<compile_context>
chip_gen: v7x
topology: tpu7x:2x2x1
jax: 0.10.0
libtpu: 0.0.40
codegen_flags: <defaults>
</compile_context>

<pallas_src>
import math
import functools

import jax
import jax.numpy as jnp
from jax.experimental import pallas as pl
from jax.experimental.pallas import tpu as pltpu

# ----------------------- model config (small, consistent with the module) ----
ENC_N_LAYER = 2
ENC_N_HEAD = 4
ENC_D_MODEL = 32
ENC_D_FF = 64
DEC_N_LAYER = 2
DEC_N_HEAD = 4
DEC_D_MODEL = 32
DEC_D_FF = 64
D_VAE_LATENT = 16
D_EMBED = 32          # == enc_d_model == dec_d_model -> TokenEmbedding has no proj
N_TOKEN = 40
D_RFREQ_EMB = 32
D_POLYPH_EMB = 32
N_RFREQ_CLS = 8
N_POLYPH_CLS = 8

LN_EPS = 1e-5
NEG_INF = -1e9
LANE = 128
BF16 = jnp.bfloat16

_LAYER_KEYS = ('wq', 'bq', 'wk', 'bk', 'wv', 'bv', 'wo', 'bo',
               'w1', 'b1', 'w2', 'b2', 'ln1w', 'ln1b', 'ln2w', 'ln2b')
_BF16_KEYS = frozenset({'wq', 'wk', 'wv', 'wo', 'w1', 'w2'})   # MXU operands
N_LKEYS = len(_LAYER_KEYS)


# ----------------------- in-kernel building blocks ----------------------------
def _layer_norm(x, w, b):
    mean = jnp.mean(x, axis=-1, keepdims=True)
    var = jnp.mean((x - mean) ** 2, axis=-1, keepdims=True)
    return (x - mean) * jax.lax.rsqrt(var + LN_EPS) * w + b


def _transformer_layer(x, causal, seq, n_head, d_model, p):
    """One post-LN nn.TransformerEncoderLayer (MHA + ReLU FFN).

    x:      (seq, d_model) f32 activation slab (one batch element per program).
    causal: (seq, seq) boolean mask (True = attend) or None.
    Weights in `p` are bf16 (matmul operands) / f32 (biases, LayerNorm).
    1/sqrt(head_dim) is pre-folded into wq/bq at init time.
    """
    hd = d_model // n_head
    xb = x.astype(BF16)

    # --- three separate projections; each result starts at lane 0 (no slicing)
    q = (jnp.dot(xb, p['wq'], preferred_element_type=jnp.float32) + p['bq'])
    k = (jnp.dot(xb, p['wk'], preferred_element_type=jnp.float32) + p['bk'])
    v = (jnp.dot(xb, p['wv'], preferred_element_type=jnp.float32) + p['bv'])
    q = q.reshape(seq, n_head, hd)
    k = k.reshape(seq, n_head, hd)
    v = v.reshape(seq, n_head, hd)

    # --- all heads in one batched matmul + one softmax
    s = jnp.einsum('qhd,khd->hqk', q.astype(BF16), k.astype(BF16),
                   preferred_element_type=jnp.float32)            # (H, S, S)
    if causal is not None:
        s = jnp.where(causal, s, NEG_INF)                         # broadcast over H
    s = s - jnp.max(s, axis=-1, keepdims=True)
    prob = jnp.exp(s)
    prob = prob * pl.reciprocal(jnp.sum(prob, axis=-1, keepdims=True), approx=True)

    ctx = jnp.einsum('hqk,khd->qhd', prob.astype(BF16), v.astype(BF16),
                     preferred_element_type=jnp.float32)          # (S, H, hd)
    attn = (jnp.dot(ctx.reshape(seq, d_model).astype(BF16), p['wo'],
                    preferred_element_type=jnp.float32) + p['bo'])

    # residual + LayerNorm 1 (f32)
    y = _layer_norm(x + attn, p['ln1w'], p['ln1b'])
    # FFN (ReLU)
    h1 = jnp.maximum(jnp.dot(y.astype(BF16), p['w1'],
                             preferred_element_type=jnp.float32) + p['b1'], 0.0)
    ff = jnp.dot(h1.astype(BF16), p['w2'],
                 preferred_element_type=jnp.float32) + p['b2']
    # residual + LayerNorm 2 (f32)
    return _layer_norm(y + ff, p['ln2w'], p['ln2b'])


def _layer_dict(stacked_refs, l):
    return {k: stacked_refs[i][l] for i, k in enumerate(_LAYER_KEYS)}


# ----------------------- fused kernels -----------------------------------------
def _encoder_kernel(*refs, n_layer, n_head, d_model, seq):
    """All encoder layers + (fc_mu | fc_logvar) head, one batch element/program."""
    x_ref = refs[0]
    stacked = refs[1:1 + N_LKEYS]
    head_w_ref = refs[1 + N_LKEYS]
    head_b_ref = refs[2 + N_LKEYS]
    o_ref = refs[3 + N_LKEYS]

    x = x_ref[0]                                          # (seq, D) f32
    for l in range(n_layer):                              # unrolled, weights resident
        x = _transformer_layer(x, None, seq, n_head, d_model,
                               _layer_dict(stacked, l))
    # Head applied to first 8 rows only (row 0 == hidden_out consumed host-side);
    # lane-dense 128-wide zero-padded (mu|logvar) projection, unmasked store.
    h8 = x[:8, :]
    o_ref[0] = (jnp.dot(h8.astype(BF16), head_w_ref[...],
                        preferred_element_type=jnp.float32) + head_b_ref[...])


def _decoder_kernel(*refs, n_layer, n_head, d_model, seq):
    """seg_emb_proj + in-attn conditioning + decoder layers + logits head."""
    x_ref, seg_ref, segw_ref = refs[0], refs[1], refs[2]
    stacked = refs[3:3 + N_LKEYS]
    outw_ref = refs[3 + N_LKEYS]
    outb_ref = refs[4 + N_LKEYS]
    o_ref = refs[5 + N_LKEYS]

    x = x_ref[0]                                          # (seq, D) f32
    seg = jnp.dot(seg_ref[0].astype(BF16), segw_ref[...],
                  preferred_element_type=jnp.float32)     # (seq, D), no bias

    # (seq, seq) boolean causal mask, generated in-kernel, shared by all heads.
    rows = jax.lax.broadcasted_iota(jnp.int32, (seq, seq), 0)
    cols = jax.lax.broadcasted_iota(jnp.int32, (seq, seq), 1)
    causal = rows >= cols

    for l in range(n_layer):
        x = x + seg                                       # cond_mode='in-attn'
        x = _transformer_layer(x, causal, seq, n_head, d_model,
                               _layer_dict(stacked, l))
    # lane-dense (128-wide, zero-padded) vocab projection
    o_ref[0] = (jnp.dot(x.astype(BF16), outw_ref[...],
                        preferred_element_type=jnp.float32) + outb_ref[...])


def _const_spec(arr):
    nd = arr.ndim
    return pl.BlockSpec(arr.shape, lambda b, _nd=nd: (0,) * _nd)


def fused_encoder(x3, enc_stack, head_w, head_b, *, n_head, d_model):
    Be, S, D = x3.shape
    n_layer = enc_stack[0].shape[0]
    kernel = functools.partial(_encoder_kernel, n_layer=n_layer, n_head=n_head,
                               d_model=d_model, seq=S)
    weights = list(enc_stack) + [head_w, head_b]
    return pl.pallas_call(
        kernel,
        grid=(Be,),
        out_shape=jax.ShapeDtypeStruct((Be, 8, head_w.shape[1]), jnp.float32),
        in_specs=[pl.BlockSpec((1, S, D), lambda b: (b, 0, 0))]
                 + [_const_spec(w) for w in weights],
        out_specs=pl.BlockSpec((1, 8, head_w.shape[1]), lambda b: (b, 0, 0)),
        compiler_params=pltpu.CompilerParams(dimension_semantics=("parallel",)),
    )(x3, *weights)


def fused_decoder(x3, seg3, seg_w, dec_stack, out_w, out_b, *, n_head, d_model):
    B, S, D = x3.shape
    d_seg = seg3.shape[-1]
    n_layer = dec_stack[0].shape[0]
    kernel = functools.partial(_decoder_kernel, n_layer=n_layer, n_head=n_head,
                               d_model=d_model, seq=S)
    weights = [seg_w] + list(dec_stack) + [out_w, out_b]
    return pl.pallas_call(
        kernel,
        grid=(B,),
        out_shape=jax.ShapeDtypeStruct((B, S, out_w.shape[1]), jnp.float32),
        in_specs=[pl.BlockSpec((1, S, D), lambda b: (b, 0, 0)),
                  pl.BlockSpec((1, S, d_seg), lambda b: (b, 0, 0))]
                 + [_const_spec(w) for w in weights],
        out_specs=pl.BlockSpec((1, S, out_w.shape[1]), lambda b: (b, 0, 0)),
        compiler_params=pltpu.CompilerParams(dimension_semantics=("parallel",)),
    )(x3, seg3, *weights)


# ----------------------- parameters (deterministic synthetic init) ------------
def _layer_params(keys, d_model, d_ff):
    nrm = lambda shape, std: (std * jax.random.normal(next(keys), shape)).astype(jnp.float32)
    zeros = lambda shape: jnp.zeros(shape, jnp.float32)
    return {
        'wq': nrm((d_model, d_model), 0.02), 'bq': zeros((1, d_model)),
        'wk': nrm((d_model, d_model), 0.02), 'bk': zeros((1, d_model)),
        'wv': nrm((d_model, d_model), 0.02), 'bv': zeros((1, d_model)),
        'wo': nrm((d_model, d_model), 0.02), 'bo': zeros((1, d_model)),
        'w1': nrm((d_model, d_ff), 0.02),    'b1': zeros((1, d_ff)),
        'w2': nrm((d_ff, d_model), 0.02),    'b2': zeros((1, d_model)),
        'ln1w': 1.0 + nrm((1, d_model), 0.01), 'ln1b': zeros((1, d_model)),
        'ln2w': 1.0 + nrm((1, d_model), 0.01), 'ln2b': zeros((1, d_model)),
    }


def init_params(key):
    keys = iter(jax.random.split(key, 128))
    nrm = lambda shape, std: (std * jax.random.normal(next(keys), shape)).astype(jnp.float32)
    p = {}
    p['token_emb'] = nrm((N_TOKEN, D_EMBED), 0.01)
    p['rfreq_emb'] = nrm((N_RFREQ_CLS, D_RFREQ_EMB), 0.01)
    p['polyph_emb'] = nrm((N_POLYPH_CLS, D_POLYPH_EMB), 0.01)
    p['enc_layers'] = [_layer_params(keys, ENC_D_MODEL, ENC_D_FF) for _ in range(ENC_N_LAYER)]
    p['fc_mu_w'] = nrm((ENC_D_MODEL, D_VAE_LATENT), 0.01)
    p['fc_mu_b'] = jnp.zeros((1, D_VAE_LATENT), jnp.float32)
    p['fc_logvar_w'] = nrm((ENC_D_MODEL, D_VAE_LATENT), 0.01)
    p['fc_logvar_b'] = jnp.zeros((1, D_VAE_LATENT), jnp.float32)
    d_seg = D_VAE_LATENT + D_RFREQ_EMB + D_POLYPH_EMB
    p['seg_proj_w'] = nrm((d_seg, DEC_D_MODEL), 0.01)          # cond_mode='in-attn', no bias
    p['dec_layers'] = [_layer_params(keys, DEC_D_MODEL, DEC_D_FF) for _ in range(DEC_N_LAYER)]
    p['dec_out_w'] = nrm((DEC_D_MODEL, N_TOKEN), 0.01)
    p['dec_out_b'] = jnp.zeros((1, N_TOKEN), jnp.float32)
    return p


def _stack_layers(layers, d_model, n_head):
    """Stack per-layer params along a leading layer axis, fold 1/sqrt(hd) into
    the Q projection, and down-cast MXU operands to bf16 (done ONCE at init)."""
    scale = 1.0 / math.sqrt(d_model // n_head)
    out = []
    for k in _LAYER_KEYS:
        arr = jnp.stack([lp[k] for lp in layers], axis=0)
        if k in ('wq', 'bq'):
            arr = arr * scale
        if k in _BF16_KEYS:
            arr = arr.astype(BF16)
        out.append(arr)
    return tuple(out)


def prepare_params(params):
    """One-time host-side weight prep: stacking, scale folding, lane padding,
    bf16 casts -- kernel inputs become stable buffers across forward calls."""
    head_w = jnp.pad(jnp.concatenate([params['fc_mu_w'], params['fc_logvar_w']], axis=1),
                     ((0, 0), (0, LANE - 2 * D_VAE_LATENT))).astype(BF16)
    head_b = jnp.pad(jnp.concatenate([params['fc_mu_b'], params['fc_logvar_b']], axis=1),
                     ((0, 0), (0, LANE - 2 * D_VAE_LATENT)))
    out_w = jnp.pad(params['dec_out_w'], ((0, 0), (0, LANE - N_TOKEN))).astype(BF16)
    out_b = jnp.pad(params['dec_out_b'], ((0, 0), (0, LANE - N_TOKEN)))
    return {
        'token_emb': params['token_emb'],
        'rfreq_emb': params['rfreq_emb'],
        'polyph_emb': params['polyph_emb'],
        'enc_stack': _stack_layers(params['enc_layers'], ENC_D_MODEL, ENC_N_HEAD),
        'head_w': head_w, 'head_b': head_b,
        'seg_w': params['seg_proj_w'].astype(BF16),
        'dec_stack': _stack_layers(params['dec_layers'], DEC_D_MODEL, DEC_N_HEAD),
        'out_w': out_w, 'out_b': out_b,
    }


# ----------------------- glue helpers ------------------------------------------
def positional_encoding(seq_len, d):
    position = jnp.arange(seq_len, dtype=jnp.float32)[:, None]
    div_term = jnp.exp(jnp.arange(0, d, 2, dtype=jnp.float32) * (-math.log(10000.0) / d))
    pe = jnp.zeros((seq_len, d), jnp.float32)
    pe = pe.at[:, 0::2].set(jnp.sin(position * div_term))
    pe = pe.at[:, 1::2].set(jnp.cos(position * div_term))
    return pe  # (S, d)


# ----------------------- forward pass -------------------------------------------
def musemorphose_forward(prep, enc_inp, dec_inp, dec_inp_bar_pos,
                         rfreq_cls, polyph_cls, latent_key):
    S_e, B, NB = enc_inp.shape
    S_d = dec_inp.shape[0]
    D = ENC_D_MODEL
    emb_scale = math.sqrt(D)          # TokenEmbedding emb_scale = d_proj**0.5

    # --- token embeddings (gather) + scale + positional encoding ---
    enc_emb = prep['token_emb'][enc_inp] * emb_scale            # (S_e, B, NB, D)
    dec_emb = prep['token_emb'][dec_inp] * emb_scale            # (S_d, B, D)
    pe_e = positional_encoding(S_e, D_EMBED)
    pe_d = positional_encoding(S_d, D_EMBED)

    Be = B * NB
    # flatten bars like torch reshape(S_e, -1, D): (b, bar) with bar fastest
    enc_x = enc_emb.reshape(S_e, Be, D) + pe_e[:, None, :]
    enc_x = jnp.transpose(enc_x, (1, 0, 2))                     # (Be, S_e, D)
    dec_x = jnp.transpose(dec_emb + pe_d[:, None, :], (1, 0, 2))  # (B, S_d, D)

    # --- fused VAE transformer encoder + fc_mu/fc_logvar (one pallas_call) ---
    # TODO(synk): the all-zero encoder padding mask of the reference is dropped.
    enc_head = fused_encoder(enc_x, prep['enc_stack'], prep['head_w'], prep['head_b'],
                             n_head=ENC_N_HEAD, d_model=D)      # (Be, 8, 128)
    hidden_head = enc_head[:, 0, :]                             # == out[0, :, :]
    mu = hidden_head[:, :D_VAE_LATENT]
    logvar = hidden_head[:, D_VAE_LATENT:2 * D_VAE_LATENT]

    # --- reparameterize (use_sampling=True, sampling_var=1.0) ---
    std = jnp.exp(0.5 * logvar)
    eps = jax.random.normal(latent_key, std.shape, jnp.float32)
    vae_latent = eps * std + mu
    latent_r = vae_latent.reshape(B, NB, D_VAE_LATENT)

    # --- dec_seg_emb: copy each bar's latent over its decoder positions ---
    t = jnp.arange(S_d)
    st = dec_inp_bar_pos[:, :-1]                                # (B, NB)
    ed = dec_inp_bar_pos[:, 1:]
    sel = ((t[None, :, None] >= st[:, None, :]) &
           (t[None, :, None] < ed[:, None, :])).astype(jnp.float32)   # (B, S_d, NB)
    dec_seg_emb = jnp.einsum('bsn,bnd->bsd', sel, latent_r)     # (B, S_d, d_lat)

    # --- attribute embeddings + concat ---
    rf_emb = jnp.transpose(prep['rfreq_emb'][rfreq_cls] * math.sqrt(D_RFREQ_EMB), (1, 0, 2))
    pp_emb = jnp.transpose(prep['polyph_emb'][polyph_cls] * math.sqrt(D_POLYPH_EMB), (1, 0, 2))
    seg_cat = jnp.concatenate([dec_seg_emb, rf_emb, pp_emb], axis=-1)   # (B, S_d, 80)

    # --- fused VAE transformer decoder (seg_proj + in-attn add + layers + logits) ---
    # Pad seq to a sublane multiple; the causal mask keeps padded keys away from
    # real queries, pad rows are sliced off host-side.
    Sp = ((S_d + 7) // 8) * 8
    pad = Sp - S_d
    if pad:
        dec_x = jnp.pad(dec_x, ((0, 0), (0, pad), (0, 0)))
        seg_cat = jnp.pad(seg_cat, ((0, 0), (0, pad), (0, 0)))
    logits_pad = fused_decoder(dec_x, seg_cat, prep['seg_w'], prep['dec_stack'],
                               prep['out_w'], prep['out_b'],
                               n_head=DEC_N_HEAD, d_model=DEC_D_MODEL)   # (B, Sp, 128)
    logits = logits_pad[:, :S_d, :N_TOKEN]
    dec_logits = jnp.transpose(logits, (1, 0, 2))               # (S_d, B, n_token)
    return mu, logvar, dec_logits


# ----------------------- demo ----------------------------------------------------
if __name__ == "__main__":
    key = jax.random.PRNGKey(0)
    k_param, k_enc, k_dec, k_rf, k_pp, k_lat = jax.random.split(key, 6)

    S_e, B, NB = 8, 2, 2        # enc_inp: (enc_seqlen, batch, n_bars) of token ids
    S_d = 12                    # dec_inp: (dec_seqlen, batch)

    params = init_params(k_param)
    prep = prepare_params(params)   # one-time weight stacking / padding / bf16 cast

    enc_inp = jax.random.randint(k_enc, (S_e, B, NB), 0, N_TOKEN, dtype=jnp.int32)
    dec_inp = jax.random.randint(k_dec, (S_d, B), 0, N_TOKEN, dtype=jnp.int32)
    dec_inp_bar_pos = jnp.array([[0, 6, 12], [0, 5, 12]], dtype=jnp.int32)   # (B, NB+1)
    rfreq_cls = jax.random.randint(k_rf, (S_d, B), 0, N_RFREQ_CLS, dtype=jnp.int32)
    polyph_cls = jax.random.randint(k_pp, (S_d, B), 0, N_POLYPH_CLS, dtype=jnp.int32)

    fwd = jax.jit(musemorphose_forward)
    mu, logvar, dec_logits = fwd(prep, enc_inp, dec_inp, dec_inp_bar_pos,
                                 rfreq_cls, polyph_cls, k_lat)
    jax.block_until_ready((mu, logvar, dec_logits))

    assert mu.shape == (B * NB, D_VAE_LATENT)
    assert logvar.shape == (B * NB, D_VAE_LATENT)
    assert dec_logits.shape == (S_d, B, N_TOKEN)
    assert bool(jnp.all(jnp.isfinite(mu))) and bool(jnp.all(jnp.isfinite(dec_logits)))
    print("KERNEL_OK")
</pallas_src>

<mosaic_0001>
module attributes {stable_mosaic.version = 11 : i64} {
  func.func @_encoder_kernel(%arg0: i32, %arg1: memref<1x8x32xf32, #tpu.memory_space<vmem>>, %arg2: memref<2x32x32xbf16, #tpu.memory_space<vmem>>, %arg3: memref<2x1x32xf32, #tpu.memory_space<vmem>>, %arg4: memref<2x32x32xbf16, #tpu.memory_space<vmem>>, %arg5: memref<2x1x32xf32, #tpu.memory_space<vmem>>, %arg6: memref<2x32x32xbf16, #tpu.memory_space<vmem>>, %arg7: memref<2x1x32xf32, #tpu.memory_space<vmem>>, %arg8: memref<2x32x32xbf16, #tpu.memory_space<vmem>>, %arg9: memref<2x1x32xf32, #tpu.memory_space<vmem>>, %arg10: memref<2x32x64xbf16, #tpu.memory_space<vmem>>, %arg11: memref<2x1x64xf32, #tpu.memory_space<vmem>>, %arg12: memref<2x64x32xbf16, #tpu.memory_space<vmem>>, %arg13: memref<2x1x32xf32, #tpu.memory_space<vmem>>, %arg14: memref<2x1x32xf32, #tpu.memory_space<vmem>>, %arg15: memref<2x1x32xf32, #tpu.memory_space<vmem>>, %arg16: memref<2x1x32xf32, #tpu.memory_space<vmem>>, %arg17: memref<2x1x32xf32, #tpu.memory_space<vmem>>, %arg18: memref<32x128xbf16, #tpu.memory_space<vmem>>, %arg19: memref<1x128xf32, #tpu.memory_space<vmem>>, %arg20: memref<1x8x128xf32, #tpu.memory_space<vmem>>) attributes {dimension_semantics = [#tpu.dimension_semantics<parallel>], iteration_bounds = array<i64: 4>, scalar_prefetch = 0 : i64, scratch_operands = 0 : i64, tpu.core_type = #tpu.core_type<tc>, window_params = [{transform_indices = @transform_0, window_bounds = array<i64: 1, 8, 32>}, {pipeline_mode = #tpu.pipeline_mode<synchronous>, transform_indices = @transform_1, window_bounds = array<i64: 2, 32, 32>}, {pipeline_mode = #tpu.pipeline_mode<synchronous>, transform_indices = @transform_2, window_bounds = array<i64: 2, 1, 32>}, {pipeline_mode = #tpu.pipeline_mode<synchronous>, transform_indices = @transform_3, window_bounds = array<i64: 2, 32, 32>}, {pipeline_mode = #tpu.pipeline_mode<synchronous>, transform_indices = @transform_4, window_bounds = array<i64: 2, 1, 32>}, {pipeline_mode = #tpu.pipeline_mode<synchronous>, transform_indices = @transform_5, window_bounds = array<i64: 2, 32, 32>}, {pipeline_mode = #tpu.pipeline_mode<synchronous>, transform_indices = @transform_6, window_bounds = array<i64: 2, 1, 32>}, {pipeline_mode = #tpu.pipeline_mode<synchronous>, transform_indices = @transform_7, window_bounds = array<i64: 2, 32, 32>}, {pipeline_mode = #tpu.pipeline_mode<synchronous>, transform_indices = @transform_8, window_bounds = array<i64: 2, 1, 32>}, {pipeline_mode = #tpu.pipeline_mode<synchronous>, transform_indices = @transform_9, window_bounds = array<i64: 2, 32, 64>}, {pipeline_mode = #tpu.pipeline_mode<synchronous>, transform_indices = @transform_10, window_bounds = array<i64: 2, 1, 64>}, {pipeline_mode = #tpu.pipeline_mode<synchronous>, transform_indices = @transform_11, window_bounds = array<i64: 2, 64, 32>}, {pipeline_mode = #tpu.pipeline_mode<synchronous>, transform_indices = @transform_12, window_bounds = array<i64: 2, 1, 32>}, {pipeline_mode = #tpu.pipeline_mode<synchronous>, transform_indices = @transform_13, window_bounds = array<i64: 2, 1, 32>}, {pipeline_mode = #tpu.pipeline_mode<synchronous>, transform_indices = @transform_14, window_bounds = array<i64: 2, 1, 32>}, {pipeline_mode = #tpu.pipeline_mode<synchronous>, transform_indices = @transform_15, window_bounds = array<i64: 2, 1, 32>}, {pipeline_mode = #tpu.pipeline_mode<synchronous>, transform_indices = @transform_16, window_bounds = array<i64: 2, 1, 32>}, {pipeline_mode = #tpu.pipeline_mode<synchronous>, transform_indices = @transform_17, window_bounds = array<i64: 32, 128>}, {pipeline_mode = #tpu.pipeline_mode<synchronous>, transform_indices = @transform_18, window_bounds = array<i64: 1, 128>}, {transform_indices = @transform_19, window_bounds = array<i64: 1, 8, 128>}]} {
    %c0 = arith.constant 0 : index
    %c0_0 = arith.constant 0 : index
    %c0_1 = arith.constant 0 : index
    %0 = vector.load %arg1[%c0, %c0_0, %c0_1] : memref<1x8x32xf32, #tpu.memory_space<vmem>>, vector<1x8x32xf32>
    %1 = vector.shape_cast %0 : vector<1x8x32xf32> to vector<8x32xf32>
    %c0_2 = arith.constant 0 : index
    %c0_3 = arith.constant 0 : index
    %c0_4 = arith.constant 0 : index
    %2 = vector.load %arg2[%c0_2, %c0_3, %c0_4] : memref<2x32x32xbf16, #tpu.memory_space<vmem>>, vector<1x32x32xbf16>
    %3 = vector.shape_cast %2 : vector<1x32x32xbf16> to vector<32x32xbf16>
    %c0_5 = arith.constant 0 : index
    %c0_6 = arith.constant 0 : index
    %c0_7 = arith.constant 0 : index
    %4 = vector.load %arg3[%c0_5, %c0_6, %c0_7] : memref<2x1x32xf32, #tpu.memory_space<vmem>>, vector<1x1x32xf32>
    %5 = vector.shape_cast %4 : vector<1x1x32xf32> to vector<1x32xf32>
    %c0_8 = arith.constant 0 : index
    %c0_9 = arith.constant 0 : index
    %c0_10 = arith.constant 0 : index
    %6 = vector.load %arg4[%c0_8, %c0_9, %c0_10] : memref<2x32x32xbf16, #tpu.memory_space<vmem>>, vector<1x32x32xbf16>
    %7 = vector.shape_cast %6 : vector<1x32x32xbf16> to vector<32x32xbf16>
    %c0_11 = arith.constant 0 : index
    %c0_12 = arith.constant 0 : index
    %c0_13 = arith.constant 0 : index
    %8 = vector.load %arg5[%c0_11, %c0_12, %c0_13] : memref<2x1x32xf32, #tpu.memory_space<vmem>>, vector<1x1x32xf32>
    %9 = vector.shape_cast %8 : vector<1x1x32xf32> to vector<1x32xf32>
    %c0_14 = arith.constant 0 : index
    %c0_15 = arith.constant 0 : index
    %c0_16 = arith.constant 0 : index
    %10 = vector.load %arg6[%c0_14, %c0_15, %c0_16] : memref<2x32x32xbf16, #tpu.memory_space<vmem>>, vector<1x32x32xbf16>
    %11 = vector.shape_cast %10 : vector<1x32x32xbf16> to vector<32x32xbf16>
    %c0_17 = arith.constant 0 : index
    %c0_18 = arith.constant 0 : index
    %c0_19 = arith.constant 0 : index
    %12 = vector.load %arg7[%c0_17, %c0_18, %c0_19] : memref<2x1x32xf32, #tpu.memory_space<vmem>>, vector<1x1x32xf32>
    %13 = vector.shape_cast %12 : vector<1x1x32xf32> to vector<1x32xf32>
    %c0_20 = arith.constant 0 : index
    %c0_21 = arith.constant 0 : index
    %c0_22 = arith.constant 0 : index
    %14 = vector.load %arg8[%c0_20, %c0_21, %c0_22] : memref<2x32x32xbf16, #tpu.memory_space<vmem>>, vector<1x32x32xbf16>
    %15 = vector.shape_cast %14 : vector<1x32x32xbf16> to vector<32x32xbf16>
    %c0_23 = arith.constant 0 : index
    %c0_24 = arith.constant 0 : index
    %c0_25 = arith.constant 0 : index
    %16 = vector.load %arg9[%c0_23, %c0_24, %c0_25] : memref<2x1x32xf32, #tpu.memory_space<vmem>>, vector<1x1x32xf32>
    %17 = vector.shape_cast %16 : vector<1x1x32xf32> to vector<1x32xf32>
    %c0_26 = arith.constant 0 : index
    %c0_27 = arith.constant 0 : index
    %c0_28 = arith.constant 0 : index
    %18 = vector.load %arg10[%c0_26, %c0_27, %c0_28] : memref<2x32x64xbf16, #tpu.memory_space<vmem>>, vector<1x32x64xbf16>
    %19 = vector.shape_cast %18 : vector<1x32x64xbf16> to vector<32x64xbf16>
    %c0_29 = arith.constant 0 : index
    %c0_30 = arith.constant 0 : index
    %c0_31 = arith.constant 0 : index
    %20 = vector.load %arg11[%c0_29, %c0_30, %c0_31] : memref<2x1x64xf32, #tpu.memory_space<vmem>>, vector<1x1x64xf32>
    %21 = vector.shape_cast %20 : vector<1x1x64xf32> to vector<1x64xf32>
    %c0_32 = arith.constant 0 : index
    %c0_33 = arith.constant 0 : index
    %c0_34 = arith.constant 0 : index
    %22 = vector.load %arg12[%c0_32, %c0_33, %c0_34] : memref<2x64x32xbf16, #tpu.memory_space<vmem>>, vector<1x64x32xbf16>
    %23 = vector.shape_cast %22 : vector<1x64x32xbf16> to vector<64x32xbf16>
    %c0_35 = arith.constant 0 : index
    %c0_36 = arith.constant 0 : index
    %c0_37 = arith.constant 0 : index
    %24 = vector.load %arg13[%c0_35, %c0_36, %c0_37] : memref<2x1x32xf32, #tpu.memory_space<vmem>>, vector<1x1x32xf32>
    %25 = vector.shape_cast %24 : vector<1x1x32xf32> to vector<1x32xf32>
    %c0_38 = arith.constant 0 : index
    %c0_39 = arith.constant 0 : index
    %c0_40 = arith.constant 0 : index
    %26 = vector.load %arg14[%c0_38, %c0_39, %c0_40] : memref<2x1x32xf32, #tpu.memory_space<vmem>>, vector<1x1x32xf32>
    %27 = vector.shape_cast %26 : vector<1x1x32xf32> to vector<1x32xf32>
    %c0_41 = arith.constant 0 : index
    %c0_42 = arith.constant 0 : index
    %c0_43 = arith.constant 0 : index
    %28 = vector.load %arg15[%c0_41, %c0_42, %c0_43] : memref<2x1x32xf32, #tpu.memory_space<vmem>>, vector<1x1x32xf32>
    %29 = vector.shape_cast %28 : vector<1x1x32xf32> to vector<1x32xf32>
    %c0_44 = arith.constant 0 : index
    %c0_45 = arith.constant 0 : index
    %c0_46 = arith.constant 0 : index
    %30 = vector.load %arg16[%c0_44, %c0_45, %c0_46] : memref<2x1x32xf32, #tpu.memory_space<vmem>>, vector<1x1x32xf32>
    %31 = vector.shape_cast %30 : vector<1x1x32xf32> to vector<1x32xf32>
    %c0_47 = arith.constant 0 : index
    %c0_48 = arith.constant 0 : index
    %c0_49 = arith.constant 0 : index
    %32 = vector.load %arg17[%c0_47, %c0_48, %c0_49] : memref<2x1x32xf32, #tpu.memory_space<vmem>>, vector<1x1x32xf32>
    %33 = vector.shape_cast %32 : vector<1x1x32xf32> to vector<1x32xf32>
    %34 = arith.truncf %1 : vector<8x32xf32> to vector<8x32xbf16>
    %cst = arith.constant dense<0.000000e+00> : vector<8x32xf32>
    %35 = tpu.matmul %34, %3, %cst {dimension_numbers = #tpu.dot_dimension_numbers<[1], [0], [0], [1], [0, 0, 1, 1], [], []>} : vector<8x32xbf16>, vector<32x32xbf16>, vector<8x32xf32> -> vector<8x32xf32>
    %36 = vector.broadcast %5 : vector<1x32xf32> to vector<8x32xf32>
    %37 = arith.addf %35, %36 : vector<8x32xf32>
    %cst_50 = arith.constant dense<0.000000e+00> : vector<8x32xf32>
    %38 = tpu.matmul %34, %7, %cst_50 {dimension_numbers = #tpu.dot_dimension_numbers<[1], [0], [0], [1], [0, 0, 1, 1], [], []>} : vector<8x32xbf16>, vector<32x32xbf16>, vector<8x32xf32> -> vector<8x32xf32>
    %39 = vector.broadcast %9 : vector<1x32xf32> to vector<8x32xf32>
    %40 = arith.addf %38, %39 : vector<8x32xf32>
    %cst_51 = arith.constant dense<0.000000e+00> : vector<8x32xf32>
    %41 = tpu.matmul %34, %11, %cst_51 {dimension_numbers = #tpu.dot_dimension_numbers<[1], [0], [0], [1], [0, 0, 1, 1], [], []>} : vector<8x32xbf16>, vector<32x32xbf16>, vector<8x32xf32> -> vector<8x32xf32>
    %42 = vector.broadcast %13 : vector<1x32xf32> to vector<8x32xf32>
    %43 = arith.addf %41, %42 : vector<8x32xf32>
    %44 = vector.shape_cast %37 : vector<8x32xf32> to vector<8x4x8xf32>
    %45 = vector.shape_cast %40 : vector<8x32xf32> to vector<8x4x8xf32>
    %46 = vector.shape_cast %43 : vector<8x32xf32> to vector<8x4x8xf32>
    %47 = arith.truncf %44 : vector<8x4x8xf32> to vector<8x4x8xbf16>
    %48 = arith.truncf %45 : vector<8x4x8xf32> to vector<8x4x8xbf16>
    "tpu.trace_start"() <{level = 10 : i32, message = "qhd,khd->hqk"}> : () -> ()
    %cst_52 = arith.constant dense<0.000000e+00> : vector<4x8x8xf32>
    %49 = tpu.matmul %47, %48, %cst_52 {dimension_numbers = #tpu.dot_dimension_numbers<[2], [2], [0], [0], [0, 1, 0, 0, 1, 0], [1], [1]>} : vector<8x4x8xbf16>, vector<8x4x8xbf16>, vector<4x8x8xf32> -> vector<4x8x8xf32>
    "tpu.trace_stop"() : () -> ()
    %cst_53 = arith.constant dense<0xFF800000> : vector<4x8xf32>
    %50 = vector.multi_reduction <maximumf>, %49, %cst_53 [2] : vector<4x8x8xf32> to vector<4x8xf32>
    %51 = vector.shape_cast %50 : vector<4x8xf32> to vector<4x8x1xf32>
    %52 = vector.broadcast %51 : vector<4x8x1xf32> to vector<4x8x8xf32>
    %53 = arith.subf %49, %52 : vector<4x8x8xf32>
    %54 = math.exp %53 : vector<4x8x8xf32>
    %cst_54 = arith.constant dense<0.000000e+00> : vector<4x8xf32>
    %55 = vector.multi_reduction <add>, %54, %cst_54 [2] : vector<4x8x8xf32> to vector<4x8xf32>
    %56 = vector.shape_cast %55 : vector<4x8xf32> to vector<4x8x1xf32>
    %57 = tpu.reciprocal %56 {approx = true} : vector<4x8x1xf32> -> vector<4x8x1xf32>
    %58 = vector.broadcast %57 : vector<4x8x1xf32> to vector<4x8x8xf32>
    %59 = arith.mulf %54, %58 : vector<4x8x8xf32>
    %60 = arith.truncf %59 : vector<4x8x8xf32> to vector<4x8x8xbf16>
    %61 = arith.truncf %46 : vector<8x4x8xf32> to vector<8x4x8xbf16>
    "tpu.trace_start"() <{level = 10 : i32, message = "hqk,khd->qhd"}> : () -> ()
    %cst_55 = arith.constant dense<0.000000e+00> : vector<4x8x8xf32>
    %62 = tpu.matmul %61, %60, %cst_55 {dimension_numbers = #tpu.dot_dimension_numbers<[0], [2], [2], [1], [0, 1, 0, 2, 1, 1], [1], [0]>} : vector<8x4x8xbf16>, vector<4x8x8xbf16>, vector<4x8x8xf32> -> vector<4x8x8xf32>
    %63 = tpu.transpose %62, [2, 0, 1] : vector<4x8x8xf32> -> vector<8x4x8xf32>
    "tpu.trace_stop"() : () -> ()
    %64 = vector.shape_cast %63 : vector<8x4x8xf32> to vector<8x32xf32>
    %65 = arith.truncf %64 : vector<8x32xf32> to vector<8x32xbf16>
    %cst_56 = arith.constant dense<0.000000e+00> : vector<8x32xf32>
    %66 = tpu.matmul %65, %15, %cst_56 {dimension_numbers = #tpu.dot_dimension_numbers<[1], [0], [0], [1], [0, 0, 1, 1], [], []>} : vector<8x32xbf16>, vector<32x32xbf16>, vector<8x32xf32> -> vector<8x32xf32>
    %67 = vector.broadcast %17 : vector<1x32xf32> to vector<8x32xf32>
    %68 = arith.addf %66, %67 : vector<8x32xf32>
    %69 = arith.addf %1, %68 : vector<8x32xf32>
    %cst_57 = arith.constant dense<0.000000e+00> : vector<8xf32>
    %70 = vector.multi_reduction <add>, %69, %cst_57 [1] : vector<8x32xf32> to vector<8xf32>
    %71 = vector.shape_cast %70 : vector<8xf32> to vector<8x1xf32>
    %cst_58 = arith.constant 3.200000e+01 : f32
    %72 = vector.broadcast %cst_58 : f32 to vector<8x1xf32>
    %73 = arith.divf %71, %72 : vector<8x1xf32>
    %74 = vector.broadcast %73 : vector<8x1xf32> to vector<8x32xf32>
    %75 = arith.subf %69, %74 : vector<8x32xf32>
    %76 = arith.mulf %75, %75 : vector<8x32xf32>
    %cst_59 = arith.constant dense<0.000000e+00> : vector<8xf32>
    %77 = vector.multi_reduction <add>, %76, %cst_59 [1] : vector<8x32xf32> to vector<8xf32>
    %78 = vector.shape_cast %77 : vector<8xf32> to vector<8x1xf32>
    %cst_60 = arith.constant 3.200000e+01 : f32
    %79 = vector.broadcast %cst_60 : f32 to vector<8x1xf32>
    %80 = arith.divf %78, %79 : vector<8x1xf32>
    %81 = vector.broadcast %73 : vector<8x1xf32> to vector<8x32xf32>
    %82 = arith.subf %69, %81 : vector<8x32xf32>
    %cst_61 = arith.constant 9.99999974E-6 : f32
    %83 = vector.broadcast %cst_61 : f32 to vector<8x1xf32>
    %84 = arith.addf %80, %83 : vector<8x1xf32>
    %85 = math.rsqrt %84 : vector<8x1xf32>
    %86 = vector.broadcast %85 : vector<8x1xf32> to vector<8x32xf32>
    %87 = arith.mulf %82, %86 : vector<8x32xf32>
    %88 = vector.broadcast %27 : vector<1x32xf32> to vector<8x32xf32>
    %89 = arith.mulf %87, %88 : vector<8x32xf32>
    %90 = vector.broadcast %29 : vector<1x32xf32> to vector<8x32xf32>
    %91 = arith.addf %89, %90 : vector<8x32xf32>
    %92 = arith.truncf %91 : vector<8x32xf32> to vector<8x32xbf16>
    %cst_62 = arith.constant dense<0.000000e+00> : vector<8x64xf32>
    %93 = tpu.matmul %92, %19, %cst_62 {dimension_numbers = #tpu.dot_dimension_numbers<[1], [0], [0], [1], [0, 0, 1, 1], [], []>} : vector<8x32xbf16>, vector<32x64xbf16>, vector<8x64xf32> -> vector<8x64xf32>
    %94 = vector.broadcast %21 : vector<1x64xf32> to vector<8x64xf32>
    %95 = arith.addf %93, %94 : vector<8x64xf32>
    %cst_63 = arith.constant 0.000000e+00 : f32
    %96 = vector.broadcast %cst_63 : f32 to vector<8x64xf32>
    %97 = arith.maximumf %95, %96 : vector<8x64xf32>
    %98 = arith.truncf %97 : vector<8x64xf32> to vector<8x64xbf16>
    %cst_64 = arith.constant dense<0.000000e+00> : vector<8x32xf32>
    %99 = tpu.matmul %98, %23, %cst_64 {dimension_numbers = #tpu.dot_dimension_numbers<[1], [0], [0], [1], [0, 0, 1, 1], [], []>} : vector<8x64xbf16>, vector<64x32xbf16>, vector<8x32xf32> -> vector<8x32xf32>
    %100 = vector.broadcast %25 : vector<1x32xf32> to vector<8x32xf32>
    %101 = arith.addf %99, %100 : vector<8x32xf32>
    %102 = arith.addf %91, %101 : vector<8x32xf32>
    %cst_65 = arith.constant dense<0.000000e+00> : vector<8xf32>
    %103 = vector.multi_reduction <add>, %102, %cst_65 [1] : vector<8x32xf32> to vector<8xf32>
    %104 = vector.shape_cast %103 : vector<8xf32> to vector<8x1xf32>
    %cst_66 = arith.constant 3.200000e+01 : f32
    %105 = vector.broadcast %cst_66 : f32 to vector<8x1xf32>
    %106 = arith.divf %104, %105 : vector<8x1xf32>
    %107 = vector.broadcast %106 : vector<8x1xf32> to vector<8x32xf32>
    %108 = arith.subf %102, %107 : vector<8x32xf32>
    %109 = arith.mulf %108, %108 : vector<8x32xf32>
    %cst_67 = arith.constant dense<0.000000e+00> : vector<8xf32>
    %110 = vector.multi_reduction <add>, %109, %cst_67 [1] : vector<8x32xf32> to vector<8xf32>
    %111 = vector.shape_cast %110 : vector<8xf32> to vector<8x1xf32>
    %cst_68 = arith.constant 3.200000e+01 : f32
    %112 = vector.broadcast %cst_68 : f32 to vector<8x1xf32>
    %113 = arith.divf %111, %112 : vector<8x1xf32>
    %114 = vector.broadcast %106 : vector<8x1xf32> to vector<8x32xf32>
    %115 = arith.subf %102, %114 : vector<8x32xf32>
    %cst_69 = arith.constant 9.99999974E-6 : f32
    %116 = vector.broadcast %cst_69 : f32 to vector<8x1xf32>
    %117 = arith.addf %113, %116 : vector<8x1xf32>
    %118 = math.rsqrt %117 : vector<8x1xf32>
    %119 = vector.broadcast %118 : vector<8x1xf32> to vector<8x32xf32>
    %120 = arith.mulf %115, %119 : vector<8x32xf32>
    %121 = vector.broadcast %31 : vector<1x32xf32> to vector<8x32xf32>
    %122 = arith.mulf %120, %121 : vector<8x32xf32>
    %123 = vector.broadcast %33 : vector<1x32xf32> to vector<8x32xf32>
    %124 = arith.addf %122, %123 : vector<8x32xf32>
    %c1 = arith.constant 1 : index
    %c0_70 = arith.constant 0 : index
    %c0_71 = arith.constant 0 : index
    %125 = vector.load %arg2[%c1, %c0_70, %c0_71] : memref<2x32x32xbf16, #tpu.memory_space<vmem>>, vector<1x32x32xbf16>
    %126 = vector.shape_cast %125 : vector<1x32x32xbf16> to vector<32x32xbf16>
    %c1_72 = arith.constant 1 : index
    %c0_73 = arith.constant 0 : index
    %c0_74 = arith.constant 0 : index
    %127 = vector.load %arg3[%c1_72, %c0_73, %c0_74] : memref<2x1x32xf32, #tpu.memory_space<vmem>>, vector<1x1x32xf32>
    %128 = vector.shape_cast %127 : vector<1x1x32xf32> to vector<1x32xf32>
    %c1_75 = arith.constant 1 : index
    %c0_76 = arith.constant 0 : index
    %c0_77 = arith.constant 0 : index
    %129 = vector.load %arg4[%c1_75, %c0_76, %c0_77] : memref<2x32x32xbf16, #tpu.memory_space<vmem>>, vector<1x32x32xbf16>
    %130 = vector.shape_cast %129 : vector<1x32x32xbf16> to vector<32x32xbf16>
    %c1_78 = arith.constant 1 : index
    %c0_79 = arith.constant 0 : index
    %c0_80 = arith.constant 0 : index
    %131 = vector.load %arg5[%c1_78, %c0_79, %c0_80] : memref<2x1x32xf32, #tpu.memory_space<vmem>>, vector<1x1x32xf32>
    %132 = vector.shape_cast %131 : vector<1x1x32xf32> to vector<1x32xf32>
    %c1_81 = arith.constant 1 : index
    %c0_82 = arith.constant 0 : index
    %c0_83 = arith.constant 0 : index
    %133 = vector.load %arg6[%c1_81, %c0_82, %c0_83] : memref<2x32x32xbf16, #tpu.memory_space<vmem>>, vector<1x32x32xbf16>
    %134 = vector.shape_cast %133 : vector<1x32x32xbf16> to vector<32x32xbf16>
    %c1_84 = arith.constant 1 : index
    %c0_85 = arith.constant 0 : index
    %c0_86 = arith.constant 0 : index
    %135 = vector.load %arg7[%c1_84, %c0_85, %c0_86] : memref<2x1x32xf32, #tpu.memory_space<vmem>>, vector<1x1x32xf32>
    %136 = vector.shape_cast %135 : vector<1x1x32xf32> to vector<1x32xf32>
    %c1_87 = arith.constant 1 : index
    %c0_88 = arith.constant 0 : index
    %c0_89 = arith.constant 0 : index
    %137 = vector.load %arg8[%c1_87, %c0_88, %c0_89] : memref<2x32x32xbf16, #tpu.memory_space<vmem>>, vector<1x32x32xbf16>
    %138 = vector.shape_cast %137 : vector<1x32x32xbf16> to vector<32x32xbf16>
    %c1_90 = arith.constant 1 : index
    %c0_91 = arith.constant 0 : index
    %c0_92 = arith.constant 0 : index
    %139 = vector.load %arg9[%c1_90, %c0_91, %c0_92] : memref<2x1x32xf32, #tpu.memory_space<vmem>>, vector<1x1x32xf32>
    %140 = vector.shape_cast %139 : vector<1x1x32xf32> to vector<1x32xf32>
    %c1_93 = arith.constant 1 : index
    %c0_94 = arith.constant 0 : index
    %c0_95 = arith.constant 0 : index
    %141 = vector.load %arg10[%c1_93, %c0_94, %c0_95] : memref<2x32x64xbf16, #tpu.memory_space<vmem>>, vector<1x32x64xbf16>
    %142 = vector.shape_cast %141 : vector<1x32x64xbf16> to vector<32x64xbf16>
    %c1_96 = arith.constant 1 : index
    %c0_97 = arith.constant 0 : index
    %c0_98 = arith.constant 0 : index
    %143 = vector.load %arg11[%c1_96, %c0_97, %c0_98] : memref<2x1x64xf32, #tpu.memory_space<vmem>>, vector<1x1x64xf32>
    %144 = vector.shape_cast %143 : vector<1x1x64xf32> to vector<1x64xf32>
    %c1_99 = arith.constant 1 : index
    %c0_100 = arith.constant 0 : index
    %c0_101 = arith.constant 0 : index
    %145 = vector.load %arg12[%c1_99, %c0_100, %c0_101] : memref<2x64x32xbf16, #tpu.memory_space<vmem>>, vector<1x64x32xbf16>
    %146 = vector.shape_cast %145 : vector<1x64x32xbf16> to vector<64x32xbf16>
    %c1_102 = arith.constant 1 : index
    %c0_103 = arith.constant 0 : index
    %c0_104 = arith.constant 0 : index
    %147 = vector.load %arg13[%c1_102, %c0_103, %c0_104] : memref<2x1x32xf32, #tpu.memory_space<vmem>>, vector<1x1x32xf32>
    %148 = vector.shape_cast %147 : vector<1x1x32xf32> to vector<1x32xf32>
    %c1_105 = arith.constant 1 : index
    %c0_106 = arith.constant 0 : index
    %c0_107 = arith.constant 0 : index
    %149 = vector.load %arg14[%c1_105, %c0_106, %c0_107] : memref<2x1x32xf32, #tpu.memory_space<vmem>>, vector<1x1x32xf32>
    %150 = vector.shape_cast %149 : vector<1x1x32xf32> to vector<1x32xf32>
    %c1_108 = arith.constant 1 : index
    %c0_109 = arith.constant 0 : index
    %c0_110 = arith.constant 0 : index
    %151 = vector.load %arg15[%c1_108, %c0_109, %c0_110] : memref<2x1x32xf32, #tpu.memory_space<vmem>>, vector<1x1x32xf32>
    %152 = vector.shape_cast %151 : vector<1x1x32xf32> to vector<1x32xf32>
    %c1_111 = arith.constant 1 : index
    %c0_112 = arith.constant 0 : index
    %c0_113 = arith.constant 0 : index
    %153 = vector.load %arg16[%c1_111, %c0_112, %c0_113] : memref<2x1x32xf32, #tpu.memory_space<vmem>>, vector<1x1x32xf32>
    %154 = vector.shape_cast %153 : vector<1x1x32xf32> to vector<1x32xf32>
    %c1_114 = arith.constant 1 : index
    %c0_115 = arith.constant 0 : index
    %c0_116 = arith.constant 0 : index
    %155 = vector.load %arg17[%c1_114, %c0_115, %c0_116] : memref<2x1x32xf32, #tpu.memory_space<vmem>>, vector<1x1x32xf32>
    %156 = vector.shape_cast %155 : vector<1x1x32xf32> to vector<1x32xf32>
    %157 = arith.truncf %124 : vector<8x32xf32> to vector<8x32xbf16>
    %cst_117 = arith.constant dense<0.000000e+00> : vector<8x32xf32>
    %158 = tpu.matmul %157, %126, %cst_117 {dimension_numbers = #tpu.dot_dimension_numbers<[1], [0], [0], [1], [0, 0, 1, 1], [], []>} : vector<8x32xbf16>, vector<32x32xbf16>, vector<8x32xf32> -> vector<8x32xf32>
    %159 = vector.broadcast %128 : vector<1x32xf32> to vector<8x32xf32>
    %160 = arith.addf %158, %159 : vector<8x32xf32>
    %cst_118 = arith.constant dense<0.000000e+00> : vector<8x32xf32>
    %161 = tpu.matmul %157, %130, %cst_118 {dimension_numbers = #tpu.dot_dimension_numbers<[1], [0], [0], [1], [0, 0, 1, 1], [], []>} : vector<8x32xbf16>, vector<32x32xbf16>, vector<8x32xf32> -> vector<8x32xf32>
    %162 = vector.broadcast %132 : vector<1x32xf32> to vector<8x32xf32>
    %163 = arith.addf %161, %162 : vector<8x32xf32>
    %cst_119 = arith.constant dense<0.000000e+00> : vector<8x32xf32>
    %164 = tpu.matmul %157, %134, %cst_119 {dimension_numbers = #tpu.dot_dimension_numbers<[1], [0], [0], [1], [0, 0, 1, 1], [], []>} : vector<8x32xbf16>, vector<32x32xbf16>, vector<8x32xf32> -> vector<8x32xf32>
    %165 = vector.broadcast %136 : vector<1x32xf32> to vector<8x32xf32>
    %166 = arith.addf %164, %165 : vector<8x32xf32>
    %167 = vector.shape_cast %160 : vector<8x32xf32> to vector<8x4x8xf32>
    %168 = vector.shape_cast %163 : vector<8x32xf32> to vector<8x4x8xf32>
    %169 = vector.shape_cast %166 : vector<8x32xf32> to vector<8x4x8xf32>
    %170 = arith.truncf %167 : vector<8x4x8xf32> to vector<8x4x8xbf16>
    %171 = arith.truncf %168 : vector<8x4x8xf32> to vector<8x4x8xbf16>
    "tpu.trace_start"() <{level = 10 : i32, message = "qhd,khd->hqk"}> : () -> ()
    %cst_120 = arith.constant dense<0.000000e+00> : vector<4x8x8xf32>
    %172 = tpu.matmul %170, %171, %cst_120 {dimension_numbers = #tpu.dot_dimension_numbers<[2], [2], [0], [0], [0, 1, 0, 0, 1, 0], [1], [1]>} : vector<8x4x8xbf16>, vector<8x4x8xbf16>, vector<4x8x8xf32> -> vector<4x8x8xf32>
    "tpu.trace_stop"() : () -> ()
    %cst_121 = arith.constant dense<0xFF800000> : vector<4x8xf32>
    %173 = vector.multi_reduction <maximumf>, %172, %cst_121 [2] : vector<4x8x8xf32> to vector<4x8xf32>
    %174 = vector.shape_cast %173 : vector<4x8xf32> to vector<4x8x1xf32>
    %175 = vector.broadcast %174 : vector<4x8x1xf32> to vector<4x8x8xf32>
    %176 = arith.subf %172, %175 : vector<4x8x8xf32>
    %177 = math.exp %176 : vector<4x8x8xf32>
    %cst_122 = arith.constant dense<0.000000e+00> : vector<4x8xf32>
    %178 = vector.multi_reduction <add>, %177, %cst_122 [2] : vector<4x8x8xf32> to vector<4x8xf32>
    %179 = vector.shape_cast %178 : vector<4x8xf32> to vector<4x8x1xf32>
    %180 = tpu.reciprocal %179 {approx = true} : vector<4x8x1xf32> -> vector<4x8x1xf32>
    %181 = vector.broadcast %180 : vector<4x8x1xf32> to vector<4x8x8xf32>
    %182 = arith.mulf %177, %181 : vector<4x8x8xf32>
    %183 = arith.truncf %182 : vector<4x8x8xf32> to vector<4x8x8xbf16>
    %184 = arith.truncf %169 : vector<8x4x8xf32> to vector<8x4x8xbf16>
    "tpu.trace_start"() <{level = 10 : i32, message = "hqk,khd->qhd"}> : () -> ()
    %cst_123 = arith.constant dense<0.000000e+00> : vector<4x8x8xf32>
    %185 = tpu.matmul %184, %183, %cst_123 {dimension_numbers = #tpu.dot_dimension_numbers<[0], [2], [2], [1], [0, 1, 0, 2, 1, 1], [1], [0]>} : vector<8x4x8xbf16>, vector<4x8x8xbf16>, vector<4x8x8xf32> -> vector<4x8x8xf32>
    %186 = tpu.transpose %185, [2, 0, 1] : vector<4x8x8xf32> -> vector<8x4x8xf32>
    "tpu.trace_stop"() : () -> ()
    %187 = vector.shape_cast %186 : vector<8x4x8xf32> to vector<8x32xf32>
    %188 = arith.truncf %187 : vector<8x32xf32> to vector<8x32xbf16>
    %cst_124 = arith.constant dense<0.000000e+00> : vector<8x32xf32>
    %189 = tpu.matmul %188, %138, %cst_124 {dimension_numbers = #tpu.dot_dimension_numbers<[1], [0], [0], [1], [0, 0, 1, 1], [], []>} : vector<8x32xbf16>, vector<32x32xbf16>, vector<8x32xf32> -> vector<8x32xf32>
    %190 = vector.broadcast %140 : vector<1x32xf32> to vector<8x32xf32>
    %191 = arith.addf %189, %190 : vector<8x32xf32>
    %192 = arith.addf %124, %191 : vector<8x32xf32>
    %cst_125 = arith.constant dense<0.000000e+00> : vector<8xf32>
    %193 = vector.multi_reduction <add>, %192, %cst_125 [1] : vector<8x32xf32> to vector<8xf32>
    %194 = vector.shape_cast %193 : vector<8xf32> to vector<8x1xf32>
    %cst_126 = arith.constant 3.200000e+01 : f32
    %195 = vector.broadcast %cst_126 : f32 to vector<8x1xf32>
    %196 = arith.divf %194, %195 : vector<8x1xf32>
    %197 = vector.broadcast %196 : vector<8x1xf32> to vector<8x32xf32>
    %198 = arith.subf %192, %197 : vector<8x32xf32>
    %199 = arith.mulf %198, %198 : vector<8x32xf32>
    %cst_127 = arith.constant dense<0.000000e+00> : vector<8xf32>
    %200 = vector.multi_reduction <add>, %199, %cst_127 [1] : vector<8x32xf32> to vector<8xf32>
    %201 = vector.shape_cast %200 : vector<8xf32> to vector<8x1xf32>
    %cst_128 = arith.constant 3.200000e+01 : f32
    %202 = vector.broadcast %cst_128 : f32 to vector<8x1xf32>
    %203 = arith.divf %201, %202 : vector<8x1xf32>
    %204 = vector.broadcast %196 : vector<8x1xf32> to vector<8x32xf32>
    %205 = arith.subf %192, %204 : vector<8x32xf32>
    %cst_129 = arith.constant 9.99999974E-6 : f32
    %206 = vector.broadcast %cst_129 : f32 to vector<8x1xf32>
    %207 = arith.addf %203, %206 : vector<8x1xf32>
    %208 = math.rsqrt %207 : vector<8x1xf32>
    %209 = vector.broadcast %208 : vector<8x1xf32> to vector<8x32xf32>
    %210 = arith.mulf %205, %209 : vector<8x32xf32>
    %211 = vector.broadcast %150 : vector<1x32xf32> to vector<8x32xf32>
    %212 = arith.mulf %210, %211 : vector<8x32xf32>
    %213 = vector.broadcast %152 : vector<1x32xf32> to vector<8x32xf32>
    %214 = arith.addf %212, %213 : vector<8x32xf32>
    %215 = arith.truncf %214 : vector<8x32xf32> to vector<8x32xbf16>
    %cst_130 = arith.constant dense<0.000000e+00> : vector<8x64xf32>
    %216 = tpu.matmul %215, %142, %cst_130 {dimension_numbers = #tpu.dot_dimension_numbers<[1], [0], [0], [1], [0, 0, 1, 1], [], []>} : vector<8x32xbf16>, vector<32x64xbf16>, vector<8x64xf32> -> vector<8x64xf32>
    %217 = vector.broadcast %144 : vector<1x64xf32> to vector<8x64xf32>
    %218 = arith.addf %216, %217 : vector<8x64xf32>
    %cst_131 = arith.constant 0.000000e+00 : f32
    %219 = vector.broadcast %cst_131 : f32 to vector<8x64xf32>
    %220 = arith.maximumf %218, %219 : vector<8x64xf32>
    %221 = arith.truncf %220 : vector<8x64xf32> to vector<8x64xbf16>
    %cst_132 = arith.constant dense<0.000000e+00> : vector<8x32xf32>
    %222 = tpu.matmul %221, %146, %cst_132 {dimension_numbers = #tpu.dot_dimension_numbers<[1], [0], [0], [1], [0, 0, 1, 1], [], []>} : vector<8x64xbf16>, vector<64x32xbf16>, vector<8x32xf32> -> vector<8x32xf32>
    %223 = vector.broadcast %148 : vector<1x32xf32> to vector<8x32xf32>
    %224 = arith.addf %222, %223 : vector<8x32xf32>
    %225 = arith.addf %214, %224 : vector<8x32xf32>
    %cst_133 = arith.constant dense<0.000000e+00> : vector<8xf32>
    %226 = vector.multi_reduction <add>, %225, %cst_133 [1] : vector<8x32xf32> to vector<8xf32>
    %227 = vector.shape_cast %226 : vector<8xf32> to vector<8x1xf32>
    %cst_134 = arith.constant 3.200000e+01 : f32
    %228 = vector.broadcast %cst_134 : f32 to vector<8x1xf32>
    %229 = arith.divf %227, %228 : vector<8x1xf32>
    %230 = vector.broadcast %229 : vector<8x1xf32> to vector<8x32xf32>
    %231 = arith.subf %225, %230 : vector<8x32xf32>
    %232 = arith.mulf %231, %231 : vector<8x32xf32>
    %cst_135 = arith.constant dense<0.000000e+00> : vector<8xf32>
    %233 = vector.multi_reduction <add>, %232, %cst_135 [1] : vector<8x32xf32> to vector<8xf32>
    %234 = vector.shape_cast %233 : vector<8xf32> to vector<8x1xf32>
    %cst_136 = arith.constant 3.200000e+01 : f32
    %235 = vector.broadcast %cst_136 : f32 to vector<8x1xf32>
    %236 = arith.divf %234, %235 : vector<8x1xf32>
    %237 = vector.broadcast %229 : vector<8x1xf32> to vector<8x32xf32>
    %238 = arith.subf %225, %237 : vector<8x32xf32>
    %cst_137 = arith.constant 9.99999974E-6 : f32
    %239 = vector.broadcast %cst_137 : f32 to vector<8x1xf32>
    %240 = arith.addf %236, %239 : vector<8x1xf32>
    %241 = math.rsqrt %240 : vector<8x1xf32>
    %242 = vector.broadcast %241 : vector<8x1xf32> to vector<8x32xf32>
    %243 = arith.mulf %238, %242 : vector<8x32xf32>
    %244 = vector.broadcast %154 : vector<1x32xf32> to vector<8x32xf32>
    %245 = arith.mulf %243, %244 : vector<8x32xf32>
    %246 = vector.broadcast %156 : vector<1x32xf32> to vector<8x32xf32>
    %247 = arith.addf %245, %246 : vector<8x32xf32>
    %248 = arith.truncf %247 : vector<8x32xf32> to vector<8x32xbf16>
    %c0_138 = arith.constant 0 : index
    %c0_139 = arith.constant 0 : index
    %249 = vector.load %arg18[%c0_138, %c0_139] : memref<32x128xbf16, #tpu.memory_space<vmem>>, vector<32x128xbf16>
    %cst_140 = arith.constant dense<0.000000e+00> : vector<8x128xf32>
    %250 = tpu.matmul %248, %249, %cst_140 {dimension_numbers = #tpu.dot_dimension_numbers<[1], [0], [0], [1], [0, 0, 1, 1], [], []>} : vector<8x32xbf16>, vector<32x128xbf16>, vector<8x128xf32> -> vector<8x128xf32>
    %c0_141 = arith.constant 0 : index
    %c0_142 = arith.constant 0 : index
    %251 = vector.load %arg19[%c0_141, %c0_142] : memref<1x128xf32, #tpu.memory_space<vmem>>, vector<1x128xf32>
    %252 = vector.broadcast %251 : vector<1x128xf32> to vector<8x128xf32>
    %253 = arith.addf %250, %252 : vector<8x128xf32>
    %c0_143 = arith.constant 0 : index
    %c0_144 = arith.constant 0 : index
    %c0_145 = arith.constant 0 : index
    %254 = vector.load %arg20[%c0_143, %c0_144, %c0_145] : memref<1x8x128xf32, #tpu.memory_space<vmem>>, vector<1x8x128xf32>
    %255 = vector.shape_cast %254 : vector<1x8x128xf32> to vector<8x128xf32>
    %256 = vector.shape_cast %253 : vector<8x128xf32> to vector<1x8x128xf32>
    tpu.vector_store %arg20[%c0_143, %c0_144, %c0_145], %256 {strides = array<i32>} : memref<1x8x128xf32, #tpu.memory_space<vmem>>, vector<1x8x128xf32>,
    return
  }
  func.func @transform_0(%arg0: i32) -> (i32, i32, i32) {
    %c0_i32 = arith.constant 0 : i32
    %c0_i32_0 = arith.constant 0 : i32
    %c0_i32_1 = arith.constant 0 : i32
    return %arg0, %c0_i32, %c0_i32_0 : i32, i32, i32
  }
  func.func @transform_1(%arg0: i32) -> (i32, i32, i32) {
    %c0_i32 = arith.constant 0 : i32
    %c0_i32_0 = arith.constant 0 : i32
    %c0_i32_1 = arith.constant 0 : i32
    %c0_i32_2 = arith.constant 0 : i32
    return %c0_i32, %c0_i32_0, %c0_i32_1 : i32, i32, i32
  }
  func.func @transform_2(%arg0: i32) -> (i32, i32, i32) {
    %c0_i32 = arith.constant 0 : i32
    %c0_i32_0 = arith.constant 0 : i32
    %c0_i32_1 = arith.constant 0 : i32
    %c0_i32_2 = arith.constant 0 : i32
    return %c0_i32, %c0_i32_0, %c0_i32_1 : i32, i32, i32
  }
  func.func @transform_3(%arg0: i32) -> (i32, i32, i32) {
    %c0_i32 = arith.constant 0 : i32
    %c0_i32_0 = arith.constant 0 : i32
    %c0_i32_1 = arith.constant 0 : i32
    %c0_i32_2 = arith.constant 0 : i32
    return %c0_i32, %c0_i32_0, %c0_i32_1 : i32, i32, i32
  }
  func.func @transform_4(%arg0: i32) -> (i32, i32, i32) {
    %c0_i32 = arith.constant 0 : i32
    %c0_i32_0 = arith.constant 0 : i32
    %c0_i32_1 = arith.constant 0 : i32
    %c0_i32_2 = arith.constant 0 : i32
    return %c0_i32, %c0_i32_0, %c0_i32_1 : i32, i32, i32
  }
  func.func @transform_5(%arg0: i32) -> (i32, i32, i32) {
    %c0_i32 = arith.constant 0 : i32
    %c0_i32_0 = arith.constant 0 : i32
    %c0_i32_1 = arith.constant 0 : i32
    %c0_i32_2 = arith.constant 0 : i32
    return %c0_i32, %c0_i32_0, %c0_i32_1 : i32, i32, i32
  }
  func.func @transform_6(%arg0: i32) -> (i32, i32, i32) {
    %c0_i32 = arith.constant 0 : i32
    %c0_i32_0 = arith.constant 0 : i32
    %c0_i32_1 = arith.constant 0 : i32
    %c0_i32_2 = arith.constant 0 : i32
    return %c0_i32, %c0_i32_0, %c0_i32_1 : i32, i32, i32
  }
  func.func @transform_7(%arg0: i32) -> (i32, i32, i32) {
    %c0_i32 = arith.constant 0 : i32
    %c0_i32_0 = arith.constant 0 : i32
    %c0_i32_1 = arith.constant 0 : i32
    %c0_i32_2 = arith.constant 0 : i32
    return %c0_i32, %c0_i32_0, %c0_i32_1 : i32, i32, i32
  }
  func.func @transform_8(%arg0: i32) -> (i32, i32, i32) {
    %c0_i32 = arith.constant 0 : i32
    %c0_i32_0 = arith.constant 0 : i32
    %c0_i32_1 = arith.constant 0 : i32
    %c0_i32_2 = arith.constant 0 : i32
    return %c0_i32, %c0_i32_0, %c0_i32_1 : i32, i32, i32
  }
  func.func @transform_9(%arg0: i32) -> (i32, i32, i32) {
    %c0_i32 = arith.constant 0 : i32
    %c0_i32_0 = arith.constant 0 : i32
    %c0_i32_1 = arith.constant 0 : i32
    %c0_i32_2 = arith.constant 0 : i32
    return %c0_i32, %c0_i32_0, %c0_i32_1 : i32, i32, i32
  }
  func.func @transform_10(%arg0: i32) -> (i32, i32, i32) {
    %c0_i32 = arith.constant 0 : i32
    %c0_i32_0 = arith.constant 0 : i32
    %c0_i32_1 = arith.constant 0 : i32
    %c0_i32_2 = arith.constant 0 : i32
    return %c0_i32, %c0_i32_0, %c0_i32_1 : i32, i32, i32
  }
  func.func @transform_11(%arg0: i32) -> (i32, i32, i32) {
    %c0_i32 = arith.constant 0 : i32
    %c0_i32_0 = arith.constant 0 : i32
    %c0_i32_1 = arith.constant 0 : i32
    %c0_i32_2 = arith.constant 0 : i32
    return %c0_i32, %c0_i32_0, %c0_i32_1 : i32, i32, i32
  }
  func.func @transform_12(%arg0: i32) -> (i32, i32, i32) {
    %c0_i32 = arith.constant 0 : i32
    %c0_i32_0 = arith.constant 0 : i32
    %c0_i32_1 = arith.constant 0 : i32
    %c0_i32_2 = arith.constant 0 : i32
    return %c0_i32, %c0_i32_0, %c0_i32_1 : i32, i32, i32
  }
  func.func @transform_13(%arg0: i32) -> (i32, i32, i32) {
    %c0_i32 = arith.constant 0 : i32
    %c0_i32_0 = arith.constant 0 : i32
    %c0_i32_1 = arith.constant 0 : i32
    %c0_i32_2 = arith.constant 0 : i32
    return %c0_i32, %c0_i32_0, %c0_i32_1 : i32, i32, i32
  }
  func.func @transform_14(%arg0: i32) -> (i32, i32, i32) {
    %c0_i32 = arith.constant 0 : i32
    %c0_i32_0 = arith.constant 0 : i32
    %c0_i32_1 = arith.constant 0 : i32
    %c0_i32_2 = arith.constant 0 : i32
    return %c0_i32, %c0_i32_0, %c0_i32_1 : i32, i32, i32
  }
  func.func @transform_15(%arg0: i32) -> (i32, i32, i32) {
    %c0_i32 = arith.constant 0 : i32
    %c0_i32_0 = arith.constant 0 : i32
    %c0_i32_1 = arith.constant 0 : i32
    %c0_i32_2 = arith.constant 0 : i32
    return %c0_i32, %c0_i32_0, %c0_i32_1 : i32, i32, i32
  }
  func.func @transform_16(%arg0: i32) -> (i32, i32, i32) {
    %c0_i32 = arith.constant 0 : i32
    %c0_i32_0 = arith.constant 0 : i32
    %c0_i32_1 = arith.constant 0 : i32
    %c0_i32_2 = arith.constant 0 : i32
    return %c0_i32, %c0_i32_0, %c0_i32_1 : i32, i32, i32
  }
  func.func @transform_17(%arg0: i32) -> (i32, i32) {
    %c0_i32 = arith.constant 0 : i32
    %c0_i32_0 = arith.constant 0 : i32
    %c0_i32_1 = arith.constant 0 : i32
    return %c0_i32, %c0_i32_0 : i32, i32
  }
  func.func @transform_18(%arg0: i32) -> (i32, i32) {
    %c0_i32 = arith.constant 0 : i32
    %c0_i32_0 = arith.constant 0 : i32
    %c0_i32_1 = arith.constant 0 : i32
    return %c0_i32, %c0_i32_0 : i32, i32
  }
  func.func @transform_19(%arg0: i32) -> (i32, i32, i32) {
    %c0_i32 = arith.constant 0 : i32
    %c0_i32_0 = arith.constant 0 : i32
    %c0_i32_1 = arith.constant 0 : i32
    return %arg0, %c0_i32, %c0_i32_0 : i32, i32, i32
  }
}

module attributes {stable_mosaic.version = 11 : i64} {
  func.func @_decoder_kernel(%arg0: i32, %arg1: memref<1x16x32xf32, #tpu.memory_space<vmem>>, %arg2: memref<1x16x80xf32, #tpu.memory_space<vmem>>, %arg3: memref<80x32xbf16, #tpu.memory_space<vmem>>, %arg4: memref<2x32x32xbf16, #tpu.memory_space<vmem>>, %arg5: memref<2x1x32xf32, #tpu.memory_space<vmem>>, %arg6: memref<2x32x32xbf16, #tpu.memory_space<vmem>>, %arg7: memref<2x1x32xf32, #tpu.memory_space<vmem>>, %arg8: memref<2x32x32xbf16, #tpu.memory_space<vmem>>, %arg9: memref<2x1x32xf32, #tpu.memory_space<vmem>>, %arg10: memref<2x32x32xbf16, #tpu.memory_space<vmem>>, %arg11: memref<2x1x32xf32, #tpu.memory_space<vmem>>, %arg12: memref<2x32x64xbf16, #tpu.memory_space<vmem>>, %arg13: memref<2x1x64xf32, #tpu.memory_space<vmem>>, %arg14: memref<2x64x32xbf16, #tpu.memory_space<vmem>>, %arg15: memref<2x1x32xf32, #tpu.memory_space<vmem>>, %arg16: memref<2x1x32xf32, #tpu.memory_space<vmem>>, %arg17: memref<2x1x32xf32, #tpu.memory_space<vmem>>, %arg18: memref<2x1x32xf32, #tpu.memory_space<vmem>>, %arg19: memref<2x1x32xf32, #tpu.memory_space<vmem>>, %arg20: memref<32x128xbf16, #tpu.memory_space<vmem>>, %arg21: memref<1x128xf32, #tpu.memory_space<vmem>>, %arg22: memref<1x16x128xf32, #tpu.memory_space<vmem>>) attributes {dimension_semantics = [#tpu.dimension_semantics<parallel>], iteration_bounds = array<i64: 2>, scalar_prefetch = 0 : i64, scratch_operands = 0 : i64, tpu.core_type = #tpu.core_type<tc>, window_params = [{transform_indices = @transform_0, window_bounds = array<i64: 1, 16, 32>}, {transform_indices = @transform_1, window_bounds = array<i64: 1, 16, 80>}, {pipeline_mode = #tpu.pipeline_mode<synchronous>, transform_indices = @transform_2, window_bounds = array<i64: 80, 32>}, {pipeline_mode = #tpu.pipeline_mode<synchronous>, transform_indices = @transform_3, window_bounds = array<i64: 2, 32, 32>}, {pipeline_mode = #tpu.pipeline_mode<synchronous>, transform_indices = @transform_4, window_bounds = array<i64: 2, 1, 32>}, {pipeline_mode = #tpu.pipeline_mode<synchronous>, transform_indices = @transform_5, window_bounds = array<i64: 2, 32, 32>}, {pipeline_mode = #tpu.pipeline_mode<synchronous>, transform_indices = @transform_6, window_bounds = array<i64: 2, 1, 32>}, {pipeline_mode = #tpu.pipeline_mode<synchronous>, transform_indices = @transform_7, window_bounds = array<i64: 2, 32, 32>}, {pipeline_mode = #tpu.pipeline_mode<synchronous>, transform_indices = @transform_8, window_bounds = array<i64: 2, 1, 32>}, {pipeline_mode = #tpu.pipeline_mode<synchronous>, transform_indices = @transform_9, window_bounds = array<i64: 2, 32, 32>}, {pipeline_mode = #tpu.pipeline_mode<synchronous>, transform_indices = @transform_10, window_bounds = array<i64: 2, 1, 32>}, {pipeline_mode = #tpu.pipeline_mode<synchronous>, transform_indices = @transform_11, window_bounds = array<i64: 2, 32, 64>}, {pipeline_mode = #tpu.pipeline_mode<synchronous>, transform_indices = @transform_12, window_bounds = array<i64: 2, 1, 64>}, {pipeline_mode = #tpu.pipeline_mode<synchronous>, transform_indices = @transform_13, window_bounds = array<i64: 2, 64, 32>}, {pipeline_mode = #tpu.pipeline_mode<synchronous>, transform_indices = @transform_14, window_bounds = array<i64: 2, 1, 32>}, {pipeline_mode = #tpu.pipeline_mode<synchronous>, transform_indices = @transform_15, window_bounds = array<i64: 2, 1, 32>}, {pipeline_mode = #tpu.pipeline_mode<synchronous>, transform_indices = @transform_16, window_bounds = array<i64: 2, 1, 32>}, {pipeline_mode = #tpu.pipeline_mode<synchronous>, transform_indices = @transform_17, window_bounds = array<i64: 2, 1, 32>}, {pipeline_mode = #tpu.pipeline_mode<synchronous>, transform_indices = @transform_18, window_bounds = array<i64: 2, 1, 32>}, {pipeline_mode = #tpu.pipeline_mode<synchronous>, transform_indices = @transform_19, window_bounds = array<i64: 32, 128>}, {pipeline_mode = #tpu.pipeline_mode<synchronous>, transform_indices = @transform_20, window_bounds = array<i64: 1, 128>}, {transform_indices = @transform_21, window_bounds = array<i64: 1, 16, 128>}]} {
    %c0 = arith.constant 0 : index
    %c0_0 = arith.constant 0 : index
    %c0_1 = arith.constant 0 : index
    %0 = vector.load %arg1[%c0, %c0_0, %c0_1] : memref<1x16x32xf32, #tpu.memory_space<vmem>>, vector<1x16x32xf32>
    %1 = vector.shape_cast %0 : vector<1x16x32xf32> to vector<16x32xf32>
    %c0_2 = arith.constant 0 : index
    %c0_3 = arith.constant 0 : index
    %c0_4 = arith.constant 0 : index
    %2 = vector.load %arg2[%c0_2, %c0_3, %c0_4] : memref<1x16x80xf32, #tpu.memory_space<vmem>>, vector<1x16x80xf32>
    %3 = vector.shape_cast %2 : vector<1x16x80xf32> to vector<16x80xf32>
    %4 = arith.truncf %3 : vector<16x80xf32> to vector<16x80xbf16>
    %c0_5 = arith.constant 0 : index
    %c0_6 = arith.constant 0 : index
    %5 = vector.load %arg3[%c0_5, %c0_6] : memref<80x32xbf16, #tpu.memory_space<vmem>>, vector<80x32xbf16>
    %cst = arith.constant dense<0.000000e+00> : vector<16x32xf32>
    %6 = tpu.matmul %4, %5, %cst {dimension_numbers = #tpu.dot_dimension_numbers<[1], [0], [0], [1], [0, 0, 1, 1], [], []>} : vector<16x80xbf16>, vector<80x32xbf16>, vector<16x32xf32> -> vector<16x32xf32>
    %7 = tpu.iota {dimensions = array<i32: 0>} : vector<16x16xi32>
    %8 = tpu.iota {dimensions = array<i32: 1>} : vector<16x16xi32>
    %9 = arith.cmpi sge, %7, %8 : vector<16x16xi32>
    %10 = arith.addf %1, %6 : vector<16x32xf32>
    %c0_7 = arith.constant 0 : index
    %c0_8 = arith.constant 0 : index
    %c0_9 = arith.constant 0 : index
    %11 = vector.load %arg4[%c0_7, %c0_8, %c0_9] : memref<2x32x32xbf16, #tpu.memory_space<vmem>>, vector<1x32x32xbf16>
    %12 = vector.shape_cast %11 : vector<1x32x32xbf16> to vector<32x32xbf16>
    %c0_10 = arith.constant 0 : index
    %c0_11 = arith.constant 0 : index
    %c0_12 = arith.constant 0 : index
    %13 = vector.load %arg5[%c0_10, %c0_11, %c0_12] : memref<2x1x32xf32, #tpu.memory_space<vmem>>, vector<1x1x32xf32>
    %14 = vector.shape_cast %13 : vector<1x1x32xf32> to vector<1x32xf32>
    %c0_13 = arith.constant 0 : index
    %c0_14 = arith.constant 0 : index
    %c0_15 = arith.constant 0 : index
    %15 = vector.load %arg6[%c0_13, %c0_14, %c0_15] : memref<2x32x32xbf16, #tpu.memory_space<vmem>>, vector<1x32x32xbf16>
    %16 = vector.shape_cast %15 : vector<1x32x32xbf16> to vector<32x32xbf16>
    %c0_16 = arith.constant 0 : index
    %c0_17 = arith.constant 0 : index
    %c0_18 = arith.constant 0 : index
    %17 = vector.load %arg7[%c0_16, %c0_17, %c0_18] : memref<2x1x32xf32, #tpu.memory_space<vmem>>, vector<1x1x32xf32>
    %18 = vector.shape_cast %17 : vector<1x1x32xf32> to vector<1x32xf32>
    %c0_19 = arith.constant 0 : index
    %c0_20 = arith.constant 0 : index
    %c0_21 = arith.constant 0 : index
    %19 = vector.load %arg8[%c0_19, %c0_20, %c0_21] : memref<2x32x32xbf16, #tpu.memory_space<vmem>>, vector<1x32x32xbf16>
    %20 = vector.shape_cast %19 : vector<1x32x32xbf16> to vector<32x32xbf16>
    %c0_22 = arith.constant 0 : index
    %c0_23 = arith.constant 0 : index
    %c0_24 = arith.constant 0 : index
    %21 = vector.load %arg9[%c0_22, %c0_23, %c0_24] : memref<2x1x32xf32, #tpu.memory_space<vmem>>, vector<1x1x32xf32>
    %22 = vector.shape_cast %21 : vector<1x1x32xf32> to vector<1x32xf32>
    %c0_25 = arith.constant 0 : index
    %c0_26 = arith.constant 0 : index
    %c0_27 = arith.constant 0 : index
    %23 = vector.load %arg10[%c0_25, %c0_26, %c0_27] : memref<2x32x32xbf16, #tpu.memory_space<vmem>>, vector<1x32x32xbf16>
    %24 = vector.shape_cast %23 : vector<1x32x32xbf16> to vector<32x32xbf16>
    %c0_28 = arith.constant 0 : index
    %c0_29 = arith.constant 0 : index
    %c0_30 = arith.constant 0 : index
    %25 = vector.load %arg11[%c0_28, %c0_29, %c0_30] : memref<2x1x32xf32, #tpu.memory_space<vmem>>, vector<1x1x32xf32>
    %26 = vector.shape_cast %25 : vector<1x1x32xf32> to vector<1x32xf32>
    %c0_31 = arith.constant 0 : index
    %c0_32 = arith.constant 0 : index
    %c0_33 = arith.constant 0 : index
    %27 = vector.load %arg12[%c0_31, %c0_32, %c0_33] : memref<2x32x64xbf16, #tpu.memory_space<vmem>>, vector<1x32x64xbf16>
    %28 = vector.shape_cast %27 : vector<1x32x64xbf16> to vector<32x64xbf16>
    %c0_34 = arith.constant 0 : index
    %c0_35 = arith.constant 0 : index
    %c0_36 = arith.constant 0 : index
    %29 = vector.load %arg13[%c0_34, %c0_35, %c0_36] : memref<2x1x64xf32, #tpu.memory_space<vmem>>, vector<1x1x64xf32>
    %30 = vector.shape_cast %29 : vector<1x1x64xf32> to vector<1x64xf32>
    %c0_37 = arith.constant 0 : index
    %c0_38 = arith.constant 0 : index
    %c0_39 = arith.constant 0 : index
    %31 = vector.load %arg14[%c0_37, %c0_38, %c0_39] : memref<2x64x32xbf16, #tpu.memory_space<vmem>>, vector<1x64x32xbf16>
    %32 = vector.shape_cast %31 : vector<1x64x32xbf16> to vector<64x32xbf16>
    %c0_40 = arith.constant 0 : index
    %c0_41 = arith.constant 0 : index
    %c0_42 = arith.constant 0 : index
    %33 = vector.load %arg15[%c0_40, %c0_41, %c0_42] : memref<2x1x32xf32, #tpu.memory_space<vmem>>, vector<1x1x32xf32>
    %34 = vector.shape_cast %33 : vector<1x1x32xf32> to vector<1x32xf32>
    %c0_43 = arith.constant 0 : index
    %c0_44 = arith.constant 0 : index
    %c0_45 = arith.constant 0 : index
    %35 = vector.load %arg16[%c0_43, %c0_44, %c0_45] : memref<2x1x32xf32, #tpu.memory_space<vmem>>, vector<1x1x32xf32>
    %36 = vector.shape_cast %35 : vector<1x1x32xf32> to vector<1x32xf32>
    %c0_46 = arith.constant 0 : index
    %c0_47 = arith.constant 0 : index
    %c0_48 = arith.constant 0 : index
    %37 = vector.load %arg17[%c0_46, %c0_47, %c0_48] : memref<2x1x32xf32, #tpu.memory_space<vmem>>, vector<1x1x32xf32>
    %38 = vector.shape_cast %37 : vector<1x1x32xf32> to vector<1x32xf32>
    %c0_49 = arith.constant 0 : index
    %c0_50 = arith.constant 0 : index
    %c0_51 = arith.constant 0 : index
    %39 = vector.load %arg18[%c0_49, %c0_50, %c0_51] : memref<2x1x32xf32, #tpu.memory_space<vmem>>, vector<1x1x32xf32>
    %40 = vector.shape_cast %39 : vector<1x1x32xf32> to vector<1x32xf32>
    %c0_52 = arith.constant 0 : index
    %c0_53 = arith.constant 0 : index
    %c0_54 = arith.constant 0 : index
    %41 = vector.load %arg19[%c0_52, %c0_53, %c0_54] : memref<2x1x32xf32, #tpu.memory_space<vmem>>, vector<1x1x32xf32>
    %42 = vector.shape_cast %41 : vector<1x1x32xf32> to vector<1x32xf32>
    %43 = arith.truncf %10 : vector<16x32xf32> to vector<16x32xbf16>
    %cst_55 = arith.constant dense<0.000000e+00> : vector<16x32xf32>
    %44 = tpu.matmul %43, %12, %cst_55 {dimension_numbers = #tpu.dot_dimension_numbers<[1], [0], [0], [1], [0, 0, 1, 1], [], []>} : vector<16x32xbf16>, vector<32x32xbf16>, vector<16x32xf32> -> vector<16x32xf32>
    %45 = vector.broadcast %14 : vector<1x32xf32> to vector<16x32xf32>
    %46 = arith.addf %44, %45 : vector<16x32xf32>
    %cst_56 = arith.constant dense<0.000000e+00> : vector<16x32xf32>
    %47 = tpu.matmul %43, %16, %cst_56 {dimension_numbers = #tpu.dot_dimension_numbers<[1], [0], [0], [1], [0, 0, 1, 1], [], []>} : vector<16x32xbf16>, vector<32x32xbf16>, vector<16x32xf32> -> vector<16x32xf32>
    %48 = vector.broadcast %18 : vector<1x32xf32> to vector<16x32xf32>
    %49 = arith.addf %47, %48 : vector<16x32xf32>
    %cst_57 = arith.constant dense<0.000000e+00> : vector<16x32xf32>
    %50 = tpu.matmul %43, %20, %cst_57 {dimension_numbers = #tpu.dot_dimension_numbers<[1], [0], [0], [1], [0, 0, 1, 1], [], []>} : vector<16x32xbf16>, vector<32x32xbf16>, vector<16x32xf32> -> vector<16x32xf32>
    %51 = vector.broadcast %22 : vector<1x32xf32> to vector<16x32xf32>
    %52 = arith.addf %50, %51 : vector<16x32xf32>
    %53 = vector.shape_cast %46 : vector<16x32xf32> to vector<16x4x8xf32>
    %54 = vector.shape_cast %49 : vector<16x32xf32> to vector<16x4x8xf32>
    %55 = vector.shape_cast %52 : vector<16x32xf32> to vector<16x4x8xf32>
    %56 = arith.truncf %53 : vector<16x4x8xf32> to vector<16x4x8xbf16>
    %57 = arith.truncf %54 : vector<16x4x8xf32> to vector<16x4x8xbf16>
    "tpu.trace_start"() <{level = 10 : i32, message = "qhd,khd->hqk"}> : () -> ()
    %cst_58 = arith.constant dense<0.000000e+00> : vector<4x16x16xf32>
    %58 = tpu.matmul %56, %57, %cst_58 {dimension_numbers = #tpu.dot_dimension_numbers<[2], [2], [0], [0], [0, 1, 0, 0, 1, 0], [1], [1]>} : vector<16x4x8xbf16>, vector<16x4x8xbf16>, vector<4x16x16xf32> -> vector<4x16x16xf32>
    %cst_59 = arith.constant -1.000000e+09 : f32
    "tpu.trace_stop"() : () -> ()
    %59 = vector.shape_cast %9 : vector<16x16xi1> to vector<1x16x16xi1>
    %60 = vector.broadcast %59 : vector<1x16x16xi1> to vector<4x16x16xi1>
    %61 = vector.broadcast %cst_59 : f32 to vector<4x16x16xf32>
    %62 = arith.select %60, %58, %61 : vector<4x16x16xi1>, vector<4x16x16xf32>
    %cst_60 = arith.constant dense<0xFF800000> : vector<4x16xf32>
    %63 = vector.multi_reduction <maximumf>, %62, %cst_60 [2] : vector<4x16x16xf32> to vector<4x16xf32>
    %64 = vector.shape_cast %63 : vector<4x16xf32> to vector<4x16x1xf32>
    %65 = vector.broadcast %64 : vector<4x16x1xf32> to vector<4x16x16xf32>
    %66 = arith.subf %62, %65 : vector<4x16x16xf32>
    %67 = math.exp %66 : vector<4x16x16xf32>
    %cst_61 = arith.constant dense<0.000000e+00> : vector<4x16xf32>
    %68 = vector.multi_reduction <add>, %67, %cst_61 [2] : vector<4x16x16xf32> to vector<4x16xf32>
    %69 = vector.shape_cast %68 : vector<4x16xf32> to vector<4x16x1xf32>
    %70 = tpu.reciprocal %69 {approx = true} : vector<4x16x1xf32> -> vector<4x16x1xf32>
    %71 = vector.broadcast %70 : vector<4x16x1xf32> to vector<4x16x16xf32>
    %72 = arith.mulf %67, %71 : vector<4x16x16xf32>
    %73 = arith.truncf %72 : vector<4x16x16xf32> to vector<4x16x16xbf16>
    %74 = arith.truncf %55 : vector<16x4x8xf32> to vector<16x4x8xbf16>
    "tpu.trace_start"() <{level = 10 : i32, message = "hqk,khd->qhd"}> : () -> ()
    %cst_62 = arith.constant dense<0.000000e+00> : vector<4x8x16xf32>
    %75 = tpu.matmul %74, %73, %cst_62 {dimension_numbers = #tpu.dot_dimension_numbers<[0], [2], [2], [1], [0, 1, 0, 2, 1, 1], [1], [0]>} : vector<16x4x8xbf16>, vector<4x16x16xbf16>, vector<4x8x16xf32> -> vector<4x8x16xf32>
    %76 = tpu.transpose %75, [2, 0, 1] : vector<4x8x16xf32> -> vector<16x4x8xf32>
    "tpu.trace_stop"() : () -> ()
    %77 = vector.shape_cast %76 : vector<16x4x8xf32> to vector<16x32xf32>
    %78 = arith.truncf %77 : vector<16x32xf32> to vector<16x32xbf16>
    %cst_63 = arith.constant dense<0.000000e+00> : vector<16x32xf32>
    %79 = tpu.matmul %78, %24, %cst_63 {dimension_numbers = #tpu.dot_dimension_numbers<[1], [0], [0], [1], [0, 0, 1, 1], [], []>} : vector<16x32xbf16>, vector<32x32xbf16>, vector<16x32xf32> -> vector<16x32xf32>
    %80 = vector.broadcast %26 : vector<1x32xf32> to vector<16x32xf32>
    %81 = arith.addf %79, %80 : vector<16x32xf32>
    %82 = arith.addf %10, %81 : vector<16x32xf32>
    %cst_64 = arith.constant dense<0.000000e+00> : vector<16xf32>
    %83 = vector.multi_reduction <add>, %82, %cst_64 [1] : vector<16x32xf32> to vector<16xf32>
    %84 = vector.shape_cast %83 : vector<16xf32> to vector<16x1xf32>
    %cst_65 = arith.constant 3.200000e+01 : f32
    %85 = vector.broadcast %cst_65 : f32 to vector<16x1xf32>
    %86 = arith.divf %84, %85 : vector<16x1xf32>
    %87 = vector.broadcast %86 : vector<16x1xf32> to vector<16x32xf32>
    %88 = arith.subf %82, %87 : vector<16x32xf32>
    %89 = arith.mulf %88, %88 : vector<16x32xf32>
    %cst_66 = arith.constant dense<0.000000e+00> : vector<16xf32>
    %90 = vector.multi_reduction <add>, %89, %cst_66 [1] : vector<16x32xf32> to vector<16xf32>
    %91 = vector.shape_cast %90 : vector<16xf32> to vector<16x1xf32>
    %cst_67 = arith.constant 3.200000e+01 : f32
    %92 = vector.broadcast %cst_67 : f32 to vector<16x1xf32>
    %93 = arith.divf %91, %92 : vector<16x1xf32>
    %94 = vector.broadcast %86 : vector<16x1xf32> to vector<16x32xf32>
    %95 = arith.subf %82, %94 : vector<16x32xf32>
    %cst_68 = arith.constant 9.99999974E-6 : f32
    %96 = vector.broadcast %cst_68 : f32 to vector<16x1xf32>
    %97 = arith.addf %93, %96 : vector<16x1xf32>
    %98 = math.rsqrt %97 : vector<16x1xf32>
    %99 = vector.broadcast %98 : vector<16x1xf32> to vector<16x32xf32>
    %100 = arith.mulf %95, %99 : vector<16x32xf32>
    %101 = vector.broadcast %36 : vector<1x32xf32> to vector<16x32xf32>
    %102 = arith.mulf %100, %101 : vector<16x32xf32>
    %103 = vector.broadcast %38 : vector<1x32xf32> to vector<16x32xf32>
    %104 = arith.addf %102, %103 : vector<16x32xf32>
    %105 = arith.truncf %104 : vector<16x32xf32> to vector<16x32xbf16>
    %cst_69 = arith.constant dense<0.000000e+00> : vector<16x64xf32>
    %106 = tpu.matmul %105, %28, %cst_69 {dimension_numbers = #tpu.dot_dimension_numbers<[1], [0], [0], [1], [0, 0, 1, 1], [], []>} : vector<16x32xbf16>, vector<32x64xbf16>, vector<16x64xf32> -> vector<16x64xf32>
    %107 = vector.broadcast %30 : vector<1x64xf32> to vector<16x64xf32>
    %108 = arith.addf %106, %107 : vector<16x64xf32>
    %cst_70 = arith.constant 0.000000e+00 : f32
    %109 = vector.broadcast %cst_70 : f32 to vector<16x64xf32>
    %110 = arith.maximumf %108, %109 : vector<16x64xf32>
    %111 = arith.truncf %110 : vector<16x64xf32> to vector<16x64xbf16>
    %cst_71 = arith.constant dense<0.000000e+00> : vector<16x32xf32>
    %112 = tpu.matmul %111, %32, %cst_71 {dimension_numbers = #tpu.dot_dimension_numbers<[1], [0], [0], [1], [0, 0, 1, 1], [], []>} : vector<16x64xbf16>, vector<64x32xbf16>, vector<16x32xf32> -> vector<16x32xf32>
    %113 = vector.broadcast %34 : vector<1x32xf32> to vector<16x32xf32>
    %114 = arith.addf %112, %113 : vector<16x32xf32>
    %115 = arith.addf %104, %114 : vector<16x32xf32>
    %cst_72 = arith.constant dense<0.000000e+00> : vector<16xf32>
    %116 = vector.multi_reduction <add>, %115, %cst_72 [1] : vector<16x32xf32> to vector<16xf32>
    %117 = vector.shape_cast %116 : vector<16xf32> to vector<16x1xf32>
    %cst_73 = arith.constant 3.200000e+01 : f32
    %118 = vector.broadcast %cst_73 : f32 to vector<16x1xf32>
    %119 = arith.divf %117, %118 : vector<16x1xf32>
    %120 = vector.broadcast %119 : vector<16x1xf32> to vector<16x32xf32>
    %121 = arith.subf %115, %120 : vector<16x32xf32>
    %122 = arith.mulf %121, %121 : vector<16x32xf32>
    %cst_74 = arith.constant dense<0.000000e+00> : vector<16xf32>
    %123 = vector.multi_reduction <add>, %122, %cst_74 [1] : vector<16x32xf32> to vector<16xf32>
    %124 = vector.shape_cast %123 : vector<16xf32> to vector<16x1xf32>
    %cst_75 = arith.constant 3.200000e+01 : f32
    %125 = vector.broadcast %cst_75 : f32 to vector<16x1xf32>
    %126 = arith.divf %124, %125 : vector<16x1xf32>
    %127 = vector.broadcast %119 : vector<16x1xf32> to vector<16x32xf32>
    %128 = arith.subf %115, %127 : vector<16x32xf32>
    %cst_76 = arith.constant 9.99999974E-6 : f32
    %129 = vector.broadcast %cst_76 : f32 to vector<16x1xf32>
    %130 = arith.addf %126, %129 : vector<16x1xf32>
    %131 = math.rsqrt %130 : vector<16x1xf32>
    %132 = vector.broadcast %131 : vector<16x1xf32> to vector<16x32xf32>
    %133 = arith.mulf %128, %132 : vector<16x32xf32>
    %134 = vector.broadcast %40 : vector<1x32xf32> to vector<16x32xf32>
    %135 = arith.mulf %133, %134 : vector<16x32xf32>
    %136 = vector.broadcast %42 : vector<1x32xf32> to vector<16x32xf32>
    %137 = arith.addf %135, %136 : vector<16x32xf32>
    %138 = arith.addf %137, %6 : vector<16x32xf32>
    %c1 = arith.constant 1 : index
    %c0_77 = arith.constant 0 : index
    %c0_78 = arith.constant 0 : index
    %139 = vector.load %arg4[%c1, %c0_77, %c0_78] : memref<2x32x32xbf16, #tpu.memory_space<vmem>>, vector<1x32x32xbf16>
    %140 = vector.shape_cast %139 : vector<1x32x32xbf16> to vector<32x32xbf16>
    %c1_79 = arith.constant 1 : index
    %c0_80 = arith.constant 0 : index
    %c0_81 = arith.constant 0 : index
    %141 = vector.load %arg5[%c1_79, %c0_80, %c0_81] : memref<2x1x32xf32, #tpu.memory_space<vmem>>, vector<1x1x32xf32>
    %142 = vector.shape_cast %141 : vector<1x1x32xf32> to vector<1x32xf32>
    %c1_82 = arith.constant 1 : index
    %c0_83 = arith.constant 0 : index
    %c0_84 = arith.constant 0 : index
    %143 = vector.load %arg6[%c1_82, %c0_83, %c0_84] : memref<2x32x32xbf16, #tpu.memory_space<vmem>>, vector<1x32x32xbf16>
    %144 = vector.shape_cast %143 : vector<1x32x32xbf16> to vector<32x32xbf16>
    %c1_85 = arith.constant 1 : index
    %c0_86 = arith.constant 0 : index
    %c0_87 = arith.constant 0 : index
    %145 = vector.load %arg7[%c1_85, %c0_86, %c0_87] : memref<2x1x32xf32, #tpu.memory_space<vmem>>, vector<1x1x32xf32>
    %146 = vector.shape_cast %145 : vector<1x1x32xf32> to vector<1x32xf32>
    %c1_88 = arith.constant 1 : index
    %c0_89 = arith.constant 0 : index
    %c0_90 = arith.constant 0 : index
    %147 = vector.load %arg8[%c1_88, %c0_89, %c0_90] : memref<2x32x32xbf16, #tpu.memory_space<vmem>>, vector<1x32x32xbf16>
    %148 = vector.shape_cast %147 : vector<1x32x32xbf16> to vector<32x32xbf16>
    %c1_91 = arith.constant 1 : index
    %c0_92 = arith.constant 0 : index
    %c0_93 = arith.constant 0 : index
    %149 = vector.load %arg9[%c1_91, %c0_92, %c0_93] : memref<2x1x32xf32, #tpu.memory_space<vmem>>, vector<1x1x32xf32>
    %150 = vector.shape_cast %149 : vector<1x1x32xf32> to vector<1x32xf32>
    %c1_94 = arith.constant 1 : index
    %c0_95 = arith.constant 0 : index
    %c0_96 = arith.constant 0 : index
    %151 = vector.load %arg10[%c1_94, %c0_95, %c0_96] : memref<2x32x32xbf16, #tpu.memory_space<vmem>>, vector<1x32x32xbf16>
    %152 = vector.shape_cast %151 : vector<1x32x32xbf16> to vector<32x32xbf16>
    %c1_97 = arith.constant 1 : index
    %c0_98 = arith.constant 0 : index
    %c0_99 = arith.constant 0 : index
    %153 = vector.load %arg11[%c1_97, %c0_98, %c0_99] : memref<2x1x32xf32, #tpu.memory_space<vmem>>, vector<1x1x32xf32>
    %154 = vector.shape_cast %153 : vector<1x1x32xf32> to vector<1x32xf32>
    %c1_100 = arith.constant 1 : index
    %c0_101 = arith.constant 0 : index
    %c0_102 = arith.constant 0 : index
    %155 = vector.load %arg12[%c1_100, %c0_101, %c0_102] : memref<2x32x64xbf16, #tpu.memory_space<vmem>>, vector<1x32x64xbf16>
    %156 = vector.shape_cast %155 : vector<1x32x64xbf16> to vector<32x64xbf16>
    %c1_103 = arith.constant 1 : index
    %c0_104 = arith.constant 0 : index
    %c0_105 = arith.constant 0 : index
    %157 = vector.load %arg13[%c1_103, %c0_104, %c0_105] : memref<2x1x64xf32, #tpu.memory_space<vmem>>, vector<1x1x64xf32>
    %158 = vector.shape_cast %157 : vector<1x1x64xf32> to vector<1x64xf32>
    %c1_106 = arith.constant 1 : index
    %c0_107 = arith.constant 0 : index
    %c0_108 = arith.constant 0 : index
    %159 = vector.load %arg14[%c1_106, %c0_107, %c0_108] : memref<2x64x32xbf16, #tpu.memory_space<vmem>>, vector<1x64x32xbf16>
    %160 = vector.shape_cast %159 : vector<1x64x32xbf16> to vector<64x32xbf16>
    %c1_109 = arith.constant 1 : index
    %c0_110 = arith.constant 0 : index
    %c0_111 = arith.constant 0 : index
    %161 = vector.load %arg15[%c1_109, %c0_110, %c0_111] : memref<2x1x32xf32, #tpu.memory_space<vmem>>, vector<1x1x32xf32>
    %162 = vector.shape_cast %161 : vector<1x1x32xf32> to vector<1x32xf32>
    %c1_112 = arith.constant 1 : index
    %c0_113 = arith.constant 0 : index
    %c0_114 = arith.constant 0 : index
    %163 = vector.load %arg16[%c1_112, %c0_113, %c0_114] : memref<2x1x32xf32, #tpu.memory_space<vmem>>, vector<1x1x32xf32>
    %164 = vector.shape_cast %163 : vector<1x1x32xf32> to vector<1x32xf32>
    %c1_115 = arith.constant 1 : index
    %c0_116 = arith.constant 0 : index
    %c0_117 = arith.constant 0 : index
    %165 = vector.load %arg17[%c1_115, %c0_116, %c0_117] : memref<2x1x32xf32, #tpu.memory_space<vmem>>, vector<1x1x32xf32>
    %166 = vector.shape_cast %165 : vector<1x1x32xf32> to vector<1x32xf32>
    %c1_118 = arith.constant 1 : index
    %c0_119 = arith.constant 0 : index
    %c0_120 = arith.constant 0 : index
    %167 = vector.load %arg18[%c1_118, %c0_119, %c0_120] : memref<2x1x32xf32, #tpu.memory_space<vmem>>, vector<1x1x32xf32>
    %168 = vector.shape_cast %167 : vector<1x1x32xf32> to vector<1x32xf32>
    %c1_121 = arith.constant 1 : index
    %c0_122 = arith.constant 0 : index
    %c0_123 = arith.constant 0 : index
    %169 = vector.load %arg19[%c1_121, %c0_122, %c0_123] : memref<2x1x32xf32, #tpu.memory_space<vmem>>, vector<1x1x32xf32>
    %170 = vector.shape_cast %169 : vector<1x1x32xf32> to vector<1x32xf32>
    %171 = arith.truncf %138 : vector<16x32xf32> to vector<16x32xbf16>
    %cst_124 = arith.constant dense<0.000000e+00> : vector<16x32xf32>
    %172 = tpu.matmul %171, %140, %cst_124 {dimension_numbers = #tpu.dot_dimension_numbers<[1], [0], [0], [1], [0, 0, 1, 1], [], []>} : vector<16x32xbf16>, vector<32x32xbf16>, vector<16x32xf32> -> vector<16x32xf32>
    %173 = vector.broadcast %142 : vector<1x32xf32> to vector<16x32xf32>
    %174 = arith.addf %172, %173 : vector<16x32xf32>
    %cst_125 = arith.constant dense<0.000000e+00> : vector<16x32xf32>
    %175 = tpu.matmul %171, %144, %cst_125 {dimension_numbers = #tpu.dot_dimension_numbers<[1], [0], [0], [1], [0, 0, 1, 1], [], []>} : vector<16x32xbf16>, vector<32x32xbf16>, vector<16x32xf32> -> vector<16x32xf32>
    %176 = vector.broadcast %146 : vector<1x32xf32> to vector<16x32xf32>
    %177 = arith.addf %175, %176 : vector<16x32xf32>
    %cst_126 = arith.constant dense<0.000000e+00> : vector<16x32xf32>
    %178 = tpu.matmul %171, %148, %cst_126 {dimension_numbers = #tpu.dot_dimension_numbers<[1], [0], [0], [1], [0, 0, 1, 1], [], []>} : vector<16x32xbf16>, vector<32x32xbf16>, vector<16x32xf32> -> vector<16x32xf32>
    %179 = vector.broadcast %150 : vector<1x32xf32> to vector<16x32xf32>
    %180 = arith.addf %178, %179 : vector<16x32xf32>
    %181 = vector.shape_cast %174 : vector<16x32xf32> to vector<16x4x8xf32>
    %182 = vector.shape_cast %177 : vector<16x32xf32> to vector<16x4x8xf32>
    %183 = vector.shape_cast %180 : vector<16x32xf32> to vector<16x4x8xf32>
    %184 = arith.truncf %181 : vector<16x4x8xf32> to vector<16x4x8xbf16>
    %185 = arith.truncf %182 : vector<16x4x8xf32> to vector<16x4x8xbf16>
    "tpu.trace_start"() <{level = 10 : i32, message = "qhd,khd->hqk"}> : () -> ()
    %cst_127 = arith.constant dense<0.000000e+00> : vector<4x16x16xf32>
    %186 = tpu.matmul %184, %185, %cst_127 {dimension_numbers = #tpu.dot_dimension_numbers<[2], [2], [0], [0], [0, 1, 0, 0, 1, 0], [1], [1]>} : vector<16x4x8xbf16>, vector<16x4x8xbf16>, vector<4x16x16xf32> -> vector<4x16x16xf32>
    %cst_128 = arith.constant -1.000000e+09 : f32
    "tpu.trace_stop"() : () -> ()
    %187 = vector.shape_cast %9 : vector<16x16xi1> to vector<1x16x16xi1>
    %188 = vector.broadcast %187 : vector<1x16x16xi1> to vector<4x16x16xi1>
    %189 = vector.broadcast %cst_128 : f32 to vector<4x16x16xf32>
    %190 = arith.select %188, %186, %189 : vector<4x16x16xi1>, vector<4x16x16xf32>
    %cst_129 = arith.constant dense<0xFF800000> : vector<4x16xf32>
    %191 = vector.multi_reduction <maximumf>, %190, %cst_129 [2] : vector<4x16x16xf32> to vector<4x16xf32>
    %192 = vector.shape_cast %191 : vector<4x16xf32> to vector<4x16x1xf32>
    %193 = vector.broadcast %192 : vector<4x16x1xf32> to vector<4x16x16xf32>
    %194 = arith.subf %190, %193 : vector<4x16x16xf32>
    %195 = math.exp %194 : vector<4x16x16xf32>
    %cst_130 = arith.constant dense<0.000000e+00> : vector<4x16xf32>
    %196 = vector.multi_reduction <add>, %195, %cst_130 [2] : vector<4x16x16xf32> to vector<4x16xf32>
    %197 = vector.shape_cast %196 : vector<4x16xf32> to vector<4x16x1xf32>
    %198 = tpu.reciprocal %197 {approx = true} : vector<4x16x1xf32> -> vector<4x16x1xf32>
    %199 = vector.broadcast %198 : vector<4x16x1xf32> to vector<4x16x16xf32>
    %200 = arith.mulf %195, %199 : vector<4x16x16xf32>
    %201 = arith.truncf %200 : vector<4x16x16xf32> to vector<4x16x16xbf16>
    %202 = arith.truncf %183 : vector<16x4x8xf32> to vector<16x4x8xbf16>
    "tpu.trace_start"() <{level = 10 : i32, message = "hqk,khd->qhd"}> : () -> ()
    %cst_131 = arith.constant dense<0.000000e+00> : vector<4x8x16xf32>
    %203 = tpu.matmul %202, %201, %cst_131 {dimension_numbers = #tpu.dot_dimension_numbers<[0], [2], [2], [1], [0, 1, 0, 2, 1, 1], [1], [0]>} : vector<16x4x8xbf16>, vector<4x16x16xbf16>, vector<4x8x16xf32> -> vector<4x8x16xf32>
    %204 = tpu.transpose %203, [2, 0, 1] : vector<4x8x16xf32> -> vector<16x4x8xf32>
    "tpu.trace_stop"() : () -> ()
    %205 = vector.shape_cast %204 : vector<16x4x8xf32> to vector<16x32xf32>
    %206 = arith.truncf %205 : vector<16x32xf32> to vector<16x32xbf16>
    %cst_132 = arith.constant dense<0.000000e+00> : vector<16x32xf32>
    %207 = tpu.matmul %206, %152, %cst_132 {dimension_numbers = #tpu.dot_dimension_numbers<[1], [0], [0], [1], [0, 0, 1, 1], [], []>} : vector<16x32xbf16>, vector<32x32xbf16>, vector<16x32xf32> -> vector<16x32xf32>
    %208 = vector.broadcast %154 : vector<1x32xf32> to vector<16x32xf32>
    %209 = arith.addf %207, %208 : vector<16x32xf32>
    %210 = arith.addf %138, %209 : vector<16x32xf32>
    %cst_133 = arith.constant dense<0.000000e+00> : vector<16xf32>
    %211 = vector.multi_reduction <add>, %210, %cst_133 [1] : vector<16x32xf32> to vector<16xf32>
    %212 = vector.shape_cast %211 : vector<16xf32> to vector<16x1xf32>
    %cst_134 = arith.constant 3.200000e+01 : f32
    %213 = vector.broadcast %cst_134 : f32 to vector<16x1xf32>
    %214 = arith.divf %212, %213 : vector<16x1xf32>
    %215 = vector.broadcast %214 : vector<16x1xf32> to vector<16x32xf32>
    %216 = arith.subf %210, %215 : vector<16x32xf32>
    %217 = arith.mulf %216, %216 : vector<16x32xf32>
    %cst_135 = arith.constant dense<0.000000e+00> : vector<16xf32>
    %218 = vector.multi_reduction <add>, %217, %cst_135 [1] : vector<16x32xf32> to vector<16xf32>
    %219 = vector.shape_cast %218 : vector<16xf32> to vector<16x1xf32>
    %cst_136 = arith.constant 3.200000e+01 : f32
    %220 = vector.broadcast %cst_136 : f32 to vector<16x1xf32>
    %221 = arith.divf %219, %220 : vector<16x1xf32>
    %222 = vector.broadcast %214 : vector<16x1xf32> to vector<16x32xf32>
    %223 = arith.subf %210, %222 : vector<16x32xf32>
    %cst_137 = arith.constant 9.99999974E-6 : f32
    %224 = vector.broadcast %cst_137 : f32 to vector<16x1xf32>
    %225 = arith.addf %221, %224 : vector<16x1xf32>
    %226 = math.rsqrt %225 : vector<16x1xf32>
    %227 = vector.broadcast %226 : vector<16x1xf32> to vector<16x32xf32>
    %228 = arith.mulf %223, %227 : vector<16x32xf32>
    %229 = vector.broadcast %164 : vector<1x32xf32> to vector<16x32xf32>
    %230 = arith.mulf %228, %229 : vector<16x32xf32>
    %231 = vector.broadcast %166 : vector<1x32xf32> to vector<16x32xf32>
    %232 = arith.addf %230, %231 : vector<16x32xf32>
    %233 = arith.truncf %232 : vector<16x32xf32> to vector<16x32xbf16>
    %cst_138 = arith.constant dense<0.000000e+00> : vector<16x64xf32>
    %234 = tpu.matmul %233, %156, %cst_138 {dimension_numbers = #tpu.dot_dimension_numbers<[1], [0], [0], [1], [0, 0, 1, 1], [], []>} : vector<16x32xbf16>, vector<32x64xbf16>, vector<16x64xf32> -> vector<16x64xf32>
    %235 = vector.broadcast %158 : vector<1x64xf32> to vector<16x64xf32>
    %236 = arith.addf %234, %235 : vector<16x64xf32>
    %cst_139 = arith.constant 0.000000e+00 : f32
    %237 = vector.broadcast %cst_139 : f32 to vector<16x64xf32>
    %238 = arith.maximumf %236, %237 : vector<16x64xf32>
    %239 = arith.truncf %238 : vector<16x64xf32> to vector<16x64xbf16>
    %cst_140 = arith.constant dense<0.000000e+00> : vector<16x32xf32>
    %240 = tpu.matmul %239, %160, %cst_140 {dimension_numbers = #tpu.dot_dimension_numbers<[1], [0], [0], [1], [0, 0, 1, 1], [], []>} : vector<16x64xbf16>, vector<64x32xbf16>, vector<16x32xf32> -> vector<16x32xf32>
    %241 = vector.broadcast %162 : vector<1x32xf32> to vector<16x32xf32>
    %242 = arith.addf %240, %241 : vector<16x32xf32>
    %243 = arith.addf %232, %242 : vector<16x32xf32>
    %cst_141 = arith.constant dense<0.000000e+00> : vector<16xf32>
    %244 = vector.multi_reduction <add>, %243, %cst_141 [1] : vector<16x32xf32> to vector<16xf32>
    %245 = vector.shape_cast %244 : vector<16xf32> to vector<16x1xf32>
    %cst_142 = arith.constant 3.200000e+01 : f32
    %246 = vector.broadcast %cst_142 : f32 to vector<16x1xf32>
    %247 = arith.divf %245, %246 : vector<16x1xf32>
    %248 = vector.broadcast %247 : vector<16x1xf32> to vector<16x32xf32>
    %249 = arith.subf %243, %248 : vector<16x32xf32>
    %250 = arith.mulf %249, %249 : vector<16x32xf32>
    %cst_143 = arith.constant dense<0.000000e+00> : vector<16xf32>
    %251 = vector.multi_reduction <add>, %250, %cst_143 [1] : vector<16x32xf32> to vector<16xf32>
    %252 = vector.shape_cast %251 : vector<16xf32> to vector<16x1xf32>
    %cst_144 = arith.constant 3.200000e+01 : f32
    %253 = vector.broadcast %cst_144 : f32 to vector<16x1xf32>
    %254 = arith.divf %252, %253 : vector<16x1xf32>
    %255 = vector.broadcast %247 : vector<16x1xf32> to vector<16x32xf32>
    %256 = arith.subf %243, %255 : vector<16x32xf32>
    %cst_145 = arith.constant 9.99999974E-6 : f32
    %257 = vector.broadcast %cst_145 : f32 to vector<16x1xf32>
    %258 = arith.addf %254, %257 : vector<16x1xf32>
    %259 = math.rsqrt %258 : vector<16x1xf32>
    %260 = vector.broadcast %259 : vector<16x1xf32> to vector<16x32xf32>
    %261 = arith.mulf %256, %260 : vector<16x32xf32>
    %262 = vector.broadcast %168 : vector<1x32xf32> to vector<16x32xf32>
    %263 = arith.mulf %261, %262 : vector<16x32xf32>
    %264 = vector.broadcast %170 : vector<1x32xf32> to vector<16x32xf32>
    %265 = arith.addf %263, %264 : vector<16x32xf32>
    %266 = arith.truncf %265 : vector<16x32xf32> to vector<16x32xbf16>
    %c0_146 = arith.constant 0 : index
    %c0_147 = arith.constant 0 : index
    %267 = vector.load %arg20[%c0_146, %c0_147] : memref<32x128xbf16, #tpu.memory_space<vmem>>, vector<32x128xbf16>
    %cst_148 = arith.constant dense<0.000000e+00> : vector<16x128xf32>
    %268 = tpu.matmul %266, %267, %cst_148 {dimension_numbers = #tpu.dot_dimension_numbers<[1], [0], [0], [1], [0, 0, 1, 1], [], []>} : vector<16x32xbf16>, vector<32x128xbf16>, vector<16x128xf32> -> vector<16x128xf32>
    %c0_149 = arith.constant 0 : index
    %c0_150 = arith.constant 0 : index
    %269 = vector.load %arg21[%c0_149, %c0_150] : memref<1x128xf32, #tpu.memory_space<vmem>>, vector<1x128xf32>
    %270 = vector.broadcast %269 : vector<1x128xf32> to vector<16x128xf32>
    %271 = arith.addf %268, %270 : vector<16x128xf32>
    %c0_151 = arith.constant 0 : index
    %c0_152 = arith.constant 0 : index
    %c0_153 = arith.constant 0 : index
    %272 = vector.load %arg22[%c0_151, %c0_152, %c0_153] : memref<1x16x128xf32, #tpu.memory_space<vmem>>, vector<1x16x128xf32>
    %273 = vector.shape_cast %272 : vector<1x16x128xf32> to vector<16x128xf32>
    %274 = vector.shape_cast %271 : vector<16x128xf32> to vector<1x16x128xf32>
    tpu.vector_store %arg22[%c0_151, %c0_152, %c0_153], %274 {strides = array<i32>} : memref<1x16x128xf32, #tpu.memory_space<vmem>>, vector<1x16x128xf32>,
    return
  }
  func.func @transform_0(%arg0: i32) -> (i32, i32, i32) {
    %c0_i32 = arith.constant 0 : i32
    %c0_i32_0 = arith.constant 0 : i32
    %c0_i32_1 = arith.constant 0 : i32
    return %arg0, %c0_i32, %c0_i32_0 : i32, i32, i32
  }
  func.func @transform_1(%arg0: i32) -> (i32, i32, i32) {
    %c0_i32 = arith.constant 0 : i32
    %c0_i32_0 = arith.constant 0 : i32
    %c0_i32_1 = arith.constant 0 : i32
    return %arg0, %c0_i32, %c0_i32_0 : i32, i32, i32
  }
  func.func @transform_2(%arg0: i32) -> (i32, i32) {
    %c0_i32 = arith.constant 0 : i32
    %c0_i32_0 = arith.constant 0 : i32
    %c0_i32_1 = arith.constant 0 : i32
    return %c0_i32, %c0_i32_0 : i32, i32
  }
  func.func @transform_3(%arg0: i32) -> (i32, i32, i32) {
    %c0_i32 = arith.constant 0 : i32
    %c0_i32_0 = arith.constant 0 : i32
    %c0_i32_1 = arith.constant 0 : i32
    %c0_i32_2 = arith.constant 0 : i32
    return %c0_i32, %c0_i32_0, %c0_i32_1 : i32, i32, i32
  }
  func.func @transform_4(%arg0: i32) -> (i32, i32, i32) {
    %c0_i32 = arith.constant 0 : i32
    %c0_i32_0 = arith.constant 0 : i32
    %c0_i32_1 = arith.constant 0 : i32
    %c0_i32_2 = arith.constant 0 : i32
    return %c0_i32, %c0_i32_0, %c0_i32_1 : i32, i32, i32
  }
  func.func @transform_5(%arg0: i32) -> (i32, i32, i32) {
    %c0_i32 = arith.constant 0 : i32
    %c0_i32_0 = arith.constant 0 : i32
    %c0_i32_1 = arith.constant 0 : i32
    %c0_i32_2 = arith.constant 0 : i32
    return %c0_i32, %c0_i32_0, %c0_i32_1 : i32, i32, i32
  }
  func.func @transform_6(%arg0: i32) -> (i32, i32, i32) {
    %c0_i32 = arith.constant 0 : i32
    %c0_i32_0 = arith.constant 0 : i32
    %c0_i32_1 = arith.constant 0 : i32
    %c0_i32_2 = arith.constant 0 : i32
    return %c0_i32, %c0_i32_0, %c0_i32_1 : i32, i32, i32
  }
  func.func @transform_7(%arg0: i32) -> (i32, i32, i32) {
    %c0_i32 = arith.constant 0 : i32
    %c0_i32_0 = arith.constant 0 : i32
    %c0_i32_1 = arith.constant 0 : i32
    %c0_i32_2 = arith.constant 0 : i32
    return %c0_i32, %c0_i32_0, %c0_i32_1 : i32, i32, i32
  }
  func.func @transform_8(%arg0: i32) -> (i32, i32, i32) {
    %c0_i32 = arith.constant 0 : i32
    %c0_i32_0 = arith.constant 0 : i32
    %c0_i32_1 = arith.constant 0 : i32
    %c0_i32_2 = arith.constant 0 : i32
    return %c0_i32, %c0_i32_0, %c0_i32_1 : i32, i32, i32
  }
  func.func @transform_9(%arg0: i32) -> (i32, i32, i32) {
    %c0_i32 = arith.constant 0 : i32
    %c0_i32_0 = arith.constant 0 : i32
    %c0_i32_1 = arith.constant 0 : i32
    %c0_i32_2 = arith.constant 0 : i32
    return %c0_i32, %c0_i32_0, %c0_i32_1 : i32, i32, i32
  }
  func.func @transform_10(%arg0: i32) -> (i32, i32, i32) {
    %c0_i32 = arith.constant 0 : i32
    %c0_i32_0 = arith.constant 0 : i32
    %c0_i32_1 = arith.constant 0 : i32
    %c0_i32_2 = arith.constant 0 : i32
    return %c0_i32, %c0_i32_0, %c0_i32_1 : i32, i32, i32
  }
  func.func @transform_11(%arg0: i32) -> (i32, i32, i32) {
    %c0_i32 = arith.constant 0 : i32
    %c0_i32_0 = arith.constant 0 : i32
    %c0_i32_1 = arith.constant 0 : i32
    %c0_i32_2 = arith.constant 0 : i32
    return %c0_i32, %c0_i32_0, %c0_i32_1 : i32, i32, i32
  }
  func.func @transform_12(%arg0: i32) -> (i32, i32, i32) {
    %c0_i32 = arith.constant 0 : i32
    %c0_i32_0 = arith.constant 0 : i32
    %c0_i32_1 = arith.constant 0 : i32
    %c0_i32_2 = arith.constant 0 : i32
    return %c0_i32, %c0_i32_0, %c0_i32_1 : i32, i32, i32
  }
  func.func @transform_13(%arg0: i32) -> (i32, i32, i32) {
    %c0_i32 = arith.constant 0 : i32
    %c0_i32_0 = arith.constant 0 : i32
    %c0_i32_1 = arith.constant 0 : i32
    %c0_i32_2 = arith.constant 0 : i32
    return %c0_i32, %c0_i32_0, %c0_i32_1 : i32, i32, i32
  }
  func.func @transform_14(%arg0: i32) -> (i32, i32, i32) {
    %c0_i32 = arith.constant 0 : i32
    %c0_i32_0 = arith.constant 0 : i32
    %c0_i32_1 = arith.constant 0 : i32
    %c0_i32_2 = arith.constant 0 : i32
    return %c0_i32, %c0_i32_0, %c0_i32_1 : i32, i32, i32
  }
  func.func @transform_15(%arg0: i32) -> (i32, i32, i32) {
    %c0_i32 = arith.constant 0 : i32
    %c0_i32_0 = arith.constant 0 : i32
    %c0_i32_1 = arith.constant 0 : i32
    %c0_i32_2 = arith.constant 0 : i32
    return %c0_i32, %c0_i32_0, %c0_i32_1 : i32, i32, i32
  }
  func.func @transform_16(%arg0: i32) -> (i32, i32, i32) {
    %c0_i32 = arith.constant 0 : i32
    %c0_i32_0 = arith.constant 0 : i32
    %c0_i32_1 = arith.constant 0 : i32
    %c0_i32_2 = arith.constant 0 : i32
    return %c0_i32, %c0_i32_0, %c0_i32_1 : i32, i32, i32
  }
  func.func @transform_17(%arg0: i32) -> (i32, i32, i32) {
    %c0_i32 = arith.constant 0 : i32
    %c0_i32_0 = arith.constant 0 : i32
    %c0_i32_1 = arith.constant 0 : i32
    %c0_i32_2 = arith.constant 0 : i32
    return %c0_i32, %c0_i32_0, %c0_i32_1 : i32, i32, i32
  }
  func.func @transform_18(%arg0: i32) -> (i32, i32, i32) {
    %c0_i32 = arith.constant 0 : i32
    %c0_i32_0 = arith.constant 0 : i32
    %c0_i32_1 = arith.constant 0 : i32
    %c0_i32_2 = arith.constant 0 : i32
    return %c0_i32, %c0_i32_0, %c0_i32_1 : i32, i32, i32
  }
  func.func @transform_19(%arg0: i32) -> (i32, i32) {
    %c0_i32 = arith.constant 0 : i32
    %c0_i32_0 = arith.constant 0 : i32
    %c0_i32_1 = arith.constant 0 : i32
    return %c0_i32, %c0_i32_0 : i32, i32
  }
  func.func @transform_20(%arg0: i32) -> (i32, i32) {
    %c0_i32 = arith.constant 0 : i32
    %c0_i32_0 = arith.constant 0 : i32
    %c0_i32_1 = arith.constant 0 : i32
    return %c0_i32, %c0_i32_0 : i32, i32
  }
  func.func @transform_21(%arg0: i32) -> (i32, i32, i32) {
    %c0_i32 = arith.constant 0 : i32
    %c0_i32_0 = arith.constant 0 : i32
    %c0_i32_1 = arith.constant 0 : i32
    return %arg0, %c0_i32, %c0_i32_0 : i32, i32, i32
  }
}

</mosaic_0001>

<bundles_post_ra>
// kernel: musemorphose_forward.2
= control target key start
LH: loop header
LB: loop body
LE: loop exit
PB: predicated region body
PF: predicated region fallthrough
CT: control target
= control target key end

     0   :  { %s6675_s0 = inlined_call_operand.vmem [shape: f32[4,8,32], index: 0, kind: input, shape index: {}]   ;;  %s6676_s1 = inlined_call_operand.vmem [shape: bf16[2,32,32], index: 1, kind: input, shape index: {}]   ;;  %s6677_s2 = inlined_call_operand.vmem [shape: f32[2,1,32], index: 2, kind: input, shape index: {}]   ;;  %s6678_s3 = inlined_call_operand.vmem [shape: bf16[2,32,32], index: 3, kind: input, shape index: {}]   ;;  %s6679_s4 = inlined_call_operand.vmem [shape: f32[2,1,32], index: 4, kind: input, shape index: {}]   ;;  %s6680_s5 = inlined_call_operand.vmem [shape: bf16[2,32,32], index: 5, kind: input, shape index: {}]   ;;  %s6681_s6 = inlined_call_operand.vmem [shape: f32[2,1,32], index: 6, kind: input, shape index: {}]   ;;  %s6682_s7 = inlined_call_operand.vmem [shape: bf16[2,32,32], index: 7, kind: input, shape index: {}]   ;;  %s6683_s8 = inlined_call_operand.vmem [shape: f32[2,1,32], index: 8, kind: input, shape index: {}]   ;;  %s6684_s9 = inlined_call_operand.vmem [shape: bf16[2,32,64], index: 9, kind: input, shape index: {}]   ;;  %s6685_s10 = inlined_call_operand.vmem [shape: f32[2,1,64], index: 10, kind: input, shape index: {}]   ;;  %s6686_s11 = inlined_call_operand.vmem [shape: bf16[2,64,32], index: 11, kind: input, shape index: {}]   ;;  %s6687_s12 = inlined_call_operand.vmem [shape: f32[2,1,32], index: 12, kind: input, shape index: {}]   ;;  %s6688_s13 = inlined_call_operand.vmem [shape: f32[2,1,32], index: 13, kind: input, shape index: {}]   ;;  %s6689_s14 = inlined_call_operand.vmem [shape: f32[2,1,32], index: 14, kind: input, shape index: {}]   ;;  %s6690_s15 = inlined_call_operand.vmem [shape: f32[2,1,32], index: 15, kind: input, shape index: {}]   ;;  %s6691_s16 = inlined_call_operand.vmem [shape: f32[2,1,32], index: 16, kind: input, shape index: {}]   ;;  %s6692_s17 = inlined_call_operand.vmem [shape: bf16[32,128], index: 17, kind: input, shape index: {}]   ;;  %s6693_s18 = inlined_call_operand.vmem [shape: f32[1,128], index: 18, kind: input, shape index: {}]   ;;  %s6694_s19 = inlined_call_operand.vmem [shape: f32[4,8,128], index: 19, kind: output, shape index: {}]  }
   0x1   :  { %6704 = sst [smem:[#allocation2_spill]] %s6675_s0  ;;  %s6019_s0 = smov 0  }
   0x2   :  { %6705 = sst [smem:[#allocation3_spill]] %s6676_s1 }
   0x3   :  { %6706 = sst [smem:[#allocation4_spill]] %s6677_s2 }
   0x4   :  { %6707 = sst [smem:[#allocation5_spill]] %s6678_s3 }
   0x5 LB: > { %s5388_s30 = sadd.s32 4294967295, %s5906_s0   ;;  %p5392_p0 = scmp.ge.s32.totalorder %s5906_s0, 1  ;;  %s5906_s0 = sphi %s6019_s0, %s29_s0  }
   0x6   : > { %p536_p1 = scmp.lt.s32.totalorder %s5906_s0, 5 }
   0x8   : > { %p537_p2 = pnand %p5392_p0, %p536_p1 }
   0x9   : > { %s6708_s1 = sld [smem:[#allocation5_spill]] (!%p537_p2)  ;;  %v5908_v1 = vmov (!%p537_p2), 0.0   ;;  %vm5909_vm0 = vmmov (!%p537_p2), 0   ;;  %p590_p3 = scmp.lt.s32.totalorder (!%p537_p2), %s5388_s30, 3  ;;  %vm657_vm1 = vcmask (!%p537_p2), 261120   ;;  %v5833_v17 = vld [vmem:[%s6680_s5] sm:$0xff] (!%p537_p2)   ;;  %v832_v21 = vlaneseq (!%p537_p2) }
   0xa   : > { %540 = sbr.rel (%p537_p2) target bundleno = 6244 (0x1864), region = 96  ;;  %5610 = vmatprep.subr.bf16.mxu1 (!%p537_p2), %v5908_v1  ;;  %5602 = vmatprep.subr.bf16.mxu0 (!%p537_p2), %v5908_v1  ;;  %s6709_s25 = sld [smem:[#allocation3_spill]] (!%p537_p2)  ;;  %v5399_v7 = vld [vmem:[%s6679_s4] ss:$0 sm:$0xff] (!%p537_p2)  ;;  %v5834_v18 = vld [vmem:[%s6680_s5 + $0x8] sm:$0xff] (!%p537_p2)   ;;  %vm1551_vm2 = vcmask (!%p537_p2), 1043456  }
   0xb   : > { %5614 = vmatprep.mubr.msk.bf16.mxu1 (!%p537_p2), %vm5909_vm0, %v5908_v1  ;;  %5606 = vmatprep.mubr.msk.bf16.mxu0 (!%p537_p2), %vm5909_vm0, %v5908_v1  ;;  %s6710_s20 = sld [smem:[#allocation2_spill]] (!%p537_p2)  ;;  %s6702_s23 = smov (!%p537_p2), 104   ;;  %v5913_v19 = vmov (!%p537_p2), 1983009808   ;;  %v5914_v22 = vmov (!%p537_p2), 1934713408  }
   0xc   : > { %s5911_s24 = smov (!%p537_p2), 120   ;;  %s5912_s3 = smov (!%p537_p2), 112   ;;  %v830_v20 = vunpack.c.l.s4 (!%p537_p2), %v5913_v19  ;;  %v862_v23 = vunpack.c.l.s4 (!%p537_p2), %v5914_v22  ;;  %v833_v25 = vshrl.u32 (!%p537_p2), %v832_v21, 7  ;;  %vm1547_vm3 = vcmask (!%p537_p2), 64512  }
   0xd   : > { %s6711_s26 = sld [smem:[#allocation4_spill]] (!%p537_p2)  ;;  %s6701_s29 = smov (!%p537_p2), 16   ;;  %vm2668_vm4 = vcmask (!%p537_p2), 130048   ;;  %vm2670_vm5 = vcmask (!%p537_p2), 195584   ;;  %vm2857_vm6 = vcmask (!%p537_p2), 523264  }
   0xe   : > { %v831_v24 = vunpack.c.0.s8 (!%p537_p2), %v830_v20  ;;  %v863_v28 = vunpack.c.0.s8 (!%p537_p2), %v862_v23  ;;  %s6699_s22 = smov (!%p537_p2), 24   ;;  %s6712_s28 = smov (!%p537_p2), 104  }
   0xf   : > { %v5829_v0 = vld [vmem:[%s6708_s1] sm:$0xff] (!%p537_p2)   ;;  %v5830_v2 = vld [vmem:[%s6708_s1 + $0x8] sm:$0xff] (!%p537_p2)  }
  0x10   : > { %5611 = vmatpush3.bf16.msra.mxu1 (!%p537_p2), %v5829_v0  ;;  %v5831_v3 = vld [vmem:[%s6709_s25] sm:$0xff] (!%p537_p2)   ;;  %v5832_v4 = vld [vmem:[%s6709_s25 + $0x8] sm:$0xff] (!%p537_p2)   ;;  %v6083_v29 = vsub.s32 (!%p537_p2), %v831_v24, %v833_v25  ;;  %v6085_v35 = vsub.s32 (!%p537_p2), %v863_v28, %v833_v25 }
  0x11   : > { %5612 = vmatprep.subr.bf16.mxu1 %v5908_v1  ;;  %s6718_s30 = smov (!%p590_p3, %s5388_s30), 3  ;;  %5603 = vmatpush3.bf16.msra.mxu0 %v5831_v3 }
  0x12   : > { %s6698_s27 = sshll.u32 %s6718_s30, 3  ;;  %5604 = vmatprep.subr.bf16.mxu0 %v5908_v1 }
  0x13   : > { %s6055_s21 = scalar_lea.vmem %s6710_s20, %s6698_s27  ;;  %v5395_v58 = vld [vmem:[%s6711_s26] ss:$0 sm:$0xff]  ;;  %s6700_s20 = smov 8  }
  0x14   : > { %5613 = vmatpush3.bf16.msra.mxu1 %v5830_v2  ;;  %v599_v5 = vld [vmem:[%s6055_s21] sm:$0xff] }
  0x15   : > { %5626 = vmatprep.subr.bf16.mxu1 %v5908_v1  ;;  %v638_v6 = vpack.c.bf16 %v599_v5, %v599_v5  ;;  %5605 = vmatpush3.bf16.msra.mxu0 %v5832_v4 }
  0x16   : > { %5618 = vmatprep.subr.bf16.mxu0 %v5908_v1 }
  0x17   : > { %5615 = vmatmul.mubr.msk.bf16.vlgmr.msra.gmra.mrb[0].mxu1 %vm657_vm1, %v638_v6 }
  0x18   : > { %5607 = vmatmul.mubr.msk.bf16.vlgmr.msra.gmra.mrb[0].mxu0 %vm657_vm1, %v638_v6  ;;  %5628 = vmatprep.mubr.msk.bf16.mxu1 %vm5909_vm0, %v5908_v1 }
  0x19   : > { %5622 = vmatprep.mubr.msk.bf16.mxu0 %vm5909_vm0, %v5908_v1  ;;  %5619 = vmatpush3.bf16.msra.mxu0 %v5833_v17 }
  0x1a   : > { %5620 = vmatprep.subr.bf16.mxu0 %v5908_v1 }
  0x1d   : > { %5621 = vmatpush3.bf16.msra.mxu0 %v5834_v18 }
  0x1e   : > { %5632 = vmatprep.subr.bf16.mxu0 %v5908_v1 }
  0x20   : > { %5623 = vmatmul.mubr.msk.bf16.vlgmr.msra.gmra.mrb[4].mxu0 %vm657_vm1, %v638_v6 }
  0x21   : > { %5634 = vmatprep.mubr.msk.bf16.mxu0 %vm5909_vm0, %v5908_v1 }
  0xea   : > { %v753_v8 = vpop.f32.mrb[0].mxu1 }
  0xeb   : > { %v754_v9 = vadd.f32 %v5399_v7, %v753_v8  ;;  %v5616_v10 = vpop.f32.mrb[1].mxu1  ;;  %v695_v13 = vpop.f32.mrb[0].mxu0 }
  0xec   : > { %v756_v11 = vpop.f32.mrb[2].mxu1  ;;  %v5608_v14 = vpop.f32.mrb[1].mxu0  ;;  %v6102_v61 = vadd.f32 %v5395_v58, %v695_v13 }
  0xed   : > { %902 = vrot.lane.b32.xlu1 %v754_v9, %s6702_s23  ;;  %896 = vrot.lane.b32.xlu0 %v754_v9, %s5911_s24  ;;  %v5617_v12 = vpop.f32.mrb[3].mxu1  ;;  %v698_v15 = vpop.f32.mrb[2].mxu0 }
  0xee   : > { %v5609_v16 = vpop.f32.mrb[3].mxu0 }
  0xf1   : > { %899 = vrot.lane.b32.xlu0 %v754_v9, %s5912_s3 }
 0x15f   : > { %v903_v26 = vpop.permute.xlu1 %902  ;;  %v897_v27 = vpop.permute.xlu0 %896 }
 0x160   : > { %v921_v30 = vcombine.low %v897_v27, %v903_v26  ;;  %v922_v31 = vcombine.high %v897_v27, %v903_v26  ;;  %v5915_v26 = vmov 0  }
 0x162   : > { %v929_v36 = vrot.slane %v921_v30, %v6083_v29  ;;  %v936_v37 = vrot.slane %v922_v31, %v6083_v29 }
 0x163   : > { %v900_v32 = vpop.permute.xlu0 %899 }
 0x164   : > { %v905_v33 = vcombine.low %v754_v9, %v900_v32  ;;  %v906_v34 = vcombine.high %v754_v9, %v900_v32 }
 0x166   : > { %v913_v38 = vrot.slane %v905_v33, %v6083_v29  ;;  %v920_v39 = vrot.slane %v906_v34, %v6083_v29 }
 0x168   : > { %v938_v40 = vcombine.high %v913_v38, %v929_v36  ;;  %v937_v41 = vcombine.low %v913_v38, %v929_v36  ;;  %v953_v42 = vcombine.low %v920_v39, %v936_v37  ;;  %v954_v45 = vcombine.high %v920_v39, %v936_v37 }
 0x16a   : > { %v952_v43 = vrot.slane %v938_v40, %v6085_v35  ;;  %v945_v44 = vrot.slane %v937_v41, %v6085_v35  ;;  %v961_v48 = vrot.slane %v953_v42, %v6085_v35  ;;  %v968_v52 = vrot.slane %v954_v45, %v6085_v35  ;;  %v5403_v42 = vld [vmem:[%s6681_s6] ss:$0 sm:$0xff] }
 0x16c   : > { %v1061_v46 = vpack.c.bf16 %v952_v43, %v952_v43  ;;  %v1059_v47 = vpack.c.bf16 %v945_v44, %v945_v44  ;;  %v970_v49 = vcombine.high %v952_v43, %v5908_v1  ;;  %v1063_v50 = vpack.c.bf16 %v961_v48, %v961_v48  ;;  %v811_v43 = vpop.f32.mrb[4].mxu0 }
 0x16d   : > { %v971_v53 = vcombine.high %v961_v48, %v5908_v1  ;;  %v1065_v54 = vpack.c.bf16 %v968_v52, %v968_v52  ;;  %v972_v56 = vcombine.high %v968_v52, %v5908_v1  ;;  %v969_v57 = vcombine.high %v945_v44, %v5908_v1  ;;  %v5624_v45 = vpop.f32.mrb[5].mxu0 }
 0x16e   : > { %1161 = vxpose.xlu0.c.b16.start.end [1/1] (short) (narrow) %v1061_v46, 16  ;;  %1129 = vxpose.xlu1.c.b16.start.end [1/1] (short) (narrow) %v1059_v47, 16  ;;  %v1062_v51 = vpack.c.bf16 %v970_v49, %v970_v49  ;;  %v6125_v44 = vadd.f32 %v5403_v42, %v811_v43  ;;  %v814_v48 = vpop.f32.mrb[6].mxu0 }
 0x16f   : > { %v1064_v55 = vpack.c.bf16 %v971_v53, %v971_v53  ;;  %v1066_v59 = vpack.c.bf16 %v972_v56, %v972_v56  ;;  %v1060_v60 = vpack.c.bf16 %v969_v57, %v969_v57  ;;  %v5625_v49 = vpop.f32.mrb[7].mxu0 }
 0x172   : > { %1193 = vxpose.xlu0.c.b16.start.end [1/1] (short) (narrow) %v1063_v50, 16  ;;  %1177 = vxpose.xlu1.c.b16.start.end [1/1] (short) (narrow) %v1062_v51, 16 }
 0x176   : > { %1225 = vxpose.xlu0.c.b16.start.end [1/1] (short) (narrow) %v1065_v54, 16  ;;  %1209 = vxpose.xlu1.c.b16.start.end [1/1] (short) (narrow) %v1064_v55, 16 }
 0x17a   : > { %1241 = vxpose.xlu1.c.b16.start.end [1/1] (short) (narrow) %v1066_v59, 16  ;;  %1145 = vxpose.xlu0.c.b16.start.end [1/1] (short) (narrow) %v1060_v60, 16 }
 0x17e   : > { %821 = vrot.lane.b32.xlu1 %v6102_v61, %s5912_s3 }
 0x182   : > { %824 = vrot.lane.b32.xlu1 %v6102_v61, %s6702_s23 }
 0x183   : > { %818 = vrot.lane.b32.xlu0 %v6102_v61, %s5911_s24 }
 0x1d4   : > { %v1169_v62 = vpop.trf.xlu0  ;;  %v1137_v63 = vpop.trf.xlu1 }
 0x1d8   : > { %v1201_v0 = vpop.trf.xlu0  ;;  %v1185_v2 = vpop.trf.xlu1 }
 0x1d9   : > { %v1257_v5 = vcombine.low %v1137_v63, %v1201_v0 }
 0x1db   : > { %v1264_v10 = vrot.slane %v1257_v5, %v6083_v29 }
 0x1dc   : > { %v1233_v3 = vpop.trf.xlu0  ;;  %v1217_v4 = vpop.trf.xlu1 }
 0x1dd   : > { %v1265_v6 = vcombine.low %v1169_v62, %v1233_v3 }
 0x1df   : > { %v1272_v7 = vrot.slane %v1265_v6, %v6083_v29 }
 0x1e0   : > { %v1249_v8 = vpop.trf.xlu1  ;;  %v1153_v9 = vpop.trf.xlu0 }
 0x1e1   : > { %v1299_v11 = vcombine.low %v1185_v2, %v1249_v8  ;;  %v1291_v12 = vcombine.low %v1153_v9, %v1217_v4  ;;  %v1273_v13 = vcombine.low %v1264_v10, %v1272_v7  ;;  %v1274_v14 = vcombine.high %v1264_v10, %v1272_v7 }
 0x1e3   : > { %v1306_v15 = vrot.slane %v1299_v11, %v6083_v29  ;;  %v1298_v16 = vrot.slane %v1291_v12, %v6083_v29  ;;  %v1281_v19 = vrot.slane %v1273_v13, %v6085_v35  ;;  %v1288_v20 = vrot.slane %v1274_v14, %v6085_v35 }
 0x1e5   : > { %v1307_v17 = vcombine.low %v1298_v16, %v1306_v15  ;;  %v1308_v18 = vcombine.high %v1298_v16, %v1306_v15  ;;  %v1329_v28 = vshrl.u32 %v1281_v19, 16  ;;  %v1289_v30 = vcombine.high %v1281_v19, %v5915_v26 }
 0x1e6   : > { %v1290_v36 = vcombine.high %v1288_v20, %v5915_v26  ;;  %v1345_v37 = vshrl.u32 %v1288_v20, 16 }
 0x1e7   : > { %v1315_v21 = vrot.slane %v1307_v17, %v6085_v35  ;;  %v1322_v22 = vrot.slane %v1308_v18, %v6085_v35  ;;  %v1337_v41 = vshrl.u32 %v1289_v30, 16 }
 0x1e8   : > { %v1353_v50 = vshrl.u32 %v1290_v36, 16 }
 0x1e9   : > { %v1343_v23 = vpack.i.b16 %v1322_v22, %v1288_v20  ;;  %v1327_v24 = vpack.i.b16 %v1315_v21, %v1281_v19  ;;  %v1330_v25 = vshrl.u32 %v1315_v21, 16  ;;  %v1323_v27 = vcombine.high %v1315_v21, %v5915_v26 }
 0x1ea   : > { %v1324_v33 = vcombine.high %v1322_v22, %v5915_v26  ;;  %v1346_v34 = vshrl.u32 %v1322_v22, 16 }
 0x1eb   : > { %1421 = vxpose.xlu1.c.b16.start.end [1/1] (short) (narrow) %v1343_v23, 16  ;;  %1357 = vxpose.xlu0.c.b16.start.end [1/1] (short) (narrow) %v1327_v24, 16  ;;  %v1331_v31 = vpack.i.b16 %v1330_v25, %v1329_v28  ;;  %v1335_v32 = vpack.i.b16 %v1323_v27, %v1289_v30  ;;  %v1338_v40 = vshrl.u32 %v1323_v27, 16 }
 0x1ec   : > { %v1351_v38 = vpack.i.b16 %v1324_v33, %v1290_v36  ;;  %v1347_v39 = vpack.i.b16 %v1346_v34, %v1345_v37  ;;  %v1354_v47 = vshrl.u32 %v1324_v33, 16 }
 0x1ed   : > { %v1339_v46 = vpack.i.b16 %v1338_v40, %v1337_v41 }
 0x1ee   : > { %v1355_v51 = vpack.i.b16 %v1354_v47, %v1353_v50 }
 0x1ef   : > { %1373 = vxpose.xlu1.c.b16.start.end [1/1] (short) (narrow) %v1331_v31, 16  ;;  %1389 = vxpose.xlu0.c.b16.start.end [1/1] (short) (narrow) %v1335_v32, 16 }
 0x1f0   : > { %v822_v52 = vpop.permute.xlu1 %821 }
 0x1f1   : > { %v827_v57 = vcombine.low %v6102_v61, %v822_v52  ;;  %v828_v58 = vcombine.high %v6102_v61, %v822_v52 }
 0x1f3   : > { %1453 = vxpose.xlu1.c.b16.start.end [1/1] (short) (narrow) %v1351_v38, 16  ;;  %1437 = vxpose.xlu0.c.b16.start.end [1/1] (short) (narrow) %v1347_v39, 16  ;;  %v835_v62 = vrot.slane %v827_v57, %v6083_v29  ;;  %v842_v63 = vrot.slane %v828_v58, %v6083_v29 }
 0x1f4   : > { %v825_v53 = vpop.permute.xlu1 %824 }
 0x1f5   : > { %v819_v54 = vpop.permute.xlu0 %818 }
 0x1f6   : > { %v843_v55 = vcombine.low %v819_v54, %v825_v53  ;;  %v844_v56 = vcombine.high %v819_v54, %v825_v53 }
 0x1f7   : > { %1405 = vxpose.xlu0.c.b16.start.end [1/1] (short) (narrow) %v1339_v46, 16  ;;  %974 = vrot.lane.b32.xlu1 %v6125_v44, %s5911_s24 }
 0x1f8   : > { %v851_v59 = vrot.slane %v843_v55, %v6083_v29  ;;  %v858_v60 = vrot.slane %v844_v56, %v6083_v29 }
 0x1fa   : > { %v859_v0 = vcombine.low %v835_v62, %v851_v59  ;;  %v860_v2 = vcombine.high %v835_v62, %v851_v59  ;;  %v875_v3 = vcombine.low %v842_v63, %v858_v60  ;;  %v876_v4 = vcombine.high %v842_v63, %v858_v60 }
 0x1fb   : > { %1469 = vxpose.xlu0.c.b16.start.end [1/1] (short) (narrow) %v1355_v51, 16  ;;  %980 = vrot.lane.b32.xlu1 %v6125_v44, %s6702_s23 }
 0x1fc   : > { %v867_v7 = vrot.slane %v859_v0, %v6085_v35  ;;  %v874_v8 = vrot.slane %v860_v2, %v6085_v35  ;;  %v883_v61 = vrot.slane %v875_v3, %v6085_v35  ;;  %v890_v9 = vrot.slane %v876_v4, %v6085_v35 }
 0x1fe   : > { %v891_v12 = vcombine.high %v867_v7, %v5908_v1  ;;  %v892_v13 = vcombine.high %v874_v8, %v5908_v1  ;;  %v893_v14 = vcombine.high %v883_v61, %v5908_v1  ;;  %v894_v15 = vcombine.high %v890_v9, %v5908_v1 }
 0x1ff   : > { %v5407_v23 = vpack.c.bf16 %v883_v61, %v867_v7  ;;  %v5408_v24 = vpack.c.bf16 %v890_v9, %v874_v8 }
 0x200   : > { %v5409_v20 = vpack.c.bf16 %v893_v14, %v891_v12  ;;  %v5410_v21 = vpack.c.bf16 %v894_v15, %v892_v13 }
 0x201   : > { %v1074_v33 = vrot.slane %v5407_v23, %v6083_v29  ;;  %v1082_v34 = vrot.slane %v5408_v24, %v6083_v29 }
 0x202   : > { %v1099_v28 = vrot.slane %v5409_v20, %v6083_v29  ;;  %v1107_v30 = vrot.slane %v5410_v21, %v6083_v29 }
 0x203   : > { %v1083_v42 = vcombine.low %v1074_v33, %v1082_v34 }
 0x204   : > { %977 = vrot.lane.b32.xlu0 %v6125_v44, %s5912_s3  ;;  %v1108_v38 = vcombine.low %v1099_v28, %v1107_v30 }
 0x205   : > { %v1090_v48 = vrot.slane %v1083_v42, %v6085_v35 }
 0x206   : > { %v1115_v45 = vrot.slane %v1108_v38, %v6085_v35 }
 0x207   : > { %v1120_v62 = vshrl.u32 %v1090_v48, 16 }
 0x208   : > { %v1121_v53 = vshrl.u32 %v1115_v45, 16  ;;  %v1119_v60 = vpack.i.b16 %v1115_v45, %v1090_v48  ;;  %v1116_v3 = vcombine.high %v1115_v45, %v5915_v26 }
 0x20a   : > { %v1122_v2 = vpack.i.b16 %v1121_v53, %v1120_v62 }
 0x251   : > { %v1429_v5 = vpop.trf.xlu1  ;;  %v1365_v6 = vpop.trf.xlu0 }
 0x252   : > { %v1485_v16 = vcombine.low %v1365_v6, %v1429_v5  ;;  %v1091_v5 = vcombine.high %v1090_v48, %v5915_v26  ;;  %v1127_v6 = vshrl.u32 %v1116_v3, 16 }
 0x254   : > { %v1492_v25 = vrot.slane %v1485_v16, %v6083_v29  ;;  %v1125_v7 = vpack.i.b16 %v1116_v3, %v1091_v5  ;;  %v1126_v8 = vshrl.u32 %v1091_v5, 16 }
 0x255   : > { %v1381_v10 = vpop.trf.xlu1  ;;  %v1397_v11 = vpop.trf.xlu0 }
 0x256   : > { %v1128_v61 = vpack.i.b16 %v1127_v6, %v1126_v8 }
 0x259   : > { %v1461_v17 = vpop.trf.xlu1  ;;  %v1445_v18 = vpop.trf.xlu0 }
 0x25a   : > { %v1493_v19 = vcombine.low %v1397_v11, %v1461_v17  ;;  %v1510_v32 = vcombine.low %v1381_v10, %v1445_v18 }
 0x25c   : > { %v1500_v22 = vrot.slane %v1493_v19, %v6083_v29  ;;  %v1517_v40 = vrot.slane %v1510_v32, %v6083_v29 }
 0x25d   : > { %v1413_v27 = vpop.trf.xlu0 }
 0x25e   : > { %v1501_v31 = vcombine.low %v1492_v25, %v1500_v22 }
 0x260   : > { %v1508_v39 = vrot.slane %v1501_v31, %v6085_v35 }
 0x261   : > { %v1477_v36 = vpop.trf.xlu0 }
 0x262   : > { %v1518_v37 = vcombine.low %v1413_v27, %v1477_v36  ;;  %v1509_v46 = vcombine.high %v1508_v39, %v5915_v26  ;;  %v1538_v50 = vshrl.u32 %v1508_v39, 16 }
 0x264   : > { %v1525_v41 = vrot.slane %v1518_v37, %v6083_v29  ;;  %v1544_v54 = vshrl.u32 %v1509_v46, 16 }
 0x266   : > { %v1526_v43 = vcombine.low %v1517_v40, %v1525_v41 }
 0x268   : > { %v1533_v47 = vrot.slane %v1526_v43, %v6085_v35 }
 0x269   : > { %v975_v28 = vpop.permute.xlu1 %974 }
 0x26a   : > { %v1537_v49 = vpack.i.b16 %v1533_v47, %v1508_v39  ;;  %v1539_v51 = vshrl.u32 %v1533_v47, 16  ;;  %v1534_v52 = vcombine.high %v1533_v47, %v5915_v26 }
 0x26c   : > { %v1553_v55 = vsel %vm1551_vm2, %v1537_v49, 0  ;;  %v1540_v56 = vpack.i.b16 %v1539_v51, %v1538_v50  ;;  %v1543_v57 = vpack.i.b16 %v1534_v52, %v1509_v46  ;;  %v1545_v58 = vshrl.u32 %v1534_v52, 16 }
 0x26d   : > { %5627 = vmatpush3.bf16.msra.mxu1 %v1553_v55  ;;  %v981_v31 = vpop.permute.xlu1 %980 }
 0x26e   : > { %v1599_v59 = vsel %vm1551_vm2, %v1540_v56, 0  ;;  %5638 = vmatprep.subr.bf16.mxu1 %v5908_v1  ;;  %v1546_v63 = vpack.i.b16 %v1545_v58, %v1544_v54  ;;  %v1645_v0 = vsel %vm1551_vm2, %v1543_v57, 0  ;;  %v999_v33 = vcombine.low %v975_v28, %v981_v31 }
 0x26f   : > { %5633 = vmatpush3.bf16.msra.mxu0 %v1599_v59  ;;  %v1000_v46 = vcombine.high %v975_v28, %v981_v31 }
 0x270   : > { %5629 = vmatmul.mubr.msk.bf16.vlgmr.msra.gmra.mrb[4].mxu1 %vm1547_vm3, %v1119_v60  ;;  %5644 = vmatprep.subr.bf16.mxu0 %v5908_v1  ;;  %v1691_v4 = vsel %vm1551_vm2, %v1546_v63, 0  ;;  %v1007_v36 = vrot.slane %v999_v33, %v6083_v29 }
 0x271   : > { %5639 = vmatpush3.bf16.msra.mxu1 %v1645_v0  ;;  %5640 = vmatprep.mubr.msk.bf16.mxu1 %vm5909_vm0, %v5908_v1  ;;  %v1014_v48 = vrot.slane %v1000_v46, %v6083_v29 }
 0x272   : > { %5635 = vmatmul.mubr.msk.bf16.vlgmr.msra.gmra.mrb[8].mxu0 %vm1547_vm3, %v1122_v2  ;;  %5650 = vmatprep.subr.bf16.mxu1 %v5908_v1 }
 0x273   : > { %5645 = vmatpush3.bf16.msra.mxu0 %v1691_v4  ;;  %5646 = vmatprep.mubr.msk.bf16.mxu0 %vm5909_vm0, %v5908_v1 }
 0x274   : > { %5656 = vmatprep.subr.bf16.mxu0 %v5908_v1 }
 0x276   : > { %v978_v30 = vpop.permute.xlu0 %977 }
 0x277   : > { %v983_v32 = vcombine.low %v6125_v44, %v978_v30  ;;  %v984_v45 = vcombine.high %v6125_v44, %v978_v30 }
 0x278   : > { %5641 = vmatmul.mubr.msk.bf16.vlgmr.msra.gmra.mrb[8].mxu1 %vm1547_vm3, %v1125_v7 }
 0x279   : > { %5652 = vmatprep.mubr.msk.bf16.mxu1 %vm5909_vm0, %v5908_v1  ;;  %v991_v34 = vrot.slane %v983_v32, %v6083_v29  ;;  %v998_v47 = vrot.slane %v984_v45, %v6083_v29 }
 0x27a   : > { %5647 = vmatmul.mubr.msk.bf16.vlgmr.msra.gmra.mrb[12].mxu0 %vm1547_vm3, %v1128_v61 }
 0x27b   : > { %5658 = vmatprep.mubr.msk.bf16.mxu0 %vm5909_vm0, %v5908_v1  ;;  %v1015_v37 = vcombine.low %v991_v34, %v1007_v36  ;;  %v1016_v49 = vcombine.high %v991_v34, %v1007_v36  ;;  %v1031_v50 = vcombine.low %v998_v47, %v1014_v48  ;;  %v1032_v52 = vcombine.high %v998_v47, %v1014_v48 }
 0x27d   : > { %v1023_v38 = vrot.slane %v1015_v37, %v6085_v35  ;;  %v1030_v51 = vrot.slane %v1016_v49, %v6085_v35  ;;  %v1039_v54 = vrot.slane %v1031_v50, %v6085_v35  ;;  %v1046_v57 = vrot.slane %v1032_v52, %v6085_v35 }
 0x27f   : > { %v1047_v39 = vcombine.high %v1023_v38, %v5908_v1  ;;  %v1781_v40 = vpack.c.bf16 %v1023_v38, %v1023_v38  ;;  %v1048_v53 = vcombine.high %v1030_v51, %v5908_v1  ;;  %v1049_v56 = vcombine.high %v1039_v54, %v5908_v1 }
 0x280   : > { %v1783_v44 = vpack.c.bf16 %v1030_v51, %v1030_v51  ;;  %v1050_v59 = vcombine.high %v1046_v57, %v5908_v1  ;;  %v1785_v60 = vpack.c.bf16 %v1039_v54, %v1039_v54  ;;  %v1787_v63 = vpack.c.bf16 %v1046_v57, %v1046_v57 }
 0x281   : > { %v1782_v41 = vpack.c.bf16 %v1047_v39, %v1047_v39  ;;  %v1784_v55 = vpack.c.bf16 %v1048_v53, %v1048_v53  ;;  %v1786_v58 = vpack.c.bf16 %v1049_v56, %v1049_v56 }
 0x282   : > { %v1788_v62 = vpack.c.bf16 %v1050_v59, %v1050_v59 }
 0x343   : > { %v6183_v9 = vpop.f32.mrb[4].mxu1 }
 0x344   : > { %v5630_v10 = vpop.f32.mrb[5].mxu1  ;;  %v1733_v11 = vsel %vm1547_vm3, %v6183_v9, -inf }
 0x345   : > { %v1592_v12 = vpop.f32.mrb[6].mxu1  ;;  %1734 = vmax.xlane.f32.xlu1 %v1733_v11  ;;  %v6187_v13 = vpop.f32.mrb[8].mxu0 }
 0x346   : > { %v5631_v14 = vpop.f32.mrb[7].mxu1  ;;  %v5636_v15 = vpop.f32.mrb[9].mxu0  ;;  %v1736_v16 = vsel %vm1547_vm3, %v6187_v13, -inf }
 0x347   : > { %1737 = vmax.xlane.f32.xlu0 %v1736_v16  ;;  %v1638_v17 = vpop.f32.mrb[10].mxu0 }
 0x348   : > { %v5637_v18 = vpop.f32.mrb[11].mxu0 }
 0x34b   : > { %v6191_v19 = vpop.f32.mrb[8].mxu1 }
 0x34c   : > { %v5642_v20 = vpop.f32.mrb[9].mxu1  ;;  %v1739_v42 = vsel %vm1547_vm3, %v6191_v19, -inf }
 0x34d   : > { %v1684_v21 = vpop.f32.mrb[10].mxu1  ;;  %v6193_v22 = vpop.f32.mrb[12].mxu0 }
 0x34e   : > { %v5643_v23 = vpop.f32.mrb[11].mxu1  ;;  %v5648_v24 = vpop.f32.mrb[13].mxu0  ;;  %v1742_v43 = vsel %vm1547_vm3, %v6193_v22, -inf }
 0x34f   : > { %v1730_v25 = vpop.f32.mrb[14].mxu0 }
 0x350   : > { %v5649_v27 = vpop.f32.mrb[15].mxu0 }
 0x372   : > { %1789 = vxpose.xlu1.c.b16.start.end [1/1] (short) (narrow) %v1781_v40, 16 }
 0x374   : > { %1805 = vxpose.xlu0.c.b16.start.end [1/1] (short) (narrow) %v1782_v41, 16 }
 0x37f   : > { %1740 = vmax.xlane.f32.xlu1 %v1739_v42 }
 0x381   : > { %1743 = vmax.xlane.f32.xlu0 %v1742_v43 }
 0x3ac   : > { %1837 = vxpose.xlu1.c.b16.start.end [1/1] (short) (narrow) %v1784_v55, 16 }
 0x3ae   : > { %1821 = vxpose.xlu0.c.b16.start.end [1/1] (short) (narrow) %v1783_v44, 16 }
 0x3b0   : > { %1869 = vxpose.xlu1.c.b16.start.end [1/1] (short) (narrow) %v1786_v58, 16 }
 0x3b2   : > { %1853 = vxpose.xlu0.c.b16.start.end [1/1] (short) (narrow) %v1785_v60, 16 }
 0x3b4   : > { %1901 = vxpose.xlu1.c.b16.start.end [1/1] (short) (narrow) %v1788_v62, 16 }
 0x3b6   : > { %1885 = vxpose.xlu0.c.b16.start.end [1/1] (short) (narrow) %v1787_v63, 16 }
 0x3d2   : > { %v1735_v0 = vpop.xlane.xlu1 %1734 }
 0x3d3   : > { %v1745_v38 = vsub.f32 %v6183_v9, %v1735_v0 }
 0x3d4   : > { %v1738_v2 = vpop.xlane.xlu0 %1737 }
 0x3d5   : > { %v1746_v42 = vsub.f32 %v6187_v13, %v1738_v2  ;;  %v1749_v47 = vmul.f32 1.442695, %v1745_v38 }
 0x3d7   : > { %v1751_v51 = vmul.f32 1.442695, %v1746_v42  ;;  %5859 = vpow2.f32 %v1749_v47 }
 0x3d8   : > { %v1797_v3 = vpop.trf.xlu1 }
 0x3d9   : > { %5861 = vpow2.f32 %v1751_v51 }
 0x3da   : > { %v1813_v4 = vpop.trf.xlu0 }
 0x3e1   : > { %v5860_v56 = vpop.eup %5859 }
 0x3e2   : > { %v1757_v57 = vsel %vm1547_vm3, %v5860_v56, 0.0 }
 0x40c   : > { %v1741_v5 = vpop.xlane.xlu1 %1740 }
 0x40d   : > { %v1747_v48 = vsub.f32 %v6191_v19, %v1741_v5  ;;  %v5862_v19 = vpop.eup %5861 }
 0x40e   : > { %v1744_v6 = vpop.xlane.xlu0 %1743 }
 0x40f   : > { %v1748_v9 = vsub.f32 %v6193_v22, %v1744_v6  ;;  %v1753_v54 = vmul.f32 1.442695, %v1747_v48  ;;  %v1760_v22 = vsel %vm1547_vm3, %v5862_v19, 0.0 }
 0x411   : > { %v1755_v55 = vmul.f32 1.442695, %v1748_v9  ;;  %5863 = vpow2.f32 %v1753_v54 }
 0x412   : > { %v1845_v7 = vpop.trf.xlu1 }
 0x413   : > { %5865 = vpow2.f32 %v1755_v55 }
 0x414   : > { %v1829_v8 = vpop.trf.xlu0 }
 0x416   : > { %v1877_v61 = vpop.trf.xlu1 }
 0x417   : > { %v1951_v11 = vcombine.low %v1813_v4, %v1877_v61 }
 0x418   : > { %v1861_v10 = vpop.trf.xlu0 }
 0x419   : > { %v1917_v14 = vcombine.low %v1797_v3, %v1861_v10  ;;  %v1958_v17 = vrot.slane %v1951_v11, %v6083_v29 }
 0x41a   : > { %v1909_v12 = vpop.trf.xlu1 }
 0x41b   : > { %v1959_v15 = vcombine.low %v1845_v7, %v1909_v12  ;;  %v1924_v21 = vrot.slane %v1917_v14, %v6083_v29  ;;  %v5864_v44 = vpop.eup %5863 }
 0x41c   : > { %v1893_v16 = vpop.trf.xlu0  ;;  %v1763_v59 = vsel %vm1547_vm3, %v5864_v44, 0.0 }
 0x41d   : > { %v1966_v18 = vrot.slane %v1959_v15, %v6083_v29  ;;  %v1925_v20 = vcombine.low %v1829_v8, %v1893_v16  ;;  %v5866_v58 = vpop.eup %5865 }
 0x41e   : > { %v1766_v60 = vsel %vm1547_vm3, %v5866_v58, 0.0 }
 0x41f   : > { %v1967_v23 = vcombine.low %v1958_v17, %v1966_v18  ;;  %v1932_v24 = vrot.slane %v1925_v20, %v6083_v29  ;;  %v1968_v31 = vcombine.high %v1958_v17, %v1966_v18 }
 0x421   : > { %v1933_v25 = vcombine.low %v1924_v21, %v1932_v24  ;;  %v1975_v27 = vrot.slane %v1967_v23, %v6085_v35  ;;  %v1934_v28 = vcombine.high %v1924_v21, %v1932_v24  ;;  %v1982_v46 = vrot.slane %v1968_v31, %v6085_v35 }
 0x423   : > { %v1941_v30 = vrot.slane %v1933_v25, %v6085_v35  ;;  %v1990_v32 = vshrl.u32 %v1975_v27, 16  ;;  %v1983_v37 = vcombine.high %v1975_v27, %v5915_v26  ;;  %v1948_v41 = vrot.slane %v1934_v28, %v6085_v35 }
 0x424   : > { %v2006_v53 = vshrl.u32 %v1982_v46, 16  ;;  %v1984_v63 = vcombine.high %v1982_v46, %v5915_v26 }
 0x425   : > { %v1987_v33 = vpack.i.b16 %v1975_v27, %v1941_v30  ;;  %v1989_v34 = vshrl.u32 %v1941_v30, 16  ;;  %v1949_v36 = vcombine.high %v1941_v30, %v5915_v26  ;;  %v1998_v45 = vshrl.u32 %v1983_v37, 16 }
 0x426   : > { %v2005_v50 = vshrl.u32 %v1948_v41, 16  ;;  %v2003_v52 = vpack.i.b16 %v1982_v46, %v1948_v41  ;;  %v1950_v62 = vcombine.high %v1948_v41, %v5915_v26  ;;  %v2014_v3 = vshrl.u32 %v1984_v63, 16 }
 0x427   : > { %2017 = vxpose.xlu0.c.b16.start.end [1/1] (short) (narrow) %v1987_v33, 16  ;;  %v1991_v39 = vpack.i.b16 %v1990_v32, %v1989_v34  ;;  %v1997_v40 = vshrl.u32 %v1949_v36, 16  ;;  %v1995_v43 = vpack.i.b16 %v1983_v37, %v1949_v36 }
 0x428   : > { %v2007_v13 = vpack.i.b16 %v2006_v53, %v2005_v50  ;;  %v2013_v0 = vshrl.u32 %v1950_v62, 16  ;;  %v2011_v2 = vpack.i.b16 %v1984_v63, %v1950_v62 }
 0x429   : > { %2033 = vxpose.xlu1.c.b16.start.end [1/1] (short) (narrow) %v1991_v39, 16  ;;  %v1999_v49 = vpack.i.b16 %v1998_v45, %v1997_v40 }
 0x42a   : > { %v2015_v4 = vpack.i.b16 %v2014_v3, %v2013_v0 }
 0x42b   : > { %2049 = vxpose.xlu0.c.b16.start.end [1/1] (short) (narrow) %v1995_v43, 16 }
 0x42d   : > { %2065 = vxpose.xlu1.c.b16.start.end [1/1] (short) (narrow) %v1999_v49, 16 }
 0x42f   : > { %2081 = vxpose.xlu0.c.b16.start.end [1/1] (short) (narrow) %v2003_v52, 16 }
 0x431   : > { %2097 = vxpose.xlu1.c.b16.start.end [1/1] (short) (narrow) %v2007_v13, 16 }
 0x43c   : > { %1758 = vadd.xlane.f32.xlu0 %v1757_v57 }
 0x43e   : > { %1761 = vadd.xlane.f32.xlu1 %v1760_v22 }
 0x440   : > { %1764 = vadd.xlane.f32.xlu0 %v1763_v59 }
 0x442   : > { %1767 = vadd.xlane.f32.xlu1 %v1766_v60 }
 0x46d   : > { %2113 = vxpose.xlu0.c.b16.start.end [1/1] (short) (narrow) %v2011_v2, 16 }
 0x46f   : > { %2129 = vxpose.xlu1.c.b16.start.end [1/1] (short) (narrow) %v2015_v4, 16 }
 0x48d   : > { %v2025_v5 = vpop.trf.xlu0 }
 0x48f   : > { %v2041_v6 = vpop.trf.xlu1 }
 0x491   : > { %v2057_v7 = vpop.trf.xlu0 }
 0x493   : > { %v2073_v8 = vpop.trf.xlu1 }
 0x495   : > { %v2089_v61 = vpop.trf.xlu0 }
 0x496   : > { %v2145_v16 = vcombine.low %v2025_v5, %v2089_v61 }
 0x497   : > { %v2105_v10 = vpop.trf.xlu1 }
 0x498   : > { %v2170_v20 = vcombine.low %v2041_v6, %v2105_v10  ;;  %v2152_v27 = vrot.slane %v2145_v16, %v6083_v29 }
 0x49a   : > { %v2177_v34 = vrot.slane %v2170_v20, %v6083_v29 }
 0x4c9   : > { %v1759_v11 = vpop.xlane.xlu0 %1758 }
 0x4ca   : > { %5867 = vrcp.f32 %v1759_v11 }
 0x4cb   : > { %v1762_v12 = vpop.xlane.xlu1 %1761 }
 0x4cc   : > { %5869 = vrcp.f32 %v1762_v12 }
 0x4cd   : > { %v1765_v14 = vpop.xlane.xlu0 %1764 }
 0x4ce   : > { %5871 = vrcp.f32 %v1765_v14 }
 0x4cf   : > { %v1768_v15 = vpop.xlane.xlu1 %1767 }
 0x4d0   : > { %5873 = vrcp.f32 %v1768_v15 }
 0x4d3   : > { %v2121_v17 = vpop.trf.xlu0 }
 0x4d4   : > { %v5868_v18 = vpop.eup %5867  ;;  %v2153_v21 = vcombine.low %v2057_v7, %v2121_v17 }
 0x4d5   : > { %v2137_v23 = vpop.trf.xlu1  ;;  %v1773_v24 = vmul.f32 %v5868_v18, %v5860_v56 }
 0x4d6   : > { %v5870_v25 = vpop.eup %5869  ;;  %v2160_v28 = vrot.slane %v2153_v21, %v6083_v29  ;;  %v2178_v30 = vcombine.low %v2073_v8, %v2137_v23 }
 0x4d7   : > { %v1777_v31 = vpack.c.bf16 %v1773_v24, %v1773_v24  ;;  %v1774_v32 = vmul.f32 %v5870_v25, %v5862_v19 }
 0x4d8   : > { %v5872_v33 = vpop.eup %5871  ;;  %v2161_v36 = vcombine.low %v2152_v27, %v2160_v28  ;;  %v2185_v37 = vrot.slane %v2178_v30, %v6083_v29 }
 0x4d9   : > { %v2211_v38 = vsel %vm1547_vm3, %v1777_v31, 0  ;;  %v1778_v39 = vpack.c.bf16 %v1774_v32, %v1774_v32  ;;  %v1775_v40 = vmul.f32 %v5872_v33, %v5864_v44  ;;  %v5835_v32 = vld [vmem:[%s6682_s7] sm:$0xff]  }
 0x4da   : > { %v5874_v41 = vpop.eup %5873  ;;  %v2168_v42 = vrot.slane %v2161_v36, %v6085_v35  ;;  %v2186_v43 = vcombine.low %v2177_v34, %v2185_v37  ;;  %5651 = vmatpush3.bf16.xpose.msra.mxu1 %v2211_v38 }
 0x4db   : > { %v2257_v45 = vsel %vm1547_vm3, %v1778_v39, 0  ;;  %5662 = vmatprep.subr.bf16.mxu1 %v5908_v1  ;;  %v1776_v46 = vmul.f32 %v5874_v41, %v5866_v58  ;;  %v1779_v48 = vpack.c.bf16 %v1775_v40, %v1775_v40 }
 0x4dc   : > { %v2193_v47 = vrot.slane %v2186_v43, %v6085_v35  ;;  %5657 = vmatpush3.bf16.xpose.msra.mxu0 %v2257_v45  ;;  %v2198_v49 = vshrl.u32 %v2168_v42, 16  ;;  %v2169_v13 = vcombine.high %v2168_v42, %v5915_v26 }
 0x4dd   : > { %5668 = vmatprep.subr.bf16.mxu0 %v5908_v1  ;;  %v1780_v9 = vpack.c.bf16 %v1776_v46, %v1776_v46  ;;  %v2303_v54 = vsel %vm1547_vm3, %v1779_v48, 0 }
 0x4de   : > { %v2197_v50 = vpack.i.b16 %v2193_v47, %v2168_v42  ;;  %v2199_v51 = vshrl.u32 %v2193_v47, 16  ;;  %v2194_v53 = vcombine.high %v2193_v47, %v5915_v26  ;;  %v2204_v19 = vshrl.u32 %v2169_v13, 16  ;;  %v5836_v42 = vld [vmem:[%s6682_s7 + $0x8] sm:$0xff]  }
 0x4df   : > { %v2349_v55 = vsel %vm1547_vm3, %v1780_v9, 0 }
 0x4e0   : > { %v2200_v52 = vpack.i.b16 %v2199_v51, %v2198_v49  ;;  %v2205_v56 = vshrl.u32 %v2194_v53, 16  ;;  %v2203_v57 = vpack.i.b16 %v2194_v53, %v2169_v13 }
 0x4e1   : > { %5653 = vmatmul.mubr.msk.bf16.vlgmr.msra.gmra.mrb[12].mxu1 %vm1547_vm3, %v2197_v50 }
 0x4e2   : > { %5663 = vmatpush3.bf16.xpose.msra.mxu1 %v2303_v54  ;;  %5664 = vmatprep.mubr.msk.bf16.mxu1 %vm5909_vm0, %v5908_v1  ;;  %v2206_v44 = vpack.i.b16 %v2205_v56, %v2204_v19 }
 0x4e3   : > { %5659 = vmatmul.mubr.msk.bf16.vlgmr.msra.gmra.mrb[16].mxu0 %vm1547_vm3, %v2200_v52  ;;  %5674 = vmatprep.subr.bf16.mxu1 %v5908_v1 }
 0x4e4   : > { %5669 = vmatpush3.bf16.xpose.msra.mxu0 %v2349_v55  ;;  %5670 = vmatprep.mubr.msk.bf16.mxu0 %vm5909_vm0, %v5908_v1 }
 0x4e5   : > { %5682 = vmatprep.subr.bf16.mxu0 %v5908_v1 }
 0x4e9   : > { %5665 = vmatmul.mubr.msk.bf16.vlgmr.msra.gmra.mrb[16].mxu1 %vm1547_vm3, %v2203_v57 }
 0x4ea   : > { %5678 = vmatprep.mubr.msk.bf16.mxu1 %vm5909_vm0, %v5908_v1  ;;  %5675 = vmatpush3.bf16.msra.mxu1 %v5835_v32 }
 0x4eb   : > { %5671 = vmatmul.mubr.msk.bf16.vlgmr.msra.gmra.mrb[20].mxu0 %vm1547_vm3, %v2206_v44  ;;  %5676 = vmatprep.subr.bf16.mxu1 %v5908_v1 }
 0x4ec   : > { %5686 = vmatprep.mubr.msk.bf16.mxu0 %vm5909_vm0, %v5908_v1 }
 0x4ee   : > { %5677 = vmatpush3.bf16.msra.mxu1 %v5836_v42 }
 0x4ef   : > { %5690 = vmatprep.subr.bf16.mxu1 %v5908_v1 }
 0x5b4   : > { %v2247_v22 = vpop.f32.mrb[12].mxu1 }
 0x5b5   : > { %2391 = vxpose.xlu0.b32.start.end [1/1] (short) (narrow) %v2247_v22, 8  ;;  %v5654_v58 = vpop.f32.mrb[13].mxu1 }
 0x5b6   : > { %v2250_v59 = vpop.f32.mrb[14].mxu1  ;;  %v2293_v60 = vpop.f32.mrb[16].mxu0 }
 0x5b7   : > { %v5655_v62 = vpop.f32.mrb[15].mxu1  ;;  %2423 = vxpose.xlu1.b32.start.end [1/1] (short) (narrow) %v2293_v60, 8  ;;  %v5660_v63 = vpop.f32.mrb[17].mxu0 }
 0x5b8   : > { %v2296_v0 = vpop.f32.mrb[18].mxu0  ;;  %v5421_v63 = vld [vmem:[%s6683_s8] ss:$0 sm:$0xff] }
 0x5b9   : > { %v5661_v2 = vpop.f32.mrb[19].mxu0 }
 0x5bc   : > { %v2339_v3 = vpop.f32.mrb[16].mxu1 }
 0x5bd   : > { %2455 = vxpose.xlu0.b32.start.end [1/1] (short) (narrow) %v2339_v3, 8  ;;  %v5666_v4 = vpop.f32.mrb[17].mxu1 }
 0x5be   : > { %v2342_v5 = vpop.f32.mrb[18].mxu1  ;;  %v2385_v6 = vpop.f32.mrb[20].mxu0 }
 0x5bf   : > { %v5667_v7 = vpop.f32.mrb[19].mxu1  ;;  %v5672_v8 = vpop.f32.mrb[21].mxu0 }
 0x5c0   : > { %v2388_v61 = vpop.f32.mrb[22].mxu0 }
 0x5c1   : > { %2487 = vxpose.xlu0.b32.start.end [1/1] (short) (narrow) %v2385_v6, 8  ;;  %v5673_v10 = vpop.f32.mrb[23].mxu0  ;;  %v5899_v6 = vld [vmem:[%s6055_s21] sm:$0xff]  ;;  %s6715_s21 = smov 24  }
 0x635   : > { %v2407_v11 = vpop.trf.xlu0 }
 0x637   : > { %v2439_v14 = vpop.trf.xlu1 }
 0x63d   : > { %v2471_v12 = vpop.trf.xlu0 }
 0x63e   : > { %v2519_v15 = vcombine.low %v2407_v11, %v2471_v12  ;;  %v2520_v16 = vcombine.high %v2407_v11, %v2471_v12 }
 0x640   : > { %v2527_v21 = vrot.slane %v2519_v15, %v6083_v29  ;;  %v2534_v23 = vrot.slane %v2520_v16, %v6083_v29  ;;  %v5837_v15 = vld [vmem:[%s6684_s9] sm:$0xff]   ;;  %v5838_v16 = vld [vmem:[%s6684_s9 + $0x8] sm:$0xff]  }
 0x641   : > { %v2503_v17 = vpop.trf.xlu0  ;;  %5683 = vmatpush3.bf16.msra.mxu0 %v5837_v15 }
 0x642   : > { %v2535_v18 = vcombine.low %v2439_v14, %v2503_v17  ;;  %v2536_v20 = vcombine.high %v2439_v14, %v2503_v17  ;;  %5684 = vmatprep.subr.bf16.mxu0 %v5908_v1  ;;  %v5839_v17 = vld [vmem:[%s6686_s11] sm:$0xff]  }
 0x644   : > { %v2543_v24 = vrot.slane %v2535_v18, %v6083_v29  ;;  %v2550_v25 = vrot.slane %v2536_v20, %v6083_v29  ;;  %v5840_v18 = vld [vmem:[%s6686_s11 + $0x8] sm:$0xff]  }
 0x645   : > { %5685 = vmatpush3.bf16.msra.mxu0 %v5838_v16  ;;  %v5481_v16 = vld [vmem:[%s6679_s4 + $0x1] ss:$0 sm:$0xff] }
 0x646   : > { %v2551_v27 = vcombine.low %v2527_v21, %v2543_v24  ;;  %v2552_v28 = vcombine.high %v2527_v21, %v2543_v24  ;;  %v2567_v30 = vcombine.low %v2534_v23, %v2550_v25  ;;  %v2568_v31 = vcombine.high %v2534_v23, %v2550_v25  ;;  %5702 = vmatprep.subr.bf16.mxu0 %v5908_v1  ;;  %v5425_v25 = vld [vmem:[%s6688_s13] ss:$0 sm:$0xff] }
 0x648   : > { %v2559_v33 = vrot.slane %v2551_v27, %v6085_v35  ;;  %v2566_v34 = vrot.slane %v2552_v28, %v6085_v35  ;;  %v2575_v36 = vrot.slane %v2567_v30, %v6085_v35  ;;  %v2582_v37 = vrot.slane %v2568_v31, %v6085_v35  ;;  %v5426_v28 = vld [vmem:[%s6689_s14] ss:$0 sm:$0xff] }
 0x64a   : > { %v2587_v38 = vcombine.low %v2559_v33, %v2566_v34  ;;  %v5419_v39 = vcombine.high %v2559_v33, %v2566_v34  ;;  %v2603_v40 = vcombine.low %v2575_v36, %v2582_v37  ;;  %v5420_v41 = vcombine.high %v2575_v36, %v2582_v37  ;;  %v5841_v33 = vld [vmem:[%s6686_s11 + $0x10] sm:$0xff]   ;;  %v5842_v34 = vld [vmem:[%s6686_s11 + $0x18] sm:$0xff]   ;;  %v5427_v36 = vld [vmem:[%s6685_s10] ss:$0 sm:$0xff] }
 0x64c   : > { %v2594_v43 = vrot.slane %v2587_v38, %v6083_v29  ;;  %v2602_v45 = vrot.slane %v5419_v39, %v6083_v29  ;;  %v2610_v46 = vrot.slane %v2603_v40, %v6083_v29  ;;  %v2618_v47 = vrot.slane %v5420_v41, %v6083_v29 }
 0x64e   : > { %v2620_v48 = vcombine.high %v2594_v43, %v2602_v45  ;;  %v2636_v49 = vcombine.high %v2610_v46, %v2618_v47  ;;  %v2619_v50 = vcombine.low %v2594_v43, %v2602_v45  ;;  %v2635_v51 = vcombine.low %v2610_v46, %v2618_v47  ;;  %v5431_v45 = vld [vmem:[%s6687_s12] ss:$0 sm:$0xff] }
 0x650   : > { %v2634_v9 = vrot.slane %v2620_v48, %v6085_v35  ;;  %v2650_v52 = vrot.slane %v2636_v49, %v6085_v35  ;;  %v2627_v53 = vrot.slane %v2619_v50, %v6085_v35  ;;  %v2643_v54 = vrot.slane %v2635_v51, %v6085_v35 }
 0x652   : > { %v2653_v13 = vcombine.low %v2634_v9, %v2650_v52  ;;  %v2652_v55 = vcombine.high %v2627_v53, %v2643_v54  ;;  %v2651_v56 = vcombine.low %v2627_v53, %v2643_v54  ;;  %v2654_v19 = vcombine.high %v2634_v9, %v2650_v52 }
 0x654   : > { %2660 = vrot.lane.b32.xlu0 %v2653_v13, %s6701_s29  ;;  %2656 = vrot.lane.b32.xlu1 %v2652_v55, %s6700_s20  ;;  %s6713_s29 = smov 16   ;;  %s6716_s20 = sshll.u32 %s6718_s30, 3 }
 0x655   : > { %s597_s2 = scalar_lea.vmem %s6694_s19, %s6716_s20 }
 0x658   : > { %2664 = vrot.lane.b32.xlu1 %v2654_v19, %s6699_s22  ;;  %v5844_v19 = vld [vmem:[%s6680_s5 + $0x10] sm:$0xff]  }
 0x6c6   : > { %v2657_v57 = vpop.permute.xlu1 %2656  ;;  %v2661_v44 = vpop.permute.xlu0 %2660 }
 0x6c7   : > { %v2667_v22 = vsel %vm1547_vm3, %v2651_v56, %v2657_v57  ;;  %v5843_v56 = vld [vmem:[%s6709_s25 + $0x10] sm:$0xff]   ;;  %v5845_v57 = vld [vmem:[%s6709_s25 + $0x18] sm:$0xff]  }
 0x6c8   : > { %v2669_v59 = vsel %vm2668_vm4, %v2667_v22, %v2661_v44  ;;  %v5846_v44 = vld [vmem:[%s6680_s5 + $0x18] sm:$0xff]  }
 0x6ca   : > { %v2665_v58 = vpop.permute.xlu1 %2664 }
 0x6cb   : > { %v2671_v60 = vsel %vm2670_vm5, %v2669_v59, %v2665_v58 }
 0x6cc   : > { %v2672_v62 = vpack.c.bf16 %v2671_v60, %v2671_v60 }
 0x6ce   : > { %5679 = vmatmul.mubr.msk.bf16.vlgmr.msra.gmra.mrb[20].mxu1 %vm657_vm1, %v2672_v62  ;;  %v5437_v62 = vld [vmem:[%s6690_s15] ss:$0 sm:$0xff] }
 0x6cf   : > { %5698 = vmatprep.mubr.msk.bf16.mxu1 %vm5909_vm0, %v5908_v1  ;;  %5691 = vmatpush3.bf16.msra.mxu1 %v5839_v17 }
 0x6d0   : > { %5692 = vmatprep.subr.bf16.mxu1 %v5908_v1 }
 0x6d3   : > { %5693 = vmatpush3.bf16.msra.mxu1 %v5840_v18 }
 0x6d4   : > { %5694 = vmatprep.subr.bf16.mxu1 %v5908_v1 }
 0x6d7   : > { %5695 = vmatpush3.bf16.msra.mxu1 %v5841_v33 }
 0x6d8   : > { %5696 = vmatprep.subr.bf16.mxu1 %v5908_v1 }
 0x6db   : > { %5697 = vmatpush3.bf16.msra.mxu1 %v5842_v34 }
 0x6dc   : > { %5718 = vmatprep.subr.bf16.mxu1 %v5908_v1 }
 0x7a1   : > { %v2728_v0 = vpop.f32.mrb[20].mxu1 }
 0x7a2   : > { %v2729_v2 = vadd.f32 %v5421_v63, %v2728_v0  ;;  %v5680_v3 = vpop.f32.mrb[21].mxu1  ;;  %v5438_v0 = vld [vmem:[%s6691_s16] ss:$0 sm:$0xff] }
 0x7a3   : > { %v2731_v4 = vpop.f32.mrb[22].mxu1 }
 0x7a4   : > { %v5681_v5 = vpop.f32.mrb[23].mxu1  ;;  %v2734_v7 = vadd.f32 %v5899_v6, %v2729_v2  ;;  %v5847_v4 = vld [vmem:[%s6708_s1 + $0x10] sm:$0xff]   ;;  %v5848_v6 = vld [vmem:[%s6708_s1 + $0x18] sm:$0xff]  }
 0x7a6   : > { %v2735_v8 = vsel %vm657_vm1, %v2734_v7, 0.0 }
 0x7a7   : > { %2736 = vadd.xlane.f32.xlu1 %v2735_v8 }
 0x834   : > { %v2737_v61 = vpop.xlane.xlu1 %2736 }
 0x835   : > { %v2739_v10 = vmul.f32 0.03125, %v2737_v61 }
 0x837   : > { %v2740_v11 = vsub.f32 %v2734_v7, %v2739_v10 }
 0x839   : > { %v2741_v12 = vmul.f32 %v2740_v11, %v2740_v11 }
 0x83b   : > { %v2742_v14 = vsel %vm657_vm1, %v2741_v12, 0.0 }
 0x83c   : > { %2743 = vadd.xlane.f32.xlu0 %v2742_v14 }
 0x8c9   : > { %v2744_v20 = vpop.xlane.xlu0 %2743 }
 0x8ca   : > { %v2745_v21 = vmul.f32 0.03125, %v2744_v20 }
 0x8cc   : > { %v2746_v23 = vadd.f32 1e-05, %v2745_v21 }
 0x8ce   : > { %5875 = vrsqrt.f32 %v2746_v23 }
 0x8d8   : > { %v5876_v24 = vpop.eup %5875 }
 0x8d9   : > { %v2748_v27 = vmul.f32 %v5876_v24, %v2740_v11 }
 0x8db   : > { %v2755_v30 = vmul.f32 %v5425_v25, %v2748_v27 }
 0x8dd   : > { %v2762_v31 = vadd.f32 %v5426_v28, %v2755_v30 }
 0x8df   : > { %v2763_v32 = vpack.c.bf16 %v2762_v31, %v2762_v31 }
 0x8e1   : > { %5687 = vmatmul.mubr.msk.bf16.vlgmr.msra.gmra.mrb[24].mxu0 %vm657_vm1, %v2763_v32 }
 0x8e2   : > { %5706 = vmatprep.mubr.msk.bf16.mxu0 %vm5909_vm0, %v5908_v1  ;;  %5703 = vmatpush3.bf16.msra.mxu0 %v5843_v56 }
 0x8e3   : > { %5704 = vmatprep.subr.bf16.mxu0 %v5908_v1 }
 0x8e6   : > { %5705 = vmatpush3.bf16.msra.mxu0 %v5845_v57 }
 0x8e7   : > { %5710 = vmatprep.subr.bf16.mxu0 %v5908_v1 }
 0x9b4   : > { %v2819_v37 = vpop.f32.mrb[24].mxu0 }
 0x9b5   : > { %v2820_v38 = vadd.f32 %v5427_v36, %v2819_v37  ;;  %v5688_v39 = vpop.f32.mrb[25].mxu0 }
 0x9b6   : > { %v2822_v40 = vpop.f32.mrb[26].mxu0 }
 0x9b7   : > { %v2825_v41 = vmax.f32 %v2820_v38, 0.0  ;;  %v5689_v42 = vpop.f32.mrb[27].mxu0 }
 0x9b9   : > { %v2826_v43 = vpack.c.bf16 %v2825_v41, %v2825_v41 }
 0x9bb   : > { %5699 = vmatmul.mubr.msk.bf16.vlgmr.msra.gmra.mrb[24].mxu1 %vm2857_vm6, %v2826_v43 }
 0x9bc   : > { %5722 = vmatprep.mubr.msk.bf16.mxu1 %vm5909_vm0, %v5908_v1  ;;  %5719 = vmatpush3.bf16.msra.mxu1 %v5844_v19  ;;  %v5477_v19 = vld [vmem:[%s6711_s26 + $0x1] ss:$0 sm:$0xff] }
 0x9bd   : > { %5720 = vmatprep.subr.bf16.mxu1 %v5908_v1 }
 0x9c0   : > { %5721 = vmatpush3.bf16.msra.mxu1 %v5846_v44 }
 0x9c1   : > { %5732 = vmatprep.subr.bf16.mxu1 %v5908_v1 }
 0xa8e   : > { %v2895_v46 = vpop.f32.mrb[24].mxu1 }
 0xa8f   : > { %v2896_v47 = vadd.f32 %v5431_v45, %v2895_v46  ;;  %v5700_v48 = vpop.f32.mrb[25].mxu1 }
 0xa90   : > { %v2898_v49 = vpop.f32.mrb[26].mxu1 }
 0xa91   : > { %v5701_v50 = vpop.f32.mrb[27].mxu1  ;;  %v2901_v51 = vadd.f32 %v2896_v47, %v2762_v31 }
 0xa93   : > { %v2902_v9 = vsel %vm657_vm1, %v2901_v51, 0.0 }
 0xa94   : > { %2903 = vadd.xlane.f32.xlu1 %v2902_v9 }
 0xb21   : > { %v2904_v52 = vpop.xlane.xlu1 %2903 }
 0xb22   : > { %v2905_v53 = vmul.f32 0.03125, %v2904_v52 }
 0xb24   : > { %v2906_v54 = vsub.f32 %v2901_v51, %v2905_v53 }
 0xb26   : > { %v2907_v13 = vmul.f32 %v2906_v54, %v2906_v54 }
 0xb28   : > { %v2908_v55 = vsel %vm657_vm1, %v2907_v13, 0.0 }
 0xb29   : > { %2909 = vadd.xlane.f32.xlu0 %v2908_v55 }
 0xbb6   : > { %v2910_v22 = vpop.xlane.xlu0 %2909 }
 0xbb7   : > { %v2911_v58 = vmul.f32 0.03125, %v2910_v22 }
 0xbb9   : > { %v2912_v59 = vadd.f32 1e-05, %v2911_v58 }
 0xbbb   : > { %5877 = vrsqrt.f32 %v2912_v59 }
 0xbc5   : > { %v5878_v60 = vpop.eup %5877 }
 0xbc6   : > { %v2914_v63 = vmul.f32 %v5878_v60, %v2906_v54 }
 0xbc8   : > { %v2921_v2 = vmul.f32 %v5437_v62, %v2914_v63 }
 0xbca   : > { %v6366_v3 = vadd.f32 %v5438_v0, %v2921_v2 }
 0xbcc   : > { %v2983_v5 = vpack.c.bf16 %v6366_v3, %v6366_v3 }
 0xbce   : > { %5707 = vmatmul.mubr.msk.bf16.vlgmr.msra.gmra.mrb[28].mxu0 %vm657_vm1, %v2983_v5  ;;  %5723 = vmatmul.mubr.msk.bf16.vlgmr.msra.gmra.mrb[28].mxu1 %vm657_vm1, %v2983_v5 }
 0xbcf   : > { %5711 = vmatpush3.bf16.msra.mxu0 %v5847_v4  ;;  %5714 = vmatprep.mubr.msk.bf16.mxu0 %vm5909_vm0, %v5908_v1 }
 0xbd0   : > { %5712 = vmatprep.subr.bf16.mxu0 %v5908_v1  ;;  %5734 = vmatprep.mubr.msk.bf16.mxu1 %vm5909_vm0, %v5908_v1 }
 0xbd3   : > { %5713 = vmatpush3.bf16.msra.mxu0 %v5848_v6 }
 0xbd4   : > { %5726 = vmatprep.subr.bf16.mxu0 %v5908_v1 }
 0xbd6   : > { %5715 = vmatmul.mubr.msk.bf16.vlgmr.msra.gmra.mrb[32].mxu0 %vm657_vm1, %v2983_v5 }
 0xbd7   : > { %5728 = vmatprep.mubr.msk.bf16.mxu0 %vm5909_vm0, %v5908_v1 }
 0xca1   : > { %v3039_v7 = vpop.f32.mrb[28].mxu0  ;;  %v6387_v8 = vpop.f32.mrb[28].mxu1 }
 0xca2   : > { %v5708_v61 = vpop.f32.mrb[29].mxu0  ;;  %v5724_v10 = vpop.f32.mrb[29].mxu1  ;;  %v6410_v57 = vadd.f32 %v5477_v19, %v3039_v7 }
 0xca3   : > { %v3042_v11 = vpop.f32.mrb[30].mxu0  ;;  %v3158_v12 = vpop.f32.mrb[30].mxu1 }
 0xca4   : > { %v5709_v14 = vpop.f32.mrb[31].mxu0  ;;  %v5725_v15 = vpop.f32.mrb[31].mxu1 }
 0xca9   : > { %v3097_v17 = vpop.f32.mrb[32].mxu0 }
 0xcaa   : > { %v3098_v18 = vadd.f32 %v5481_v16, %v3097_v17  ;;  %v5716_v20 = vpop.f32.mrb[33].mxu0 }
 0xcab   : > { %v3100_v21 = vpop.f32.mrb[34].mxu0 }
 0xcac   : > { %3243 = vrot.lane.b32.xlu0 %v3098_v18, %s5912_s3  ;;  %3240 = vrot.lane.b32.xlu1 %v3098_v18, %s5911_s24  ;;  %v5717_v23 = vpop.f32.mrb[35].mxu0 }
 0xcb0   : > { %3246 = vrot.lane.b32.xlu1 %v3098_v18, %s6712_s28 }
 0xd1e   : > { %v3244_v24 = vpop.permute.xlu0 %3243  ;;  %v3241_v25 = vpop.permute.xlu1 %3240 }
 0xd1f   : > { %v3249_v27 = vcombine.low %v3098_v18, %v3244_v24  ;;  %v3250_v28 = vcombine.high %v3098_v18, %v3244_v24 }
 0xd21   : > { %v3257_v33 = vrot.slane %v3249_v27, %v6083_v29  ;;  %v3264_v34 = vrot.slane %v3250_v28, %v6083_v29 }
 0xd22   : > { %v3247_v30 = vpop.permute.xlu1 %3246 }
 0xd23   : > { %v3265_v31 = vcombine.low %v3241_v25, %v3247_v30  ;;  %v3266_v32 = vcombine.high %v3241_v25, %v3247_v30 }
 0xd25   : > { %v3273_v36 = vrot.slane %v3265_v31, %v6083_v29  ;;  %v3280_v37 = vrot.slane %v3266_v32, %v6083_v29 }
 0xd27   : > { %v3281_v38 = vcombine.low %v3257_v33, %v3273_v36  ;;  %v3282_v39 = vcombine.high %v3257_v33, %v3273_v36  ;;  %v3297_v40 = vcombine.low %v3264_v34, %v3280_v37  ;;  %v3298_v43 = vcombine.high %v3264_v34, %v3280_v37 }
 0xd29   : > { %v3296_v41 = vrot.slane %v3282_v39, %v6085_v35  ;;  %v3289_v42 = vrot.slane %v3281_v38, %v6085_v35  ;;  %v3305_v47 = vrot.slane %v3297_v40, %v6085_v35  ;;  %v3312_v51 = vrot.slane %v3298_v43, %v6085_v35 }
 0xd2b   : > { %v3405_v45 = vpack.c.bf16 %v3296_v41, %v3296_v41  ;;  %v3403_v46 = vpack.c.bf16 %v3289_v42, %v3289_v42  ;;  %v3314_v48 = vcombine.high %v3296_v41, %v5908_v1  ;;  %v3407_v49 = vpack.c.bf16 %v3305_v47, %v3305_v47  ;;  %v5485_v41 = vld [vmem:[%s6681_s6 + $0x1] ss:$0 sm:$0xff] }
 0xd2c   : > { %v3315_v9 = vcombine.high %v3305_v47, %v5908_v1  ;;  %v3409_v52 = vpack.c.bf16 %v3312_v51, %v3312_v51  ;;  %v3316_v54 = vcombine.high %v3312_v51, %v5908_v1  ;;  %v3313_v13 = vcombine.high %v3289_v42, %v5908_v1 }
 0xd2d   : > { %3505 = vxpose.xlu0.c.b16.start.end [1/1] (short) (narrow) %v3405_v45, 16  ;;  %3473 = vxpose.xlu1.c.b16.start.end [1/1] (short) (narrow) %v3403_v46, 16  ;;  %v3406_v50 = vpack.c.bf16 %v3314_v48, %v3314_v48  ;;  %v6434_v43 = vadd.f32 %v5485_v41, %v6387_v8 }
 0xd2e   : > { %v3408_v53 = vpack.c.bf16 %v3315_v9, %v3315_v9  ;;  %v3410_v55 = vpack.c.bf16 %v3316_v54, %v3316_v54  ;;  %v3404_v56 = vpack.c.bf16 %v3313_v13, %v3313_v13 }
 0xd31   : > { %3537 = vxpose.xlu0.c.b16.start.end [1/1] (short) (narrow) %v3407_v49, 16  ;;  %3521 = vxpose.xlu1.c.b16.start.end [1/1] (short) (narrow) %v3406_v50, 16 }
 0xd35   : > { %3569 = vxpose.xlu0.c.b16.start.end [1/1] (short) (narrow) %v3409_v52, 16  ;;  %3553 = vxpose.xlu1.c.b16.start.end [1/1] (short) (narrow) %v3408_v53, 16 }
 0xd39   : > { %3585 = vxpose.xlu1.c.b16.start.end [1/1] (short) (narrow) %v3410_v55, 16  ;;  %3489 = vxpose.xlu0.c.b16.start.end [1/1] (short) (narrow) %v3404_v56, 16 }
 0xd3d   : > { %3165 = vrot.lane.b32.xlu1 %v6410_v57, %s5912_s3 }
 0xd41   : > { %3168 = vrot.lane.b32.xlu1 %v6410_v57, %s6712_s28 }
 0xd42   : > { %3162 = vrot.lane.b32.xlu0 %v6410_v57, %s5911_s24 }
 0xd93   : > { %v3513_v44 = vpop.trf.xlu0  ;;  %v3481_v22 = vpop.trf.xlu1 }
 0xd97   : > { %v3545_v58 = vpop.trf.xlu0  ;;  %v3529_v59 = vpop.trf.xlu1 }
 0xd98   : > { %v3601_v63 = vcombine.low %v3481_v22, %v3545_v58 }
 0xd9a   : > { %v3608_v6 = vrot.slane %v3601_v63, %v6083_v29 }
 0xd9b   : > { %v3577_v60 = vpop.trf.xlu0  ;;  %v3561_v62 = vpop.trf.xlu1 }
 0xd9c   : > { %v3609_v0 = vcombine.low %v3513_v44, %v3577_v60 }
 0xd9e   : > { %v3616_v2 = vrot.slane %v3609_v0, %v6083_v29 }
 0xd9f   : > { %v3593_v4 = vpop.trf.xlu1  ;;  %v3497_v5 = vpop.trf.xlu0 }
 0xda0   : > { %v3643_v7 = vcombine.low %v3529_v59, %v3593_v4  ;;  %v3635_v61 = vcombine.low %v3497_v5, %v3561_v62  ;;  %v3617_v10 = vcombine.low %v3608_v6, %v3616_v2  ;;  %v3618_v11 = vcombine.high %v3608_v6, %v3616_v2 }
 0xda2   : > { %v3650_v12 = vrot.slane %v3643_v7, %v6083_v29  ;;  %v3642_v14 = vrot.slane %v3635_v61, %v6083_v29  ;;  %v3625_v17 = vrot.slane %v3617_v10, %v6085_v35  ;;  %v3632_v18 = vrot.slane %v3618_v11, %v6085_v35 }
 0xda4   : > { %v3651_v15 = vcombine.low %v3642_v14, %v3650_v12  ;;  %v3652_v16 = vcombine.high %v3642_v14, %v3650_v12  ;;  %v3673_v28 = vshrl.u32 %v3625_v17, 16  ;;  %v3633_v30 = vcombine.high %v3625_v17, %v5915_v26 }
 0xda5   : > { %v3634_v36 = vcombine.high %v3632_v18, %v5915_v26  ;;  %v3689_v37 = vshrl.u32 %v3632_v18, 16 }
 0xda6   : > { %v3659_v20 = vrot.slane %v3651_v15, %v6085_v35  ;;  %v3666_v21 = vrot.slane %v3652_v16, %v6085_v35  ;;  %v3681_v42 = vshrl.u32 %v3633_v30, 16 }
 0xda7   : > { %v3697_v47 = vshrl.u32 %v3634_v36, 16 }
 0xda8   : > { %v3687_v23 = vpack.i.b16 %v3666_v21, %v3632_v18  ;;  %v3671_v24 = vpack.i.b16 %v3659_v20, %v3625_v17  ;;  %v3674_v25 = vshrl.u32 %v3659_v20, 16  ;;  %v3667_v27 = vcombine.high %v3659_v20, %v5915_v26 }
 0xda9   : > { %v3668_v33 = vcombine.high %v3666_v21, %v5915_v26  ;;  %v3690_v34 = vshrl.u32 %v3666_v21, 16 }
 0xdaa   : > { %3765 = vxpose.xlu1.c.b16.start.end [1/1] (short) (narrow) %v3687_v23, 16  ;;  %3701 = vxpose.xlu0.c.b16.start.end [1/1] (short) (narrow) %v3671_v24, 16  ;;  %v3675_v31 = vpack.i.b16 %v3674_v25, %v3673_v28  ;;  %v3679_v32 = vpack.i.b16 %v3667_v27, %v3633_v30  ;;  %v3682_v40 = vshrl.u32 %v3667_v27, 16 }
 0xdab   : > { %v3695_v38 = vpack.i.b16 %v3668_v33, %v3634_v36  ;;  %v3691_v39 = vpack.i.b16 %v3690_v34, %v3689_v37  ;;  %v3698_v46 = vshrl.u32 %v3668_v33, 16 }
 0xdac   : > { %v3683_v45 = vpack.i.b16 %v3682_v40, %v3681_v42 }
 0xdad   : > { %v3699_v48 = vpack.i.b16 %v3698_v46, %v3697_v47 }
 0xdae   : > { %3717 = vxpose.xlu1.c.b16.start.end [1/1] (short) (narrow) %v3675_v31, 16  ;;  %3733 = vxpose.xlu0.c.b16.start.end [1/1] (short) (narrow) %v3679_v32, 16 }
 0xdaf   : > { %v3166_v49 = vpop.permute.xlu1 %3165 }
 0xdb0   : > { %v3171_v52 = vcombine.low %v6410_v57, %v3166_v49  ;;  %v3172_v53 = vcombine.high %v6410_v57, %v3166_v49 }
 0xdb2   : > { %3797 = vxpose.xlu1.c.b16.start.end [1/1] (short) (narrow) %v3695_v38, 16  ;;  %3781 = vxpose.xlu0.c.b16.start.end [1/1] (short) (narrow) %v3691_v39, 16  ;;  %v3179_v55 = vrot.slane %v3171_v52, %v6083_v29  ;;  %v3186_v56 = vrot.slane %v3172_v53, %v6083_v29 }
 0xdb3   : > { %v3169_v50 = vpop.permute.xlu1 %3168 }
 0xdb4   : > { %v3163_v51 = vpop.permute.xlu0 %3162 }
 0xdb5   : > { %v3187_v8 = vcombine.low %v3163_v51, %v3169_v50  ;;  %v3188_v9 = vcombine.high %v3163_v51, %v3169_v50 }
 0xdb6   : > { %3318 = vrot.lane.b32.xlu1 %v6434_v43, %s5911_s24  ;;  %3749 = vxpose.xlu0.c.b16.start.end [1/1] (short) (narrow) %v3683_v45, 16 }
 0xdb7   : > { %v3195_v54 = vrot.slane %v3187_v8, %v6083_v29  ;;  %v3202_v13 = vrot.slane %v3188_v9, %v6083_v29 }
 0xdb9   : > { %v3203_v19 = vcombine.low %v3179_v55, %v3195_v54  ;;  %v3204_v44 = vcombine.high %v3179_v55, %v3195_v54  ;;  %v3219_v22 = vcombine.low %v3186_v56, %v3202_v13  ;;  %v3220_v58 = vcombine.high %v3186_v56, %v3202_v13 }
 0xdba   : > { %3324 = vrot.lane.b32.xlu1 %v6434_v43, %s6712_s28  ;;  %3813 = vxpose.xlu0.c.b16.start.end [1/1] (short) (narrow) %v3699_v48, 16  ;;  %s6714_s28 = smov 8  }
 0xdbb   : > { %v3211_v62 = vrot.slane %v3203_v19, %v6085_v35  ;;  %v3218_v63 = vrot.slane %v3204_v44, %v6085_v35  ;;  %v3227_v57 = vrot.slane %v3219_v22, %v6085_v35  ;;  %v3234_v0 = vrot.slane %v3220_v58, %v6085_v35 }
 0xdbd   : > { %v3235_v5 = vcombine.high %v3211_v62, %v5908_v1  ;;  %v3236_v6 = vcombine.high %v3218_v63, %v5908_v1  ;;  %v3237_v7 = vcombine.high %v3227_v57, %v5908_v1  ;;  %v3238_v61 = vcombine.high %v3234_v0, %v5908_v1 }
 0xdbe   : > { %v5489_v17 = vpack.c.bf16 %v3227_v57, %v3211_v62  ;;  %v5490_v18 = vpack.c.bf16 %v3234_v0, %v3218_v63 }
 0xdbf   : > { %v5491_v14 = vpack.c.bf16 %v3237_v7, %v3235_v5  ;;  %v5492_v15 = vpack.c.bf16 %v3238_v61, %v3236_v6 }
 0xdc0   : > { %v3418_v28 = vrot.slane %v5489_v17, %v6083_v29  ;;  %v3426_v30 = vrot.slane %v5490_v18, %v6083_v29 }
 0xdc1   : > { %v3443_v23 = vrot.slane %v5491_v14, %v6083_v29  ;;  %v3451_v24 = vrot.slane %v5492_v15, %v6083_v29 }
 0xdc2   : > { %v3427_v38 = vcombine.low %v3418_v28, %v3426_v30 }
 0xdc3   : > { %3321 = vrot.lane.b32.xlu0 %v6434_v43, %s5912_s3  ;;  %v3452_v34 = vcombine.low %v3443_v23, %v3451_v24 }
 0xdc4   : > { %v3434_v45 = vrot.slane %v3427_v38, %v6085_v35 }
 0xdc5   : > { %v3459_v41 = vrot.slane %v3452_v34, %v6085_v35 }
 0xdc6   : > { %v3464_v56 = vshrl.u32 %v3434_v45, 16 }
 0xdc7   : > { %v3465_v51 = vshrl.u32 %v3459_v41, 16  ;;  %v3463_v55 = vpack.i.b16 %v3459_v41, %v3434_v45  ;;  %v3460_v58 = vcombine.high %v3459_v41, %v5915_v26 }
 0xdc9   : > { %v3466_v22 = vpack.i.b16 %v3465_v51, %v3464_v56  ;;  %v3471_v62 = vshrl.u32 %v3460_v58, 16 }
 0xe10   : > { %v3773_v59 = vpop.trf.xlu1  ;;  %v3709_v60 = vpop.trf.xlu0 }
 0xe11   : > { %v3829_v16 = vcombine.low %v3709_v60, %v3773_v59  ;;  %v3435_v60 = vcombine.high %v3434_v45, %v5915_v26 }
 0xe13   : > { %v3836_v25 = vrot.slane %v3829_v16, %v6083_v29  ;;  %v3469_v63 = vpack.i.b16 %v3460_v58, %v3435_v60  ;;  %v3470_v57 = vshrl.u32 %v3435_v60, 16 }
 0xe14   : > { %v3725_v2 = vpop.trf.xlu1  ;;  %v3741_v4 = vpop.trf.xlu0 }
 0xe15   : > { %v3472_v0 = vpack.i.b16 %v3471_v62, %v3470_v57 }
 0xe18   : > { %v3805_v10 = vpop.trf.xlu1  ;;  %v3789_v11 = vpop.trf.xlu0 }
 0xe19   : > { %v3837_v12 = vcombine.low %v3741_v4, %v3805_v10  ;;  %v3854_v27 = vcombine.low %v3725_v2, %v3789_v11 }
 0xe1b   : > { %v3844_v20 = vrot.slane %v3837_v12, %v6083_v29  ;;  %v3861_v36 = vrot.slane %v3854_v27, %v6083_v29 }
 0xe1c   : > { %v3757_v21 = vpop.trf.xlu0 }
 0xe1d   : > { %v3845_v31 = vcombine.low %v3836_v25, %v3844_v20 }
 0xe1f   : > { %v3852_v39 = vrot.slane %v3845_v31, %v6085_v35 }
 0xe20   : > { %v3821_v32 = vpop.trf.xlu0 }
 0xe21   : > { %v3862_v33 = vcombine.low %v3757_v21, %v3821_v32  ;;  %v3853_v46 = vcombine.high %v3852_v39, %v5915_v26  ;;  %v3882_v48 = vshrl.u32 %v3852_v39, 16 }
 0xe23   : > { %v3869_v37 = vrot.slane %v3862_v33, %v6083_v29  ;;  %v3888_v54 = vshrl.u32 %v3853_v46, 16 }
 0xe25   : > { %v3870_v40 = vcombine.low %v3861_v36, %v3869_v37 }
 0xe27   : > { %v3877_v42 = vrot.slane %v3870_v40, %v6085_v35 }
 0xe28   : > { %v3319_v25 = vpop.permute.xlu1 %3318 }
 0xe29   : > { %v3881_v47 = vpack.i.b16 %v3877_v42, %v3852_v39  ;;  %v3883_v49 = vshrl.u32 %v3877_v42, 16  ;;  %v3878_v50 = vcombine.high %v3877_v42, %v5915_v26 }
 0xe2b   : > { %v3895_v8 = vsel %vm1551_vm2, %v3881_v47, 0  ;;  %v3884_v9 = vpack.i.b16 %v3883_v49, %v3882_v48  ;;  %v3887_v52 = vpack.i.b16 %v3878_v50, %v3853_v46  ;;  %v3889_v53 = vshrl.u32 %v3878_v50, 16 }
 0xe2c   : > { %5727 = vmatpush3.bf16.msra.mxu0 %v3895_v8  ;;  %v3325_v28 = vpop.permute.xlu1 %3324 }
 0xe2d   : > { %v3941_v13 = vsel %vm1551_vm2, %v3884_v9, 0  ;;  %5738 = vmatprep.subr.bf16.mxu0 %v5908_v1  ;;  %v3890_v19 = vpack.i.b16 %v3889_v53, %v3888_v54  ;;  %v3987_v44 = vsel %vm1551_vm2, %v3887_v52, 0  ;;  %v3343_v31 = vcombine.low %v3319_v25, %v3325_v28 }
 0xe2e   : > { %5733 = vmatpush3.bf16.msra.mxu1 %v3941_v13  ;;  %v3344_v45 = vcombine.high %v3319_v25, %v3325_v28 }
 0xe2f   : > { %5729 = vmatmul.mubr.msk.bf16.vlgmr.msra.gmra.mrb[36].mxu0 %vm1547_vm3, %v3463_v55  ;;  %5744 = vmatprep.subr.bf16.mxu1 %v5908_v1  ;;  %v4033_v59 = vsel %vm1551_vm2, %v3890_v19, 0  ;;  %v3351_v33 = vrot.slane %v3343_v31, %v6083_v29 }
 0xe30   : > { %5739 = vmatpush3.bf16.msra.mxu0 %v3987_v44  ;;  %5740 = vmatprep.mubr.msk.bf16.mxu0 %vm5909_vm0, %v5908_v1  ;;  %v3358_v48 = vrot.slane %v3344_v45, %v6083_v29 }
 0xe31   : > { %5735 = vmatmul.mubr.msk.bf16.vlgmr.msra.gmra.mrb[32].mxu1 %vm1547_vm3, %v3466_v22  ;;  %5750 = vmatprep.subr.bf16.mxu0 %v5908_v1 }
 0xe32   : > { %5745 = vmatpush3.bf16.msra.mxu1 %v4033_v59  ;;  %5746 = vmatprep.mubr.msk.bf16.mxu1 %vm5909_vm0, %v5908_v1 }
 0xe33   : > { %5756 = vmatprep.subr.bf16.mxu1 %v5908_v1 }
 0xe35   : > { %v3322_v27 = vpop.permute.xlu0 %3321 }
 0xe36   : > { %v3327_v30 = vcombine.low %v6434_v43, %v3322_v27  ;;  %v3328_v42 = vcombine.high %v6434_v43, %v3322_v27 }
 0xe37   : > { %5741 = vmatmul.mubr.msk.bf16.vlgmr.msra.gmra.mrb[40].mxu0 %vm1547_vm3, %v3469_v63 }
 0xe38   : > { %5752 = vmatprep.mubr.msk.bf16.mxu0 %vm5909_vm0, %v5908_v1  ;;  %v3335_v32 = vrot.slane %v3327_v30, %v6083_v29  ;;  %v3342_v46 = vrot.slane %v3328_v42, %v6083_v29 }
 0xe39   : > { %5747 = vmatmul.mubr.msk.bf16.vlgmr.msra.gmra.mrb[36].mxu1 %vm1547_vm3, %v3472_v0 }
 0xe3a   : > { %5758 = vmatprep.mubr.msk.bf16.mxu1 %vm5909_vm0, %v5908_v1  ;;  %v3359_v34 = vcombine.low %v3335_v32, %v3351_v33  ;;  %v3360_v47 = vcombine.high %v3335_v32, %v3351_v33  ;;  %v3375_v49 = vcombine.low %v3342_v46, %v3358_v48  ;;  %v3376_v51 = vcombine.high %v3342_v46, %v3358_v48 }
 0xe3c   : > { %v3367_v36 = vrot.slane %v3359_v34, %v6085_v35  ;;  %v3374_v50 = vrot.slane %v3360_v47, %v6085_v35  ;;  %v3383_v9 = vrot.slane %v3375_v49, %v6085_v35  ;;  %v3390_v54 = vrot.slane %v3376_v51, %v6085_v35 }
 0xe3e   : > { %v3391_v37 = vcombine.high %v3367_v36, %v5908_v1  ;;  %v4123_v38 = vpack.c.bf16 %v3367_v36, %v3367_v36  ;;  %v3392_v8 = vcombine.high %v3374_v50, %v5908_v1  ;;  %v3393_v53 = vcombine.high %v3383_v9, %v5908_v1 }
 0xe3f   : > { %v4125_v43 = vpack.c.bf16 %v3374_v50, %v3374_v50  ;;  %v3394_v55 = vcombine.high %v3390_v54, %v5908_v1  ;;  %v4127_v56 = vpack.c.bf16 %v3383_v9, %v3383_v9  ;;  %v4129_v44 = vpack.c.bf16 %v3390_v54, %v3390_v54 }
 0xe40   : > { %v4124_v39 = vpack.c.bf16 %v3391_v37, %v3391_v37  ;;  %v4126_v52 = vpack.c.bf16 %v3392_v8, %v3392_v8  ;;  %v4128_v13 = vpack.c.bf16 %v3393_v53, %v3393_v53 }
 0xe41   : > { %v4130_v19 = vpack.c.bf16 %v3394_v55, %v3394_v55 }
 0xf02   : > { %v6492_v2 = vpop.f32.mrb[36].mxu0 }
 0xf03   : > { %v5730_v4 = vpop.f32.mrb[37].mxu0  ;;  %v4075_v5 = vsel %vm1547_vm3, %v6492_v2, -inf }
 0xf04   : > { %v6496_v6 = vpop.f32.mrb[32].mxu1  ;;  %4076 = vmax.xlane.f32.xlu1 %v4075_v5  ;;  %v3934_v7 = vpop.f32.mrb[38].mxu0 }
 0xf05   : > { %v5731_v61 = vpop.f32.mrb[39].mxu0  ;;  %v5736_v10 = vpop.f32.mrb[33].mxu1  ;;  %v4078_v11 = vsel %vm1547_vm3, %v6496_v6, -inf }
 0xf06   : > { %4079 = vmax.xlane.f32.xlu0 %v4078_v11  ;;  %v3980_v12 = vpop.f32.mrb[34].mxu1 }
 0xf07   : > { %v5737_v14 = vpop.f32.mrb[35].mxu1 }
 0xf0a   : > { %v6500_v15 = vpop.f32.mrb[40].mxu0 }
 0xf0b   : > { %v5742_v16 = vpop.f32.mrb[41].mxu0  ;;  %v4081_v40 = vsel %vm1547_vm3, %v6500_v15, -inf }
 0xf0c   : > { %v4026_v17 = vpop.f32.mrb[42].mxu0  ;;  %v6502_v18 = vpop.f32.mrb[36].mxu1 }
 0xf0d   : > { %v5743_v20 = vpop.f32.mrb[43].mxu0  ;;  %v5748_v21 = vpop.f32.mrb[37].mxu1  ;;  %v4084_v41 = vsel %vm1547_vm3, %v6502_v18, -inf }
 0xf0e   : > { %v4072_v23 = vpop.f32.mrb[38].mxu1 }
 0xf0f   : > { %v5749_v24 = vpop.f32.mrb[39].mxu1 }
 0xf31   : > { %4131 = vxpose.xlu1.c.b16.start.end [1/1] (short) (narrow) %v4123_v38, 16 }
 0xf33   : > { %4147 = vxpose.xlu0.c.b16.start.end [1/1] (short) (narrow) %v4124_v39, 16 }
 0xf3e   : > { %4082 = vmax.xlane.f32.xlu1 %v4081_v40 }
 0xf40   : > { %4085 = vmax.xlane.f32.xlu0 %v4084_v41 }
 0xf6b   : > { %4179 = vxpose.xlu1.c.b16.start.end [1/1] (short) (narrow) %v4126_v52, 16 }
 0xf6d   : > { %4163 = vxpose.xlu0.c.b16.start.end [1/1] (short) (narrow) %v4125_v43, 16 }
 0xf6f   : > { %4211 = vxpose.xlu1.c.b16.start.end [1/1] (short) (narrow) %v4128_v13, 16 }
 0xf71   : > { %4195 = vxpose.xlu0.c.b16.start.end [1/1] (short) (narrow) %v4127_v56, 16 }
 0xf73   : > { %4243 = vxpose.xlu1.c.b16.start.end [1/1] (short) (narrow) %v4130_v19, 16 }
 0xf75   : > { %4227 = vxpose.xlu0.c.b16.start.end [1/1] (short) (narrow) %v4129_v44, 16 }
 0xf91   : > { %v4077_v22 = vpop.xlane.xlu1 %4076 }
 0xf92   : > { %v4087_v37 = vsub.f32 %v6492_v2, %v4077_v22 }
 0xf93   : > { %v4080_v58 = vpop.xlane.xlu0 %4079 }
 0xf94   : > { %v4088_v41 = vsub.f32 %v6496_v6, %v4080_v58  ;;  %v4091_v47 = vmul.f32 1.442695, %v4087_v37 }
 0xf96   : > { %v4093_v51 = vmul.f32 1.442695, %v4088_v41  ;;  %5879 = vpow2.f32 %v4091_v47 }
 0xf97   : > { %v4139_v59 = vpop.trf.xlu1 }
 0xf98   : > { %5881 = vpow2.f32 %v4093_v51 }
 0xf99   : > { %v4155_v60 = vpop.trf.xlu0 }
 0xfa0   : > { %v5880_v54 = vpop.eup %5879 }
 0xfa1   : > { %v4099_v43 = vsel %vm1547_vm3, %v5880_v54, 0.0 }
 0xfcb   : > { %v4083_v62 = vpop.xlane.xlu1 %4082 }
 0xfcc   : > { %v4089_v48 = vsub.f32 %v6500_v15, %v4083_v62  ;;  %v5882_v15 = vpop.eup %5881 }
 0xfcd   : > { %v4086_v63 = vpop.xlane.xlu0 %4085 }
 0xfce   : > { %v4090_v2 = vsub.f32 %v6502_v18, %v4086_v63  ;;  %v4095_v52 = vmul.f32 1.442695, %v4089_v48  ;;  %v4102_v18 = vsel %vm1547_vm3, %v5882_v15, 0.0 }
 0xfd0   : > { %v4097_v53 = vmul.f32 1.442695, %v4090_v2  ;;  %5883 = vpow2.f32 %v4095_v52 }
 0xfd1   : > { %v4187_v57 = vpop.trf.xlu1 }
 0xfd2   : > { %5885 = vpow2.f32 %v4097_v53 }
 0xfd3   : > { %v4171_v0 = vpop.trf.xlu0 }
 0xfd5   : > { %v4219_v4 = vpop.trf.xlu1 }
 0xfd6   : > { %v4293_v7 = vcombine.low %v4155_v60, %v4219_v4 }
 0xfd7   : > { %v4203_v5 = vpop.trf.xlu0 }
 0xfd8   : > { %v4259_v10 = vcombine.low %v4139_v59, %v4203_v5  ;;  %v4300_v14 = vrot.slane %v4293_v7, %v6083_v29 }
 0xfd9   : > { %v4251_v61 = vpop.trf.xlu1 }
 0xfda   : > { %v4301_v11 = vcombine.low %v4187_v57, %v4251_v61  ;;  %v4266_v20 = vrot.slane %v4259_v10, %v6083_v29  ;;  %v5884_v13 = vpop.eup %5883 }
 0xfdb   : > { %v4235_v12 = vpop.trf.xlu0  ;;  %v4105_v56 = vsel %vm1547_vm3, %v5884_v13, 0.0 }
 0xfdc   : > { %v4308_v16 = vrot.slane %v4301_v11, %v6083_v29  ;;  %v4267_v17 = vcombine.low %v4171_v0, %v4235_v12  ;;  %v5886_v55 = vpop.eup %5885 }
 0xfdd   : > { %v4108_v19 = vsel %vm1547_vm3, %v5886_v55, 0.0 }
 0xfde   : > { %v4309_v21 = vcombine.low %v4300_v14, %v4308_v16  ;;  %v4274_v23 = vrot.slane %v4267_v17, %v6083_v29  ;;  %v4310_v30 = vcombine.high %v4300_v14, %v4308_v16 }
 0xfe0   : > { %v4317_v24 = vrot.slane %v4309_v21, %v6085_v35  ;;  %v4275_v25 = vcombine.low %v4266_v20, %v4274_v23  ;;  %v4276_v27 = vcombine.high %v4266_v20, %v4274_v23  ;;  %v4324_v42 = vrot.slane %v4310_v30, %v6085_v35 }
 0xfe2   : > { %v4283_v28 = vrot.slane %v4275_v25, %v6085_v35  ;;  %v4332_v31 = vshrl.u32 %v4317_v24, 16  ;;  %v4325_v36 = vcombine.high %v4317_v24, %v5915_v26  ;;  %v4290_v38 = vrot.slane %v4276_v27, %v6085_v35 }
 0xfe3   : > { %v4348_v9 = vshrl.u32 %v4324_v42, 16  ;;  %v4326_v22 = vcombine.high %v4324_v42, %v5915_v26 }
 0xfe4   : > { %v4329_v32 = vpack.i.b16 %v4317_v24, %v4283_v28  ;;  %v4331_v33 = vshrl.u32 %v4283_v28, 16  ;;  %v4291_v34 = vcombine.high %v4283_v28, %v5915_v26  ;;  %v4340_v46 = vshrl.u32 %v4325_v36, 16 }
 0xfe5   : > { %v4347_v50 = vshrl.u32 %v4290_v38, 16  ;;  %v4345_v8 = vpack.i.b16 %v4324_v42, %v4290_v38  ;;  %v4292_v44 = vcombine.high %v4290_v38, %v5915_v26  ;;  %v4356_v60 = vshrl.u32 %v4326_v22, 16 }
 0xfe6   : > { %4359 = vxpose.xlu0.c.b16.start.end [1/1] (short) (narrow) %v4329_v32, 16  ;;  %v4333_v39 = vpack.i.b16 %v4332_v31, %v4331_v33  ;;  %v4339_v40 = vshrl.u32 %v4291_v34, 16  ;;  %v4337_v45 = vpack.i.b16 %v4325_v36, %v4291_v34 }
 0xfe7   : > { %v4349_v6 = vpack.i.b16 %v4348_v9, %v4347_v50  ;;  %v4355_v58 = vshrl.u32 %v4292_v44, 16  ;;  %v4353_v59 = vpack.i.b16 %v4326_v22, %v4292_v44 }
 0xfe8   : > { %4375 = vxpose.xlu1.c.b16.start.end [1/1] (short) (narrow) %v4333_v39, 16  ;;  %v4341_v49 = vpack.i.b16 %v4340_v46, %v4339_v40 }
 0xfe9   : > { %v4357_v62 = vpack.i.b16 %v4356_v60, %v4355_v58 }
 0xfea   : > { %4391 = vxpose.xlu0.c.b16.start.end [1/1] (short) (narrow) %v4337_v45, 16 }
 0xfec   : > { %4407 = vxpose.xlu1.c.b16.start.end [1/1] (short) (narrow) %v4341_v49, 16 }
 0xfee   : > { %4423 = vxpose.xlu0.c.b16.start.end [1/1] (short) (narrow) %v4345_v8, 16 }
 0xff0   : > { %4439 = vxpose.xlu1.c.b16.start.end [1/1] (short) (narrow) %v4349_v6, 16 }
 0xffb   : > { %4100 = vadd.xlane.f32.xlu0 %v4099_v43 }
 0xffd   : > { %4103 = vadd.xlane.f32.xlu1 %v4102_v18 }
 0xfff   : > { %4106 = vadd.xlane.f32.xlu0 %v4105_v56 }
0x1001   : > { %4109 = vadd.xlane.f32.xlu1 %v4108_v19 }
0x102c   : > { %4455 = vxpose.xlu0.c.b16.start.end [1/1] (short) (narrow) %v4353_v59, 16 }
0x102e   : > { %4471 = vxpose.xlu1.c.b16.start.end [1/1] (short) (narrow) %v4357_v62, 16 }
0x104c   : > { %v4367_v63 = vpop.trf.xlu0 }
0x104e   : > { %v4383_v57 = vpop.trf.xlu1 }
0x1050   : > { %v4399_v0 = vpop.trf.xlu0 }
0x1052   : > { %v4415_v4 = vpop.trf.xlu1 }
0x1054   : > { %v4431_v5 = vpop.trf.xlu0 }
0x1055   : > { %v4487_v14 = vcombine.low %v4367_v63, %v4431_v5 }
0x1056   : > { %v4447_v7 = vpop.trf.xlu1 }
0x1057   : > { %v4512_v20 = vcombine.low %v4383_v57, %v4447_v7  ;;  %v4494_v27 = vrot.slane %v4487_v14, %v6083_v29 }
0x1059   : > { %v4519_v34 = vrot.slane %v4512_v20, %v6083_v29 }
0x1088   : > { %v4101_v61 = vpop.xlane.xlu0 %4100 }
0x1089   : > { %5887 = vrcp.f32 %v4101_v61 }
0x108a   : > { %v4104_v10 = vpop.xlane.xlu1 %4103 }
0x108b   : > { %5889 = vrcp.f32 %v4104_v10 }
0x108c   : > { %v4107_v11 = vpop.xlane.xlu0 %4106 }
0x108d   : > { %5891 = vrcp.f32 %v4107_v11 }
0x108e   : > { %v4110_v12 = vpop.xlane.xlu1 %4109 }
0x108f   : > { %5893 = vrcp.f32 %v4110_v12 }
0x1092   : > { %v4463_v16 = vpop.trf.xlu0 }
0x1093   : > { %v5888_v17 = vpop.eup %5887  ;;  %v4495_v21 = vcombine.low %v4399_v0, %v4463_v16 }
0x1094   : > { %v4479_v23 = vpop.trf.xlu1  ;;  %v4115_v24 = vmul.f32 %v5888_v17, %v5880_v54 }
0x1095   : > { %v5890_v25 = vpop.eup %5889  ;;  %v4502_v28 = vrot.slane %v4495_v21, %v6083_v29  ;;  %v4520_v30 = vcombine.low %v4415_v4, %v4479_v23 }
0x1096   : > { %v4119_v31 = vpack.c.bf16 %v4115_v24, %v4115_v24  ;;  %v4116_v32 = vmul.f32 %v5890_v25, %v5882_v15 }
0x1097   : > { %v5892_v33 = vpop.eup %5891  ;;  %v4503_v36 = vcombine.low %v4494_v27, %v4502_v28  ;;  %v4527_v37 = vrot.slane %v4520_v30, %v6083_v29 }
0x1098   : > { %v4553_v38 = vsel %vm1547_vm3, %v4119_v31, 0  ;;  %v4120_v39 = vpack.c.bf16 %v4116_v32, %v4116_v32  ;;  %v4117_v40 = vmul.f32 %v5892_v33, %v5884_v13  ;;  %v5849_v32 = vld [vmem:[%s6682_s7 + $0x10] sm:$0xff]  }
0x1099   : > { %v5894_v41 = vpop.eup %5893  ;;  %v4510_v42 = vrot.slane %v4503_v36, %v6085_v35  ;;  %v4528_v45 = vcombine.low %v4519_v34, %v4527_v37  ;;  %5751 = vmatpush3.bf16.xpose.msra.mxu0 %v4553_v38 }
0x109a   : > { %v4599_v46 = vsel %vm1547_vm3, %v4120_v39, 0  ;;  %5762 = vmatprep.subr.bf16.mxu0 %v5908_v1  ;;  %v4118_v47 = vmul.f32 %v5894_v41, %v5886_v55  ;;  %v4121_v49 = vpack.c.bf16 %v4117_v40, %v4117_v40 }
0x109b   : > { %v4535_v48 = vrot.slane %v4528_v45, %v6085_v35  ;;  %5757 = vmatpush3.bf16.xpose.msra.mxu1 %v4599_v46  ;;  %v4540_v50 = vshrl.u32 %v4510_v42, 16  ;;  %v4511_v53 = vcombine.high %v4510_v42, %v5915_v26 }
0x109c   : > { %5768 = vmatprep.subr.bf16.mxu1 %v5908_v1  ;;  %v4122_v8 = vpack.c.bf16 %v4118_v47, %v4118_v47  ;;  %v4645_v6 = vsel %vm1547_vm3, %v4121_v49, 0 }
0x109d   : > { %v4539_v51 = vpack.i.b16 %v4535_v48, %v4510_v42  ;;  %v4541_v2 = vshrl.u32 %v4535_v48, 16  ;;  %v4536_v52 = vcombine.high %v4535_v48, %v5915_v26  ;;  %v4546_v43 = vshrl.u32 %v4511_v53, 16  ;;  %v5850_v42 = vld [vmem:[%s6682_s7 + $0x18] sm:$0xff]  }
0x109e   : > { %v4691_v54 = vsel %vm1547_vm3, %v4122_v8, 0 }
0x109f   : > { %v4542_v9 = vpack.i.b16 %v4541_v2, %v4540_v50  ;;  %v4547_v15 = vshrl.u32 %v4536_v52, 16  ;;  %v4545_v13 = vpack.i.b16 %v4536_v52, %v4511_v53 }
0x10a0   : > { %5753 = vmatmul.mubr.msk.bf16.vlgmr.msra.gmra.mrb[44].mxu0 %vm1547_vm3, %v4539_v51 }
0x10a1   : > { %5763 = vmatpush3.bf16.xpose.msra.mxu0 %v4645_v6  ;;  %5764 = vmatprep.mubr.msk.bf16.mxu0 %vm5909_vm0, %v5908_v1  ;;  %v4548_v18 = vpack.i.b16 %v4547_v15, %v4546_v43 }
0x10a2   : > { %5759 = vmatmul.mubr.msk.bf16.vlgmr.msra.gmra.mrb[40].mxu1 %vm1547_vm3, %v4542_v9  ;;  %5774 = vmatprep.subr.bf16.mxu0 %v5908_v1 }
0x10a3   : > { %5769 = vmatpush3.bf16.xpose.msra.mxu1 %v4691_v54  ;;  %5770 = vmatprep.mubr.msk.bf16.mxu1 %vm5909_vm0, %v5908_v1 }
0x10a4   : > { %5782 = vmatprep.subr.bf16.mxu1 %v5908_v1 }
0x10a8   : > { %5765 = vmatmul.mubr.msk.bf16.vlgmr.msra.gmra.mrb[48].mxu0 %vm1547_vm3, %v4545_v13 }
0x10a9   : > { %5778 = vmatprep.mubr.msk.bf16.mxu0 %vm5909_vm0, %v5908_v1  ;;  %5775 = vmatpush3.bf16.msra.mxu0 %v5849_v32 }
0x10aa   : > { %5771 = vmatmul.mubr.msk.bf16.vlgmr.msra.gmra.mrb[44].mxu1 %vm1547_vm3, %v4548_v18  ;;  %5776 = vmatprep.subr.bf16.mxu0 %v5908_v1 }
0x10ab   : > { %5786 = vmatprep.mubr.msk.bf16.mxu1 %vm5909_vm0, %v5908_v1 }
0x10ad   : > { %5777 = vmatpush3.bf16.msra.mxu0 %v5850_v42 }
0x10ae   : > { %5790 = vmatprep.subr.bf16.mxu0 %v5908_v1 }
0x1173   : > { %v4589_v26 = vpop.f32.mrb[44].mxu0 }
0x1174   : > { %4733 = vxpose.xlu0.b32.start.end [1/1] (short) (narrow) %v4589_v26, 8  ;;  %v5754_v55 = vpop.f32.mrb[45].mxu0 }
0x1175   : > { %v4592_v56 = vpop.f32.mrb[46].mxu0  ;;  %v4635_v19 = vpop.f32.mrb[40].mxu1 }
0x1176   : > { %4765 = vxpose.xlu1.b32.start.end [1/1] (short) (narrow) %v4635_v19, 8  ;;  %v5755_v44 = vpop.f32.mrb[47].mxu0  ;;  %v5760_v22 = vpop.f32.mrb[41].mxu1  ;;  %v5503_v19 = vld [vmem:[%s6683_s8 + $0x1] ss:$0 sm:$0xff] }
0x1177   : > { %v4638_v58 = vpop.f32.mrb[42].mxu1 }
0x1178   : > { %v5761_v59 = vpop.f32.mrb[43].mxu1 }
0x117b   : > { %v4681_v60 = vpop.f32.mrb[48].mxu0 }
0x117c   : > { %4797 = vxpose.xlu0.b32.start.end [1/1] (short) (narrow) %v4681_v60, 8  ;;  %v5766_v62 = vpop.f32.mrb[49].mxu0 }
0x117d   : > { %v4684_v63 = vpop.f32.mrb[50].mxu0  ;;  %v4727_v57 = vpop.f32.mrb[44].mxu1 }
0x117e   : > { %v5767_v0 = vpop.f32.mrb[51].mxu0  ;;  %v5772_v4 = vpop.f32.mrb[45].mxu1 }
0x117f   : > { %v4730_v5 = vpop.f32.mrb[46].mxu1 }
0x1180   : > { %v5773_v7 = vpop.f32.mrb[47].mxu1  ;;  %4829 = vxpose.xlu0.b32.start.end [1/1] (short) (narrow) %v4727_v57, 8 }
0x11f4   : > { %v4749_v61 = vpop.trf.xlu0 }
0x11f6   : > { %v4781_v11 = vpop.trf.xlu1 }
0x11fc   : > { %v4813_v10 = vpop.trf.xlu0 }
0x11fd   : > { %v4861_v12 = vcombine.low %v4749_v61, %v4813_v10  ;;  %v4862_v14 = vcombine.high %v4749_v61, %v4813_v10  ;;  %v5851_v61 = vld [vmem:[%s6684_s9 + $0x10] sm:$0xff]   ;;  %v5853_v10 = vld [vmem:[%s6686_s11 + $0x20] sm:$0xff]  }
0x11fe   : > { %5783 = vmatpush3.bf16.msra.mxu1 %v5851_v61 }
0x11ff   : > { %v4869_v21 = vrot.slane %v4861_v12, %v6083_v29  ;;  %v4876_v23 = vrot.slane %v4862_v14, %v6083_v29  ;;  %5784 = vmatprep.subr.bf16.mxu1 %v5908_v1 }
0x1200   : > { %v4845_v16 = vpop.trf.xlu0 }
0x1201   : > { %v4877_v17 = vcombine.low %v4781_v11, %v4845_v16  ;;  %v4878_v20 = vcombine.high %v4781_v11, %v4845_v16  ;;  %v5854_v11 = vld [vmem:[%s6686_s11 + $0x28] sm:$0xff]  }
0x1203   : > { %v4885_v24 = vrot.slane %v4877_v17, %v6083_v29  ;;  %v4892_v25 = vrot.slane %v4878_v20, %v6083_v29  ;;  %v5507_v20 = vld [vmem:[%s6688_s13 + $0x1] ss:$0 sm:$0xff] }
0x1205   : > { %v4893_v27 = vcombine.low %v4869_v21, %v4885_v24  ;;  %v4894_v28 = vcombine.high %v4869_v21, %v4885_v24  ;;  %v4909_v30 = vcombine.low %v4876_v23, %v4892_v25  ;;  %v4910_v31 = vcombine.high %v4876_v23, %v4892_v25  ;;  %v5508_v23 = vld [vmem:[%s6689_s14 + $0x1] ss:$0 sm:$0xff] }
0x1207   : > { %v4901_v33 = vrot.slane %v4893_v27, %v6085_v35  ;;  %v4908_v34 = vrot.slane %v4894_v28, %v6085_v35  ;;  %v4917_v36 = vrot.slane %v4909_v30, %v6085_v35  ;;  %v4924_v37 = vrot.slane %v4910_v31, %v6085_v35  ;;  %v5855_v28 = vld [vmem:[%s6686_s11 + $0x30] sm:$0xff]   ;;  %v5856_v30 = vld [vmem:[%s6686_s11 + $0x38] sm:$0xff]   ;;  %v5509_v31 = vld [vmem:[%s6685_s10 + $0x1] ss:$0 sm:$0xff] }
0x1209   : > { %v4929_v38 = vcombine.low %v4901_v33, %v4908_v34  ;;  %v5501_v39 = vcombine.high %v4901_v33, %v4908_v34  ;;  %v4945_v40 = vcombine.low %v4917_v36, %v4924_v37  ;;  %v5502_v41 = vcombine.high %v4917_v36, %v4924_v37 }
0x120b   : > { %v4936_v45 = vrot.slane %v4929_v38, %v6083_v29  ;;  %v4944_v46 = vrot.slane %v5501_v39, %v6083_v29  ;;  %v4952_v47 = vrot.slane %v4945_v40, %v6083_v29  ;;  %v4960_v48 = vrot.slane %v5502_v41, %v6083_v29  ;;  %v5513_v40 = vld [vmem:[%s6687_s12 + $0x1] ss:$0 sm:$0xff] }
0x120d   : > { %v4962_v49 = vcombine.high %v4936_v45, %v4944_v46  ;;  %v4978_v50 = vcombine.high %v4952_v47, %v4960_v48  ;;  %v4961_v51 = vcombine.low %v4936_v45, %v4944_v46  ;;  %v4977_v2 = vcombine.low %v4952_v47, %v4960_v48 }
0x120f   : > { %v4976_v8 = vrot.slane %v4962_v49, %v6085_v35  ;;  %v4992_v9 = vrot.slane %v4978_v50, %v6085_v35  ;;  %v4969_v52 = vrot.slane %v4961_v51, %v6085_v35  ;;  %v4985_v6 = vrot.slane %v4977_v2, %v6085_v35 }
0x1211   : > { %v4995_v53 = vcombine.low %v4976_v8, %v4992_v9  ;;  %v4994_v54 = vcombine.high %v4969_v52, %v4985_v6  ;;  %v4993_v15 = vcombine.low %v4969_v52, %v4985_v6  ;;  %v4996_v29 = vcombine.high %v4976_v8, %v4992_v9  ;;  %v5857_v52 = vld [vmem:[%s6692_s17] sm:$0xff]   ;;  %v5858_v6 = vld [vmem:[%s6692_s17 + $0x8] sm:$0xff]  }
0x1213   : > { %5002 = vrot.lane.b32.xlu0 %v4995_v53, %s6713_s29  ;;  %4998 = vrot.lane.b32.xlu1 %v4994_v54, %s6714_s28 }
0x1217   : > { %5006 = vrot.lane.b32.xlu1 %v4996_v29, %s6715_s21 }
0x1285   : > { %v4999_v43 = vpop.permute.xlu1 %4998  ;;  %v5003_v13 = vpop.permute.xlu0 %5002 }
0x1286   : > { %v5009_v18 = vsel %vm1547_vm3, %v4993_v15, %v4999_v43  ;;  %v5519_v43 = vld [vmem:[%s6690_s15 + $0x1] ss:$0 sm:$0xff] }
0x1287   : > { %v5010_v55 = vsel %vm2668_vm4, %v5009_v18, %v5003_v13  ;;  %v5520_v18 = vld [vmem:[%s6691_s16 + $0x1] ss:$0 sm:$0xff] }
0x1289   : > { %v5007_v26 = vpop.permute.xlu1 %5006 }
0x128a   : > { %v5011_v56 = vsel %vm2670_vm5, %v5010_v55, %v5007_v26 }
0x128b   : > { %v5012_v35 = vpack.c.bf16 %v5011_v56, %v5011_v56 }
0x128d   : > { %5779 = vmatmul.mubr.msk.bf16.vlgmr.msra.gmra.mrb[52].mxu0 %vm657_vm1, %v5012_v35 }
0x128e   : > { %5798 = vmatprep.mubr.msk.bf16.mxu0 %vm5909_vm0, %v5908_v1  ;;  %5791 = vmatpush3.bf16.msra.mxu0 %v5853_v10 }
0x128f   : > { %5792 = vmatprep.subr.bf16.mxu0 %v5908_v1 }
0x1292   : > { %5793 = vmatpush3.bf16.msra.mxu0 %v5854_v11 }
0x1293   : > { %5794 = vmatprep.subr.bf16.mxu0 %v5908_v1 }
0x1296   : > { %5795 = vmatpush3.bf16.msra.mxu0 %v5855_v28 }
0x1297   : > { %5796 = vmatprep.subr.bf16.mxu0 %v5908_v1 }
0x129a   : > { %5797 = vmatpush3.bf16.msra.mxu0 %v5856_v30 }
0x1360   : > { %v5068_v44 = vpop.f32.mrb[52].mxu0 }
0x1361   : > { %v5069_v22 = vadd.f32 %v5503_v19, %v5068_v44  ;;  %v5780_v58 = vpop.f32.mrb[53].mxu0 }
0x1362   : > { %v5071_v59 = vpop.f32.mrb[54].mxu0 }
0x1363   : > { %v5074_v60 = vadd.f32 %v5069_v22, %v6366_v3  ;;  %v5781_v62 = vpop.f32.mrb[55].mxu0  ;;  %v5852_v3 = vld [vmem:[%s6684_s9 + $0x18] sm:$0xff]  }
0x1364   : > { %5785 = vmatpush3.bf16.msra.mxu1 %v5852_v3 }
0x1365   : > { %v5075_v63 = vsel %vm657_vm1, %v5074_v60, 0.0  ;;  %5802 = vmatprep.subr.bf16.mxu1 %v5908_v1 }
0x1366   : > { %5076 = vadd.xlane.f32.xlu1 %v5075_v63 }
0x13f3   : > { %v5077_v57 = vpop.xlane.xlu1 %5076 }
0x13f4   : > { %v5078_v0 = vmul.f32 0.03125, %v5077_v57 }
0x13f6   : > { %v5079_v4 = vsub.f32 %v5074_v60, %v5078_v0 }
0x13f8   : > { %v5080_v5 = vmul.f32 %v5079_v4, %v5079_v4 }
0x13fa   : > { %v5081_v7 = vsel %vm657_vm1, %v5080_v5, 0.0 }
0x13fb   : > { %5082 = vadd.xlane.f32.xlu0 %v5081_v7 }
0x1488   : > { %v5083_v12 = vpop.xlane.xlu0 %5082 }
0x1489   : > { %v5084_v14 = vmul.f32 0.03125, %v5083_v12 }
0x148b   : > { %v5085_v16 = vadd.f32 1e-05, %v5084_v14 }
0x148d   : > { %5895 = vrsqrt.f32 %v5085_v16 }
0x1497   : > { %v5896_v17 = vpop.eup %5895 }
0x1498   : > { %v5087_v21 = vmul.f32 %v5896_v17, %v5079_v4 }
0x149a   : > { %v5094_v24 = vmul.f32 %v5507_v20, %v5087_v21 }
0x149c   : > { %v5101_v25 = vadd.f32 %v5508_v23, %v5094_v24 }
0x149e   : > { %v5102_v27 = vpack.c.bf16 %v5101_v25, %v5101_v25 }
0x14a0   : > { %5787 = vmatmul.mubr.msk.bf16.vlgmr.msra.gmra.mrb[48].mxu1 %vm657_vm1, %v5102_v27 }
0x14a1   : > { %5806 = vmatprep.mubr.msk.bf16.mxu1 %vm5909_vm0, %v5908_v1  ;;  %5803 = vmatpush3.bf16.msra.mxu1 %v5857_v52 }
0x14a2   : > { %5804 = vmatprep.subr.bf16.mxu1 %v5908_v1  ;;  %v5521_v1 = vld [vmem:[%s6693_s18] ss:$0 sm:$0xff] }
0x14a5   : > { %5805 = vmatpush3.bf16.msra.mxu1 %v5858_v6 }
0x1573   : > { %v5158_v32 = vpop.f32.mrb[48].mxu1 }
0x1574   : > { %v5159_v33 = vadd.f32 %v5509_v31, %v5158_v32  ;;  %v5788_v34 = vpop.f32.mrb[49].mxu1 }
0x1575   : > { %v5161_v36 = vpop.f32.mrb[50].mxu1 }
0x1576   : > { %v5164_v37 = vmax.f32 %v5159_v33, 0.0  ;;  %v5789_v38 = vpop.f32.mrb[51].mxu1 }
0x1578   : > { %v5165_v39 = vpack.c.bf16 %v5164_v37, %v5164_v37 }
0x157a   : > { %5799 = vmatmul.mubr.msk.bf16.vlgmr.msra.gmra.mrb[56].mxu0 %vm2857_vm6, %v5165_v39 }
0x164d   : > { %v5233_v41 = vpop.f32.mrb[56].mxu0 }
0x164e   : > { %v5234_v42 = vadd.f32 %v5513_v40, %v5233_v41  ;;  %v5800_v45 = vpop.f32.mrb[57].mxu0 }
0x164f   : > { %v5236_v46 = vpop.f32.mrb[58].mxu0 }
0x1650   : > { %v5239_v47 = vadd.f32 %v5234_v42, %v5101_v25  ;;  %v5801_v48 = vpop.f32.mrb[59].mxu0 }
0x1652   : > { %v5240_v49 = vsel %vm657_vm1, %v5239_v47, 0.0 }
0x1653   : > { %5241 = vadd.xlane.f32.xlu1 %v5240_v49 }
0x16e0   : > { %v5242_v50 = vpop.xlane.xlu1 %5241 }
0x16e1   : > { %v5243_v51 = vmul.f32 0.03125, %v5242_v50 }
0x16e3   : > { %v5244_v2 = vsub.f32 %v5239_v47, %v5243_v51 }
0x16e5   : > { %v5245_v8 = vmul.f32 %v5244_v2, %v5244_v2 }
0x16e7   : > { %v5246_v9 = vsel %vm657_vm1, %v5245_v8, 0.0 }
0x16e8   : > { %5247 = vadd.xlane.f32.xlu0 %v5246_v9 }
0x1775   : > { %v5248_v53 = vpop.xlane.xlu0 %5247 }
0x1776   : > { %v5249_v54 = vmul.f32 0.03125, %v5248_v53 }
0x1778   : > { %v5250_v15 = vadd.f32 1e-05, %v5249_v54 }
0x177a   : > { %5897 = vrsqrt.f32 %v5250_v15 }
0x1784   : > { %v5898_v29 = vpop.eup %5897 }
0x1785   : > { %v5252_v13 = vmul.f32 %v5898_v29, %v5244_v2 }
0x1787   : > { %v5259_v26 = vmul.f32 %v5519_v43, %v5252_v13 }
0x1789   : > { %v5266_v55 = vadd.f32 %v5520_v18, %v5259_v26 }
0x178b   : > { %v5267_v56 = vpack.c.bf16 %v5266_v55, %v5266_v55 }
0x178d   : > { %5807 = vmatmul.mubr.msk.bf16.vlgmr.msra.gmra.mrb[52].mxu1 %vm657_vm1, %v5267_v56 }
0x1860   : > { %v5328_v35 = vpop.f32.mrb[52].mxu1 }
0x1861   : > { %v5329_v19 = vadd.f32 %v5521_v1, %v5328_v35  ;;  %v5808_v44 = vpop.f32.mrb[53].mxu1 }
0x1862   : > { %v5331_v22 = vpop.f32.mrb[54].mxu1 }
0x1863   : > { %5334 = vst [vmem:[%s597_s2] sm:$0xff] %v5329_v19  ;;  %v5809_v58 = vpop.f32.mrb[55].mxu1 }
0x1864 PF: > { %s29_s0 = sadd.s32 1, %s5906_s0  }
0x1865   : > { %p26_p4 = scmp.ge.s32.totalorder %s29_s0, 6  }
0x1867   :  { %28 = sbr.rel (!%p26_p4) target bundleno = 5 (0x5), region = 142 }

// kernel: musemorphose_forward.3
= control target key start
LH: loop header
LB: loop body
LE: loop exit
PB: predicated region body
PF: predicated region fallthrough
CT: control target
= control target key end

     0   :  { %s9377_s0 = inlined_call_operand.vmem [shape: f32[2,16,32], index: 0, kind: input, shape index: {}]   ;;  %s9378_s1 = inlined_call_operand.vmem [shape: f32[2,16,80], index: 1, kind: input, shape index: {}]   ;;  %s9379_s2 = inlined_call_operand.vmem [shape: bf16[80,32], index: 2, kind: input, shape index: {}]   ;;  %s9380_s3 = inlined_call_operand.vmem [shape: bf16[2,32,32], index: 3, kind: input, shape index: {}]   ;;  %s9381_s4 = inlined_call_operand.vmem [shape: f32[2,1,32], index: 4, kind: input, shape index: {}]   ;;  %s9382_s5 = inlined_call_operand.vmem [shape: bf16[2,32,32], index: 5, kind: input, shape index: {}]   ;;  %s9383_s6 = inlined_call_operand.vmem [shape: f32[2,1,32], index: 6, kind: input, shape index: {}]   ;;  %s9384_s7 = inlined_call_operand.vmem [shape: bf16[2,32,32], index: 7, kind: input, shape index: {}]   ;;  %s9385_s8 = inlined_call_operand.vmem [shape: f32[2,1,32], index: 8, kind: input, shape index: {}]   ;;  %s9386_s9 = inlined_call_operand.vmem [shape: bf16[2,32,32], index: 9, kind: input, shape index: {}]   ;;  %s9387_s10 = inlined_call_operand.vmem [shape: f32[2,1,32], index: 10, kind: input, shape index: {}]   ;;  %s9388_s11 = inlined_call_operand.vmem [shape: bf16[2,32,64], index: 11, kind: input, shape index: {}]   ;;  %s9389_s12 = inlined_call_operand.vmem [shape: f32[2,1,64], index: 12, kind: input, shape index: {}]   ;;  %s9390_s13 = inlined_call_operand.vmem [shape: bf16[2,64,32], index: 13, kind: input, shape index: {}]   ;;  %s9391_s14 = inlined_call_operand.vmem [shape: f32[2,1,32], index: 14, kind: input, shape index: {}]   ;;  %s9392_s15 = inlined_call_operand.vmem [shape: f32[2,1,32], index: 15, kind: input, shape index: {}]   ;;  %s9393_s16 = inlined_call_operand.vmem [shape: f32[2,1,32], index: 16, kind: input, shape index: {}]   ;;  %s9394_s17 = inlined_call_operand.vmem [shape: f32[2,1,32], index: 17, kind: input, shape index: {}]   ;;  %s9395_s18 = inlined_call_operand.vmem [shape: f32[2,1,32], index: 18, kind: input, shape index: {}]   ;;  %s9396_s19 = inlined_call_operand.vmem [shape: bf16[32,128], index: 19, kind: input, shape index: {}]   ;;  %s9397_s20 = inlined_call_operand.vmem [shape: f32[1,128], index: 20, kind: input, shape index: {}]   ;;  %s9398_s21 = inlined_call_operand.vmem [shape: f32[2,16,128], index: 21, kind: output, shape index: {}]  }
   0x1   :  { %9410 = sst [smem:[#allocation2_spill]] %s9377_s0 }
   0x2   :  { %9411 = sst [smem:[#allocation3_spill]] %s9378_s1 }
   0x3   :  { %9412 = sst [smem:[#allocation4_spill]] %s9379_s2  ;;  %s8239_s2 = smov 0  }
   0x4   :  { %9413 = sst [smem:[#allocation5_spill]] %s9380_s3 }
   0x5   :  { %9414 = sst [smem:[#allocation6_spill]] %s9381_s4 }
   0x6   :  { %9415 = sst [smem:[#allocation7_spill]] %s9382_s5 }
   0x7 LB: > { %s7479_s25 = sadd.s32 4294967295, %s8116_s2   ;;  %p7483_p0 = scmp.ge.s32.totalorder %s8116_s2, 1  ;;  %s8116_s2 = sphi %s8239_s2, %s31_s2  }
   0x8   : > { %p597_p1 = scmp.lt.s32.totalorder %s8116_s2, 3 }
   0xa   : > { %p598_p2 = pnand %p7483_p0, %p597_p1 }
   0xb   : > { %s9416_s3 = sld [smem:[#allocation4_spill]] (!%p598_p2)  ;;  %v8118_v1 = vmov (!%p598_p2), 0.0   ;;  %vm8119_vm0 = vmmov (!%p598_p2), 0   ;;  %p662_p3 = scmp.lt.s32.totalorder (!%p598_p2), %s7479_s25, 1  ;;  %vm723_vm1 = vcmask (!%p598_p2), 654336   ;;  %vm834_vm2 = vcmask (!%p598_p2), 261120  }
   0xc   : > { %601 = sbr.rel (%p598_p2) target bundleno = 6475 (0x194b), region = 104  ;;  %7724 = vmatprep.subr.bf16.mxu0 (!%p598_p2), %v8118_v1  ;;  %7738 = vmatprep.subr.bf16.mxu1 (!%p598_p2), %v8118_v1  ;;  %s9417_s24 = sld [smem:[#allocation3_spill]] (!%p598_p2)  ;;  %v8004_v22 = vld [vmem:[%s9384_s7] sm:$0xff] (!%p598_p2)   ;;  %v8005_v23 = vld [vmem:[%s9384_s7 + $0x8] sm:$0xff] (!%p598_p2)   ;;  %v768_v42 = vlaneseq (!%p598_p2)  ;;  %v8123_v43 = vmov (!%p598_p2), 1983009808  }
   0xd   : > { %7734 = vmatprep.mubr.msk.bf16.mxu0 (!%p598_p2), %vm8119_vm0, %v8118_v1  ;;  %7742 = vmatprep.mubr.msk.bf16.mxu1 (!%p598_p2), %vm8119_vm0, %v8118_v1  ;;  %s9418_s0 = sld [smem:[#allocation5_spill]] (!%p598_p2)  ;;  %s9419_s1 = sld [smem:[#allocation2_spill]] (!%p598_p2)  ;;  %v7500_v28 = vld [vmem:[%s9383_s6] ss:$0 sm:$0xff] (!%p598_p2)  ;;  %v1020_v44 = vunpack.c.l.s4 (!%p598_p2), %v8123_v43  ;;  %v8124_v47 = vmov (!%p598_p2), 1934713408  }
   0xe   : > { %s9420_s28 = sld [smem:[#allocation7_spill]] (!%p598_p2)  ;;  %s9408_s27 = smov (!%p598_p2), 120   ;;  %v1052_v48 = vunpack.c.l.s4 (!%p598_p2), %v8124_v47  ;;  %v8360_v49 = vshrl.u32 (!%p598_p2), %v768_v42, 7  ;;  %vm2227_vm3 = vcmask (!%p598_p2), 1043456   ;;  %vm2223_vm4 = vcmask (!%p598_p2), 64512  }
   0xf   : > { %s9421_s4 = sld [smem:[#allocation6_spill]] (!%p598_p2)  ;;  %s9406_s5 = smov (!%p598_p2), 104   ;;  %v1021_v50 = vunpack.c.0.s8 (!%p598_p2), %v1020_v44  ;;  %vm2425_vm6 = vcmask (!%p598_p2), 130048   ;;  %vm3760_vm8 = vcmask (!%p598_p2), 195584   ;;  %vm3967_vm9 = vcmask (!%p598_p2), 523264  }
  0x10   : > { %v1053_v53 = vunpack.c.0.s8 (!%p598_p2), %v1052_v48  ;;  %s9405_s22 = smov (!%p598_p2), 16   ;;  %s9404_s23 = smov (!%p598_p2), 8  }
  0x11   : > { %v7995_v0 = vld [vmem:[%s9416_s3] sm:$0xff] (!%p598_p2)   ;;  %v7996_v2 = vld [vmem:[%s9416_s3 + $0x8] sm:$0xff] (!%p598_p2)   ;;  %v7997_v3 = vld [vmem:[%s9416_s3 + $0x10] sm:$0xff] (!%p598_p2)   ;;  %v8363_v54 = vsub.s32 (!%p598_p2), %v1021_v50, %v8360_v49 }
  0x12   : > { %7725 = vmatpush3.bf16.msra.mxu0 (!%p598_p2), %v7995_v0  ;;  %v7998_v4 = vld [vmem:[%s9416_s3 + $0x18] sm:$0xff] (!%p598_p2)   ;;  %v7999_v5 = vld [vmem:[%s9416_s3 + $0x20] sm:$0xff] (!%p598_p2)   ;;  %v8366_v61 = vsub.s32 (!%p598_p2), %v1053_v53, %v8360_v49 }
  0x13   : > { %7726 = vmatprep.subr.bf16.mxu0 %v8118_v1  ;;  %s9432_s25 = smov (!%p662_p3, %s7479_s25), 1  ;;  %v8000_v9 = vld [vmem:[%s9418_s0] sm:$0xff]   ;;  %v8001_v10 = vld [vmem:[%s9418_s0 + $0x8] sm:$0xff]  }
  0x14   : > { %s8263_s30 = sshll.u32 %s9432_s25, 4  ;;  %7739 = vmatpush3.bf16.msra.mxu1 %v8000_v9  ;;  %v8002_v19 = vld [vmem:[%s9420_s28] sm:$0xff]   ;;  %v8003_v21 = vld [vmem:[%s9420_s28 + $0x8] sm:$0xff]   ;;  %s9427_s25 = smov 104  }
  0x15   : > { %s671_s26 = scalar_lea.vmem %s9417_s24, %s8263_s30  ;;  %7740 = vmatprep.subr.bf16.mxu1 %v8118_v1  ;;  %s666_s24 = scalar_lea.vmem %s9419_s1, %s8263_s30  ;;  %v7496_v37 = vld [vmem:[%s9421_s4] ss:$0 sm:$0xff] }
  0x16   : > { %7727 = vmatpush3.bf16.msra.mxu0 %v7996_v2  ;;  %v680_v6 = vld [vmem:[%s671_s26] sm:$0xff]  ;;  %v681_v7 = vld [vmem:[%s671_s26 + $0x8] sm:$0xff]  ;;  %s8120_s26 = smov 112   ;;  %s9403_s1 = smov 24  }
  0x17   : > { %7728 = vmatprep.subr.bf16.mxu0 %v8118_v1  ;;  %v682_v8 = vpack.c.bf16 %v681_v7, %v680_v6  ;;  %v678_v11 = vld [vmem:[%s666_s24] sm:$0xff]  ;;  %v679_v13 = vld [vmem:[%s666_s24 + $0x8] sm:$0xff]  ;;  %s9426_s24 = smov 120  }
  0x18   : > { %7741 = vmatpush3.bf16.msra.mxu1 %v8001_v10 }
  0x19   : > { %7746 = vmatprep.subr.bf16.mxu1 %v8118_v1 }
  0x1a   : > { %7729 = vmatpush3.bf16.msra.mxu0 %v7997_v3 }
  0x1b   : > { %7730 = vmatprep.subr.bf16.mxu0 %v8118_v1 }
  0x1e   : > { %7731 = vmatpush3.bf16.msra.mxu0 %v7998_v4 }
  0x1f   : > { %7732 = vmatprep.subr.bf16.mxu0 %v8118_v1 }
  0x22   : > { %7733 = vmatpush3.bf16.msra.mxu0 %v7999_v5 }
  0x23   : > { %7762 = vmatprep.subr.bf16.mxu0 %v8118_v1 }
  0x25   : > { %7735 = vmatmul.mubr.msk.bf16.vlgmr.msra.gmra.mrb[0].mxu0 %vm723_vm1, %v682_v8 }
  0x26   : > { %7764 = vmatprep.mubr.msk.bf16.mxu0 %vm8119_vm0, %v8118_v1 }
  0xf8   : > { %v8293_v12 = vpop.f32.mrb[0].mxu0 }
  0xf9   : > { %v7736_v14 = vpop.f32.mrb[1].mxu0  ;;  %v8298_v16 = vadd.f32 %v8293_v12, %v678_v11 }
  0xfa   : > { %v8295_v15 = vpop.f32.mrb[2].mxu0 }
  0xfb   : > { %v8301_v17 = vadd.f32 %v8295_v15, %v679_v13  ;;  %v7737_v18 = vpop.f32.mrb[3].mxu0 }
  0xfd   : > { %v815_v20 = vpack.c.bf16 %v8301_v17, %v8298_v16 }
  0xff   : > { %7743 = vmatmul.mubr.msk.bf16.vlgmr.msra.gmra.mrb[0].mxu1 %vm834_vm2, %v815_v20 }
 0x100   : > { %7747 = vmatpush3.bf16.msra.mxu1 %v8002_v19  ;;  %7750 = vmatprep.mubr.msk.bf16.mxu1 %vm8119_vm0, %v8118_v1 }
 0x101   : > { %7748 = vmatprep.subr.bf16.mxu1 %v8118_v1 }
 0x104   : > { %7749 = vmatpush3.bf16.msra.mxu1 %v8003_v21 }
 0x105   : > { %7754 = vmatprep.subr.bf16.mxu1 %v8118_v1 }
 0x107   : > { %7751 = vmatmul.mubr.msk.bf16.vlgmr.msra.gmra.mrb[4].mxu1 %vm834_vm2, %v815_v20 }
 0x108   : > { %7755 = vmatpush3.bf16.msra.mxu1 %v8004_v22  ;;  %7758 = vmatprep.mubr.msk.bf16.mxu1 %vm8119_vm0, %v8118_v1 }
 0x109   : > { %7756 = vmatprep.subr.bf16.mxu1 %v8118_v1 }
 0x10c   : > { %7757 = vmatpush3.bf16.msra.mxu1 %v8005_v23 }
 0x10d   : > { %7768 = vmatprep.subr.bf16.mxu1 %v8118_v1 }
 0x10f   : > { %7759 = vmatmul.mubr.msk.bf16.vlgmr.msra.gmra.mrb[8].mxu1 %vm834_vm2, %v815_v20 }
 0x110   : > { %7770 = vmatprep.mubr.msk.bf16.mxu1 %vm8119_vm0, %v8118_v1 }
 0x1d2   : > { %v872_v24 = vpop.f32.mrb[0].mxu1 }
 0x1d3   : > { %v7744_v25 = vpop.f32.mrb[1].mxu1  ;;  %v8351_v40 = vadd.f32 %v7496_v37, %v872_v24 }
 0x1d4   : > { %v875_v26 = vpop.f32.mrb[2].mxu1 }
 0x1d5   : > { %v7745_v27 = vpop.f32.mrb[3].mxu1  ;;  %v8353_v41 = vadd.f32 %v7496_v37, %v875_v26 }
 0x1da   : > { %v931_v29 = vpop.f32.mrb[4].mxu1 }
 0x1db   : > { %v932_v30 = vadd.f32 %v7500_v28, %v931_v29  ;;  %v7752_v31 = vpop.f32.mrb[5].mxu1 }
 0x1dc   : > { %v934_v32 = vpop.f32.mrb[6].mxu1 }
 0x1dd   : > { %1161 = vrot.lane.b32.xlu1 %v932_v30, %s8120_s26  ;;  %1155 = vrot.lane.b32.xlu0 %v932_v30, %s9408_s27  ;;  %v7753_v33 = vpop.f32.mrb[7].mxu1  ;;  %v8335_v34 = vadd.f32 %v7500_v28, %v934_v32 }
 0x1e1   : > { %1163 = vrot.lane.b32.xlu1 %v8335_v34, %s8120_s26  ;;  %1157 = vrot.lane.b32.xlu0 %v8335_v34, %s9408_s27 }
 0x1e2   : > { %v8341_v35 = vpop.f32.mrb[8].mxu1 }
 0x1e3   : > { %v7760_v36 = vpop.f32.mrb[9].mxu1 }
 0x1e4   : > { %v8346_v38 = vpop.f32.mrb[10].mxu1 }
 0x1e5   : > { %1169 = vrot.lane.b32.xlu1 %v8335_v34, %s9406_s5  ;;  %1167 = vrot.lane.b32.xlu0 %v932_v30, %s9406_s5  ;;  %v7761_v39 = vpop.f32.mrb[11].mxu1 }
 0x1e9   : > { %999 = vrot.lane.b32.xlu1 %v8351_v40, %s9408_s27  ;;  %1001 = vrot.lane.b32.xlu0 %v8353_v41, %s9408_s27 }
 0x24f   : > { %v1162_v45 = vpop.permute.xlu1 %1161  ;;  %v1156_v46 = vpop.permute.xlu0 %1155 }
 0x250   : > { %v1173_v55 = vcombine.low %v932_v30, %v1162_v45  ;;  %v1174_v56 = vcombine.high %v932_v30, %v1162_v45 }
 0x252   : > { %v1181_v62 = vrot.slane %v1173_v55, %v8363_v54  ;;  %v1188_v63 = vrot.slane %v1174_v56, %v8363_v54 }
 0x253   : > { %v1164_v51 = vpop.permute.xlu1 %1163  ;;  %v1158_v52 = vpop.permute.xlu0 %1157 }
 0x254   : > { %v1241_v8 = vcombine.low %v8335_v34, %v1164_v51  ;;  %v1242_v27 = vcombine.high %v8335_v34, %v1164_v51 }
 0x256   : > { %v1249_v20 = vrot.slane %v1241_v8, %v8363_v54  ;;  %v1256_v36 = vrot.slane %v1242_v27, %v8363_v54 }
 0x257   : > { %v1168_v57 = vpop.permute.xlu0 %1167  ;;  %v1170_v58 = vpop.permute.xlu1 %1169 }
 0x258   : > { %v1189_v59 = vcombine.low %v1156_v46, %v1168_v57  ;;  %v1190_v60 = vcombine.high %v1156_v46, %v1168_v57  ;;  %v1257_v3 = vcombine.low %v1158_v52, %v1170_v58  ;;  %v1258_v21 = vcombine.high %v1158_v52, %v1170_v58 }
 0x25a   : > { %v1197_v0 = vrot.slane %v1189_v59, %v8363_v54  ;;  %v1204_v2 = vrot.slane %v1190_v60, %v8363_v54  ;;  %v1265_v11 = vrot.slane %v1257_v3, %v8363_v54  ;;  %v1272_v28 = vrot.slane %v1258_v21, %v8363_v54 }
 0x25c   : > { %v1221_v4 = vcombine.low %v1188_v63, %v1204_v2  ;;  %v1205_v5 = vcombine.low %v1181_v62, %v1197_v0  ;;  %v1222_v6 = vcombine.high %v1188_v63, %v1204_v2  ;;  %v1206_v7 = vcombine.high %v1181_v62, %v1197_v0  ;;  %v8402_v63 = vpop.permute.xlu1 %999  ;;  %v8404_v0 = vpop.permute.xlu0 %1001 }
 0x25d   : > { %v1273_v22 = vcombine.low %v1249_v20, %v1265_v11  ;;  %v1274_v29 = vcombine.high %v1249_v20, %v1265_v11  ;;  %v1289_v37 = vcombine.low %v1256_v36, %v1272_v28  ;;  %v1290_v45 = vcombine.high %v1256_v36, %v1272_v28 }
 0x25e   : > { %v1229_v9 = vrot.slane %v1221_v4, %v8366_v61  ;;  %v1213_v10 = vrot.slane %v1205_v5, %v8366_v61  ;;  %v1236_v18 = vrot.slane %v1222_v6, %v8366_v61  ;;  %v1220_v19 = vrot.slane %v1206_v7, %v8366_v61 }
 0x25f   : > { %v1281_v33 = vrot.slane %v1273_v22, %v8366_v61  ;;  %v1288_v44 = vrot.slane %v1274_v29, %v8366_v61  ;;  %v1297_v50 = vrot.slane %v1289_v37, %v8366_v61  ;;  %v1304_v55 = vrot.slane %v1290_v45, %v8366_v61 }
 0x260   : > { %v1485_v13 = vpack.c.bf16 %v1229_v9, %v1229_v9  ;;  %v1481_v14 = vpack.c.bf16 %v1213_v10, %v1213_v10  ;;  %v1487_v23 = vpack.c.bf16 %v1236_v18, %v1236_v18  ;;  %v1483_v24 = vpack.c.bf16 %v1220_v19, %v1220_v19 }
 0x261   : > { %v1238_v25 = vcombine.high %v1220_v19, %v8118_v1  ;;  %v1237_v26 = vcombine.high %v1213_v10, %v8118_v1  ;;  %v1239_v32 = vcombine.high %v1229_v9, %v8118_v1  ;;  %v1489_v43 = vpack.c.bf16 %v1281_v33, %v1281_v33 }
 0x262   : > { %1673 = vxpose.xlu1.c.b16.start.end [1/1] (short) (narrow) %v1485_v13, 16  ;;  %1609 = vxpose.xlu0.c.b16.start.end [1/1] (short) (narrow) %v1481_v14, 16  ;;  %v1240_v34 = vcombine.high %v1236_v18, %v8118_v1  ;;  %v1491_v47 = vpack.c.bf16 %v1288_v44, %v1288_v44  ;;  %v1305_v48 = vcombine.high %v1281_v33, %v8118_v1 }
 0x263   : > { %v1484_v30 = vpack.c.bf16 %v1238_v25, %v1238_v25  ;;  %v1482_v31 = vpack.c.bf16 %v1237_v26, %v1237_v26  ;;  %v1486_v39 = vpack.c.bf16 %v1239_v32, %v1239_v32  ;;  %v1493_v52 = vpack.c.bf16 %v1297_v50, %v1297_v50 }
 0x264   : > { %v1488_v46 = vpack.c.bf16 %v1240_v34, %v1240_v34  ;;  %v1490_v51 = vpack.c.bf16 %v1305_v48, %v1305_v48  ;;  %v1306_v53 = vcombine.high %v1288_v44, %v8118_v1  ;;  %v1495_v57 = vpack.c.bf16 %v1304_v55, %v1304_v55 }
 0x265   : > { %v1307_v58 = vcombine.high %v1297_v50, %v8118_v1  ;;  %v1308_v60 = vcombine.high %v1304_v55, %v8118_v1 }
 0x266   : > { %1705 = vxpose.xlu1.c.b16.start.end [1/1] (short) (narrow) %v1487_v23, 16  ;;  %1641 = vxpose.xlu0.c.b16.start.end [1/1] (short) (narrow) %v1483_v24, 16  ;;  %v1492_v56 = vpack.c.bf16 %v1306_v53, %v1306_v53 }
 0x267   : > { %v1494_v59 = vpack.c.bf16 %v1307_v58, %v1307_v58  ;;  %v1496_v62 = vpack.c.bf16 %v1308_v60, %v1308_v60 }
 0x26a   : > { %1657 = vxpose.xlu0.c.b16.start.end [1/1] (short) (narrow) %v1484_v30, 16  ;;  %1625 = vxpose.xlu1.c.b16.start.end [1/1] (short) (narrow) %v1482_v31, 16 }
 0x26e   : > { %1689 = vxpose.xlu0.c.b16.start.end [1/1] (short) (narrow) %v1486_v39, 16  ;;  %1737 = vxpose.xlu1.c.b16.start.end [1/1] (short) (narrow) %v1489_v43, 16 }
 0x272   : > { %1721 = vxpose.xlu0.c.b16.start.end [1/1] (short) (narrow) %v1488_v46, 16  ;;  %1769 = vxpose.xlu1.c.b16.start.end [1/1] (short) (narrow) %v1491_v47, 16 }
 0x276   : > { %1753 = vxpose.xlu0.c.b16.start.end [1/1] (short) (narrow) %v1490_v51, 16  ;;  %1801 = vxpose.xlu1.c.b16.start.end [1/1] (short) (narrow) %v1493_v52, 16 }
 0x27a   : > { %1785 = vxpose.xlu0.c.b16.start.end [1/1] (short) (narrow) %v1492_v56, 16  ;;  %1833 = vxpose.xlu1.c.b16.start.end [1/1] (short) (narrow) %v1495_v57, 16 }
 0x27e   : > { %1817 = vxpose.xlu0.c.b16.start.end [1/1] (short) (narrow) %v1494_v59, 16  ;;  %1005 = vrot.lane.b32.xlu1 %v8351_v40, %s8120_s26 }
 0x282   : > { %1849 = vxpose.xlu0.c.b16.start.end [1/1] (short) (narrow) %v1496_v62, 16  ;;  %1007 = vrot.lane.b32.xlu1 %v8353_v41, %s8120_s26 }
 0x286   : > { %1013 = vrot.lane.b32.xlu1 %v8353_v41, %s9406_s5 }
 0x28b   : > { %1011 = vrot.lane.b32.xlu0 %v8351_v40, %s9406_s5 }
 0x2c8   : > { %v1681_v2 = vpop.trf.xlu1  ;;  %v1617_v3 = vpop.trf.xlu0 }
 0x2c9   : > { %v1865_v24 = vcombine.low %v1617_v3, %v1681_v2 }
 0x2cb   : > { %v1872_v32 = vrot.slane %v1865_v24, %v8363_v54 }
 0x2cc   : > { %v1713_v4 = vpop.trf.xlu1  ;;  %v1649_v5 = vpop.trf.xlu0 }
 0x2cd   : > { %v1873_v21 = vcombine.low %v1649_v5, %v1713_v4 }
 0x2cf   : > { %v1880_v28 = vrot.slane %v1873_v21, %v8363_v54 }
 0x2d0   : > { %v1633_v6 = vpop.trf.xlu1  ;;  %v1665_v7 = vpop.trf.xlu0 }
 0x2d1   : > { %v1897_v34 = vcombine.low %v1872_v32, %v1880_v28  ;;  %v1898_v44 = vcombine.high %v1872_v32, %v1880_v28 }
 0x2d3   : > { %v1905_v55 = vrot.slane %v1897_v34, %v8366_v61  ;;  %v1912_v56 = vrot.slane %v1898_v44, %v8366_v61 }
 0x2d4   : > { %v1745_v8 = vpop.trf.xlu1  ;;  %v1697_v9 = vpop.trf.xlu0 }
 0x2d5   : > { %v1933_v26 = vcombine.low %v1633_v6, %v1697_v9 }
 0x2d7   : > { %v1940_v36 = vrot.slane %v1933_v26, %v8363_v54 }
 0x2d8   : > { %v1777_v10 = vpop.trf.xlu1  ;;  %v1729_v11 = vpop.trf.xlu0 }
 0x2d9   : > { %v1941_v22 = vcombine.low %v1665_v7, %v1729_v11 }
 0x2db   : > { %v1948_v29 = vrot.slane %v1941_v22, %v8363_v54  ;;  %v7504_v22 = vld [vmem:[%s9385_s8] ss:$0 sm:$0xff] }
 0x2dc   : > { %v1809_v13 = vpop.trf.xlu1  ;;  %v1761_v14 = vpop.trf.xlu0  ;;  %v8426_v26 = vadd.f32 %v7504_v22, %v8341_v35 }
 0x2dd   : > { %v1881_v23 = vcombine.low %v1745_v8, %v1809_v13  ;;  %v1965_v45 = vcombine.low %v1940_v36, %v1948_v29  ;;  %v1966_v46 = vcombine.high %v1940_v36, %v1948_v29 }
 0x2df   : > { %v1888_v30 = vrot.slane %v1881_v23, %v8363_v54  ;;  %v1973_v57 = vrot.slane %v1965_v45, %v8366_v61  ;;  %v1980_v58 = vrot.slane %v1966_v46, %v8366_v61 }
 0x2e0   : > { %v1841_v18 = vpop.trf.xlu1  ;;  %v1793_v19 = vpop.trf.xlu0 }
 0x2e1   : > { %v1889_v20 = vcombine.low %v1777_v10, %v1841_v18 }
 0x2e3   : > { %v1896_v27 = vrot.slane %v1889_v20, %v8363_v54 }
 0x2e4   : > { %v1825_v25 = vpop.trf.xlu0 }
 0x2e5   : > { %v1949_v31 = vcombine.low %v1761_v14, %v1825_v25  ;;  %v1913_v37 = vcombine.low %v1888_v30, %v1896_v27  ;;  %v1914_v39 = vcombine.high %v1888_v30, %v1896_v27 }
 0x2e7   : > { %v1956_v47 = vrot.slane %v1949_v31, %v8363_v54  ;;  %v1921_v50 = vrot.slane %v1913_v37, %v8366_v61  ;;  %v1928_v51 = vrot.slane %v1914_v39, %v8366_v61  ;;  %v8433_v31 = vadd.f32 %v7504_v22, %v8346_v38 }
 0x2e8   : > { %v1857_v33 = vpop.trf.xlu0 }
 0x2e9   : > { %v1957_v43 = vcombine.low %v1793_v19, %v1857_v33  ;;  %v1931_v62 = vcombine.low %v1912_v56, %v1928_v51  ;;  %v1929_v3 = vcombine.low %v1905_v55, %v1921_v50  ;;  %v1930_v10 = vcombine.high %v1905_v55, %v1921_v50 }
 0x2ea   : > { %v1932_v19 = vcombine.high %v1912_v56, %v1928_v51 }
 0x2eb   : > { %v1964_v48 = vrot.slane %v1957_v43, %v8363_v54  ;;  %v2005_v9 = vshrl.u32 %v1929_v3, 16  ;;  %v2013_v20 = vshrl.u32 %v1930_v10, 16  ;;  %v2021_v25 = vshrl.u32 %v1931_v62, 16 }
 0x2ec   : > { %v2029_v29 = vshrl.u32 %v1932_v19, 16 }
 0x2ed   : > { %v1981_v52 = vcombine.low %v1956_v47, %v1964_v48  ;;  %v1982_v53 = vcombine.high %v1956_v47, %v1964_v48 }
 0x2ef   : > { %v1989_v59 = vrot.slane %v1981_v52, %v8366_v61  ;;  %v1996_v60 = vrot.slane %v1982_v53, %v8366_v61 }
 0x2f0   : > { %v1006_v35 = vpop.permute.xlu1 %1005 }
 0x2f1   : > { %v1999_v2 = vcombine.low %v1980_v58, %v1996_v60  ;;  %v1997_v4 = vcombine.low %v1973_v57, %v1989_v59  ;;  %v1998_v7 = vcombine.high %v1973_v57, %v1989_v59  ;;  %v2000_v14 = vcombine.high %v1980_v58, %v1996_v60 }
 0x2f2   : > { %v1017_v34 = vcombine.low %v8351_v40, %v1006_v35  ;;  %v1018_v44 = vcombine.high %v8351_v40, %v1006_v35 }
 0x2f3   : > { %v2019_v5 = vpack.i.b16 %v1999_v2, %v1931_v62  ;;  %v2003_v6 = vpack.i.b16 %v1997_v4, %v1929_v3  ;;  %v2006_v8 = vshrl.u32 %v1997_v4, 16  ;;  %v2011_v13 = vpack.i.b16 %v1998_v7, %v1930_v10 }
 0x2f4   : > { %v2014_v18 = vshrl.u32 %v1998_v7, 16  ;;  %v2027_v21 = vpack.i.b16 %v2000_v14, %v1932_v19  ;;  %v2022_v24 = vshrl.u32 %v1999_v2, 16  ;;  %v2030_v28 = vshrl.u32 %v2000_v14, 16  ;;  %v1008_v32 = vpop.permute.xlu1 %1007 }
 0x2f5   : > { %2097 = vxpose.xlu1.c.b16.start.end [1/1] (short) (narrow) %v2019_v5, 16  ;;  %2033 = vxpose.xlu0.c.b16.start.end [1/1] (short) (narrow) %v2003_v6, 16  ;;  %v2007_v11 = vpack.i.b16 %v2006_v8, %v2005_v9  ;;  %v1085_v45 = vcombine.low %v8353_v41, %v1008_v32  ;;  %v1086_v46 = vcombine.high %v8353_v41, %v1008_v32 }
 0x2f6   : > { %v2015_v23 = vpack.i.b16 %v2014_v18, %v2013_v20  ;;  %v2023_v27 = vpack.i.b16 %v2022_v24, %v2021_v25  ;;  %v2031_v30 = vpack.i.b16 %v2030_v28, %v2029_v29  ;;  %v1025_v51 = vrot.slane %v1017_v34, %v8363_v54 }
 0x2f7   : > { %v1093_v52 = vrot.slane %v1085_v45, %v8363_v54  ;;  %v1100_v40 = vrot.slane %v1086_v46, %v8363_v54 }
 0x2f8   : > { %v1014_v36 = vpop.permute.xlu1 %1013 }
 0x2f9   : > { %2049 = vxpose.xlu1.c.b16.start.end [1/1] (short) (narrow) %v2007_v11, 16  ;;  %2065 = vxpose.xlu0.c.b16.start.end [1/1] (short) (narrow) %v2011_v13, 16  ;;  %v1101_v39 = vcombine.low %v8404_v0, %v1014_v36  ;;  %v1102_v43 = vcombine.high %v8404_v0, %v1014_v36  ;;  %v1032_v0 = vrot.slane %v1018_v44, %v8363_v54 }
 0x2fb   : > { %v1109_v50 = vrot.slane %v1101_v39, %v8363_v54 }
 0x2fd   : > { %2129 = vxpose.xlu1.c.b16.start.end [1/1] (short) (narrow) %v2027_v21, 16  ;;  %2081 = vxpose.xlu0.c.b16.start.end [1/1] (short) (narrow) %v2015_v23, 16  ;;  %v1012_v33 = vpop.permute.xlu0 %1011  ;;  %v1117_v57 = vcombine.low %v1093_v52, %v1109_v50  ;;  %v1118_v58 = vcombine.high %v1093_v52, %v1109_v50 }
 0x2fe   : > { %v1033_v37 = vcombine.low %v8402_v63, %v1012_v33  ;;  %v1034_v38 = vcombine.high %v8402_v63, %v1012_v33  ;;  %v1116_v63 = vrot.slane %v1102_v43, %v8363_v54 }
 0x2ff   : > { %v1125_v5 = vrot.slane %v1117_v57, %v8366_v61  ;;  %v1132_v6 = vrot.slane %v1118_v58, %v8366_v61 }
 0x300   : > { %v1041_v47 = vrot.slane %v1033_v37, %v8363_v54  ;;  %v1048_v48 = vrot.slane %v1034_v38, %v8363_v54  ;;  %v1133_v59 = vcombine.low %v1100_v40, %v1116_v63  ;;  %v1134_v60 = vcombine.high %v1100_v40, %v1116_v63 }
 0x301   : > { %1311 = vrot.lane.b32.xlu1 %v8426_v26, %s9408_s27  ;;  %2113 = vxpose.xlu0.c.b16.start.end [1/1] (short) (narrow) %v2023_v27, 16  ;;  %v1149_v19 = vcombine.high %v1125_v5, %v8118_v1  ;;  %v1150_v20 = vcombine.high %v1132_v6, %v8118_v1 }
 0x302   : > { %v1049_v53 = vcombine.low %v1025_v51, %v1041_v47  ;;  %v1050_v55 = vcombine.high %v1025_v51, %v1041_v47  ;;  %v1065_v56 = vcombine.low %v1032_v0, %v1048_v48  ;;  %v1066_v41 = vcombine.high %v1032_v0, %v1048_v48 }
 0x303   : > { %v1141_v7 = vrot.slane %v1133_v59, %v8366_v61  ;;  %v1148_v8 = vrot.slane %v1134_v60, %v8366_v61 }
 0x304   : > { %v1057_v62 = vrot.slane %v1049_v53, %v8366_v61  ;;  %v1064_v2 = vrot.slane %v1050_v55, %v8366_v61  ;;  %v1073_v3 = vrot.slane %v1065_v56, %v8366_v61  ;;  %v1080_v4 = vrot.slane %v1066_v41, %v8366_v61 }
 0x305   : > { %1317 = vrot.lane.b32.xlu1 %v8426_v26, %s8120_s26  ;;  %2145 = vxpose.xlu0.c.b16.start.end [1/1] (short) (narrow) %v2031_v30, 16  ;;  %v1151_v21 = vcombine.high %v1141_v7, %v8118_v1  ;;  %v1152_v22 = vcombine.high %v1148_v8, %v8118_v1  ;;  %v7510_v38 = vpack.c.bf16 %v1141_v7, %v1125_v5 }
 0x306   : > { %v1081_v11 = vcombine.high %v1057_v62, %v8118_v1  ;;  %v1082_v13 = vcombine.high %v1064_v2, %v8118_v1  ;;  %v1083_v14 = vcombine.high %v1073_v3, %v8118_v1  ;;  %v1084_v18 = vcombine.high %v1080_v4, %v8118_v1 }
 0x307   : > { %v7514_v28 = vpack.c.bf16 %v1151_v21, %v1149_v19  ;;  %v7515_v29 = vpack.c.bf16 %v1152_v22, %v1150_v20  ;;  %v7508_v35 = vpack.c.bf16 %v1073_v3, %v1057_v62  ;;  %v7509_v32 = vpack.c.bf16 %v1080_v4, %v1064_v2 }
 0x308   : > { %v7512_v25 = vpack.c.bf16 %v1083_v14, %v1081_v11  ;;  %v7513_v27 = vpack.c.bf16 %v1084_v18, %v1082_v13  ;;  %v7511_v39 = vpack.c.bf16 %v1148_v8, %v1132_v6  ;;  %v1520_v51 = vrot.slane %v7510_v38, %v8363_v54 }
 0x309   : > { %1319 = vrot.lane.b32.xlu1 %v8433_v31, %s8120_s26  ;;  %v1570_v45 = vrot.slane %v7514_v28, %v8363_v54  ;;  %v1578_v46 = vrot.slane %v7515_v29, %v8363_v54  ;;  %v1504_v47 = vrot.slane %v7508_v35, %v8363_v54  ;;  %v1512_v48 = vrot.slane %v7509_v32, %v8363_v54 }
 0x30a   : > { %v1554_v43 = vrot.slane %v7512_v25, %v8363_v54  ;;  %v1562_v34 = vrot.slane %v7513_v27, %v8363_v54  ;;  %v1528_v0 = vrot.slane %v7511_v39, %v8363_v54  ;;  %v8125_v8 = vmov 0  }
 0x30b   : > { %v1587_v55 = vcombine.low %v1570_v45, %v1578_v46  ;;  %v1529_v56 = vcombine.low %v1504_v47, %v1512_v48 }
 0x30c   : > { %v1579_v52 = vcombine.low %v1554_v43, %v1562_v34  ;;  %v1537_v58 = vcombine.low %v1520_v51, %v1528_v0 }
 0x30d   : > { %1325 = vrot.lane.b32.xlu1 %v8433_v31, %s9406_s5  ;;  %v1536_v3 = vrot.slane %v1529_v56, %v8366_v61  ;;  %v1594_v4 = vrot.slane %v1587_v55, %v8366_v61 }
 0x30e   : > { %1313 = vrot.lane.b32.xlu0 %v8433_v31, %s9408_s27  ;;  %v1586_v60 = vrot.slane %v1579_v52, %v8366_v61  ;;  %v1544_v6 = vrot.slane %v1537_v58, %v8366_v61 }
 0x310   : > { %v1595_v7 = vcombine.low %v1586_v60, %v1594_v4  ;;  %v1545_v13 = vcombine.low %v1536_v3, %v1544_v6  ;;  %v1596_v38 = vcombine.high %v1586_v60, %v1594_v4  ;;  %v1546_v43 = vcombine.high %v1536_v3, %v1544_v6 }
 0x312   : > { %1323 = vrot.lane.b32.xlu0 %v8426_v26, %s9406_s5  ;;  %v1601_v21 = vshrl.u32 %v1595_v7, 16  ;;  %v1600_v35 = vshrl.u32 %v1545_v13, 16  ;;  %v1605_v47 = vpack.i.b16 %v1596_v38, %v1546_v43  ;;  %v1606_v48 = vshrl.u32 %v1546_v43, 16 }
 0x35b   : > { %v2105_v9 = vpop.trf.xlu1  ;;  %v2041_v10 = vpop.trf.xlu0 }
 0x35c   : > { %v2161_v33 = vcombine.low %v2041_v10, %v2105_v9 }
 0x35e   : > { %v2168_v50 = vrot.slane %v2161_v33, %v8363_v54 }
 0x35f   : > { %v2057_v23 = vpop.trf.xlu1  ;;  %v2073_v24 = vpop.trf.xlu0 }
 0x363   : > { %v2137_v30 = vpop.trf.xlu1  ;;  %v2089_v37 = vpop.trf.xlu0 }
 0x364   : > { %v2169_v36 = vcombine.low %v2073_v24, %v2137_v30  ;;  %v1599_v30 = vpack.i.b16 %v1595_v7, %v1545_v13 }
 0x366   : > { %v2176_v44 = vrot.slane %v2169_v36, %v8363_v54 }
 0x367   : > { %v2121_v63 = vpop.trf.xlu0 }
 0x368   : > { %v2177_v40 = vcombine.low %v2168_v50, %v2176_v44  ;;  %v2186_v53 = vcombine.low %v2057_v23, %v2121_v63  ;;  %v1607_v44 = vshrl.u32 %v1596_v38, 16 }
 0x36a   : > { %v2184_v59 = vrot.slane %v2177_v40, %v8366_v61  ;;  %v2193_v62 = vrot.slane %v2186_v53, %v8363_v54  ;;  %v1608_v63 = vpack.i.b16 %v1607_v44, %v1606_v48  ;;  %v772_v48 = vand.u32 127, %v768_v42 }
 0x36b   : > { %v2153_v41 = vpop.trf.xlu0 }
 0x36c   : > { %v2194_v57 = vcombine.low %v2089_v37, %v2153_v41  ;;  %v2185_v9 = vcombine.high %v2184_v59, %v8125_v8  ;;  %v2214_v18 = vshrl.u32 %v2184_v59, 16  ;;  %v1602_v37 = vpack.i.b16 %v1601_v21, %v1600_v35 }
 0x36d   : > { %vm8552_vm5 = vcmp.ge.s32.totalorder %v8360_v49, %v772_v48 }
 0x36e   : > { %v2201_v2 = vrot.slane %v2194_v57, %v8363_v54  ;;  %v2220_v22 = vshrl.u32 %v2185_v9, 16 }
 0x370   : > { %v2202_v5 = vcombine.low %v2193_v62, %v2201_v2 }
 0x372   : > { %v2209_v10 = vrot.slane %v2202_v5, %v8366_v61 }
 0x373   : > { %v1312_v11 = vpop.permute.xlu1 %1311 }
 0x374   : > { %v2213_v14 = vpack.i.b16 %v2209_v10, %v2184_v59  ;;  %v2215_v19 = vshrl.u32 %v2209_v10, 16  ;;  %v2210_v20 = vcombine.high %v2209_v10, %v8125_v8 }
 0x376   : > { %v2229_v23 = vsel %vm2227_vm3, %v2213_v14, 0  ;;  %v2216_v25 = vpack.i.b16 %v2215_v19, %v2214_v18  ;;  %v2219_v27 = vpack.i.b16 %v2210_v20, %v2185_v9  ;;  %v2221_v28 = vshrl.u32 %v2210_v20, 16 }
 0x377   : > { %v1318_v24 = vpop.permute.xlu1 %1317  ;;  %7763 = vmatpush3.bf16.msra.mxu0 %v2229_v23 }
 0x378   : > { %v2276_v29 = vsel %vm2227_vm3, %v2216_v25, 0  ;;  %7774 = vmatprep.subr.bf16.mxu0 %v8118_v1  ;;  %v2222_v32 = vpack.i.b16 %v2221_v28, %v2220_v22  ;;  %v2323_v33 = vsel %vm2227_vm3, %v2219_v27, 0  ;;  %v1329_v51 = vcombine.low %v8426_v26, %v1318_v24 }
 0x379   : > { %7769 = vmatpush3.bf16.msra.mxu1 %v2276_v29  ;;  %v1330_v53 = vcombine.high %v8426_v26, %v1318_v24 }
 0x37a   : > { %7765 = vmatmul.mubr.msk.bf16.vlgmr.msra.gmra.mrb[4].mxu0 %vm2223_vm4, %v1599_v30  ;;  %7780 = vmatprep.subr.bf16.mxu1 %v8118_v1  ;;  %v2370_v39 = vsel %vm2227_vm3, %v2222_v32, 0  ;;  %v1337_v57 = vrot.slane %v1329_v51, %v8363_v54 }
 0x37b   : > { %v1320_v36 = vpop.permute.xlu1 %1319  ;;  %7775 = vmatpush3.bf16.msra.mxu0 %v2323_v33  ;;  %7776 = vmatprep.mubr.msk.bf16.mxu0 %vm8119_vm0, %v8118_v1  ;;  %v1344_v60 = vrot.slane %v1330_v53, %v8363_v54 }
 0x37c   : > { %7771 = vmatmul.mubr.msk.bf16.vlgmr.msra.gmra.mrb[12].mxu1 %vm2223_vm4, %v1602_v37  ;;  %7786 = vmatprep.subr.bf16.mxu0 %v8118_v1  ;;  %v1398_v45 = vcombine.high %v8433_v31, %v1320_v36  ;;  %v1397_v5 = vcombine.low %v8433_v31, %v1320_v36 }
 0x37d   : > { %7781 = vmatpush3.bf16.msra.mxu1 %v2370_v39  ;;  %7782 = vmatprep.mubr.msk.bf16.mxu1 %vm8119_vm0, %v8118_v1 }
 0x37e   : > { %7792 = vmatprep.subr.bf16.mxu1 %v8118_v1  ;;  %v8513_v0 = vrot.slane %v1398_v45, %v8363_v54  ;;  %v1405_v18 = vrot.slane %v1397_v5, %v8363_v54 }
 0x37f   : > { %v1326_v34 = vpop.permute.xlu1 %1325 }
 0x380   : > { %v1314_v46 = vpop.permute.xlu0 %1313 }
 0x381   : > { %v1414_v50 = vcombine.high %v1314_v46, %v1326_v34  ;;  %v1413_v3 = vcombine.low %v1314_v46, %v1326_v34 }
 0x382   : > { %7777 = vmatmul.mubr.msk.bf16.vlgmr.msra.gmra.mrb[8].mxu0 %vm2223_vm4, %v1605_v47 }
 0x383   : > { %v8516_v52 = vrot.slane %v1414_v50, %v8363_v54  ;;  %7788 = vmatprep.mubr.msk.bf16.mxu0 %vm8119_vm0, %v8118_v1  ;;  %v1421_v10 = vrot.slane %v1413_v3, %v8363_v54  ;;  %v770_v50 = vadd.s32 8, %v8360_v49 }
 0x384   : > { %7783 = vmatmul.mubr.msk.bf16.vlgmr.msra.gmra.mrb[16].mxu1 %vm2223_vm4, %v1608_v63  ;;  %v1324_v40 = vpop.permute.xlu0 %1323 }
 0x385   : > { %v1446_v55 = vcombine.high %v8513_v0, %v8516_v52  ;;  %v1345_v56 = vcombine.low %v1312_v11, %v1324_v40  ;;  %v1346_v41 = vcombine.high %v1312_v11, %v1324_v40  ;;  %7794 = vmatprep.mubr.msk.bf16.mxu1 %vm8119_vm0, %v8118_v1  ;;  %v1429_v22 = vcombine.low %v1405_v18, %v1421_v10 }
 0x386   : > { %v1430_v28 = vcombine.high %v1405_v18, %v1421_v10  ;;  %v1445_v33 = vcombine.low %v8513_v0, %v8516_v52  ;;  %vm8556_vm7 = vcmp.ge.s32.totalorder %v770_v50, %v772_v48 }
 0x387   : > { %v1353_v58 = vrot.slane %v1345_v56, %v8363_v54  ;;  %v1360_v59 = vrot.slane %v1346_v41, %v8363_v54  ;;  %v1437_v27 = vrot.slane %v1429_v22, %v8366_v61 }
 0x388   : > { %v1444_v32 = vrot.slane %v1430_v28, %v8366_v61  ;;  %v1453_v39 = vrot.slane %v1445_v33, %v8366_v61 }
 0x389   : > { %v1361_v62 = vcombine.low %v1337_v57, %v1353_v58  ;;  %v1362_v2 = vcombine.high %v1337_v57, %v1353_v58  ;;  %v1377_v4 = vcombine.low %v1344_v60, %v1360_v59  ;;  %v1378_v14 = vcombine.high %v1344_v60, %v1360_v59 }
 0x38a   : > { %v2526_v35 = vpack.c.bf16 %v1437_v27, %v1437_v27  ;;  %v1461_v37 = vcombine.high %v1437_v27, %v8118_v1  ;;  %v2528_v38 = vpack.c.bf16 %v1444_v32, %v1444_v32  ;;  %v1462_v34 = vcombine.high %v1444_v32, %v8118_v1 }
 0x38b   : > { %v1369_v26 = vrot.slane %v1361_v62, %v8366_v61  ;;  %v1376_v9 = vrot.slane %v1362_v2, %v8366_v61  ;;  %v1385_v13 = vrot.slane %v1377_v4, %v8366_v61  ;;  %v1392_v21 = vrot.slane %v1378_v14, %v8366_v61 }
 0x38c   : > { %v2527_v43 = vpack.c.bf16 %v1461_v37, %v1461_v37  ;;  %v2530_v44 = vpack.c.bf16 %v1453_v39, %v1453_v39  ;;  %v2529_v45 = vpack.c.bf16 %v1462_v34, %v1462_v34  ;;  %v1463_v46 = vcombine.high %v1453_v39, %v8118_v1 }
 0x38d   : > { %v2518_v6 = vpack.c.bf16 %v1369_v26, %v1369_v26  ;;  %v1393_v7 = vcombine.high %v1369_v26, %v8118_v1  ;;  %v2520_v19 = vpack.c.bf16 %v1376_v9, %v1376_v9  ;;  %v1394_v20 = vcombine.high %v1376_v9, %v8118_v1 }
 0x38e   : > { %v2522_v31 = vpack.c.bf16 %v1385_v13, %v1385_v13  ;;  %v1395_v24 = vcombine.high %v1385_v13, %v8118_v1  ;;  %v2524_v25 = vpack.c.bf16 %v1392_v21, %v1392_v21  ;;  %v1396_v30 = vcombine.high %v1392_v21, %v8118_v1 }
 0x38f   : > { %2534 = vxpose.xlu0.c.b16.start.end [1/1] (short) (narrow) %v2518_v6, 16  ;;  %v2519_v11 = vpack.c.bf16 %v1393_v7, %v1393_v7  ;;  %v2521_v23 = vpack.c.bf16 %v1394_v20, %v1394_v20  ;;  %v2531_v47 = vpack.c.bf16 %v1463_v46, %v1463_v46  ;;  %v1460_v27 = vrot.slane %v1446_v55, %v8366_v61 }
 0x390   : > { %v2523_v29 = vpack.c.bf16 %v1395_v24, %v1395_v24  ;;  %v2525_v36 = vpack.c.bf16 %v1396_v30, %v1396_v30 }
 0x391   : > { %2550 = vxpose.xlu1.c.b16.start.end [1/1] (short) (narrow) %v2519_v11, 16  ;;  %v1464_v28 = vcombine.high %v1460_v27, %v8118_v1 }
 0x393   : > { %2566 = vxpose.xlu0.c.b16.start.end [1/1] (short) (narrow) %v2520_v19, 16  ;;  %v2533_v30 = vpack.c.bf16 %v1464_v28, %v1464_v28 }
 0x395   : > { %2598 = vxpose.xlu1.c.b16.start.end [1/1] (short) (narrow) %v2522_v31, 16 }
 0x397   : > { %2582 = vxpose.xlu0.c.b16.start.end [1/1] (short) (narrow) %v2521_v23, 16 }
 0x399   : > { %2630 = vxpose.xlu1.c.b16.start.end [1/1] (short) (narrow) %v2524_v25, 16 }
 0x39b   : > { %2614 = vxpose.xlu0.c.b16.start.end [1/1] (short) (narrow) %v2523_v29, 16  ;;  %v2532_v29 = vpack.c.bf16 %v1460_v27, %v1460_v27 }
 0x39d   : > { %2662 = vxpose.xlu1.c.b16.start.end [1/1] (short) (narrow) %v2526_v35, 16 }
 0x39f   : > { %2646 = vxpose.xlu0.c.b16.start.end [1/1] (short) (narrow) %v2525_v36, 16 }
 0x3a1   : > { %2694 = vxpose.xlu1.c.b16.start.end [1/1] (short) (narrow) %v2528_v38, 16 }
 0x3a3   : > { %2678 = vxpose.xlu0.c.b16.start.end [1/1] (short) (narrow) %v2527_v43, 16 }
 0x3a5   : > { %2726 = vxpose.xlu1.c.b16.start.end [1/1] (short) (narrow) %v2530_v44, 16 }
 0x3a7   : > { %2710 = vxpose.xlu0.c.b16.start.end [1/1] (short) (narrow) %v2529_v45, 16 }
 0x3ab   : > { %2742 = vxpose.xlu0.c.b16.start.end [1/1] (short) (narrow) %v2531_v47, 16 }
 0x3f5   : > { %v2542_v35 = vpop.trf.xlu0 }
 0x3f7   : > { %v2558_v33 = vpop.trf.xlu1 }
 0x3f9   : > { %v2574_v32 = vpop.trf.xlu0 }
 0x3fb   : > { %v2606_v37 = vpop.trf.xlu1 }
 0x3fd   : > { %v2590_v36 = vpop.trf.xlu0 }
 0x3ff   : > { %v2638_v39 = vpop.trf.xlu1 }
 0x401   : > { %v2622_v38 = vpop.trf.xlu0 }
 0x403   : > { %v2670_v34 = vpop.trf.xlu1 }
 0x405   : > { %v2654_v43 = vpop.trf.xlu0 }
 0x407   : > { %v2702_v45 = vpop.trf.xlu1 }
 0x409   : > { %v2686_v44 = vpop.trf.xlu0 }
 0x40b   : > { %v2734_v0 = vpop.trf.xlu1 }
 0x40d   : > { %v2718_v46 = vpop.trf.xlu0 }
 0x411   : > { %v2750_v52 = vpop.trf.xlu0 }
 0x44d   : > { %v2265_v51 = vpop.f32.mrb[4].mxu0 }
 0x44e   : > { %v8562_v53 = vsel %vm8552_vm5, %v2265_v51, -1e+09  ;;  %v7766_v56 = vpop.f32.mrb[5].mxu0 }
 0x44f   : > { %v2268_v41 = vpop.f32.mrb[6].mxu0  ;;  %v2312_v42 = vpop.f32.mrb[12].mxu1  ;;  %v2426_v57 = vsel %vm2425_vm6, %v8562_v53, -inf }
 0x450   : > { %v8568_v49 = vsel %vm8556_vm7, %v2268_v41, -1e+09  ;;  %v8572_v58 = vsel %vm8552_vm5, %v2312_v42, -1e+09  ;;  %v7767_v59 = vpop.f32.mrb[7].mxu0  ;;  %2427 = vmax.xlane.f32.xlu1 %v2426_v57  ;;  %v7772_v60 = vpop.f32.mrb[13].mxu1  ;;  %v2790_v41 = vcombine.low %v2542_v35, %v2606_v37  ;;  %v2798_v42 = vcombine.low %v2574_v32, %v2638_v39 }
 0x451   : > { %v2315_v62 = vpop.f32.mrb[14].mxu1  ;;  %v2429_v2 = vsel %vm2425_vm6, %v8568_v49, -inf  ;;  %v2432_v4 = vsel %vm2425_vm6, %v8572_v58, -inf  ;;  %v2858_v57 = vcombine.low %v2558_v33, %v2622_v38  ;;  %v2866_v59 = vcombine.low %v2590_v36, %v2654_v43 }
 0x452   : > { %v8578_v3 = vsel %vm8556_vm7, %v2315_v62, -1e+09  ;;  %2430 = vmax.xlane.f32.xlu0 %v2429_v2  ;;  %v7773_v26 = vpop.f32.mrb[15].mxu1  ;;  %v2797_v62 = vrot.slane %v2790_v41, %v8363_v54  ;;  %v2805_v2 = vrot.slane %v2798_v42, %v8363_v54 }
 0x453   : > { %v2435_v6 = vsel %vm2425_vm6, %v8578_v3, -inf }
 0x454   : > { %2433 = vmax.xlane.f32.xlu1 %v2432_v4  ;;  %v2806_v4 = vcombine.low %v2670_v34, %v2734_v0 }
 0x455   : > { %v2359_v5 = vpop.f32.mrb[8].mxu0 }
 0x456   : > { %v8586_v7 = vsel %vm8552_vm5, %v2359_v5, -1e+09  ;;  %v7778_v9 = vpop.f32.mrb[9].mxu0  ;;  %2436 = vmax.xlane.f32.xlu0 %v2435_v6  ;;  %v2865_v5 = vrot.slane %v2858_v57, %v8363_v54  ;;  %v2873_v6 = vrot.slane %v2866_v59, %v8363_v54 }
 0x457   : > { %v2362_v10 = vpop.f32.mrb[10].mxu0  ;;  %v2406_v11 = vpop.f32.mrb[16].mxu1  ;;  %v2438_v13 = vsel %vm2425_vm6, %v8586_v7, -inf }
 0x458   : > { %v8592_v14 = vsel %vm8556_vm7, %v2362_v10, -1e+09  ;;  %v8596_v18 = vsel %vm8552_vm5, %v2406_v11, -1e+09  ;;  %v7779_v19 = vpop.f32.mrb[11].mxu0  ;;  %2439 = vmax.xlane.f32.xlu1 %v2438_v13  ;;  %v7784_v20 = vpop.f32.mrb[17].mxu1  ;;  %v2874_v10 = vcombine.low %v2686_v44, %v2750_v52  ;;  %v2822_v13 = vcombine.low %v2797_v62, %v2805_v2 }
 0x459   : > { %v2409_v31 = vpop.f32.mrb[18].mxu1  ;;  %v2441_v21 = vsel %vm2425_vm6, %v8592_v14, -inf  ;;  %v2444_v24 = vsel %vm2425_vm6, %v8596_v18, -inf  ;;  %v2813_v20 = vrot.slane %v2806_v4, %v8363_v54 }
 0x45a   : > { %v8602_v22 = vsel %vm8556_vm7, %v2409_v31, -1e+09  ;;  %2442 = vmax.xlane.f32.xlu0 %v2441_v21  ;;  %v7785_v23 = vpop.f32.mrb[19].mxu1  ;;  %v2830_v35 = vrot.slane %v2822_v13, %v8366_v61 }
 0x45b   : > { %v2447_v25 = vsel %vm2425_vm6, %v8602_v22, -inf  ;;  %v2823_v23 = vcombine.high %v2797_v62, %v2805_v2 }
 0x45c   : > { %2445 = vmax.xlane.f32.xlu1 %v2444_v24  ;;  %v2890_v24 = vcombine.low %v2865_v5, %v2873_v6 }
 0x45d   : > { %v2837_v38 = vrot.slane %v2823_v23, %v8366_v61 }
 0x45e   : > { %2448 = vmax.xlane.f32.xlu0 %v2447_v25  ;;  %v2881_v25 = vrot.slane %v2874_v10, %v8363_v54  ;;  %v2898_v43 = vrot.slane %v2890_v24, %v8366_v61 }
 0x489   : > { %2758 = vxpose.xlu1.c.b16.start.end [1/1] (short) (narrow) %v2532_v29, 16 }
 0x48b   : > { %2774 = vxpose.xlu0.c.b16.start.end [1/1] (short) (narrow) %v2533_v30, 16  ;;  %v2891_v30 = vcombine.high %v2865_v5, %v2873_v6 }
 0x48d   : > { %v2905_v44 = vrot.slane %v2891_v30, %v8366_v61 }
 0x4dd   : > { %v8613_v55 = vpop.xlane.xlu1 %2427 }
 0x4de   : > { %v2450_v2 = vsub.f32 %v8562_v53, %v8613_v55 }
 0x4df   : > { %v8615_v47 = vpop.xlane.xlu0 %2430 }
 0x4e0   : > { %v2451_v13 = vsub.f32 %v8568_v49, %v8615_v47  ;;  %v2458_v53 = vmul.f32 1.442695, %v2450_v2 }
 0x4e1   : > { %v8617_v48 = vpop.xlane.xlu1 %2433 }
 0x4e2   : > { %v2452_v55 = vsub.f32 %v8572_v58, %v8617_v48  ;;  %8030 = vpow2.f32 %v2458_v53 }
 0x4e3   : > { %v8619_v50 = vpop.xlane.xlu0 %2436 }
 0x4e4   : > { %v2462_v49 = vmul.f32 1.442695, %v2452_v55 }
 0x4e5   : > { %v8621_v51 = vpop.xlane.xlu1 %2439 }
 0x4e6   : > { %v2454_v47 = vsub.f32 %v8586_v7, %v8621_v51 }
 0x4e7   : > { %v8623_v56 = vpop.xlane.xlu0 %2442 }
 0x4e8   : > { %v2455_v58 = vsub.f32 %v8592_v14, %v8623_v56  ;;  %v2466_v48 = vmul.f32 1.442695, %v2454_v47 }
 0x4e9   : > { %v8625_v60 = vpop.xlane.xlu1 %2445 }
 0x4eb   : > { %v8629_v26 = vpop.xlane.xlu0 %2448 }
 0x4ec   : > { %v8031_v51 = vpop.eup %8030 }
 0x4ed   : > { %v2474_v14 = vsel %vm2425_vm6, %v8031_v51, 0.0 }
 0x4ef   : > { %v2766_v9 = vpop.trf.xlu1 }
 0x4f0   : > { %v2814_v11 = vcombine.low %v2702_v45, %v2766_v9 }
 0x4f1   : > { %v2782_v19 = vpop.trf.xlu0 }
 0x4f2   : > { %v2821_v31 = vrot.slane %v2814_v11, %v8363_v54  ;;  %v2882_v21 = vcombine.low %v2718_v46, %v2782_v19 }
 0x4f4   : > { %v2838_v27 = vcombine.low %v2813_v20, %v2821_v31  ;;  %v2839_v28 = vcombine.high %v2813_v20, %v2821_v31  ;;  %v2889_v29 = vrot.slane %v2882_v21, %v8363_v54 }
 0x4f6   : > { %v2906_v32 = vcombine.low %v2881_v25, %v2889_v29  ;;  %v2907_v33 = vcombine.high %v2881_v25, %v2889_v29  ;;  %v2846_v36 = vrot.slane %v2838_v27, %v8366_v61  ;;  %v2853_v37 = vrot.slane %v2839_v28, %v8366_v61 }
 0x4f7   : > { %v2460_v25 = vmul.f32 1.442695, %v2451_v13  ;;  %v2453_v27 = vsub.f32 %v8578_v3, %v8619_v50  ;;  %v2456_v3 = vsub.f32 %v8596_v18, %v8625_v60  ;;  %v2468_v50 = vmul.f32 1.442695, %v2455_v58 }
 0x4f8   : > { %v2854_v39 = vcombine.low %v2830_v35, %v2846_v36  ;;  %v2914_v34 = vrot.slane %v2906_v32, %v8366_v61  ;;  %v2921_v45 = vrot.slane %v2907_v33, %v8366_v61  ;;  %v8645_v46 = vcombine.high %v2837_v38, %v2853_v37 }
 0x4f9   : > { %v2855_v62 = vcombine.high %v2830_v35, %v2846_v36  ;;  %v2856_v31 = vcombine.low %v2837_v38, %v2853_v37  ;;  %8032 = vpow2.f32 %v2460_v25  ;;  %v2464_v35 = vmul.f32 1.442695, %v2453_v27 }
 0x4fa   : > { %v2922_v0 = vcombine.low %v2898_v43, %v2914_v34  ;;  %v2923_v52 = vcombine.high %v2898_v43, %v2914_v34  ;;  %v8647_v41 = vcombine.high %v2905_v44, %v2921_v45  ;;  %v2930_v57 = vshrl.u32 %v2854_v39, 16 }
 0x4fb   : > { %v2924_v4 = vcombine.low %v2905_v44, %v2921_v45  ;;  %v2954_v10 = vshrl.u32 %v8645_v46, 16  ;;  %v2938_v20 = vshrl.u32 %v2855_v62, 16  ;;  %v2946_v29 = vshrl.u32 %v2856_v31, 16 }
 0x4fc   : > { %v2928_v42 = vpack.i.b16 %v2922_v0, %v2854_v39  ;;  %v2931_v59 = vshrl.u32 %v2922_v0, 16  ;;  %v2952_v5 = vpack.i.b16 %v8647_v41, %v8645_v46  ;;  %v2939_v9 = vshrl.u32 %v2923_v52, 16 }
 0x4fd   : > { %v2955_v11 = vshrl.u32 %v8647_v41, 16  ;;  %v2936_v19 = vpack.i.b16 %v2923_v52, %v2855_v62  ;;  %v2947_v24 = vshrl.u32 %v2924_v4, 16  ;;  %v2944_v28 = vpack.i.b16 %v2924_v4, %v2856_v31 }
 0x4fe   : > { %2958 = vxpose.xlu1.c.b16.start.end [1/1] (short) (narrow) %v2928_v42, 16  ;;  %v2932_v6 = vpack.i.b16 %v2931_v59, %v2930_v57  ;;  %v2940_v23 = vpack.i.b16 %v2939_v9, %v2938_v20  ;;  %8034 = vpow2.f32 %v2462_v49  ;;  %v2457_v32 = vsub.f32 %v8602_v22, %v8629_v26 }
 0x4ff   : > { %v2956_v21 = vpack.i.b16 %v2955_v11, %v2954_v10  ;;  %v2948_v30 = vpack.i.b16 %v2947_v24, %v2946_v29  ;;  %8036 = vpow2.f32 %v2464_v35  ;;  %v2470_v7 = vmul.f32 1.442695, %v2456_v3 }
 0x500   : > { %2974 = vxpose.xlu0.c.b16.start.end [1/1] (short) (narrow) %v2932_v6, 16  ;;  %8038 = vpow2.f32 %v2466_v48  ;;  %v2472_v33 = vmul.f32 1.442695, %v2457_v32 }
 0x501   : > { %8040 = vpow2.f32 %v2468_v50 }
 0x502   : > { %2990 = vxpose.xlu1.c.b16.start.end [1/1] (short) (narrow) %v2936_v19, 16  ;;  %8042 = vpow2.f32 %v2470_v7 }
 0x503   : > { %v8033_v36 = vpop.eup %8032  ;;  %8044 = vpow2.f32 %v2472_v33 }
 0x504   : > { %3006 = vxpose.xlu0.c.b16.start.end [1/1] (short) (narrow) %v2940_v23, 16  ;;  %v2477_v37 = vsel %vm2425_vm6, %v8033_v36, 0.0 }
 0x506   : > { %3022 = vxpose.xlu1.c.b16.start.end [1/1] (short) (narrow) %v2944_v28, 16 }
 0x508   : > { %3038 = vxpose.xlu0.c.b16.start.end [1/1] (short) (narrow) %v2948_v30, 16  ;;  %v8035_v56 = vpop.eup %8034 }
 0x509   : > { %v8037_v18 = vpop.eup %8036  ;;  %v2480_v60 = vsel %vm2425_vm6, %v8035_v56, 0.0 }
 0x50a   : > { %v8672_v38 = vpop.eup %8038  ;;  %v2483_v22 = vsel %vm2425_vm6, %v8037_v18, 0.0 }
 0x50b   : > { %v8675_v26 = vpop.eup %8040  ;;  %v2486_v39 = vsel %vm2425_vm6, %v8672_v38, 0.0 }
 0x50c   : > { %v8679_v43 = vpop.eup %8042  ;;  %v2489_v34 = vsel %vm2425_vm6, %v8675_v26, 0.0 }
 0x50d   : > { %v8683_v44 = vpop.eup %8044  ;;  %v2492_v45 = vsel %vm2425_vm6, %v8679_v43, 0.0 }
 0x50e   : > { %v2495_v0 = vsel %vm2425_vm6, %v8683_v44, 0.0 }
 0x513   : > { %2475 = vadd.xlane.f32.xlu1 %v2474_v14 }
 0x515   : > { %2478 = vadd.xlane.f32.xlu0 %v2477_v37 }
 0x517   : > { %2481 = vadd.xlane.f32.xlu1 %v2480_v60 }
 0x519   : > { %2484 = vadd.xlane.f32.xlu0 %v2483_v22 }
 0x51b   : > { %2487 = vadd.xlane.f32.xlu1 %v2486_v39 }
 0x51d   : > { %2490 = vadd.xlane.f32.xlu0 %v2489_v34 }
 0x51f   : > { %2493 = vadd.xlane.f32.xlu1 %v2492_v45 }
 0x521   : > { %2496 = vadd.xlane.f32.xlu0 %v2495_v0 }
 0x54c   : > { %3054 = vxpose.xlu1.c.b16.start.end [1/1] (short) (narrow) %v2952_v5, 16 }
 0x54e   : > { %3070 = vxpose.xlu0.c.b16.start.end [1/1] (short) (narrow) %v2956_v21, 16 }
 0x564   : > { %v2966_v52 = vpop.trf.xlu1 }
 0x566   : > { %v2982_v42 = vpop.trf.xlu0 }
 0x568   : > { %v2998_v57 = vpop.trf.xlu1 }
 0x56a   : > { %v3014_v59 = vpop.trf.xlu0 }
 0x56c   : > { %v3030_v62 = vpop.trf.xlu1 }
 0x56d   : > { %v3086_v23 = vcombine.low %v2966_v52, %v3030_v62 }
 0x56e   : > { %v3046_v2 = vpop.trf.xlu0 }
 0x56f   : > { %v3111_v29 = vcombine.low %v2982_v42, %v3046_v2  ;;  %v3093_v58 = vrot.slane %v3086_v23, %v8363_v54 }
 0x571   : > { %v3118_v7 = vrot.slane %v3111_v29, %v8363_v54 }
 0x5a0   : > { %v2476_v4 = vpop.xlane.xlu1 %2475 }
 0x5a1   : > { %8046 = vrcp.f32 %v2476_v4 }
 0x5a2   : > { %v2479_v6 = vpop.xlane.xlu0 %2478 }
 0x5a3   : > { %8048 = vrcp.f32 %v2479_v6 }
 0x5a4   : > { %v2482_v9 = vpop.xlane.xlu1 %2481 }
 0x5a5   : > { %8050 = vrcp.f32 %v2482_v9 }
 0x5a6   : > { %v2485_v10 = vpop.xlane.xlu0 %2484 }
 0x5a7   : > { %8052 = vrcp.f32 %v2485_v10 }
 0x5a8   : > { %v2488_v11 = vpop.xlane.xlu1 %2487 }
 0x5aa   : > { %v2491_v13 = vpop.xlane.xlu0 %2490 }
 0x5ab   : > { %v8047_v19 = vpop.eup %8046  ;;  %8054 = vrcp.f32 %v2491_v13 }
 0x5ac   : > { %8056 = vrcp.f32 %v2488_v11  ;;  %v2494_v46 = vpop.xlane.xlu1 %2493  ;;  %v2506_v20 = vmul.f32 %v8047_v19, %v8031_v51 }
 0x5ad   : > { %v8049_v41 = vpop.eup %8048  ;;  %8058 = vrcp.f32 %v2494_v46 }
 0x5ae   : > { %v2497_v5 = vpop.xlane.xlu0 %2496  ;;  %v2507_v31 = vmul.f32 %v8049_v41, %v8033_v36 }
 0x5af   : > { %v8051_v21 = vpop.eup %8050  ;;  %8060 = vrcp.f32 %v2497_v5 }
 0x5b0   : > { %v2514_v53 = vpack.c.bf16 %v2507_v31, %v2506_v20  ;;  %v2508_v27 = vmul.f32 %v8051_v21, %v8035_v56 }
 0x5b1   : > { %v8053_v55 = vpop.eup %8052 }
 0x5b2   : > { %v3062_v24 = vpop.trf.xlu1  ;;  %v3152_v25 = vsel %vm2425_vm6, %v2514_v53, 0  ;;  %v2509_v28 = vmul.f32 %v8053_v55, %v8037_v18 }
 0x5b3   : > { %v3094_v49 = vcombine.low %v2998_v57, %v3062_v24  ;;  %7787 = vmatpush3.bf16.xpose.msra.mxu0 %v3152_v25 }
 0x5b4   : > { %v3078_v47 = vpop.trf.xlu0  ;;  %v2515_v30 = vpack.c.bf16 %v2509_v28, %v2508_v27  ;;  %7798 = vmatprep.subr.bf16.mxu0 %v8118_v1 }
 0x5b5   : > { %v8055_v35 = vpop.eup %8054  ;;  %v3101_v48 = vrot.slane %v3094_v49, %v8363_v54  ;;  %v3119_v3 = vcombine.low %v3014_v59, %v3078_v47 }
 0x5b6   : > { %v8057_v50 = vpop.eup %8056  ;;  %v3198_v32 = vsel %vm2425_vm6, %v2515_v30, 0  ;;  %v2511_v36 = vmul.f32 %v8055_v35, %v8675_v26 }
 0x5b7   : > { %v3102_v51 = vcombine.low %v3093_v58, %v3101_v48  ;;  %v3126_v33 = vrot.slane %v3119_v3, %v8363_v54  ;;  %7793 = vmatpush3.bf16.xpose.msra.mxu1 %v3198_v32  ;;  %v8059_v14 = vpop.eup %8058  ;;  %v2510_v60 = vmul.f32 %v8057_v50, %v8672_v38 }
 0x5b8   : > { %7804 = vmatprep.subr.bf16.mxu1 %v8118_v1  ;;  %v2512_v45 = vmul.f32 %v8059_v14, %v8679_v43 }
 0x5b9   : > { %v8061_v56 = vpop.eup %8060  ;;  %v3109_v37 = vrot.slane %v3102_v51, %v8366_v61  ;;  %v3127_v18 = vcombine.low %v3118_v7, %v3126_v33  ;;  %v2516_v34 = vpack.c.bf16 %v2511_v36, %v2510_v60 }
 0x5ba   : > { %v2513_v22 = vmul.f32 %v8061_v56, %v8683_v44 }
 0x5bb   : > { %v3134_v39 = vrot.slane %v3127_v18, %v8366_v61  ;;  %v3139_v0 = vshrl.u32 %v3109_v37, 16  ;;  %v3244_v59 = vsel %vm2425_vm6, %v2516_v34, 0  ;;  %v3110_v38 = vcombine.high %v3109_v37, %v8125_v8 }
 0x5bc   : > { %v2517_v26 = vpack.c.bf16 %v2513_v22, %v2512_v45 }
 0x5bd   : > { %v3140_v52 = vshrl.u32 %v3134_v39, 16  ;;  %v3138_v42 = vpack.i.b16 %v3134_v39, %v3109_v37  ;;  %v3135_v57 = vcombine.high %v3134_v39, %v8125_v8  ;;  %v3145_v4 = vshrl.u32 %v3110_v38, 16 }
 0x5be   : > { %v3290_v43 = vsel %vm2425_vm6, %v2517_v26, 0 }
 0x5bf   : > { %7789 = vmatmul.mubr.msk.bf16.vlgmr.msra.gmra.mrb[12].mxu0 %vm2425_vm6, %v3138_v42  ;;  %v3141_v62 = vpack.i.b16 %v3140_v52, %v3139_v0  ;;  %v3146_v44 = vshrl.u32 %v3135_v57, 16  ;;  %v3144_v2 = vpack.i.b16 %v3135_v57, %v3110_v38 }
 0x5c0   : > { %7799 = vmatpush3.bf16.xpose.msra.mxu0 %v3244_v59  ;;  %7800 = vmatprep.mubr.msk.bf16.mxu0 %vm8119_vm0, %v8118_v1 }
 0x5c1   : > { %7795 = vmatmul.mubr.msk.bf16.vlgmr.msra.gmra.mrb[20].mxu1 %vm2425_vm6, %v3141_v62  ;;  %7810 = vmatprep.subr.bf16.mxu0 %v8118_v1  ;;  %v3147_v6 = vpack.i.b16 %v3146_v44, %v3145_v4 }
 0x5c2   : > { %7805 = vmatpush3.bf16.xpose.msra.mxu1 %v3290_v43  ;;  %7806 = vmatprep.mubr.msk.bf16.mxu1 %vm8119_vm0, %v8118_v1 }
 0x5c3   : > { %7818 = vmatprep.subr.bf16.mxu1 %v8118_v1 }
 0x5c7   : > { %7801 = vmatmul.mubr.msk.bf16.vlgmr.msra.gmra.mrb[16].mxu0 %vm2425_vm6, %v3144_v2 }
 0x5c8   : > { %7814 = vmatprep.mubr.msk.bf16.mxu0 %vm8119_vm0, %v8118_v1 }
 0x5c9   : > { %7807 = vmatmul.mubr.msk.bf16.vlgmr.msra.gmra.mrb[24].mxu1 %vm2425_vm6, %v3147_v6 }
 0x5ca   : > { %7822 = vmatprep.mubr.msk.bf16.mxu1 %vm8119_vm0, %v8118_v1 }
 0x692   : > { %v3188_v9 = vpop.f32.mrb[12].mxu0 }
 0x693   : > { %3332 = vxpose.xlu1.b32.start.end [1/1] (short) (narrow) %v3188_v9, 16  ;;  %v7790_v10 = vpop.f32.mrb[13].mxu0 }
 0x694   : > { %v3191_v11 = vpop.f32.mrb[14].mxu0  ;;  %v3234_v13 = vpop.f32.mrb[20].mxu1 }
 0x695   : > { %v7791_v19 = vpop.f32.mrb[15].mxu0  ;;  %3364 = vxpose.xlu0.b32.start.end [1/1] (short) (narrow) %v3234_v13, 16  ;;  %v7796_v46 = vpop.f32.mrb[21].mxu1 }
 0x696   : > { %v3237_v41 = vpop.f32.mrb[22].mxu1 }
 0x697   : > { %v7797_v5 = vpop.f32.mrb[23].mxu1 }
 0x69a   : > { %v3280_v20 = vpop.f32.mrb[16].mxu0 }
 0x69b   : > { %v7802_v31 = vpop.f32.mrb[17].mxu0  ;;  %3396 = vxpose.xlu0.b32.start.end [1/1] (short) (narrow) %v3280_v20, 16 }
 0x69c   : > { %v3283_v21 = vpop.f32.mrb[18].mxu0  ;;  %v3326_v53 = vpop.f32.mrb[24].mxu1 }
 0x69d   : > { %v7803_v55 = vpop.f32.mrb[19].mxu0  ;;  %3428 = vxpose.xlu1.b32.start.end [1/1] (short) (narrow) %v3326_v53, 16  ;;  %v7808_v23 = vpop.f32.mrb[25].mxu1 }
 0x69e   : > { %v3329_v24 = vpop.f32.mrb[26].mxu1 }
 0x69f   : > { %v7809_v25 = vpop.f32.mrb[27].mxu1 }
 0x713   : > { %v3348_v27 = vpop.trf.xlu1 }
 0x715   : > { %v3380_v28 = vpop.trf.xlu0 }
 0x717   : > { %v3349_v29 = vpop.trf.xlu1 }
 0x719   : > { %v3381_v49 = vpop.trf.xlu0 }
 0x71d   : > { %v3412_v47 = vpop.trf.xlu0  ;;  %v3444_v30 = vpop.trf.xlu1 }
 0x71e   : > { %v3460_v35 = vcombine.low %v3348_v27, %v3412_v47  ;;  %v3461_v58 = vcombine.high %v3348_v27, %v3412_v47  ;;  %v3476_v48 = vcombine.low %v3380_v28, %v3444_v30  ;;  %v3477_v3 = vcombine.high %v3380_v28, %v3444_v30  ;;  %v8006_v47 = vld [vmem:[%s9386_s9] sm:$0xff]  }
 0x71f   : > { %7811 = vmatpush3.bf16.msra.mxu0 %v8006_v47 }
 0x720   : > { %v3468_v50 = vrot.slane %v3460_v35, %v8363_v54  ;;  %v3475_v32 = vrot.slane %v3461_v58, %v8363_v54  ;;  %v3484_v7 = vrot.slane %v3476_v48, %v8363_v54  ;;  %v3491_v51 = vrot.slane %v3477_v3, %v8363_v54  ;;  %7812 = vmatprep.subr.bf16.mxu0 %v8118_v1 }
 0x721   : > { %v3413_v33 = vpop.trf.xlu0  ;;  %v3445_v36 = vpop.trf.xlu1 }
 0x722   : > { %v3492_v14 = vcombine.low %v3468_v50, %v3484_v7  ;;  %v3493_v56 = vcombine.high %v3468_v50, %v3484_v7  ;;  %v3508_v37 = vcombine.low %v3475_v32, %v3491_v51  ;;  %v3509_v18 = vcombine.high %v3475_v32, %v3491_v51 }
 0x723   : > { %v3528_v60 = vcombine.low %v3349_v29, %v3413_v33  ;;  %v3529_v22 = vcombine.high %v3349_v29, %v3413_v33  ;;  %v3544_v39 = vcombine.low %v3381_v49, %v3445_v36  ;;  %v3545_v34 = vcombine.high %v3381_v49, %v3445_v36 }
 0x724   : > { %v3500_v45 = vrot.slane %v3492_v14, %v8366_v61  ;;  %v3507_v0 = vrot.slane %v3493_v56, %v8366_v61  ;;  %v3516_v52 = vrot.slane %v3508_v37, %v8366_v61  ;;  %v3523_v42 = vrot.slane %v3509_v18, %v8366_v61 }
 0x725   : > { %v3536_v26 = vrot.slane %v3528_v60, %v8363_v54  ;;  %v3543_v57 = vrot.slane %v3529_v22, %v8363_v54  ;;  %v3552_v59 = vrot.slane %v3544_v39, %v8363_v54  ;;  %v3559_v62 = vrot.slane %v3545_v34, %v8363_v54  ;;  %v8007_v60 = vld [vmem:[%s9386_s9 + $0x8] sm:$0xff]  }
 0x726   : > { %v3596_v38 = vcombine.low %v3500_v45, %v3507_v0  ;;  %v7524_v43 = vcombine.high %v3500_v45, %v3507_v0  ;;  %v3612_v44 = vcombine.low %v3516_v52, %v3523_v42  ;;  %v7525_v2 = vcombine.high %v3516_v52, %v3523_v42  ;;  %7813 = vmatpush3.bf16.msra.mxu0 %v8007_v60 }
 0x727   : > { %v3560_v4 = vcombine.low %v3536_v26, %v3552_v59  ;;  %v3561_v6 = vcombine.high %v3536_v26, %v3552_v59  ;;  %v3576_v9 = vcombine.low %v3543_v57, %v3559_v62  ;;  %v3577_v10 = vcombine.high %v3543_v57, %v3559_v62  ;;  %7826 = vmatprep.subr.bf16.mxu0 %v8118_v1 }
 0x728   : > { %v3603_v11 = vrot.slane %v3596_v38, %v8363_v54  ;;  %v3611_v13 = vrot.slane %v7524_v43, %v8363_v54  ;;  %v3619_v19 = vrot.slane %v3612_v44, %v8363_v54  ;;  %v3627_v46 = vrot.slane %v7525_v2, %v8363_v54 }
 0x729   : > { %v3568_v41 = vrot.slane %v3560_v4, %v8366_v61  ;;  %v3575_v5 = vrot.slane %v3561_v6, %v8366_v61  ;;  %v3584_v20 = vrot.slane %v3576_v9, %v8366_v61  ;;  %v3591_v31 = vrot.slane %v3577_v10, %v8366_v61 }
 0x72a   : > { %v3629_v21 = vcombine.high %v3603_v11, %v3611_v13  ;;  %v3645_v53 = vcombine.high %v3619_v19, %v3627_v46  ;;  %v3628_v55 = vcombine.low %v3603_v11, %v3611_v13  ;;  %v3644_v23 = vcombine.low %v3619_v19, %v3627_v46 }
 0x72b   : > { %v3664_v24 = vcombine.low %v3568_v41, %v3575_v5  ;;  %v7526_v25 = vcombine.high %v3568_v41, %v3575_v5  ;;  %v3680_v27 = vcombine.low %v3584_v20, %v3591_v31  ;;  %v7527_v28 = vcombine.high %v3584_v20, %v3591_v31  ;;  %v7528_v31 = vld [vmem:[%s9387_s10] ss:$0 sm:$0xff] }
 0x72c   : > { %v3636_v29 = vrot.slane %v3628_v55, %v8366_v61  ;;  %v3652_v49 = vrot.slane %v3644_v23, %v8366_v61  ;;  %v3643_v3 = vrot.slane %v3629_v21, %v8366_v61  ;;  %v3659_v50 = vrot.slane %v3645_v53, %v8366_v61 }
 0x72d   : > { %v3671_v30 = vrot.slane %v3664_v24, %v8363_v54  ;;  %v3679_v35 = vrot.slane %v7526_v25, %v8363_v54  ;;  %v3687_v58 = vrot.slane %v3680_v27, %v8363_v54  ;;  %v3695_v48 = vrot.slane %v7527_v28, %v8363_v54 }
 0x72e   : > { %v3660_v32 = vcombine.low %v3636_v29, %v3652_v49  ;;  %v3662_v22 = vcombine.low %v3643_v3, %v3659_v50  ;;  %v3661_v34 = vcombine.high %v3636_v29, %v3652_v49  ;;  %v3663_v57 = vcombine.high %v3643_v3, %v3659_v50 }
 0x72f   : > { %v3697_v7 = vcombine.high %v3671_v30, %v3679_v35  ;;  %v3713_v51 = vcombine.high %v3687_v58, %v3695_v48  ;;  %v3696_v33 = vcombine.low %v3671_v30, %v3679_v35  ;;  %v3712_v36 = vcombine.low %v3687_v58, %v3695_v48 }
 0x731   : > { %v3711_v14 = vrot.slane %v3697_v7, %v8366_v61  ;;  %v3727_v56 = vrot.slane %v3713_v51, %v8366_v61  ;;  %v3704_v37 = vrot.slane %v3696_v33, %v8366_v61  ;;  %v3720_v18 = vrot.slane %v3712_v36, %v8366_v61  ;;  %v8009_v51 = vld [vmem:[%s9388_s11 + $0x8] sm:$0xff]   ;;  %v8010_v33 = vld [vmem:[%s9390_s13] sm:$0xff]  }
 0x732   : > { %v8011_v36 = vld [vmem:[%s9390_s13 + $0x8] sm:$0xff]  }
 0x733   : > { %v3730_v39 = vcombine.low %v3711_v14, %v3727_v56  ;;  %v3729_v45 = vcombine.high %v3704_v37, %v3720_v18  ;;  %v3728_v0 = vcombine.low %v3704_v37, %v3720_v18  ;;  %v3731_v26 = vcombine.high %v3711_v14, %v3727_v56 }
 0x735   : > { %v7970_v52 = vpack.i.bf16 %v3730_v39, %v3662_v22  ;;  %v7965_v42 = vpack.i.bf16 %v3729_v45, %v3661_v34  ;;  %v7975_v59 = vpack.i.bf16 %v3731_v26, %v3663_v57  ;;  %v7532_v34 = vld [vmem:[%s9392_s15] ss:$0 sm:$0xff] }
 0x736   : > { %v7533_v26 = vld [vmem:[%s9393_s16] ss:$0 sm:$0xff] }
 0x737   : > { %7971 = vrot.lane.b32.xlu1 %v7970_v52, %s9405_s22  ;;  %7966 = vrot.lane.b32.xlu0 %v7965_v42, %s9404_s23  ;;  %s9429_s22 = smov 8   ;;  %s9430_s23 = smov 24  }
 0x73b   : > { %7976 = vrot.lane.b32.xlu1 %v7975_v59, %s9403_s1 }
 0x7a9   : > { %v7972_v62 = vpop.permute.xlu1 %7971  ;;  %v7967_v38 = vpop.permute.xlu0 %7966 }
 0x7aa   : > { %v7969_v43 = vunpack.i.h.bf16 %v7967_v38  ;;  %v7968_v44 = vunpack.i.l.bf16 %v7967_v38  ;;  %v7974_v2 = vunpack.i.h.bf16 %v7972_v62  ;;  %v7973_v4 = vunpack.i.l.bf16 %v7972_v62 }
 0x7ac   : > { %v3756_v6 = vsel %vm2223_vm4, %v3660_v32, %v7968_v44  ;;  %v3757_v9 = vsel %vm2223_vm4, %v3728_v0, %v7969_v43  ;;  %v8012_v43 = vld [vmem:[%s9390_s13 + $0x10] sm:$0xff]   ;;  %v8013_v44 = vld [vmem:[%s9390_s13 + $0x18] sm:$0xff]  }
 0x7ad   : > { %v7977_v10 = vpop.permute.xlu1 %7976  ;;  %v3758_v19 = vsel %vm2425_vm6, %v3756_v6, %v7973_v4  ;;  %v3759_v46 = vsel %vm2425_vm6, %v3757_v9, %v7974_v2  ;;  %v7534_v2 = vld [vmem:[%s9389_s12] ss:$0 sm:$0xff] }
 0x7ae   : > { %v7979_v11 = vunpack.i.h.bf16 %v7977_v10  ;;  %v7978_v13 = vunpack.i.l.bf16 %v7977_v10 }
 0x7b0   : > { %v3761_v41 = vsel %vm3760_vm8, %v3758_v19, %v7978_v13  ;;  %v3762_v5 = vsel %vm3760_vm8, %v3759_v46, %v7979_v11 }
 0x7b1   : > { %v3763_v20 = vpack.c.bf16 %v3762_v5, %v3761_v41  ;;  %v7538_v5 = vld [vmem:[%s9391_s14] ss:$0 sm:$0xff] }
 0x7b3   : > { %7815 = vmatmul.mubr.msk.bf16.vlgmr.msra.gmra.mrb[20].mxu0 %vm834_vm2, %v3763_v20 }
 0x7b4   : > { %7834 = vmatprep.mubr.msk.bf16.mxu0 %vm8119_vm0, %v8118_v1  ;;  %7827 = vmatpush3.bf16.msra.mxu0 %v8010_v33 }
 0x7b5   : > { %7828 = vmatprep.subr.bf16.mxu0 %v8118_v1 }
 0x7b8   : > { %7829 = vmatpush3.bf16.msra.mxu0 %v8011_v36 }
 0x7b9   : > { %7830 = vmatprep.subr.bf16.mxu0 %v8118_v1 }
 0x7bc   : > { %7831 = vmatpush3.bf16.msra.mxu0 %v8012_v43 }
 0x7bd   : > { %7832 = vmatprep.subr.bf16.mxu0 %v8118_v1 }
 0x7c0   : > { %7833 = vmatpush3.bf16.msra.mxu0 %v8013_v44 }
 0x7c1   : > { %7854 = vmatprep.subr.bf16.mxu0 %v8118_v1 }
 0x886   : > { %v3819_v21 = vpop.f32.mrb[20].mxu0 }
 0x887   : > { %v3820_v53 = vadd.f32 %v7528_v31, %v3819_v21  ;;  %v7816_v55 = vpop.f32.mrb[21].mxu0 }
 0x888   : > { %v3822_v23 = vpop.f32.mrb[22].mxu0 }
 0x889   : > { %v3823_v24 = vadd.f32 %v7528_v31, %v3822_v23  ;;  %v7817_v25 = vpop.f32.mrb[23].mxu0  ;;  %v3826_v27 = vadd.f32 %v3820_v53, %v8298_v16 }
 0x88b   : > { %v3828_v28 = vsel %vm834_vm2, %v3826_v27, 0.0  ;;  %v3827_v29 = vadd.f32 %v3823_v24, %v8301_v17  ;;  %v8008_v17 = vld [vmem:[%s9388_s11] sm:$0xff]  }
 0x88c   : > { %3829 = vadd.xlane.f32.xlu1 %v3828_v28  ;;  %7819 = vmatpush3.bf16.msra.mxu1 %v8008_v17  ;;  %v8016_v17 = vld [vmem:[%s9418_s0 + $0x18] sm:$0xff]  }
 0x88d   : > { %v3831_v49 = vsel %vm834_vm2, %v3827_v29, 0.0  ;;  %7820 = vmatprep.subr.bf16.mxu1 %v8118_v1 }
 0x88e   : > { %3832 = vadd.xlane.f32.xlu0 %v3831_v49 }
 0x890   : > { %7821 = vmatpush3.bf16.msra.mxu1 %v8009_v51  ;;  %v8017_v51 = vld [vmem:[%s9384_s7 + $0x18] sm:$0xff]  }
 0x891   : > { %7838 = vmatprep.subr.bf16.mxu1 %v8118_v1 }
 0x919   : > { %v3830_v47 = vpop.xlane.xlu1 %3829 }
 0x91a   : > { %v3835_v30 = vmul.f32 0.03125, %v3830_v47 }
 0x91b   : > { %v3833_v35 = vpop.xlane.xlu0 %3832 }
 0x91c   : > { %v3837_v58 = vsub.f32 %v3826_v27, %v3835_v30  ;;  %v3836_v48 = vmul.f32 0.03125, %v3833_v35 }
 0x91e   : > { %v3838_v3 = vsub.f32 %v3827_v29, %v3836_v48  ;;  %v3839_v50 = vmul.f32 %v3837_v58, %v3837_v58 }
 0x920   : > { %v3841_v32 = vsel %vm834_vm2, %v3839_v50, 0.0  ;;  %v3840_v7 = vmul.f32 %v3838_v3, %v3838_v3 }
 0x921   : > { %3842 = vadd.xlane.f32.xlu0 %v3841_v32 }
 0x922   : > { %v3844_v16 = vsel %vm834_vm2, %v3840_v7, 0.0  ;;  %v8014_v7 = vld [vmem:[%s9418_s0 + $0x10] sm:$0xff]  }
 0x923   : > { %3845 = vadd.xlane.f32.xlu1 %v3844_v16  ;;  %v8015_v16 = vld [vmem:[%s9384_s7 + $0x10] sm:$0xff]  }
 0x9ae   : > { %v3843_v14 = vpop.xlane.xlu0 %3842 }
 0x9af   : > { %v3847_v56 = vmul.f32 0.03125, %v3843_v14 }
 0x9b0   : > { %v3846_v37 = vpop.xlane.xlu1 %3845 }
 0x9b1   : > { %v3849_v18 = vadd.f32 1e-05, %v3847_v56  ;;  %v3848_v60 = vmul.f32 0.03125, %v3846_v37 }
 0x9b3   : > { %8062 = vrsqrt.f32 %v3849_v18  ;;  %v3850_v22 = vadd.f32 1e-05, %v3848_v60 }
 0x9b5   : > { %8064 = vrsqrt.f32 %v3850_v22  ;;  %v7544_v22 = vld [vmem:[%s9394_s17] ss:$0 sm:$0xff] }
 0x9bd   : > { %v8063_v39 = vpop.eup %8062 }
 0x9be   : > { %v3853_v45 = vmul.f32 %v8063_v39, %v3837_v58 }
 0x9bf   : > { %v8065_v0 = vpop.eup %8064 }
 0x9c0   : > { %v3861_v52 = vmul.f32 %v7532_v34, %v3853_v45  ;;  %v3854_v42 = vmul.f32 %v8065_v0, %v3838_v3  ;;  %v7545_v45 = vld [vmem:[%s9395_s18] ss:$0 sm:$0xff] }
 0x9c2   : > { %v3862_v57 = vmul.f32 %v7532_v34, %v3854_v42  ;;  %v3869_v59 = vadd.f32 %v7533_v26, %v3861_v52 }
 0x9c4   : > { %v3870_v62 = vadd.f32 %v7533_v26, %v3862_v57 }
 0x9c6   : > { %v3871_v38 = vpack.c.bf16 %v3870_v62, %v3869_v59 }
 0x9c8   : > { %7823 = vmatmul.mubr.msk.bf16.vlgmr.msra.gmra.mrb[28].mxu1 %vm834_vm2, %v3871_v38  ;;  %v8018_v38 = vld [vmem:[%s9420_s28 + $0x10] sm:$0xff]  }
 0x9c9   : > { %7842 = vmatprep.mubr.msk.bf16.mxu1 %vm8119_vm0, %v8118_v1  ;;  %7839 = vmatpush3.bf16.msra.mxu1 %v8014_v7 }
 0x9ca   : > { %7840 = vmatprep.subr.bf16.mxu1 %v8118_v1 }
 0x9cd   : > { %7841 = vmatpush3.bf16.msra.mxu1 %v8016_v17 }
 0x9ce   : > { %7846 = vmatprep.subr.bf16.mxu1 %v8118_v1 }
 0xa9b   : > { %v3927_v4 = vpop.f32.mrb[28].mxu1 }
 0xa9c   : > { %v3928_v6 = vadd.f32 %v7534_v2, %v3927_v4  ;;  %v7824_v9 = vpop.f32.mrb[29].mxu1 }
 0xa9d   : > { %v3930_v10 = vpop.f32.mrb[30].mxu1 }
 0xa9e   : > { %v3931_v11 = vadd.f32 %v7534_v2, %v3930_v10  ;;  %v7825_v13 = vpop.f32.mrb[31].mxu1  ;;  %v3934_v19 = vmax.f32 %v3928_v6, 0.0 }
 0xa9f   : > { %v7588_v13 = vld [vmem:[%s9383_s6 + $0x1] ss:$0 sm:$0xff] }
 0xaa0   : > { %v3935_v46 = vmax.f32 %v3931_v11, 0.0 }
 0xaa2   : > { %v3936_v41 = vpack.c.bf16 %v3935_v46, %v3934_v19 }
 0xaa4   : > { %7835 = vmatmul.mubr.msk.bf16.vlgmr.msra.gmra.mrb[24].mxu0 %vm3967_vm9, %v3936_v41 }
 0xaa5   : > { %7858 = vmatprep.mubr.msk.bf16.mxu0 %vm8119_vm0, %v8118_v1  ;;  %7855 = vmatpush3.bf16.msra.mxu0 %v8015_v16 }
 0xaa6   : > { %7856 = vmatprep.subr.bf16.mxu0 %v8118_v1 }
 0xaa9   : > { %7857 = vmatpush3.bf16.msra.mxu0 %v8017_v51 }
 0xaaa   : > { %7868 = vmatprep.subr.bf16.mxu0 %v8118_v1 }
 0xb77   : > { %v4005_v20 = vpop.f32.mrb[24].mxu0 }
 0xb78   : > { %v4006_v31 = vadd.f32 %v7538_v5, %v4005_v20  ;;  %v7836_v21 = vpop.f32.mrb[25].mxu0 }
 0xb79   : > { %v4008_v53 = vpop.f32.mrb[26].mxu0  ;;  %v7584_v21 = vld [vmem:[%s9421_s4 + $0x1] ss:$0 sm:$0xff] }
 0xb7a   : > { %v4012_v55 = vadd.f32 %v4006_v31, %v3869_v59  ;;  %v4009_v23 = vadd.f32 %v7538_v5, %v4008_v53  ;;  %v7837_v24 = vpop.f32.mrb[27].mxu0 }
 0xb7c   : > { %v4014_v25 = vsel %vm834_vm2, %v4012_v55, 0.0  ;;  %v4013_v27 = vadd.f32 %v4009_v23, %v3870_v62 }
 0xb7d   : > { %4015 = vadd.xlane.f32.xlu0 %v4014_v25 }
 0xb7e   : > { %v4017_v28 = vsel %vm834_vm2, %v4013_v27, 0.0 }
 0xb7f   : > { %4018 = vadd.xlane.f32.xlu1 %v4017_v28 }
 0xc0a   : > { %v4016_v29 = vpop.xlane.xlu0 %4015 }
 0xc0b   : > { %v4020_v49 = vmul.f32 0.03125, %v4016_v29 }
 0xc0c   : > { %v4019_v47 = vpop.xlane.xlu1 %4018 }
 0xc0d   : > { %v4022_v30 = vsub.f32 %v4012_v55, %v4020_v49  ;;  %v4021_v35 = vmul.f32 0.03125, %v4019_v47 }
 0xc0f   : > { %v4023_v58 = vsub.f32 %v4013_v27, %v4021_v35  ;;  %v4024_v48 = vmul.f32 %v4022_v30, %v4022_v30 }
 0xc11   : > { %v4026_v3 = vsel %vm834_vm2, %v4024_v48, 0.0  ;;  %v4025_v50 = vmul.f32 %v4023_v58, %v4023_v58 }
 0xc12   : > { %4027 = vadd.xlane.f32.xlu0 %v4026_v3 }
 0xc13   : > { %v4029_v32 = vsel %vm834_vm2, %v4025_v50, 0.0 }
 0xc14   : > { %4030 = vadd.xlane.f32.xlu1 %v4029_v32 }
 0xc9f   : > { %v4028_v33 = vpop.xlane.xlu0 %4027 }
 0xca0   : > { %v4032_v36 = vmul.f32 0.03125, %v4028_v33 }
 0xca1   : > { %v4031_v14 = vpop.xlane.xlu1 %4030 }
 0xca2   : > { %v4034_v56 = vadd.f32 1e-05, %v4032_v36  ;;  %v4033_v37 = vmul.f32 0.03125, %v4031_v14 }
 0xca4   : > { %8066 = vrsqrt.f32 %v4034_v56  ;;  %v4035_v18 = vadd.f32 1e-05, %v4033_v37 }
 0xca6   : > { %8068 = vrsqrt.f32 %v4035_v18 }
 0xcae   : > { %v8067_v60 = vpop.eup %8066 }
 0xcaf   : > { %v4038_v39 = vmul.f32 %v8067_v60, %v4022_v30 }
 0xcb0   : > { %v8069_v34 = vpop.eup %8068 }
 0xcb1   : > { %v4046_v0 = vmul.f32 %v7544_v22, %v4038_v39  ;;  %v4039_v52 = vmul.f32 %v8069_v34, %v4023_v58 }
 0xcb3   : > { %v4047_v42 = vmul.f32 %v7544_v22, %v4039_v52  ;;  %v4054_v26 = vadd.f32 %v7545_v45, %v4046_v0 }
 0xcb5   : > { %v4055_v57 = vadd.f32 %v7545_v45, %v4047_v42  ;;  %v8854_v59 = vadd.f32 %v4054_v26, %v8293_v12  ;;  %v8019_v12 = vld [vmem:[%s9420_s28 + $0x18] sm:$0xff]  }
 0xcb7   : > { %v8857_v62 = vadd.f32 %v4055_v57, %v8295_v15 }
 0xcb9   : > { %v4112_v43 = vpack.c.bf16 %v8857_v62, %v8854_v59 }
 0xcbb   : > { %7843 = vmatmul.mubr.msk.bf16.vlgmr.msra.gmra.mrb[32].mxu1 %vm834_vm2, %v4112_v43  ;;  %7859 = vmatmul.mubr.msk.bf16.vlgmr.msra.gmra.mrb[28].mxu0 %vm834_vm2, %v4112_v43 }
 0xcbc   : > { %7847 = vmatpush3.bf16.msra.mxu1 %v8018_v38  ;;  %7850 = vmatprep.mubr.msk.bf16.mxu1 %vm8119_vm0, %v8118_v1 }
 0xcbd   : > { %7848 = vmatprep.subr.bf16.mxu1 %v8118_v1  ;;  %7870 = vmatprep.mubr.msk.bf16.mxu0 %vm8119_vm0, %v8118_v1 }
 0xcc0   : > { %7849 = vmatpush3.bf16.msra.mxu1 %v8019_v12 }
 0xcc1   : > { %7862 = vmatprep.subr.bf16.mxu1 %v8118_v1 }
 0xcc3   : > { %7851 = vmatmul.mubr.msk.bf16.vlgmr.msra.gmra.mrb[36].mxu1 %vm834_vm2, %v4112_v43 }
 0xcc4   : > { %7864 = vmatprep.mubr.msk.bf16.mxu1 %vm8119_vm0, %v8118_v1 }
 0xd8e   : > { %v4168_v15 = vpop.f32.mrb[32].mxu1  ;;  %v8878_v44 = vpop.f32.mrb[28].mxu0 }
 0xd8f   : > { %v7844_v2 = vpop.f32.mrb[33].mxu1  ;;  %v7860_v4 = vpop.f32.mrb[29].mxu0  ;;  %v8894_v53 = vadd.f32 %v7584_v21, %v4168_v15 }
 0xd90   : > { %v4171_v6 = vpop.f32.mrb[34].mxu1  ;;  %v8880_v9 = vpop.f32.mrb[30].mxu0 }
 0xd91   : > { %v7845_v10 = vpop.f32.mrb[35].mxu1  ;;  %v7861_v11 = vpop.f32.mrb[31].mxu0  ;;  %v8896_v55 = vadd.f32 %v7584_v21, %v4171_v6 }
 0xd96   : > { %v4227_v19 = vpop.f32.mrb[36].mxu1 }
 0xd97   : > { %v4228_v46 = vadd.f32 %v7588_v13, %v4227_v19  ;;  %v7852_v41 = vpop.f32.mrb[37].mxu1 }
 0xd98   : > { %v4230_v5 = vpop.f32.mrb[38].mxu1 }
 0xd99   : > { %4457 = vrot.lane.b32.xlu1 %v4228_v46, %s8120_s26  ;;  %4451 = vrot.lane.b32.xlu0 %v4228_v46, %s9426_s24  ;;  %v7853_v20 = vpop.f32.mrb[39].mxu1  ;;  %v4231_v31 = vadd.f32 %v7588_v13, %v4230_v5 }
 0xd9d   : > { %4463 = vrot.lane.b32.xlu1 %v4228_v46, %s9427_s25  ;;  %4459 = vrot.lane.b32.xlu0 %v4231_v31, %s8120_s26 }
 0xda1   : > { %4465 = vrot.lane.b32.xlu0 %v4231_v31, %s9427_s25  ;;  %4453 = vrot.lane.b32.xlu1 %v4231_v31, %s9426_s24 }
 0xda5   : > { %4295 = vrot.lane.b32.xlu0 %v8894_v53, %s9426_s24  ;;  %4297 = vrot.lane.b32.xlu1 %v8896_v55, %s9426_s24 }
 0xe0b   : > { %v4458_v23 = vpop.permute.xlu1 %4457  ;;  %v4452_v24 = vpop.permute.xlu0 %4451 }
 0xe0c   : > { %v4469_v25 = vcombine.low %v4228_v46, %v4458_v23  ;;  %v4470_v27 = vcombine.high %v4228_v46, %v4458_v23 }
 0xe0e   : > { %v4477_v30 = vrot.slane %v4469_v25, %v8363_v54  ;;  %v4484_v35 = vrot.slane %v4470_v27, %v8363_v54 }
 0xe0f   : > { %v4464_v28 = vpop.permute.xlu1 %4463  ;;  %v4460_v29 = vpop.permute.xlu0 %4459 }
 0xe10   : > { %v4485_v49 = vcombine.low %v4452_v24, %v4464_v28  ;;  %v4486_v47 = vcombine.high %v4452_v24, %v4464_v28  ;;  %v4537_v36 = vcombine.low %v4231_v31, %v4460_v29  ;;  %v4538_v57 = vcombine.high %v4231_v31, %v4460_v29 }
 0xe12   : > { %v4493_v58 = vrot.slane %v4485_v49, %v8363_v54  ;;  %v4500_v48 = vrot.slane %v4486_v47, %v8363_v54  ;;  %v4545_v39 = vrot.slane %v4537_v36, %v8363_v54  ;;  %v4552_v10 = vrot.slane %v4538_v57, %v8363_v54 }
 0xe13   : > { %v4466_v3 = vpop.permute.xlu0 %4465  ;;  %v4454_v50 = vpop.permute.xlu1 %4453 }
 0xe14   : > { %v4501_v32 = vcombine.low %v4477_v30, %v4493_v58  ;;  %v4502_v7 = vcombine.high %v4477_v30, %v4493_v58  ;;  %v4517_v16 = vcombine.low %v4484_v35, %v4500_v48  ;;  %v4553_v17 = vcombine.low %v4454_v50, %v4466_v3 }
 0xe15   : > { %v4518_v14 = vcombine.high %v4484_v35, %v4500_v48  ;;  %v4554_v34 = vcombine.high %v4454_v50, %v4466_v3 }
 0xe16   : > { %v4509_v51 = vrot.slane %v4501_v32, %v8366_v61  ;;  %v4516_v33 = vrot.slane %v4502_v7, %v8366_v61  ;;  %v4525_v56 = vrot.slane %v4517_v16, %v8366_v61  ;;  %v4561_v37 = vrot.slane %v4553_v17, %v8363_v54 }
 0xe17   : > { %v4532_v45 = vrot.slane %v4518_v14, %v8366_v61  ;;  %v4568_v38 = vrot.slane %v4554_v34, %v8363_v54  ;;  %v8934_v58 = vpop.permute.xlu0 %4295  ;;  %v8936_v48 = vpop.permute.xlu1 %4297 }
 0xe18   : > { %v4779_v18 = vpack.c.bf16 %v4516_v33, %v4516_v33  ;;  %v4777_v60 = vpack.c.bf16 %v4509_v51, %v4509_v51  ;;  %v4534_v22 = vcombine.high %v4516_v33, %v8118_v1  ;;  %v4569_v0 = vcombine.low %v4545_v39, %v4561_v37 }
 0xe19   : > { %v4781_v52 = vpack.c.bf16 %v4525_v56, %v4525_v56  ;;  %v4535_v26 = vcombine.high %v4525_v56, %v8118_v1  ;;  %v4570_v43 = vcombine.high %v4545_v39, %v4561_v37  ;;  %v4783_v12 = vpack.c.bf16 %v4532_v45, %v4532_v45 }
 0xe1a   : > { %4937 = vxpose.xlu0.c.b16.start.end [1/1] (short) (narrow) %v4779_v18, 16  ;;  %4905 = vxpose.xlu1.c.b16.start.end [1/1] (short) (narrow) %v4777_v60, 16  ;;  %v4780_v42 = vpack.c.bf16 %v4534_v22, %v4534_v22  ;;  %v4533_v2 = vcombine.high %v4509_v51, %v8118_v1  ;;  %v4536_v4 = vcombine.high %v4532_v45, %v8118_v1 }
 0xe1b   : > { %v4782_v15 = vpack.c.bf16 %v4535_v26, %v4535_v26  ;;  %v4577_v6 = vrot.slane %v4569_v0, %v8366_v61  ;;  %v4585_v11 = vcombine.low %v4552_v10, %v4568_v38  ;;  %v4584_v41 = vrot.slane %v4570_v43, %v8366_v61 }
 0xe1c   : > { %v4778_v13 = vpack.c.bf16 %v4533_v2, %v4533_v2  ;;  %v4784_v19 = vpack.c.bf16 %v4536_v4, %v4536_v4  ;;  %v4586_v5 = vcombine.high %v4552_v10, %v4568_v38 }
 0xe1d   : > { %v4601_v46 = vcombine.high %v4577_v6, %v8118_v1  ;;  %v4785_v20 = vpack.c.bf16 %v4577_v6, %v4577_v6  ;;  %v4602_v21 = vcombine.high %v4584_v41, %v8118_v1  ;;  %v4593_v23 = vrot.slane %v4585_v11, %v8366_v61 }
 0xe1e   : > { %4969 = vxpose.xlu0.c.b16.start.end [1/1] (short) (narrow) %v4781_v52, 16  ;;  %4953 = vxpose.xlu1.c.b16.start.end [1/1] (short) (narrow) %v4780_v42, 16  ;;  %v4787_v24 = vpack.c.bf16 %v4584_v41, %v4584_v41  ;;  %v4600_v28 = vrot.slane %v4586_v5, %v8366_v61 }
 0xe1f   : > { %v4786_v31 = vpack.c.bf16 %v4601_v46, %v4601_v46  ;;  %v4788_v25 = vpack.c.bf16 %v4602_v21, %v4602_v21  ;;  %v4603_v27 = vcombine.high %v4593_v23, %v8118_v1  ;;  %v4789_v29 = vpack.c.bf16 %v4593_v23, %v4593_v23 }
 0xe20   : > { %v4604_v47 = vcombine.high %v4600_v28, %v8118_v1  ;;  %v4791_v30 = vpack.c.bf16 %v4600_v28, %v4600_v28 }
 0xe21   : > { %v4790_v49 = vpack.c.bf16 %v4603_v27, %v4603_v27 }
 0xe22   : > { %5001 = vxpose.xlu0.c.b16.start.end [1/1] (short) (narrow) %v4783_v12, 16  ;;  %4985 = vxpose.xlu1.c.b16.start.end [1/1] (short) (narrow) %v4782_v15, 16  ;;  %v4792_v35 = vpack.c.bf16 %v4604_v47, %v4604_v47 }
 0xe26   : > { %4921 = vxpose.xlu0.c.b16.start.end [1/1] (short) (narrow) %v4778_v13, 16  ;;  %5017 = vxpose.xlu1.c.b16.start.end [1/1] (short) (narrow) %v4784_v19, 16 }
 0xe2a   : > { %5033 = vxpose.xlu0.c.b16.start.end [1/1] (short) (narrow) %v4785_v20, 16  ;;  %5049 = vxpose.xlu1.c.b16.start.end [1/1] (short) (narrow) %v4786_v31, 16 }
 0xe2e   : > { %5065 = vxpose.xlu0.c.b16.start.end [1/1] (short) (narrow) %v4787_v24, 16  ;;  %5081 = vxpose.xlu1.c.b16.start.end [1/1] (short) (narrow) %v4788_v25, 16 }
 0xe32   : > { %5097 = vxpose.xlu0.c.b16.start.end [1/1] (short) (narrow) %v4789_v29, 16  ;;  %5113 = vxpose.xlu1.c.b16.start.end [1/1] (short) (narrow) %v4790_v49, 16 }
 0xe36   : > { %5129 = vxpose.xlu0.c.b16.start.end [1/1] (short) (narrow) %v4791_v30, 16  ;;  %5145 = vxpose.xlu1.c.b16.start.end [1/1] (short) (narrow) %v4792_v35, 16 }
 0xe3a   : > { %4301 = vrot.lane.b32.xlu1 %v8894_v53, %s8120_s26 }
 0xe3e   : > { %4307 = vrot.lane.b32.xlu1 %v8894_v53, %s9427_s25 }
 0xe3f   : > { %4303 = vrot.lane.b32.xlu0 %v8896_v55, %s8120_s26 }
 0xe43   : > { %4309 = vrot.lane.b32.xlu0 %v8896_v55, %s9427_s25 }
 0xe80   : > { %v4945_v3 = vpop.trf.xlu0  ;;  %v4913_v50 = vpop.trf.xlu1 }
 0xe84   : > { %v4977_v32 = vpop.trf.xlu0  ;;  %v4961_v7 = vpop.trf.xlu1 }
 0xe85   : > { %v5161_v39 = vcombine.low %v4913_v50, %v4977_v32 }
 0xe87   : > { %v5168_v38 = vrot.slane %v5161_v39, %v8363_v54 }
 0xe88   : > { %v5009_v16 = vpop.trf.xlu0  ;;  %v4993_v17 = vpop.trf.xlu1 }
 0xe89   : > { %v5169_v18 = vcombine.low %v4945_v3, %v5009_v16 }
 0xe8b   : > { %v5176_v0 = vrot.slane %v5169_v18, %v8363_v54 }
 0xe8c   : > { %v4929_v51 = vpop.trf.xlu0  ;;  %v5025_v33 = vpop.trf.xlu1 }
 0xe8d   : > { %v5229_v60 = vcombine.low %v4929_v51, %v4993_v17  ;;  %v5237_v22 = vcombine.low %v4961_v7, %v5025_v33  ;;  %v5193_v4 = vcombine.low %v5168_v38, %v5176_v0  ;;  %v5194_v46 = vcombine.high %v5168_v38, %v5176_v0 }
 0xe8f   : > { %v5236_v52 = vrot.slane %v5229_v60, %v8363_v54  ;;  %v5244_v42 = vrot.slane %v5237_v22, %v8363_v54  ;;  %v5201_v23 = vrot.slane %v5193_v4, %v8366_v61  ;;  %v5208_v49 = vrot.slane %v5194_v46, %v8366_v61 }
 0xe90   : > { %v5041_v36 = vpop.trf.xlu0  ;;  %v5057_v14 = vpop.trf.xlu1 }
 0xe91   : > { %v5261_v6 = vcombine.low %v5236_v52, %v5244_v42  ;;  %v5262_v41 = vcombine.high %v5236_v52, %v5244_v42 }
 0xe93   : > { %v5269_v24 = vrot.slane %v5261_v6, %v8366_v61  ;;  %v5276_v47 = vrot.slane %v5262_v41, %v8366_v61 }
 0xe94   : > { %v5073_v56 = vpop.trf.xlu0  ;;  %v5089_v37 = vpop.trf.xlu1 }
 0xe98   : > { %v5105_v34 = vpop.trf.xlu0  ;;  %v5121_v45 = vpop.trf.xlu1 }
 0xe99   : > { %v5177_v26 = vcombine.low %v5041_v36, %v5105_v34  ;;  %v5245_v57 = vcombine.low %v5057_v14, %v5121_v45 }
 0xe9b   : > { %v5184_v10 = vrot.slane %v5177_v26, %v8363_v54  ;;  %v5252_v11 = vrot.slane %v5245_v57, %v8363_v54 }
 0xe9c   : > { %v5137_v43 = vpop.trf.xlu0  ;;  %v5153_v12 = vpop.trf.xlu1 }
 0xe9d   : > { %v5185_v15 = vcombine.low %v5073_v56, %v5137_v43  ;;  %v5253_v2 = vcombine.low %v5089_v37, %v5153_v12 }
 0xe9f   : > { %v5192_v13 = vrot.slane %v5185_v15, %v8363_v54  ;;  %v5260_v19 = vrot.slane %v5253_v2, %v8363_v54 }
 0xea1   : > { %v5209_v5 = vcombine.low %v5184_v10, %v5192_v13  ;;  %v5210_v20 = vcombine.high %v5184_v10, %v5192_v13  ;;  %v5277_v31 = vcombine.low %v5252_v11, %v5260_v19  ;;  %v5278_v21 = vcombine.high %v5252_v11, %v5260_v19 }
 0xea3   : > { %v5217_v25 = vrot.slane %v5209_v5, %v8366_v61  ;;  %v5224_v27 = vrot.slane %v5210_v20, %v8366_v61  ;;  %v5285_v28 = vrot.slane %v5277_v31, %v8366_v61  ;;  %v5292_v29 = vrot.slane %v5278_v21, %v8366_v61 }
 0xea5   : > { %v5225_v30 = vcombine.low %v5201_v23, %v5217_v25  ;;  %v5226_v35 = vcombine.high %v5201_v23, %v5217_v25  ;;  %v5293_v3 = vcombine.low %v5269_v24, %v5285_v28  ;;  %v5294_v50 = vcombine.high %v5269_v24, %v5285_v28 }
 0xea6   : > { %v5227_v32 = vcombine.low %v5208_v49, %v5224_v27  ;;  %v5295_v7 = vcombine.low %v5276_v47, %v5292_v29  ;;  %v5228_v39 = vcombine.high %v5208_v49, %v5224_v27  ;;  %v5296_v34 = vcombine.high %v5276_v47, %v5292_v29 }
 0xea7   : > { %v5307_v16 = vpack.i.b16 %v5294_v50, %v5226_v35  ;;  %v5299_v17 = vpack.i.b16 %v5293_v3, %v5225_v30  ;;  %v5309_v51 = vshrl.u32 %v5226_v35, 16  ;;  %v5310_v33 = vshrl.u32 %v5294_v50, 16 }
 0xea8   : > { %v5315_v36 = vpack.i.b16 %v5295_v7, %v5227_v32  ;;  %v5301_v14 = vshrl.u32 %v5225_v30, 16  ;;  %v5302_v37 = vshrl.u32 %v5293_v3, 16  ;;  %v5317_v18 = vshrl.u32 %v5227_v32, 16 }
 0xea9   : > { %5361 = vxpose.xlu0.c.b16.start.end [1/1] (short) (narrow) %v5307_v16, 16  ;;  %5329 = vxpose.xlu1.c.b16.start.end [1/1] (short) (narrow) %v5299_v17, 16  ;;  %v5311_v56 = vpack.i.b16 %v5310_v33, %v5309_v51  ;;  %v5318_v60 = vshrl.u32 %v5295_v7, 16  ;;  %v5325_v57 = vshrl.u32 %v5228_v39, 16  ;;  %v5326_v38 = vshrl.u32 %v5296_v34, 16 }
 0xeaa   : > { %v5303_v52 = vpack.i.b16 %v5302_v37, %v5301_v14  ;;  %v5323_v2 = vpack.i.b16 %v5296_v34, %v5228_v39 }
 0xeab   : > { %v5319_v42 = vpack.i.b16 %v5318_v60, %v5317_v18  ;;  %v5327_v19 = vpack.i.b16 %v5326_v38, %v5325_v57 }
 0xeac   : > { %v4302_v22 = vpop.permute.xlu1 %4301 }
 0xead   : > { %5393 = vxpose.xlu0.c.b16.start.end [1/1] (short) (narrow) %v5315_v36, 16  ;;  %5377 = vxpose.xlu1.c.b16.start.end [1/1] (short) (narrow) %v5311_v56, 16  ;;  %v4313_v45 = vcombine.low %v8894_v53, %v4302_v22  ;;  %v4314_v0 = vcombine.high %v8894_v53, %v4302_v22 }
 0xeaf   : > { %v4321_v4 = vrot.slane %v4313_v45, %v8363_v54  ;;  %v4328_v6 = vrot.slane %v4314_v0, %v8363_v54 }
 0xeb0   : > { %v4308_v26 = vpop.permute.xlu1 %4307 }
 0xeb1   : > { %v4329_v43 = vcombine.low %v8934_v58, %v4308_v26  ;;  %v4330_v12 = vcombine.high %v8934_v58, %v4308_v26  ;;  %v4304_v15 = vpop.permute.xlu0 %4303  ;;  %5345 = vxpose.xlu0.c.b16.start.end [1/1] (short) (narrow) %v5303_v52, 16  ;;  %5409 = vxpose.xlu1.c.b16.start.end [1/1] (short) (narrow) %v5319_v42, 16  ;;  %v7592_v58 = vld [vmem:[%s9385_s8 + $0x1] ss:$0 sm:$0xff] }
 0xeb2   : > { %v4381_v11 = vcombine.low %v8896_v55, %v4304_v15  ;;  %v4382_v13 = vcombine.high %v8896_v55, %v4304_v15  ;;  %v8968_v21 = vadd.f32 %v7592_v58, %v8880_v9  ;;  %v8987_v14 = vadd.f32 %v7592_v58, %v8878_v44 }
 0xeb3   : > { %v4337_v10 = vrot.slane %v4329_v43, %v8363_v54  ;;  %v4344_v53 = vrot.slane %v4330_v12, %v8363_v54 }
 0xeb4   : > { %v4389_v29 = vrot.slane %v4381_v11, %v8363_v54  ;;  %v4396_v49 = vrot.slane %v4382_v13, %v8363_v54 }
 0xeb5   : > { %v4345_v46 = vcombine.low %v4321_v4, %v4337_v10  ;;  %v4346_v41 = vcombine.high %v4321_v4, %v4337_v10  ;;  %v4361_v5 = vcombine.low %v4328_v6, %v4344_v53  ;;  %v4362_v20 = vcombine.high %v4328_v6, %v4344_v53  ;;  %v4310_v31 = vpop.permute.xlu0 %4309  ;;  %5425 = vxpose.xlu0.c.b16.start.end [1/1] (short) (narrow) %v5323_v2, 16 }
 0xeb6   : > { %v4397_v23 = vcombine.low %v8936_v48, %v4310_v31  ;;  %v4398_v24 = vcombine.high %v8936_v48, %v4310_v31  ;;  %5441 = vxpose.xlu1.c.b16.start.end [1/1] (short) (narrow) %v5327_v19, 16 }
 0xeb7   : > { %v4353_v55 = vrot.slane %v4345_v46, %v8366_v61  ;;  %v4360_v25 = vrot.slane %v4346_v41, %v8366_v61  ;;  %v4369_v27 = vrot.slane %v4361_v5, %v8366_v61  ;;  %v4376_v28 = vrot.slane %v4362_v20, %v8366_v61 }
 0xeb8   : > { %v4405_v9 = vrot.slane %v4397_v23, %v8363_v54  ;;  %v4412_v47 = vrot.slane %v4398_v24, %v8363_v54 }
 0xeb9   : > { %v4377_v30 = vcombine.high %v4353_v55, %v8118_v1  ;;  %v4378_v48 = vcombine.high %v4360_v25, %v8118_v1  ;;  %v4379_v35 = vcombine.high %v4369_v27, %v8118_v1  ;;  %v4380_v3 = vcombine.high %v4376_v28, %v8118_v1 }
 0xeba   : > { %v7596_v50 = vpack.c.bf16 %v4369_v27, %v4353_v55  ;;  %v7597_v32 = vpack.c.bf16 %v4376_v28, %v4360_v25  ;;  %v4413_v7 = vcombine.low %v4389_v29, %v4405_v9  ;;  %v4414_v16 = vcombine.high %v4389_v29, %v4405_v9  ;;  %4609 = vrot.lane.b32.xlu1 %v8968_v21, %s9426_s24 }
 0xebb   : > { %v7600_v17 = vpack.c.bf16 %v4379_v35, %v4377_v30  ;;  %v7601_v51 = vpack.c.bf16 %v4380_v3, %v4378_v48  ;;  %v4429_v33 = vcombine.low %v4396_v49, %v4412_v47  ;;  %v4430_v36 = vcombine.high %v4396_v49, %v4412_v47 }
 0xebc   : > { %v4421_v56 = vrot.slane %v4413_v7, %v8366_v61  ;;  %v4428_v37 = vrot.slane %v4414_v16, %v8366_v61  ;;  %v4800_v18 = vrot.slane %v7596_v50, %v8363_v54  ;;  %v4808_v60 = vrot.slane %v7597_v32, %v8363_v54 }
 0xebd   : > { %v4437_v22 = vrot.slane %v4429_v33, %v8366_v61  ;;  %v4444_v39 = vrot.slane %v4430_v36, %v8366_v61  ;;  %v4850_v34 = vrot.slane %v7600_v17, %v8363_v54  ;;  %v4858_v44 = vrot.slane %v7601_v51, %v8363_v54 }
 0xebe   : > { %v4445_v45 = vcombine.high %v4421_v56, %v8118_v1  ;;  %v4446_v0 = vcombine.high %v4428_v37, %v8118_v1  ;;  %4613 = vrot.lane.b32.xlu1 %v8987_v14, %s8120_s26  ;;  %4607 = vrot.lane.b32.xlu0 %v8987_v14, %s9426_s24  ;;  %v4825_v15 = vcombine.low %v4800_v18, %v4808_v60 }
 0xebf   : > { %v4447_v52 = vcombine.high %v4437_v22, %v8118_v1  ;;  %v4448_v42 = vcombine.high %v4444_v39, %v8118_v1  ;;  %v7598_v26 = vpack.c.bf16 %v4437_v22, %v4421_v56  ;;  %v7599_v57 = vpack.c.bf16 %v4444_v39, %v4428_v37 }
 0xec0   : > { %v4875_v4 = vcombine.low %v4850_v34, %v4858_v44  ;;  %v4832_v13 = vrot.slane %v4825_v15, %v8366_v61 }
 0xec1   : > { %v4816_v38 = vrot.slane %v7598_v26, %v8363_v54  ;;  %v7602_v43 = vpack.c.bf16 %v4447_v52, %v4445_v45  ;;  %v7603_v12 = vpack.c.bf16 %v4448_v42, %v4446_v0  ;;  %v4824_v2 = vrot.slane %v7599_v57, %v8363_v54 }
 0xec2   : > { %4619 = vrot.lane.b32.xlu1 %v8987_v14, %s9427_s25  ;;  %4615 = vrot.lane.b32.xlu0 %v8968_v21, %s8120_s26  ;;  %v4882_v58 = vrot.slane %v4875_v4, %v8366_v61 }
 0xec3   : > { %v4866_v6 = vrot.slane %v7602_v43, %v8363_v54  ;;  %v4874_v10 = vrot.slane %v7603_v12, %v8363_v54  ;;  %v4833_v53 = vcombine.low %v4816_v38, %v4824_v2 }
 0xec5   : > { %v4883_v11 = vcombine.low %v4866_v6, %v4874_v10  ;;  %v4840_v19 = vrot.slane %v4833_v53, %v8366_v61 }
 0xec6   : > { %4621 = vrot.lane.b32.xlu0 %v8968_v21, %s9427_s25  ;;  %s9428_s25 = smov 16  }
 0xec7   : > { %v4890_v46 = vrot.slane %v4883_v11, %v8366_v61  ;;  %v4841_v41 = vcombine.low %v4832_v13, %v4840_v19  ;;  %v9019_v5 = vcombine.high %v4832_v13, %v4840_v19 }
 0xec9   : > { %v4891_v20 = vcombine.low %v4882_v58, %v4890_v46  ;;  %v4892_v31 = vcombine.high %v4882_v58, %v4890_v46  ;;  %v4896_v23 = vshrl.u32 %v4841_v41, 16  ;;  %v4902_v24 = vshrl.u32 %v9019_v5, 16 }
 0xecb   : > { %v4895_v55 = vpack.i.b16 %v4891_v20, %v4841_v41  ;;  %v4897_v25 = vshrl.u32 %v4891_v20, 16  ;;  %v4901_v27 = vpack.i.b16 %v4892_v31, %v9019_v5  ;;  %v4903_v28 = vshrl.u32 %v4892_v31, 16 }
 0xecd   : > { %v4898_v29 = vpack.i.b16 %v4897_v25, %v4896_v23  ;;  %v4904_v49 = vpack.i.b16 %v4903_v28, %v4902_v24 }
 0xf0f   : > { %v5369_v9 = vpop.trf.xlu0  ;;  %v5337_v47 = vpop.trf.xlu1 }
 0xf13   : > { %v5401_v30 = vpop.trf.xlu0  ;;  %v5385_v48 = vpop.trf.xlu1 }
 0xf14   : > { %v5457_v50 = vcombine.low %v5337_v47, %v5401_v30 }
 0xf16   : > { %v5464_v33 = vrot.slane %v5457_v50, %v8363_v54 }
 0xf17   : > { %v5353_v35 = vpop.trf.xlu0  ;;  %v5417_v3 = vpop.trf.xlu1 }
 0xf18   : > { %v5482_v32 = vcombine.low %v5353_v35, %v5417_v3 }
 0xf1a   : > { %v5489_v56 = vrot.slane %v5482_v32, %v8363_v54 }
 0xf1b   : > { %v5433_v7 = vpop.trf.xlu0 }
 0xf1c   : > { %v5465_v16 = vcombine.low %v5369_v9, %v5433_v7  ;;  %v5449_v17 = vpop.trf.xlu1 }
 0xf1d   : > { %v5490_v51 = vcombine.low %v5385_v48, %v5449_v17 }
 0xf1e   : > { %v5472_v36 = vrot.slane %v5465_v16, %v8363_v54 }
 0xf1f   : > { %v5497_v37 = vrot.slane %v5490_v51, %v8363_v54 }
 0xf20   : > { %v5473_v18 = vcombine.low %v5464_v33, %v5472_v36 }
 0xf21   : > { %v5498_v60 = vcombine.low %v5489_v56, %v5497_v37 }
 0xf22   : > { %v5480_v22 = vrot.slane %v5473_v18, %v8366_v61 }
 0xf23   : > { %v5505_v39 = vrot.slane %v5498_v60, %v8366_v61 }
 0xf24   : > { %v5510_v34 = vshrl.u32 %v5480_v22, 16  ;;  %v5481_v45 = vcombine.high %v5480_v22, %v8125_v8 }
 0xf25   : > { %v5509_v0 = vpack.i.b16 %v5505_v39, %v5480_v22  ;;  %v5511_v44 = vshrl.u32 %v5505_v39, 16  ;;  %v5506_v52 = vcombine.high %v5505_v39, %v8125_v8 }
 0xf26   : > { %v5516_v42 = vshrl.u32 %v5481_v45, 16 }
 0xf27   : > { %v5523_v26 = vsel %vm2227_vm3, %v5509_v0, 0  ;;  %v5512_v57 = vpack.i.b16 %v5511_v44, %v5510_v34  ;;  %v5515_v38 = vpack.i.b16 %v5506_v52, %v5481_v45  ;;  %v5517_v43 = vshrl.u32 %v5506_v52, 16 }
 0xf28   : > { %7863 = vmatpush3.bf16.msra.mxu1 %v5523_v26 }
 0xf29   : > { %v5570_v12 = vsel %vm2227_vm3, %v5512_v57, 0  ;;  %7874 = vmatprep.subr.bf16.mxu1 %v8118_v1  ;;  %v5518_v15 = vpack.i.b16 %v5517_v43, %v5516_v42  ;;  %v5617_v2 = vsel %vm2227_vm3, %v5515_v38, 0 }
 0xf2a   : > { %7869 = vmatpush3.bf16.msra.mxu0 %v5570_v12 }
 0xf2b   : > { %7865 = vmatmul.mubr.msk.bf16.vlgmr.msra.gmra.mrb[40].mxu1 %vm2223_vm4, %v4895_v55  ;;  %7880 = vmatprep.subr.bf16.mxu0 %v8118_v1  ;;  %v5664_v6 = vsel %vm2227_vm3, %v5518_v15, 0 }
 0xf2c   : > { %7875 = vmatpush3.bf16.msra.mxu1 %v5617_v2  ;;  %v4610_v4 = vpop.permute.xlu1 %4609  ;;  %7876 = vmatprep.mubr.msk.bf16.mxu1 %vm8119_vm0, %v8118_v1 }
 0xf2d   : > { %7871 = vmatmul.mubr.msk.bf16.vlgmr.msra.gmra.mrb[32].mxu0 %vm2223_vm4, %v4898_v29  ;;  %7886 = vmatprep.subr.bf16.mxu1 %v8118_v1 }
 0xf2e   : > { %7881 = vmatpush3.bf16.msra.mxu0 %v5664_v6  ;;  %7882 = vmatprep.mubr.msk.bf16.mxu0 %vm8119_vm0, %v8118_v1 }
 0xf2f   : > { %7892 = vmatprep.subr.bf16.mxu0 %v8118_v1 }
 0xf30   : > { %v4614_v10 = vpop.permute.xlu1 %4613  ;;  %v4608_v53 = vpop.permute.xlu0 %4607 }
 0xf31   : > { %v4625_v11 = vcombine.low %v8987_v14, %v4614_v10  ;;  %v4626_v13 = vcombine.high %v8987_v14, %v4614_v10 }
 0xf33   : > { %7877 = vmatmul.mubr.msk.bf16.vlgmr.msra.gmra.mrb[44].mxu1 %vm2223_vm4, %v4901_v27  ;;  %v4633_v5 = vrot.slane %v4625_v11, %v8363_v54  ;;  %v4640_v20 = vrot.slane %v4626_v13, %v8363_v54 }
 0xf34   : > { %v4620_v19 = vpop.permute.xlu1 %4619  ;;  %v4616_v58 = vpop.permute.xlu0 %4615  ;;  %7888 = vmatprep.mubr.msk.bf16.mxu1 %vm8119_vm0, %v8118_v1 }
 0xf35   : > { %v4641_v46 = vcombine.low %v4608_v53, %v4620_v19  ;;  %v4642_v41 = vcombine.high %v4608_v53, %v4620_v19  ;;  %7883 = vmatmul.mubr.msk.bf16.vlgmr.msra.gmra.mrb[36].mxu0 %vm2223_vm4, %v4904_v49  ;;  %v4694_v23 = vcombine.high %v8968_v21, %v4616_v58  ;;  %v4693_v9 = vcombine.low %v8968_v21, %v4616_v58 }
 0xf36   : > { %7894 = vmatprep.mubr.msk.bf16.mxu0 %vm8119_vm0, %v8118_v1 }
 0xf37   : > { %v4649_v14 = vrot.slane %v4641_v46, %v8363_v54  ;;  %v4656_v31 = vrot.slane %v4642_v41, %v8363_v54  ;;  %v9062_v48 = vrot.slane %v4694_v23, %v8363_v54  ;;  %v4701_v17 = vrot.slane %v4693_v9, %v8363_v54 }
 0xf38   : > { %v4622_v24 = vpop.permute.xlu0 %4621 }
 0xf39   : > { %v4657_v55 = vcombine.low %v4633_v5, %v4649_v14  ;;  %v4658_v25 = vcombine.high %v4633_v5, %v4649_v14  ;;  %v4673_v27 = vcombine.low %v4640_v20, %v4656_v31  ;;  %v4709_v28 = vcombine.low %v4610_v4, %v4622_v24 }
 0xf3a   : > { %v4710_v29 = vcombine.high %v4610_v4, %v4622_v24  ;;  %v4674_v30 = vcombine.high %v4640_v20, %v4656_v31 }
 0xf3b   : > { %v4665_v49 = vrot.slane %v4657_v55, %v8366_v61  ;;  %v4672_v47 = vrot.slane %v4658_v25, %v8366_v61  ;;  %v4681_v3 = vrot.slane %v4673_v27, %v8366_v61  ;;  %v4717_v50 = vrot.slane %v4709_v28, %v8363_v54 }
 0xf3c   : > { %v9065_v35 = vrot.slane %v4710_v29, %v8363_v54  ;;  %v4688_v37 = vrot.slane %v4674_v30, %v8366_v61 }
 0xf3d   : > { %v5807_v32 = vpack.c.bf16 %v4665_v49, %v4665_v49  ;;  %v4689_v7 = vcombine.high %v4665_v49, %v8118_v1  ;;  %v4690_v16 = vcombine.high %v4672_v47, %v8118_v1  ;;  %v4725_v33 = vcombine.low %v4701_v17, %v4717_v50 }
 0xf3e   : > { %v4742_v21 = vcombine.high %v9062_v48, %v9065_v35  ;;  %v4691_v56 = vcombine.high %v4681_v3, %v8118_v1  ;;  %v5809_v18 = vpack.c.bf16 %v4672_v47, %v4672_v47  ;;  %v4726_v60 = vcombine.high %v4701_v17, %v4717_v50 }
 0xf3f   : > { %5823 = vxpose.xlu1.c.b16.start.end [1/1] (short) (narrow) %v5807_v32, 16  ;;  %v5808_v51 = vpack.c.bf16 %v4689_v7, %v4689_v7  ;;  %v5810_v36 = vpack.c.bf16 %v4690_v16, %v4690_v16  ;;  %v4692_v39 = vcombine.high %v4688_v37, %v8118_v1  ;;  %v4733_v34 = vrot.slane %v4725_v33, %v8366_v61 }
 0xf40   : > { %v5812_v22 = vpack.c.bf16 %v4691_v56, %v4691_v56  ;;  %v5811_v45 = vpack.c.bf16 %v4681_v3, %v4681_v3  ;;  %v4741_v0 = vcombine.low %v9062_v48, %v9065_v35  ;;  %v4740_v42 = vrot.slane %v4726_v60, %v8366_v61 }
 0xf41   : > { %5839 = vxpose.xlu0.c.b16.start.end [1/1] (short) (narrow) %v5808_v51, 16  ;;  %v5814_v44 = vpack.c.bf16 %v4692_v39, %v4692_v39  ;;  %v4757_v52 = vcombine.high %v4733_v34, %v8118_v1  ;;  %v5813_v26 = vpack.c.bf16 %v4688_v37, %v4688_v37  ;;  %v5815_v12 = vpack.c.bf16 %v4733_v34, %v4733_v34 }
 0xf42   : > { %v4758_v38 = vcombine.high %v4740_v42, %v8118_v1  ;;  %v4749_v43 = vrot.slane %v4741_v0, %v8366_v61  ;;  %v5817_v4 = vpack.c.bf16 %v4740_v42, %v4740_v42  ;;  %v4756_v56 = vrot.slane %v4742_v21, %v8366_v61 }
 0xf43   : > { %5871 = vxpose.xlu1.c.b16.start.end [1/1] (short) (narrow) %v5810_v36, 16  ;;  %v5816_v57 = vpack.c.bf16 %v4757_v52, %v4757_v52 }
 0xf44   : > { %v5818_v15 = vpack.c.bf16 %v4758_v38, %v4758_v38  ;;  %v4759_v2 = vcombine.high %v4749_v43, %v8118_v1  ;;  %v5819_v10 = vpack.c.bf16 %v4749_v43, %v4749_v43  ;;  %v4760_v37 = vcombine.high %v4756_v56, %v8118_v1 }
 0xf45   : > { %5855 = vxpose.xlu0.c.b16.start.end [1/1] (short) (narrow) %v5809_v18, 16  ;;  %v5821_v40 = vpack.c.bf16 %v4756_v56, %v4756_v56 }
 0xf46   : > { %v5820_v6 = vpack.c.bf16 %v4759_v2, %v4759_v2  ;;  %v5822_v18 = vpack.c.bf16 %v4760_v37, %v4760_v37 }
 0xf47   : > { %5903 = vxpose.xlu1.c.b16.start.end [1/1] (short) (narrow) %v5812_v22, 16 }
 0xf49   : > { %5887 = vxpose.xlu0.c.b16.start.end [1/1] (short) (narrow) %v5811_v45, 16 }
 0xf4b   : > { %5935 = vxpose.xlu1.c.b16.start.end [1/1] (short) (narrow) %v5814_v44, 16 }
 0xf4d   : > { %5919 = vxpose.xlu0.c.b16.start.end [1/1] (short) (narrow) %v5813_v26, 16 }
 0xf4f   : > { %5967 = vxpose.xlu1.c.b16.start.end [1/1] (short) (narrow) %v5816_v57, 16 }
 0xf51   : > { %5951 = vxpose.xlu0.c.b16.start.end [1/1] (short) (narrow) %v5815_v12, 16 }
 0xf53   : > { %5999 = vxpose.xlu1.c.b16.start.end [1/1] (short) (narrow) %v5818_v15, 16 }
 0xf55   : > { %5983 = vxpose.xlu0.c.b16.start.end [1/1] (short) (narrow) %v5817_v4, 16 }
 0xf57   : > { %6031 = vxpose.xlu1.c.b16.start.end [1/1] (short) (narrow) %v5820_v6, 16 }
 0xf59   : > { %6015 = vxpose.xlu0.c.b16.start.end [1/1] (short) (narrow) %v5819_v10, 16 }
 0xfa5   : > { %v5831_v22 = vpop.trf.xlu1 }
 0xfa7   : > { %v5847_v60 = vpop.trf.xlu0 }
 0xfa9   : > { %v5879_v34 = vpop.trf.xlu1 }
 0xfab   : > { %v5863_v39 = vpop.trf.xlu0 }
 0xfad   : > { %v5911_v0 = vpop.trf.xlu1 }
 0xfaf   : > { %v5895_v45 = vpop.trf.xlu0 }
 0xfb0   : > { %v6079_v6 = vcombine.low %v5831_v22, %v5895_v45 }
 0xfb1   : > { %v5943_v52 = vpop.trf.xlu1 }
 0xfb3   : > { %v5927_v44 = vpop.trf.xlu0 }
 0xfb4   : > { %v6087_v10 = vcombine.low %v5863_v39, %v5927_v44 }
 0xfb5   : > { %v5975_v26 = vpop.trf.xlu1 }
 0xfb7   : > { %v5959_v42 = vpop.trf.xlu0 }
 0xfb9   : > { %v6007_v38 = vpop.trf.xlu1 }
 0xfbb   : > { %v5991_v57 = vpop.trf.xlu0 }
 0xfbd   : > { %v6039_v35 = vpop.trf.xlu1 }
 0xfbf   : > { %v6023_v48 = vpop.trf.xlu0 }
 0xffe   : > { %v5559_v53 = vpop.f32.mrb[40].mxu1 }
 0xfff   : > { %v9087_v11 = vsel %vm8552_vm5, %v5559_v53, -1e+09  ;;  %v7866_v13 = vpop.f32.mrb[41].mxu1  ;;  %v6147_v53 = vcombine.low %v5847_v60, %v5911_v0 }
0x1000   : > { %v5715_v19 = vsel %vm2425_vm6, %v9087_v11, -inf  ;;  %v5562_v58 = vpop.f32.mrb[42].mxu1  ;;  %v5606_v46 = vpop.f32.mrb[32].mxu0  ;;  %v6155_v13 = vcombine.low %v5879_v34, %v5943_v52 }
0x1001   : > { %v9093_v41 = vsel %vm8556_vm7, %v5562_v58, -1e+09  ;;  %v9097_v5 = vsel %vm8552_vm5, %v5606_v46, -1e+09  ;;  %v7872_v20 = vpop.f32.mrb[33].mxu0  ;;  %5716 = vmax.xlane.f32.xlu0 %v5715_v19  ;;  %v7867_v14 = vpop.f32.mrb[43].mxu1  ;;  %v6086_v58 = vrot.slane %v6079_v6, %v8363_v54  ;;  %v6094_v46 = vrot.slane %v6087_v10, %v8363_v54 }
0x1002   : > { %v5718_v31 = vsel %vm2425_vm6, %v9093_v41, -inf  ;;  %v5609_v23 = vpop.f32.mrb[34].mxu0  ;;  %v5721_v25 = vsel %vm2425_vm6, %v9097_v5, -inf  ;;  %v6095_v14 = vcombine.low %v5959_v42, %v6023_v48 }
0x1003   : > { %v9103_v24 = vsel %vm8556_vm7, %v5609_v23, -1e+09  ;;  %v7873_v55 = vpop.f32.mrb[35].mxu0  ;;  %5719 = vmax.xlane.f32.xlu1 %v5718_v31  ;;  %v6154_v31 = vrot.slane %v6147_v53, %v8363_v54  ;;  %v6162_v23 = vrot.slane %v6155_v13, %v8363_v54 }
0x1004   : > { %v5724_v27 = vsel %vm2425_vm6, %v9103_v24, -inf }
0x1005   : > { %5722 = vmax.xlane.f32.xlu0 %v5721_v25  ;;  %v6163_v25 = vcombine.low %v5975_v26, %v6039_v35 }
0x1006   : > { %v5653_v28 = vpop.f32.mrb[44].mxu1 }
0x1007   : > { %v9111_v29 = vsel %vm8552_vm5, %v5653_v28, -1e+09  ;;  %5725 = vmax.xlane.f32.xlu1 %v5724_v27  ;;  %v7878_v49 = vpop.f32.mrb[45].mxu1  ;;  %v6111_v28 = vcombine.low %v6086_v58, %v6094_v46 }
0x1008   : > { %v5727_v9 = vsel %vm2425_vm6, %v9111_v29, -inf  ;;  %v5656_v47 = vpop.f32.mrb[46].mxu1  ;;  %v5700_v30 = vpop.f32.mrb[36].mxu0  ;;  %v6112_v49 = vcombine.high %v6086_v58, %v6094_v46 }
0x1009   : > { %v9117_v3 = vsel %vm8556_vm7, %v5656_v47, -1e+09  ;;  %v9121_v50 = vsel %vm8552_vm5, %v5700_v30, -1e+09  ;;  %v7884_v32 = vpop.f32.mrb[37].mxu0  ;;  %5728 = vmax.xlane.f32.xlu0 %v5727_v9  ;;  %v7879_v7 = vpop.f32.mrb[47].mxu1  ;;  %v6102_v47 = vrot.slane %v6095_v14, %v8363_v54  ;;  %v6119_v56 = vrot.slane %v6111_v28, %v8366_v61 }
0x100a   : > { %v5730_v16 = vsel %vm2425_vm6, %v9117_v3, -inf  ;;  %v5703_v17 = vpop.f32.mrb[38].mxu0  ;;  %v5733_v36 = vsel %vm2425_vm6, %v9121_v50, -inf  ;;  %v6179_v7 = vcombine.low %v6154_v31, %v6162_v23  ;;  %v6126_v37 = vrot.slane %v6112_v49, %v8366_v61 }
0x100b   : > { %v9127_v51 = vsel %vm8556_vm7, %v5703_v17, -1e+09  ;;  %v7885_v33 = vpop.f32.mrb[39].mxu0  ;;  %5731 = vmax.xlane.f32.xlu1 %v5730_v16  ;;  %v6180_v16 = vcombine.high %v6154_v31, %v6162_v23  ;;  %v6170_v17 = vrot.slane %v6163_v25, %v8363_v54 }
0x100c   : > { %v5736_v63 = vsel %vm2425_vm6, %v9127_v51, -inf  ;;  %v6187_v39 = vrot.slane %v6179_v7, %v8366_v61 }
0x100d   : > { %5734 = vmax.xlane.f32.xlu0 %v5733_v36  ;;  %v6194_v34 = vrot.slane %v6180_v16, %v8366_v61 }
0x100f   : > { %5737 = vmax.xlane.f32.xlu1 %v5736_v63 }
0x103a   : > { %6047 = vxpose.xlu0.c.b16.start.end [1/1] (short) (narrow) %v5821_v40, 16 }
0x103c   : > { %6063 = vxpose.xlu1.c.b16.start.end [1/1] (short) (narrow) %v5822_v18, 16 }
0x108e   : > { %v9138_v21 = vpop.xlane.xlu0 %5716 }
0x108f   : > { %v5739_v10 = vsub.f32 %v9087_v11, %v9138_v21 }
0x1090   : > { %v9140_v43 = vpop.xlane.xlu1 %5719 }
0x1091   : > { %v5740_v23 = vsub.f32 %v9093_v41, %v9140_v43  ;;  %v5747_v11 = vmul.f32 1.442695, %v5739_v10 }
0x1092   : > { %v9142_v12 = vpop.xlane.xlu0 %5722 }
0x1093   : > { %v5741_v21 = vsub.f32 %v9097_v5, %v9142_v12  ;;  %8070 = vpow2.f32 %v5747_v11 }
0x1094   : > { %v9144_v15 = vpop.xlane.xlu1 %5725 }
0x1095   : > { %v5751_v41 = vmul.f32 1.442695, %v5741_v21 }
0x1096   : > { %v9146_v2 = vpop.xlane.xlu0 %5728 }
0x1097   : > { %v5743_v43 = vsub.f32 %v9111_v29, %v9146_v2 }
0x1098   : > { %v9148_v4 = vpop.xlane.xlu1 %5731 }
0x1099   : > { %v5744_v5 = vsub.f32 %v9117_v3, %v9148_v4  ;;  %v5755_v12 = vmul.f32 1.442695, %v5743_v43 }
0x109a   : > { %v9150_v19 = vpop.xlane.xlu0 %5734 }
0x109c   : > { %v9154_v20 = vpop.xlane.xlu1 %5737 }
0x109d   : > { %v8071_v2 = vpop.eup %8070 }
0x109e   : > { %v5763_v3 = vsel %vm2425_vm6, %v8071_v2, 0.0 }
0x10a0   : > { %v6055_v55 = vpop.trf.xlu0 }
0x10a1   : > { %v6103_v27 = vcombine.low %v5991_v57, %v6055_v55 }
0x10a2   : > { %v6071_v9 = vpop.trf.xlu1 }
0x10a3   : > { %v6110_v30 = vrot.slane %v6103_v27, %v8363_v54  ;;  %v6171_v32 = vcombine.low %v6007_v38, %v6071_v9 }
0x10a5   : > { %v6127_v33 = vcombine.low %v6102_v47, %v6110_v30  ;;  %v6128_v36 = vcombine.high %v6102_v47, %v6110_v30  ;;  %v6178_v63 = vrot.slane %v6171_v32, %v8363_v54  ;;  %v5749_v47 = vmul.f32 1.442695, %v5740_v23 }
0x10a6   : > { %v5742_v30 = vsub.f32 %v9103_v24, %v9144_v15  ;;  %v5745_v24 = vsub.f32 %v9121_v50, %v9150_v19  ;;  %v5757_v15 = vmul.f32 1.442695, %v5744_v5 }
0x10a7   : > { %v6135_v40 = vrot.slane %v6127_v33, %v8366_v61  ;;  %v6142_v18 = vrot.slane %v6128_v36, %v8366_v61  ;;  %v6195_v60 = vcombine.low %v6170_v17, %v6178_v63  ;;  %v6196_v22 = vcombine.high %v6170_v17, %v6178_v63 }
0x10a8   : > { %8072 = vpow2.f32 %v5749_v47  ;;  %v5753_v17 = vmul.f32 1.442695, %v5742_v30  ;;  %v5746_v33 = vsub.f32 %v9127_v51, %v9154_v20  ;;  %v5759_v29 = vmul.f32 1.442695, %v5745_v24 }
0x10a9   : > { %v9168_v45 = vcombine.high %v6126_v37, %v6142_v18  ;;  %v6203_v0 = vrot.slane %v6195_v60, %v8366_v61  ;;  %v6210_v44 = vrot.slane %v6196_v22, %v8366_v61  ;;  %v6143_v52 = vcombine.low %v6119_v56, %v6135_v40 }
0x10aa   : > { %v6144_v6 = vcombine.high %v6119_v56, %v6135_v40  ;;  %v6145_v27 = vcombine.low %v6126_v37, %v6142_v18  ;;  %8074 = vpow2.f32 %v5751_v41  ;;  %v5761_v36 = vmul.f32 1.442695, %v5746_v33 }
0x10ab   : > { %v9172_v42 = vcombine.high %v6194_v34, %v6210_v44  ;;  %v6211_v26 = vcombine.low %v6187_v39, %v6203_v0  ;;  %v6212_v57 = vcombine.high %v6187_v39, %v6203_v0  ;;  %v6219_v48 = vshrl.u32 %v6143_v52, 16 }
0x10ac   : > { %v6213_v53 = vcombine.low %v6194_v34, %v6210_v44  ;;  %v6243_v14 = vshrl.u32 %v9168_v45, 16  ;;  %v6227_v25 = vshrl.u32 %v6144_v6, 16  ;;  %v6235_v7 = vshrl.u32 %v6145_v27, 16 }
0x10ad   : > { %v6217_v38 = vpack.i.b16 %v6211_v26, %v6143_v52  ;;  %v6220_v35 = vshrl.u32 %v6211_v26, 16  ;;  %v6241_v13 = vpack.i.b16 %v9172_v42, %v9168_v45  ;;  %v6228_v46 = vshrl.u32 %v6212_v57, 16 }
0x10ae   : > { %v6244_v31 = vshrl.u32 %v9172_v42, 16  ;;  %v6225_v55 = vpack.i.b16 %v6212_v57, %v6144_v6  ;;  %v6236_v9 = vshrl.u32 %v6213_v53, 16  ;;  %v6233_v32 = vpack.i.b16 %v6213_v53, %v6145_v27 }
0x10af   : > { %6247 = vxpose.xlu0.c.b16.start.end [1/1] (short) (narrow) %v6217_v38, 16  ;;  %v6221_v58 = vpack.i.b16 %v6220_v35, %v6219_v48  ;;  %v6229_v49 = vpack.i.b16 %v6228_v46, %v6227_v25  ;;  %8076 = vpow2.f32 %v5753_v17 }
0x10b0   : > { %v6245_v28 = vpack.i.b16 %v6244_v31, %v6243_v14  ;;  %v6237_v16 = vpack.i.b16 %v6236_v9, %v6235_v7  ;;  %8078 = vpow2.f32 %v5755_v12 }
0x10b1   : > { %6263 = vxpose.xlu1.c.b16.start.end [1/1] (short) (narrow) %v6221_v58, 16  ;;  %8080 = vpow2.f32 %v5757_v15 }
0x10b2   : > { %v8073_v63 = vpop.eup %8072  ;;  %8082 = vpow2.f32 %v5759_v29 }
0x10b3   : > { %6279 = vxpose.xlu0.c.b16.start.end [1/1] (short) (narrow) %v6225_v55, 16  ;;  %8084 = vpow2.f32 %v5761_v36  ;;  %v5766_v56 = vsel %vm2425_vm6, %v8073_v63, 0.0 }
0x10b4   : > { %v8075_v4 = vpop.eup %8074 }
0x10b5   : > { %6295 = vxpose.xlu1.c.b16.start.end [1/1] (short) (narrow) %v6229_v49, 16  ;;  %v5769_v19 = vsel %vm2425_vm6, %v8075_v4, 0.0 }
0x10b7   : > { %6311 = vxpose.xlu0.c.b16.start.end [1/1] (short) (narrow) %v6233_v32, 16 }
0x10b9   : > { %6327 = vxpose.xlu1.c.b16.start.end [1/1] (short) (narrow) %v6237_v16, 16  ;;  %v8077_v50 = vpop.eup %8076 }
0x10ba   : > { %v9197_v37 = vpop.eup %8078  ;;  %v5772_v51 = vsel %vm2425_vm6, %v8077_v50, 0.0 }
0x10bb   : > { %v9200_v20 = vpop.eup %8080  ;;  %v5775_v40 = vsel %vm2425_vm6, %v9197_v37, 0.0 }
0x10bc   : > { %v9204_v18 = vpop.eup %8082  ;;  %v5778_v60 = vsel %vm2425_vm6, %v9200_v20, 0.0 }
0x10bd   : > { %v9208_v22 = vpop.eup %8084  ;;  %v5781_v39 = vsel %vm2425_vm6, %v9204_v18, 0.0 }
0x10be   : > { %v5784_v34 = vsel %vm2425_vm6, %v9208_v22, 0.0 }
0x10c4   : > { %5764 = vadd.xlane.f32.xlu0 %v5763_v3 }
0x10c6   : > { %5767 = vadd.xlane.f32.xlu1 %v5766_v56 }
0x10c8   : > { %5770 = vadd.xlane.f32.xlu0 %v5769_v19 }
0x10ca   : > { %5773 = vadd.xlane.f32.xlu1 %v5772_v51 }
0x10cc   : > { %5776 = vadd.xlane.f32.xlu0 %v5775_v40 }
0x10ce   : > { %5779 = vadd.xlane.f32.xlu1 %v5778_v60 }
0x10d0   : > { %5782 = vadd.xlane.f32.xlu0 %v5781_v39 }
0x10d2   : > { %5785 = vadd.xlane.f32.xlu1 %v5784_v34 }
0x10fd   : > { %6343 = vxpose.xlu0.c.b16.start.end [1/1] (short) (narrow) %v6241_v13, 16 }
0x10ff   : > { %6359 = vxpose.xlu1.c.b16.start.end [1/1] (short) (narrow) %v6245_v28, 16 }
0x1115   : > { %v6255_v0 = vpop.trf.xlu0 }
0x1117   : > { %v6271_v44 = vpop.trf.xlu1 }
0x1119   : > { %v6287_v52 = vpop.trf.xlu0 }
0x111b   : > { %v6303_v26 = vpop.trf.xlu1 }
0x111d   : > { %v6319_v57 = vpop.trf.xlu0 }
0x111e   : > { %v6375_v27 = vcombine.low %v6255_v0, %v6319_v57 }
0x111f   : > { %v6335_v38 = vpop.trf.xlu1 }
0x1120   : > { %v6400_v9 = vcombine.low %v6271_v44, %v6335_v38  ;;  %v6382_v41 = vrot.slane %v6375_v27, %v8363_v54 }
0x1122   : > { %v6407_v12 = vrot.slane %v6400_v9, %v8363_v54 }
0x1151   : > { %v5765_v48 = vpop.xlane.xlu0 %5764 }
0x1152   : > { %8086 = vrcp.f32 %v5765_v48 }
0x1153   : > { %v5768_v35 = vpop.xlane.xlu1 %5767 }
0x1154   : > { %8088 = vrcp.f32 %v5768_v35 }
0x1155   : > { %v5771_v6 = vpop.xlane.xlu0 %5770 }
0x1156   : > { %8090 = vrcp.f32 %v5771_v6 }
0x1157   : > { %v5774_v10 = vpop.xlane.xlu1 %5773 }
0x1158   : > { %8092 = vrcp.f32 %v5774_v10 }
0x1159   : > { %v5777_v53 = vpop.xlane.xlu0 %5776 }
0x115b   : > { %v5780_v58 = vpop.xlane.xlu1 %5779 }
0x115c   : > { %v8087_v46 = vpop.eup %8086  ;;  %8094 = vrcp.f32 %v5780_v58 }
0x115d   : > { %8096 = vrcp.f32 %v5777_v53  ;;  %v5783_v45 = vpop.xlane.xlu0 %5782  ;;  %v5795_v14 = vmul.f32 %v8087_v46, %v8071_v2 }
0x115e   : > { %v8089_v42 = vpop.eup %8088  ;;  %8098 = vrcp.f32 %v5783_v45 }
0x115f   : > { %v5786_v13 = vpop.xlane.xlu1 %5785  ;;  %v5796_v31 = vmul.f32 %v8089_v42, %v8073_v63 }
0x1160   : > { %v8091_v23 = vpop.eup %8090  ;;  %8100 = vrcp.f32 %v5786_v13 }
0x1161   : > { %v5803_v55 = vpack.c.bf16 %v5796_v31, %v5795_v14  ;;  %v5797_v21 = vmul.f32 %v8091_v23, %v8075_v4 }
0x1162   : > { %v8093_v25 = vpop.eup %8092 }
0x1163   : > { %v6351_v28 = vpop.trf.xlu0  ;;  %v6441_v11 = vsel %vm2425_vm6, %v5803_v55, 0  ;;  %v5798_v49 = vmul.f32 %v8093_v25, %v8077_v50 }
0x1164   : > { %v6383_v47 = vcombine.low %v6287_v52, %v6351_v28  ;;  %7887 = vmatpush3.bf16.xpose.msra.mxu1 %v6441_v11 }
0x1165   : > { %v6367_v30 = vpop.trf.xlu1  ;;  %v5804_v32 = vpack.c.bf16 %v5798_v49, %v5797_v21  ;;  %7898 = vmatprep.subr.bf16.mxu1 %v8118_v1 }
0x1166   : > { %v8095_v7 = vpop.eup %8094  ;;  %v6390_v43 = vrot.slane %v6383_v47, %v8363_v54  ;;  %v6408_v16 = vcombine.low %v6303_v26, %v6367_v30 }
0x1167   : > { %v8097_v17 = vpop.eup %8096  ;;  %v6487_v5 = vsel %vm2425_vm6, %v5804_v32, 0  ;;  %v5800_v33 = vmul.f32 %v8095_v7, %v9200_v20 }
0x1168   : > { %v6391_v24 = vcombine.low %v6382_v41, %v6390_v43  ;;  %v6415_v15 = vrot.slane %v6408_v16, %v8363_v54  ;;  %7893 = vmatpush3.bf16.xpose.msra.mxu0 %v6487_v5  ;;  %v8099_v29 = vpop.eup %8098  ;;  %v5799_v3 = vmul.f32 %v8097_v17, %v9197_v37 }
0x1169   : > { %7904 = vmatprep.subr.bf16.mxu0 %v8118_v1  ;;  %v5801_v19 = vmul.f32 %v8099_v29, %v9204_v18 }
0x116a   : > { %v8101_v2 = vpop.eup %8100  ;;  %v6398_v36 = vrot.slane %v6391_v24, %v8366_v61  ;;  %v6416_v63 = vcombine.low %v6407_v12, %v6415_v15  ;;  %v5805_v50 = vpack.c.bf16 %v5800_v33, %v5799_v3 }
0x116b   : > { %v5802_v4 = vmul.f32 %v8101_v2, %v9208_v22 }
0x116c   : > { %v6423_v56 = vrot.slane %v6416_v63, %v8366_v61  ;;  %v6428_v51 = vshrl.u32 %v6398_v36, 16  ;;  %v6533_v34 = vsel %vm2425_vm6, %v5805_v50, 0  ;;  %v6399_v37 = vcombine.high %v6398_v36, %v8125_v8 }
0x116d   : > { %v5806_v20 = vpack.c.bf16 %v5802_v4, %v5801_v19 }
0x116e   : > { %v6427_v40 = vpack.i.b16 %v6423_v56, %v6398_v36  ;;  %v6429_v60 = vshrl.u32 %v6423_v56, 16  ;;  %v6424_v39 = vcombine.high %v6423_v56, %v8125_v8  ;;  %v6434_v44 = vshrl.u32 %v6399_v37, 16 }
0x116f   : > { %v6579_v18 = vsel %vm2425_vm6, %v5806_v20, 0 }
0x1170   : > { %7889 = vmatmul.mubr.msk.bf16.vlgmr.msra.gmra.mrb[48].mxu1 %vm2425_vm6, %v6427_v40  ;;  %v6430_v0 = vpack.i.b16 %v6429_v60, %v6428_v51  ;;  %v6435_v22 = vshrl.u32 %v6424_v39, 16  ;;  %v6433_v52 = vpack.i.b16 %v6424_v39, %v6399_v37 }
0x1171   : > { %7899 = vmatpush3.bf16.xpose.msra.mxu1 %v6533_v34  ;;  %7900 = vmatprep.mubr.msk.bf16.mxu1 %vm8119_vm0, %v8118_v1 }
0x1172   : > { %7895 = vmatmul.mubr.msk.bf16.vlgmr.msra.gmra.mrb[40].mxu0 %vm2425_vm6, %v6430_v0  ;;  %7910 = vmatprep.subr.bf16.mxu1 %v8118_v1  ;;  %v6436_v26 = vpack.i.b16 %v6435_v22, %v6434_v44 }
0x1173   : > { %7905 = vmatpush3.bf16.xpose.msra.mxu0 %v6579_v18  ;;  %7906 = vmatprep.mubr.msk.bf16.mxu0 %vm8119_vm0, %v8118_v1 }
0x1174   : > { %7918 = vmatprep.subr.bf16.mxu0 %v8118_v1 }
0x1178   : > { %7901 = vmatmul.mubr.msk.bf16.vlgmr.msra.gmra.mrb[52].mxu1 %vm2425_vm6, %v6433_v52 }
0x1179   : > { %7914 = vmatprep.mubr.msk.bf16.mxu1 %vm8119_vm0, %v8118_v1 }
0x117a   : > { %7907 = vmatmul.mubr.msk.bf16.vlgmr.msra.gmra.mrb[44].mxu0 %vm2425_vm6, %v6436_v26 }
0x117b   : > { %7922 = vmatprep.mubr.msk.bf16.mxu0 %vm8119_vm0, %v8118_v1 }
0x1243   : > { %v6477_v8 = vpop.f32.mrb[48].mxu1 }
0x1244   : > { %6621 = vxpose.xlu0.b32.start.end [1/1] (short) (narrow) %v6477_v8, 16  ;;  %v7890_v57 = vpop.f32.mrb[49].mxu1 }
0x1245   : > { %v6480_v38 = vpop.f32.mrb[50].mxu1  ;;  %v6523_v48 = vpop.f32.mrb[40].mxu0 }
0x1246   : > { %6653 = vxpose.xlu1.b32.start.end [1/1] (short) (narrow) %v6523_v48, 16  ;;  %v7891_v35 = vpop.f32.mrb[51].mxu1  ;;  %v7896_v6 = vpop.f32.mrb[41].mxu0 }
0x1247   : > { %v6526_v10 = vpop.f32.mrb[42].mxu0 }
0x1248   : > { %v7897_v53 = vpop.f32.mrb[43].mxu0 }
0x124b   : > { %v6569_v58 = vpop.f32.mrb[52].mxu1 }
0x124c   : > { %6685 = vxpose.xlu0.b32.start.end [1/1] (short) (narrow) %v6569_v58, 16  ;;  %v7902_v46 = vpop.f32.mrb[53].mxu1 }
0x124d   : > { %v6572_v45 = vpop.f32.mrb[54].mxu1  ;;  %v6615_v42 = vpop.f32.mrb[44].mxu0 }
0x124e   : > { %v7903_v13 = vpop.f32.mrb[55].mxu1  ;;  %v7908_v14 = vpop.f32.mrb[45].mxu0 }
0x124f   : > { %v6618_v31 = vpop.f32.mrb[46].mxu0 }
0x1250   : > { %v7909_v23 = vpop.f32.mrb[47].mxu0 }
0x1251   : > { %6717 = vxpose.xlu0.b32.start.end [1/1] (short) (narrow) %v6615_v42, 16  ;;  %v8020_v23 = vld [vmem:[%s9386_s9 + $0x10] sm:$0xff]  }
0x1252   : > { %7911 = vmatpush3.bf16.msra.mxu1 %v8020_v23 }
0x1253   : > { %7912 = vmatprep.subr.bf16.mxu1 %v8118_v1 }
0x12c4   : > { %v6637_v55 = vpop.trf.xlu0 }
0x12c6   : > { %v6669_v11 = vpop.trf.xlu1 }
0x12c8   : > { %v6638_v25 = vpop.trf.xlu0 }
0x12ca   : > { %v6670_v16 = vpop.trf.xlu1 }
0x12cc   : > { %v6701_v27 = vpop.trf.xlu0 }
0x12cd   : > { %v6749_v21 = vcombine.low %v6637_v55, %v6701_v27  ;;  %v6750_v49 = vcombine.high %v6637_v55, %v6701_v27 }
0x12cf   : > { %v6757_v32 = vrot.slane %v6749_v21, %v8363_v54  ;;  %v6764_v7 = vrot.slane %v6750_v49, %v8363_v54 }
0x12d0   : > { %v6702_v28 = vpop.trf.xlu0 }
0x12d1   : > { %v6817_v17 = vcombine.low %v6638_v25, %v6702_v28  ;;  %v6818_v5 = vcombine.high %v6638_v25, %v6702_v28 }
0x12d3   : > { %v6825_v50 = vrot.slane %v6817_v17, %v8363_v54  ;;  %v6832_v19 = vrot.slane %v6818_v5, %v8363_v54 }
0x12d4   : > { %v6733_v9 = vpop.trf.xlu0 }
0x12d5   : > { %v6765_v47 = vcombine.low %v6669_v11, %v6733_v9  ;;  %v6766_v30 = vcombine.high %v6669_v11, %v6733_v9 }
0x12d7   : > { %v6773_v41 = vrot.slane %v6765_v47, %v8363_v54  ;;  %v6780_v43 = vrot.slane %v6766_v30, %v8363_v54 }
0x12d8   : > { %v6734_v12 = vpop.trf.xlu0 }
0x12d9   : > { %v6781_v24 = vcombine.low %v6757_v32, %v6773_v41  ;;  %v6782_v15 = vcombine.high %v6757_v32, %v6773_v41  ;;  %v6797_v33 = vcombine.low %v6764_v7, %v6780_v43  ;;  %v6798_v29 = vcombine.high %v6764_v7, %v6780_v43 }
0x12da   : > { %v6833_v2 = vcombine.low %v6670_v16, %v6734_v12  ;;  %v6834_v36 = vcombine.high %v6670_v16, %v6734_v12  ;;  %v8021_v16 = vld [vmem:[%s9386_s9 + $0x18] sm:$0xff]  }
0x12db   : > { %v6789_v63 = vrot.slane %v6781_v24, %v8366_v61  ;;  %v6796_v3 = vrot.slane %v6782_v15, %v8366_v61  ;;  %v6805_v4 = vrot.slane %v6797_v33, %v8366_v61  ;;  %v6812_v56 = vrot.slane %v6798_v29, %v8366_v61  ;;  %7913 = vmatpush3.bf16.msra.mxu1 %v8021_v16 }
0x12dc   : > { %v6841_v51 = vrot.slane %v6833_v2, %v8363_v54  ;;  %v6848_v40 = vrot.slane %v6834_v36, %v8363_v54  ;;  %7926 = vmatprep.subr.bf16.mxu1 %v8118_v1 }
0x12dd   : > { %v6885_v60 = vcombine.low %v6789_v63, %v6796_v3  ;;  %v7612_v20 = vcombine.high %v6789_v63, %v6796_v3  ;;  %v6901_v39 = vcombine.low %v6805_v4, %v6812_v56  ;;  %v7613_v34 = vcombine.high %v6805_v4, %v6812_v56 }
0x12de   : > { %v6849_v0 = vcombine.low %v6825_v50, %v6841_v51  ;;  %v6850_v37 = vcombine.high %v6825_v50, %v6841_v51  ;;  %v6865_v18 = vcombine.low %v6832_v19, %v6848_v40  ;;  %v6866_v22 = vcombine.high %v6832_v19, %v6848_v40 }
0x12df   : > { %v6892_v44 = vrot.slane %v6885_v60, %v8363_v54  ;;  %v6900_v52 = vrot.slane %v7612_v20, %v8363_v54  ;;  %v6908_v26 = vrot.slane %v6901_v39, %v8363_v54  ;;  %v6916_v8 = vrot.slane %v7613_v34, %v8363_v54 }
0x12e0   : > { %v6857_v57 = vrot.slane %v6849_v0, %v8366_v61  ;;  %v6864_v38 = vrot.slane %v6850_v37, %v8366_v61  ;;  %v6873_v48 = vrot.slane %v6865_v18, %v8366_v61  ;;  %v6880_v35 = vrot.slane %v6866_v22, %v8366_v61 }
0x12e1   : > { %v6918_v6 = vcombine.high %v6892_v44, %v6900_v52  ;;  %v6934_v10 = vcombine.high %v6908_v26, %v6916_v8  ;;  %v6917_v53 = vcombine.low %v6892_v44, %v6900_v52  ;;  %v6933_v58 = vcombine.low %v6908_v26, %v6916_v8  ;;  %v7616_v44 = vld [vmem:[%s9387_s10 + $0x1] ss:$0 sm:$0xff] }
0x12e2   : > { %v6953_v46 = vcombine.low %v6857_v57, %v6864_v38  ;;  %v7614_v45 = vcombine.high %v6857_v57, %v6864_v38  ;;  %v6969_v42 = vcombine.low %v6873_v48, %v6880_v35  ;;  %v7615_v13 = vcombine.high %v6873_v48, %v6880_v35 }
0x12e3   : > { %v6925_v14 = vrot.slane %v6917_v53, %v8366_v61  ;;  %v6941_v31 = vrot.slane %v6933_v58, %v8366_v61  ;;  %v6932_v11 = vrot.slane %v6918_v6, %v8366_v61  ;;  %v6948_v21 = vrot.slane %v6934_v10, %v8366_v61 }
0x12e4   : > { %v6960_v55 = vrot.slane %v6953_v46, %v8363_v54  ;;  %v6968_v25 = vrot.slane %v7614_v45, %v8363_v54  ;;  %v6976_v27 = vrot.slane %v6969_v42, %v8363_v54  ;;  %v6984_v28 = vrot.slane %v7615_v13, %v8363_v54 }
0x12e5   : > { %v6949_v49 = vcombine.low %v6925_v14, %v6941_v31  ;;  %v6951_v17 = vcombine.low %v6932_v11, %v6948_v21  ;;  %v6950_v12 = vcombine.high %v6925_v14, %v6941_v31 }
0x12e6   : > { %v6986_v9 = vcombine.high %v6960_v55, %v6968_v25  ;;  %v7002_v47 = vcombine.high %v6976_v27, %v6984_v28  ;;  %v6985_v30 = vcombine.low %v6960_v55, %v6968_v25  ;;  %v7001_v32 = vcombine.low %v6976_v27, %v6984_v28  ;;  %v8023_v25 = vld [vmem:[%s9388_s11 + $0x18] sm:$0xff]   ;;  %v8024_v27 = vld [vmem:[%s9390_s13 + $0x20] sm:$0xff]   ;;  %v8025_v28 = vld [vmem:[%s9390_s13 + $0x28] sm:$0xff]  }
0x12e8   : > { %v7000_v7 = vrot.slane %v6986_v9, %v8366_v61  ;;  %v7016_v41 = vrot.slane %v7002_v47, %v8366_v61  ;;  %v6993_v43 = vrot.slane %v6985_v30, %v8366_v61  ;;  %v7009_v54 = vrot.slane %v7001_v32, %v8366_v61 }
0x12e9   : > { %v6952_v61 = vcombine.high %v6932_v11, %v6948_v21 }
0x12ea   : > { %v7019_v5 = vcombine.low %v7000_v7, %v7016_v41  ;;  %v7018_v24 = vcombine.high %v6993_v43, %v7009_v54  ;;  %v7017_v15 = vcombine.low %v6993_v43, %v7009_v54  ;;  %v7020_v2 = vcombine.high %v7000_v7, %v7016_v41  ;;  %v7620_v41 = vld [vmem:[%s9392_s15 + $0x1] ss:$0 sm:$0xff] }
0x12ec   : > { %v7985_v33 = vpack.i.bf16 %v7019_v5, %v6951_v17  ;;  %v7980_v29 = vpack.i.bf16 %v7018_v24, %v6950_v12  ;;  %v7990_v36 = vpack.i.bf16 %v7020_v2, %v6952_v61  ;;  %v7621_v17 = vld [vmem:[%s9393_s16 + $0x1] ss:$0 sm:$0xff] }
0x12ed   : > { %v7622_v2 = vld [vmem:[%s9389_s12 + $0x1] ss:$0 sm:$0xff] }
0x12ee   : > { %7986 = vrot.lane.b32.xlu0 %v7985_v33, %s9428_s25  ;;  %7981 = vrot.lane.b32.xlu1 %v7980_v29, %s9429_s22  ;;  %v8026_v33 = vld [vmem:[%s9390_s13 + $0x30] sm:$0xff]   ;;  %v8027_v29 = vld [vmem:[%s9390_s13 + $0x38] sm:$0xff]   ;;  %s676_s22 = scalar_lea.vmem %s9398_s21, %s8263_s30 }
0x12f2   : > { %7991 = vrot.lane.b32.xlu1 %v7990_v36, %s9430_s23 }
0x1360   : > { %v7987_v63 = vpop.permute.xlu0 %7986  ;;  %v7982_v3 = vpop.permute.xlu1 %7981 }
0x1361   : > { %v7984_v4 = vunpack.i.h.bf16 %v7982_v3  ;;  %v7983_v56 = vunpack.i.l.bf16 %v7982_v3  ;;  %v7989_v50 = vunpack.i.h.bf16 %v7987_v63  ;;  %v7988_v19 = vunpack.i.l.bf16 %v7987_v63 }
0x1363   : > { %v7045_v51 = vsel %vm2223_vm4, %v6949_v49, %v7983_v56  ;;  %v7046_v40 = vsel %vm2223_vm4, %v7017_v15, %v7984_v4 }
0x1364   : > { %v7992_v60 = vpop.permute.xlu1 %7991  ;;  %v7047_v34 = vsel %vm2425_vm6, %v7045_v51, %v7988_v19  ;;  %v7048_v0 = vsel %vm2425_vm6, %v7046_v40, %v7989_v50  ;;  %v7626_v40 = vld [vmem:[%s9391_s14 + $0x1] ss:$0 sm:$0xff] }
0x1365   : > { %v7994_v20 = vunpack.i.h.bf16 %v7992_v60  ;;  %v7993_v39 = vunpack.i.l.bf16 %v7992_v60 }
0x1367   : > { %v7049_v37 = vsel %vm3760_vm8, %v7047_v34, %v7993_v39  ;;  %v7050_v18 = vsel %vm3760_vm8, %v7048_v0, %v7994_v20 }
0x1368   : > { %v7051_v22 = vpack.c.bf16 %v7050_v18, %v7049_v37 }
0x136a   : > { %7915 = vmatmul.mubr.msk.bf16.vlgmr.msra.gmra.mrb[56].mxu1 %vm834_vm2, %v7051_v22 }
0x136b   : > { %7934 = vmatprep.mubr.msk.bf16.mxu1 %vm8119_vm0, %v8118_v1  ;;  %7927 = vmatpush3.bf16.msra.mxu1 %v8024_v27 }
0x136c   : > { %7928 = vmatprep.subr.bf16.mxu1 %v8118_v1 }
0x136f   : > { %7929 = vmatpush3.bf16.msra.mxu1 %v8025_v28 }
0x1370   : > { %7930 = vmatprep.subr.bf16.mxu1 %v8118_v1 }
0x1373   : > { %7931 = vmatpush3.bf16.msra.mxu1 %v8026_v33 }
0x1374   : > { %7932 = vmatprep.subr.bf16.mxu1 %v8118_v1 }
0x1377   : > { %7933 = vmatpush3.bf16.msra.mxu1 %v8027_v29 }
0x143d   : > { %v7107_v52 = vpop.f32.mrb[56].mxu1 }
0x143e   : > { %v7108_v26 = vadd.f32 %v7616_v44, %v7107_v52  ;;  %v7916_v8 = vpop.f32.mrb[57].mxu1 }
0x143f   : > { %v7110_v57 = vpop.f32.mrb[58].mxu1 }
0x1440   : > { %v7114_v38 = vadd.f32 %v7108_v26, %v8854_v59  ;;  %v7111_v48 = vadd.f32 %v7616_v44, %v7110_v57  ;;  %v7917_v35 = vpop.f32.mrb[59].mxu1 }
0x1442   : > { %v7115_v6 = vadd.f32 %v7111_v48, %v8857_v62  ;;  %v7116_v10 = vsel %vm834_vm2, %v7114_v38, 0.0  ;;  %v8022_v62 = vld [vmem:[%s9388_s11 + $0x10] sm:$0xff]  }
0x1443   : > { %7117 = vadd.xlane.f32.xlu1 %v7116_v10  ;;  %7919 = vmatpush3.bf16.msra.mxu0 %v8022_v62  ;;  %v7632_v62 = vld [vmem:[%s9394_s17 + $0x1] ss:$0 sm:$0xff] }
0x1444   : > { %v7119_v53 = vsel %vm834_vm2, %v7115_v6, 0.0  ;;  %7920 = vmatprep.subr.bf16.mxu0 %v8118_v1 }
0x1445   : > { %7120 = vadd.xlane.f32.xlu0 %v7119_v53 }
0x1447   : > { %7921 = vmatpush3.bf16.msra.mxu0 %v8023_v25 }
0x1448   : > { %7938 = vmatprep.subr.bf16.mxu0 %v8118_v1 }
0x14d0   : > { %v7118_v58 = vpop.xlane.xlu1 %7117 }
0x14d1   : > { %v7122_v46 = vmul.f32 0.03125, %v7118_v58 }
0x14d2   : > { %v7121_v45 = vpop.xlane.xlu0 %7120 }
0x14d3   : > { %v7124_v42 = vsub.f32 %v7114_v38, %v7122_v46  ;;  %v7123_v13 = vmul.f32 0.03125, %v7121_v45  ;;  %v8028_v46 = vld [vmem:[%s9396_s19] sm:$0xff]   ;;  %v8029_v45 = vld [vmem:[%s9396_s19 + $0x8] sm:$0xff]  }
0x14d5   : > { %v7125_v14 = vsub.f32 %v7115_v6, %v7123_v13  ;;  %v7126_v31 = vmul.f32 %v7124_v42, %v7124_v42 }
0x14d7   : > { %v7128_v23 = vsel %vm834_vm2, %v7126_v31, 0.0  ;;  %v7127_v59 = vmul.f32 %v7125_v14, %v7125_v14 }
0x14d8   : > { %7129 = vadd.xlane.f32.xlu1 %v7128_v23 }
0x14d9   : > { %v7131_v55 = vsel %vm834_vm2, %v7127_v59, 0.0 }
0x14dc   : > { %7132 = vadd.xlane.f32.xlu1 %v7131_v55 }
0x1565   : > { %v7130_v11 = vpop.xlane.xlu1 %7129 }
0x1566   : > { %v7134_v21 = vmul.f32 0.03125, %v7130_v11 }
0x1568   : > { %v7136_v49 = vadd.f32 1e-05, %v7134_v21 }
0x1569   : > { %v7133_v9 = vpop.xlane.xlu1 %7132 }
0x156a   : > { %8102 = vrsqrt.f32 %v7136_v49  ;;  %v7135_v47 = vmul.f32 0.03125, %v7133_v9 }
0x156c   : > { %v7137_v30 = vadd.f32 1e-05, %v7135_v47 }
0x156e   : > { %8104 = vrsqrt.f32 %v7137_v30  ;;  %v7634_v30 = vld [vmem:[%s9397_s20] ss:$0 sm:$0xff] }
0x1574   : > { %v8103_v32 = vpop.eup %8102 }
0x1575   : > { %v7140_v7 = vmul.f32 %v8103_v32, %v7124_v42 }
0x1577   : > { %v7148_v54 = vmul.f32 %v7620_v41, %v7140_v7 }
0x1578   : > { %v8105_v43 = vpop.eup %8104 }
0x1579   : > { %v7141_v16 = vmul.f32 %v8105_v43, %v7125_v14  ;;  %v7156_v12 = vadd.f32 %v7621_v17, %v7148_v54 }
0x157b   : > { %v7149_v5 = vmul.f32 %v7620_v41, %v7141_v16 }
0x157d   : > { %v7157_v24 = vadd.f32 %v7621_v17, %v7149_v5 }
0x157f   : > { %v7158_v15 = vpack.c.bf16 %v7157_v24, %v7156_v12 }
0x1581   : > { %7923 = vmatmul.mubr.msk.bf16.vlgmr.msra.gmra.mrb[48].mxu0 %vm834_vm2, %v7158_v15 }
0x1582   : > { %7942 = vmatprep.mubr.msk.bf16.mxu0 %vm8119_vm0, %v8118_v1  ;;  %7939 = vmatpush3.bf16.msra.mxu0 %v8028_v46 }
0x1583   : > { %7940 = vmatprep.subr.bf16.mxu0 %v8118_v1  ;;  %v7633_v1 = vld [vmem:[%s9395_s18 + $0x1] ss:$0 sm:$0xff] }
0x1586   : > { %7941 = vmatpush3.bf16.msra.mxu0 %v8029_v45 }
0x1654   : > { %v7214_v61 = vpop.f32.mrb[48].mxu0 }
0x1655   : > { %v7215_v36 = vadd.f32 %v7622_v2, %v7214_v61  ;;  %v7924_v63 = vpop.f32.mrb[49].mxu0 }
0x1656   : > { %v7217_v3 = vpop.f32.mrb[50].mxu0 }
0x1657   : > { %v7218_v4 = vadd.f32 %v7622_v2, %v7217_v3  ;;  %v7925_v56 = vpop.f32.mrb[51].mxu0  ;;  %v7221_v50 = vmax.f32 %v7215_v36, 0.0 }
0x1659   : > { %v7222_v19 = vmax.f32 %v7218_v4, 0.0 }
0x165b   : > { %v7223_v51 = vpack.c.bf16 %v7222_v19, %v7221_v50 }
0x165d   : > { %7935 = vmatmul.mubr.msk.bf16.vlgmr.msra.gmra.mrb[60].mxu1 %vm3967_vm9, %v7223_v51 }
0x1730   : > { %v7291_v60 = vpop.f32.mrb[60].mxu1 }
0x1731   : > { %v7292_v20 = vadd.f32 %v7626_v40, %v7291_v60  ;;  %v7936_v39 = vpop.f32.mrb[61].mxu1 }
0x1732   : > { %v7294_v34 = vpop.f32.mrb[62].mxu1 }
0x1733   : > { %v7298_v0 = vadd.f32 %v7292_v20, %v7156_v12  ;;  %v7295_v37 = vadd.f32 %v7626_v40, %v7294_v34  ;;  %v7937_v18 = vpop.f32.mrb[63].mxu1 }
0x1735   : > { %v7299_v22 = vadd.f32 %v7295_v37, %v7157_v24  ;;  %v7300_v44 = vsel %vm834_vm2, %v7298_v0, 0.0 }
0x1736   : > { %7301 = vadd.xlane.f32.xlu0 %v7300_v44 }
0x1737   : > { %v7303_v52 = vsel %vm834_vm2, %v7299_v22, 0.0 }
0x1738   : > { %7304 = vadd.xlane.f32.xlu1 %v7303_v52 }
0x17c3   : > { %v7302_v26 = vpop.xlane.xlu0 %7301 }
0x17c4   : > { %v7306_v8 = vmul.f32 0.03125, %v7302_v26 }
0x17c5   : > { %v7305_v57 = vpop.xlane.xlu1 %7304 }
0x17c6   : > { %v7308_v38 = vsub.f32 %v7298_v0, %v7306_v8  ;;  %v7307_v48 = vmul.f32 0.03125, %v7305_v57 }
0x17c8   : > { %v7309_v35 = vsub.f32 %v7299_v22, %v7307_v48  ;;  %v7310_v6 = vmul.f32 %v7308_v38, %v7308_v38 }
0x17ca   : > { %v7312_v10 = vsel %vm834_vm2, %v7310_v6, 0.0  ;;  %v7311_v53 = vmul.f32 %v7309_v35, %v7309_v35 }
0x17cb   : > { %7313 = vadd.xlane.f32.xlu0 %v7312_v10 }
0x17cc   : > { %v7315_v58 = vsel %vm834_vm2, %v7311_v53, 0.0 }
0x17cd   : > { %7316 = vadd.xlane.f32.xlu1 %v7315_v58 }
0x1858   : > { %v7314_v42 = vpop.xlane.xlu0 %7313 }
0x1859   : > { %v7318_v13 = vmul.f32 0.03125, %v7314_v42 }
0x185a   : > { %v7317_v14 = vpop.xlane.xlu1 %7316 }
0x185b   : > { %v7320_v31 = vadd.f32 1e-05, %v7318_v13  ;;  %v7319_v23 = vmul.f32 0.03125, %v7317_v14 }
0x185d   : > { %8106 = vrsqrt.f32 %v7320_v31  ;;  %v7321_v59 = vadd.f32 1e-05, %v7319_v23 }
0x185f   : > { %8108 = vrsqrt.f32 %v7321_v59 }
0x1867   : > { %v8107_v55 = vpop.eup %8106 }
0x1868   : > { %v7324_v25 = vmul.f32 %v8107_v55, %v7308_v38 }
0x1869   : > { %v8109_v27 = vpop.eup %8108 }
0x186a   : > { %v7332_v28 = vmul.f32 %v7632_v62, %v7324_v25  ;;  %v7325_v11 = vmul.f32 %v8109_v27, %v7309_v35 }
0x186c   : > { %v7333_v21 = vmul.f32 %v7632_v62, %v7325_v11  ;;  %v7340_v49 = vadd.f32 %v7633_v1, %v7332_v28 }
0x186e   : > { %v7341_v9 = vadd.f32 %v7633_v1, %v7333_v21 }
0x1870   : > { %v7342_v47 = vpack.c.bf16 %v7341_v9, %v7340_v49 }
0x1872   : > { %7943 = vmatmul.mubr.msk.bf16.vlgmr.msra.gmra.mrb[52].mxu0 %vm834_vm2, %v7342_v47 }
0x1945   : > { %v7403_v32 = vpop.f32.mrb[52].mxu0 }
0x1946   : > { %v7404_v7 = vadd.f32 %v7634_v30, %v7403_v32  ;;  %v7944_v41 = vpop.f32.mrb[53].mxu0 }
0x1947   : > { %v7406_v43 = vpop.f32.mrb[54].mxu0 }
0x1948   : > { %7410 = vst [vmem:[%s676_s22] sm:$0xff] %v7404_v7  ;;  %v7407_v54 = vadd.f32 %v7634_v30, %v7406_v43  ;;  %v7945_v16 = vpop.f32.mrb[55].mxu0 }
0x194a   : > { %7411 = vst [vmem:[%s676_s22 + $0x8] sm:$0xff] %v7407_v54 }
0x194b PF: > { %s31_s2 = sadd.s32 1, %s8116_s2  }
0x194c   : > { %p28_p4 = scmp.ge.s32.totalorder %s31_s2, 4  }
0x194e   :  { %30 = sbr.rel (!%p28_p4) target bundleno = 7 (0x7), region = 153 }

</bundles_post_ra>
